<compile_context>
chip_gen: v6e
topology: v6e:2x2x1
jax: 0.10.0
libtpu: 0.0.40
codegen_flags: <defaults>
</compile_context>

<pallas_src>
import jax
import jax.numpy as jnp
from jax.experimental import pallas as pl
from jax.experimental.pallas import tpu as pltpu

_HIGHEST = jax.lax.Precision.HIGHEST


def _se_kernel(x_ref, p1_ref, w2e_ref, o_ref):
    # x_ref:   (bm, C*L)  lane-dense block of flattened activations (native dtype)
    # p1_ref:  (C*L, H)   folded pooling + first Linear:  x_flat @ P1 == mean_L(x) @ W1^T
    # w2e_ref: (H, C*L)   folded second Linear + broadcast over L
    # o_ref:   (bm, C*L)
    x = x_ref[...]  # keep native dtype; no full-size f32 copy of x

    # squeeze + first excite matmul, folded into one lane-dense contraction
    h = jnp.maximum(
        jnp.dot(x, p1_ref[...], precision=_HIGHEST,
                preferred_element_type=jnp.float32), 0.0)            # (bm, H) f32

    # second excite matmul + broadcast over L, folded; sigmoid on the EUP slot
    s_flat = jax.nn.sigmoid(
        jnp.dot(h, w2e_ref[...], precision=_HIGHEST,
                preferred_element_type=jnp.float32))                 # (bm, C*L) f32

    # Cast the scale back to x.dtype immediately, then one lane-dense store.
    o_ref[...] = (x * s_flat.astype(x.dtype)).astype(o_ref.dtype)


def _round_up(v, m):
    return pl.cdiv(v, m) * m


def squeeze_excite_block(x, w1, w2):
    """x: (N, C, L); w1: (H, C); w2: (C, H)  (PyTorch nn.Linear weight layout)."""
    n, c, l = x.shape
    h_dim = w1.shape[0]
    assert w1.shape == (h_dim, c) and w2.shape == (c, h_dim)
    cl = c * l
    itemsize = jnp.dtype(x.dtype).itemsize

    # ---- folded constants (tiny: C*L*H elements each, f32) -----------------
    # P1[c*L + j, hh]  = W1[hh, c] / L    ->  x_flat @ P1 == mean_L(x) @ W1^T
    p1 = jnp.repeat(w1.astype(jnp.float32).T, l, axis=0) * (1.0 / l)   # (C*L, H)
    # W2E[hh, c*L + j] = W2[c, hh]        ->  sigmoid(h @ W2E) == s broadcast over L
    w2e = jnp.repeat(w2.astype(jnp.float32).T, l, axis=1)              # (H, C*L)

    # ---- generation-aware tile sizing --------------------------------------
    try:
        vmem_cap = int(pltpu.get_tpu_info().vmem_capacity_bytes)       # 64 MiB v7x, 128 MiB v5e/v6e
    except Exception:
        vmem_cap = 64 * 1024 * 1024                                    # conservative fallback
    vmem_limit = max(32 * 1024 * 1024,
                     min(vmem_cap * 3 // 4, 96 * 1024 * 1024))

    const_bytes = (p1.size + w2e.size) * 4
    # Per-row VMEM cost: 2x in + 2x out double buffers in x.dtype, plus the
    # full-tile f32 s_flat intermediate and the x.dtype product transient.
    per_row_bytes = cl * (4 * itemsize + 2 * 4)
    budget = max(0, vmem_limit - 2 * const_bytes - (4 << 20))           # headroom

    # Sublane packing: 8 rows for 32-bit, 16 for 16-bit, 32 for 8-bit dtypes.
    row_align = 8 * max(1, 4 // itemsize)
    rows_fit = max(row_align, (budget // per_row_bytes) // row_align * row_align)

    # Pad the batch so the grid always has >= 2 steps (>= 4 when possible):
    # keeps DMA/compute pipelining and lets the parallel axis shard across
    # both v7x TensorCores even for small N.
    n_pad = max(_round_up(n, row_align), 2 * row_align)
    min_blocks = 4 if n_pad >= 4 * row_align else 2
    block_rows = min(rows_fit, n_pad // min_blocks)
    block_rows = max(row_align, block_rows // row_align * row_align)
    n_pad = _round_up(n_pad, block_rows)
    grid = (n_pad // block_rows,)

    # Flatten (C, L) onto the lane axis: x_flat[n, ch*L + j] == x[n, ch, j].
    # (C*L % 128 == 0 gives fully unmasked stores; other sizes still work,
    #  just with masked partial stores on the lane tail.)
    x_flat = x.reshape(n, cl)
    if n_pad != n:
        x_flat = jnp.pad(x_flat, ((0, n_pad - n), (0, 0)))

    out_flat = pl.pallas_call(
        _se_kernel,
        out_shape=jax.ShapeDtypeStruct((n_pad, cl), x.dtype),
        grid=grid,
        in_specs=[
            # streamed activations: one lane-dense row-block per grid step
            pl.BlockSpec((block_rows, cl), lambda i: (i, 0)),
            # tiny folded constants: resident in VMEM across all grid steps
            pl.BlockSpec((cl, h_dim), lambda i: (0, 0)),
            pl.BlockSpec((h_dim, cl), lambda i: (0, 0)),
        ],
        out_specs=pl.BlockSpec((block_rows, cl), lambda i: (i, 0)),
        compiler_params=pltpu.CompilerParams(
            dimension_semantics=("parallel",),
            vmem_limit_bytes=vmem_limit,
        ),
    )(x_flat, p1, w2e)

    return out_flat[:n].reshape(n, c, l)


def _reference(x, w1, w2):
    y = jnp.mean(x.astype(jnp.float32), axis=-1)                       # (N, C)
    h = jnp.maximum(jnp.dot(y, w1.T.astype(jnp.float32),
                            precision=_HIGHEST), 0.0)                  # (N, H)
    s = jax.nn.sigmoid(jnp.dot(h, w2.T.astype(jnp.float32),
                               precision=_HIGHEST))                    # (N, C)
    return x * s[:, :, None].astype(x.dtype)


if __name__ == "__main__":
    # Small shapes consistent with the module: ni=64 channels, reduction=16.
    N, C, L = 2, 64, 32
    reduction = 16
    H = C // reduction

    key = jax.random.PRNGKey(0)
    kx, k1, k2 = jax.random.split(key, 3)
    x = jax.random.normal(kx, (N, C, L), dtype=jnp.float32)
    # PyTorch nn.Linear weight shapes: (out_features, in_features), no bias.
    w1 = jax.random.normal(k1, (H, C), dtype=jnp.float32) * 0.1
    w2 = jax.random.normal(k2, (C, H), dtype=jnp.float32) * 0.1

    out = jax.block_until_ready(squeeze_excite_block(x, w1, w2))
    ref = _reference(x, w1, w2)

    assert out.shape == (N, C, L)
    assert jnp.allclose(out, ref, atol=1e-4, rtol=1e-5), "mismatch vs reference"

    print("KERNEL_OK")
</pallas_src>

<mosaic_0001>
module attributes {stable_mosaic.version = 11 : i64} {
  func.func @_se_kernel(%arg0: i32, %arg1: memref<8x2048xf32, #tpu.memory_space<vmem>>, %arg2: memref<2048x4xf32, #tpu.memory_space<vmem>>, %arg3: memref<4x2048xf32, #tpu.memory_space<vmem>>, %arg4: memref<8x2048xf32, #tpu.memory_space<vmem>>) attributes {dimension_semantics = [#tpu.dimension_semantics<parallel>], iteration_bounds = array<i64: 2>, scalar_prefetch = 0 : i64, scratch_operands = 0 : i64, tpu.core_type = #tpu.core_type<tc>, window_params = [{transform_indices = @transform_0, window_bounds = array<i64: 8, 2048>}, {pipeline_mode = #tpu.pipeline_mode<synchronous>, transform_indices = @transform_1, window_bounds = array<i64: 2048, 4>}, {pipeline_mode = #tpu.pipeline_mode<synchronous>, transform_indices = @transform_2, window_bounds = array<i64: 4, 2048>}, {transform_indices = @transform_3, window_bounds = array<i64: 8, 2048>}]} {
    %c0 = arith.constant 0 : index
    %c0_0 = arith.constant 0 : index
    %0 = vector.load %arg1[%c0, %c0_0] : memref<8x2048xf32, #tpu.memory_space<vmem>>, vector<8x2048xf32>
    %c0_1 = arith.constant 0 : index
    %c0_2 = arith.constant 0 : index
    %1 = vector.load %arg2[%c0_1, %c0_2] : memref<2048x4xf32, #tpu.memory_space<vmem>>, vector<2048x4xf32>
    %cst = arith.constant dense<0.000000e+00> : vector<8x4xf32>
    %2 = tpu.matmul %0, %1, %cst {dimension_numbers = #tpu.dot_dimension_numbers<[1], [0], [0], [1], [0, 0, 1, 1], [], []>, precision = #tpu.contract_precision<fp32>} : vector<8x2048xf32>, vector<2048x4xf32>, vector<8x4xf32> -> vector<8x4xf32>
    %cst_3 = arith.constant 0.000000e+00 : f32
    %3 = vector.broadcast %cst_3 : f32 to vector<8x4xf32>
    %4 = arith.maximumf %2, %3 : vector<8x4xf32>
    %c0_4 = arith.constant 0 : index
    %c0_5 = arith.constant 0 : index
    %5 = vector.load %arg3[%c0_4, %c0_5] : memref<4x2048xf32, #tpu.memory_space<vmem>>, vector<4x2048xf32>
    %cst_6 = arith.constant dense<0.000000e+00> : vector<8x2048xf32>
    %6 = tpu.matmul %4, %5, %cst_6 {dimension_numbers = #tpu.dot_dimension_numbers<[1], [0], [0], [1], [0, 0, 1, 1], [], []>, precision = #tpu.contract_precision<fp32>} : vector<8x4xf32>, vector<4x2048xf32>, vector<8x2048xf32> -> vector<8x2048xf32>
    %7 = arith.negf %6 : vector<8x2048xf32>
    %8 = math.exp %7 : vector<8x2048xf32>
    %cst_7 = arith.constant 1.000000e+00 : f32
    %9 = vector.broadcast %cst_7 : f32 to vector<8x2048xf32>
    %10 = arith.addf %9, %8 : vector<8x2048xf32>
    %11 = arith.divf %9, %10 : vector<8x2048xf32>
    %12 = arith.mulf %0, %11 : vector<8x2048xf32>
    %c0_8 = arith.constant 0 : index
    %c0_9 = arith.constant 0 : index
    %13 = vector.load %arg4[%c0_8, %c0_9] : memref<8x2048xf32, #tpu.memory_space<vmem>>, vector<8x2048xf32>
    tpu.vector_store %arg4[%c0_8, %c0_9], %12 {strides = array<i32>} : memref<8x2048xf32, #tpu.memory_space<vmem>>, vector<8x2048xf32>,
    return
  }
  func.func @transform_0(%arg0: i32) -> (i32, i32) {
    %c0_i32 = arith.constant 0 : i32
    %c0_i32_0 = arith.constant 0 : i32
    return %arg0, %c0_i32 : i32, i32
  }
  func.func @transform_1(%arg0: i32) -> (i32, i32) {
    %c0_i32 = arith.constant 0 : i32
    %c0_i32_0 = arith.constant 0 : i32
    %c0_i32_1 = arith.constant 0 : i32
    return %c0_i32, %c0_i32_0 : i32, i32
  }
  func.func @transform_2(%arg0: i32) -> (i32, i32) {
    %c0_i32 = arith.constant 0 : i32
    %c0_i32_0 = arith.constant 0 : i32
    %c0_i32_1 = arith.constant 0 : i32
    return %c0_i32, %c0_i32_0 : i32, i32
  }
  func.func @transform_3(%arg0: i32) -> (i32, i32) {
    %c0_i32 = arith.constant 0 : i32
    %c0_i32_0 = arith.constant 0 : i32
    return %arg0, %c0_i32 : i32, i32
  }
}

</mosaic_0001>

<bundles_post_ra>
// kernel: tpu_custom_call.1
= control target key start
LH: loop header
LB: loop body
LE: loop exit
PB: predicated region body
PF: predicated region fallthrough
CT: control target
= control target key end

     0   :  { %8 = vsyncpa [#allocation3], 0  ;;  %s19171_s0 = inlined_call_operand.vmem [shape: f32[16,2048], index: 0, kind: input, shape index: {}]   ;;  %s19172_s1 = inlined_call_operand.vmem [shape: f32[2048,4], index: 1, kind: input, shape index: {}]   ;;  %s19173_s2 = inlined_call_operand.vmem [shape: f32[4,2048], index: 2, kind: input, shape index: {}]   ;;  %s19174_s3 = inlined_call_operand.hbm [shape: f32[16,2048], index: 3, kind: output, shape index: {}]  }
   0x1   :  { %10 = vsyncpa [#allocation3 + $0x1], 0  ;;  %s13243_s12 = smov 0   ;;  %s13245_s13 = smov 0  }
   0x2   :  { %s13247_s14 = smov 0   ;;  %s13249_s15 = smov 0  }
   0x3 LB: > { %s13264_s16 = sadd.s32 4294967295, %s13219_s15   ;;  %s11321_s17 = sadd.s32 4294967294, %s13219_s15   ;;  %s13219_s15 = sphi %s13249_s15, %s20624_s15   ;;  %s13215_s14 = sphi %s13247_s14, %s20623_s14   ;;  %s13211_s13 = sphi %s13245_s13, %s20622_s13   ;;  %s13207_s12 = sphi %s13243_s12, %s20621_s12  }
   0x4   : > { %s13268_s18 = sadd.s32 1, %s13219_s15   ;;  %s91_s19 = sadd.s32 1, %s13215_s14 }
   0x5   : > { %s88_s20 = ssub.s32 %s13219_s15, %s13268_s18  ;;  %p101_p0 = scmp.ne.s32.totalorder %s13215_s14, %s13211_s13 }
   0x6   : > { %p89_p1 = scmp.eq.s32.totalorder %s88_s20, 0  ;;  %p102_p2 = scmp.eq.s32.totalorder %s13264_s16, 1 }
   0x7   : > { %p107_p3 = scmp.ne.s32.totalorder %s13211_s13, %s13207_s12  ;;  %p108_p4 = scmp.eq.s32.totalorder %s11321_s17, 1 }
   0x8   : > { %s13279_s21 = scalar_select %p89_p1, %s13215_s14, %s91_s19  }
   0x9   : > { %p13281_p5 = por %p102_p2, %p101_p0  ;;  %p13285_p6 = por %p108_p4, %p107_p3 }
   0xa   : > { %p11324_p7 = scmp.ge.s32.totalorder %s13219_s15, 1  ;;  %p140_p8 = scmp.lt.s32.totalorder %s13219_s15, 3 }
   0xc   : > { %p141_p9 = pnand %p11324_p7, %p140_p8 }
   0xe   : > { %144 = sbr.rel (%p141_p9) target bundleno = 1406 (0x57e), region = 32 }
  0x13   : > { %v216_v0 = vld [vmem:[%s19172_s1 + $0xf8] sm:$0xff]  ;;  %v215_v2 = vld [vmem:[%s19172_s1 + $0xf0] sm:$0xff]  ;;  %v214_v7 = vld [vmem:[%s19172_s1 + $0xe8] sm:$0xff]  ;;  %p164_p10 = scmp.lt.s32.totalorder %s13264_s16, 1  ;;  %vm7366_vm0 = vcmask 1043456   ;;  %vm7362_vm1 = vcmask 31744  }
  0x14   : > { %v200_v1 = vld [vmem:[%s19172_s1 + $0x78] sm:$0xff]  ;;  %v13300_v3 = vand.u32 4294901760, %v216_v0  ;;  %v13304_v5 = vand.u32 4294901760, %v215_v2  ;;  %v199_v6 = vld [vmem:[%s19172_s1 + $0x70] sm:$0xff]  ;;  %v198_v8 = vld [vmem:[%s19172_s1 + $0x68] sm:$0xff]  ;;  %v13317_v10 = vand.u32 4294901760, %v214_v7 }
  0x15   : > { %v13302_v4 = vand.u32 4294901760, %v200_v1  ;;  %v13315_v9 = vand.u32 4294901760, %v199_v6  ;;  %v13319_v11 = vand.u32 4294901760, %v198_v8  ;;  %v213_v12 = vld [vmem:[%s19172_s1 + $0xe0] sm:$0xff]  ;;  %v212_v14 = vld [vmem:[%s19172_s1 + $0xd8] sm:$0xff]  ;;  %v13348_v20 = vld [vmem:[%s19172_s1 + $0xd0] sm:$0xff] }
  0x16   : > { %v197_v13 = vld [vmem:[%s19172_s1 + $0x60] sm:$0xff]  ;;  %11351 = vmatprep.subr.mxu0 %v13300_v3  ;;  %v13331_v15 = vand.u32 4294901760, %v213_v12  ;;  %v13335_v17 = vand.u32 4294901760, %v212_v14  ;;  %v13338_v18 = vsub.f32 %v216_v0, %v13300_v3  ;;  %v13343_v19 = vld [vmem:[%s19172_s1 + $0x58] sm:$0xff]  ;;  %v13353_v21 = vld [vmem:[%s19172_s1 + $0x50] sm:$0xff]  ;;  %v13363_v24 = vand.u32 4294901760, %v13348_v20 }
  0x17   : > { %v13333_v16 = vand.u32 4294901760, %v197_v13  ;;  %11352 = vmatpush3.msra.mxu0 %v13302_v4  ;;  %v13357_v22 = vand.u32 4294901760, %v13343_v19  ;;  %v13360_v23 = vsub.f32 %v200_v1, %v13302_v4  ;;  %v13366_v25 = vsub.f32 %v215_v2, %v13304_v5  ;;  %v13371_v26 = vld [vmem:[%s19172_s1 + $0xc8] sm:$0xff]  ;;  %v13381_v28 = vld [vmem:[%s19172_s1 + $0xc0] sm:$0xff]  ;;  %v13433_v46 = vld [vmem:[%s19172_s1 + $0xb8] sm:$0xff]  ;;  %s13571_s11 = scalar_select %p164_p10, %s13264_s16, 1 }
  0x18   : > { %19709 = vst [vmem:[#allocation5_spill] sm:$0xff] %v13363_v24  ;;  %v13376_v27 = vld [vmem:[%s19172_s1 + $0x48] sm:$0xff]  ;;  %11353 = vmatprep.subr.mxu0 %v13304_v5  ;;  %v19188_v29 = vand.u32 4294901760, %v13338_v18  ;;  %v13386_v30 = vand.u32 4294901760, %v13353_v21  ;;  %v13389_v31 = vsub.f32 %v199_v6, %v13315_v9  ;;  %v13392_v32 = vand.u32 4294901760, %v13371_v26  ;;  %v13406_v37 = vld [vmem:[%s19172_s1 + $0x40] sm:$0xff] }
  0x19   : > { %11354 = vmatpush3.msra.mxu0 %v13315_v9  ;;  %v19187_v33 = vand.u32 4294901760, %v13360_v23  ;;  %v19185_v34 = vand.u32 4294901760, %v13366_v25  ;;  %v13398_v35 = vsub.f32 %v214_v7, %v13317_v10  ;;  %v13401_v36 = vand.u32 4294901760, %v13376_v27  ;;  %v13446_v51 = vld [vmem:[%s19172_s1 + $0x38] sm:$0xff]  ;;  %v13456_v56 = vld [vmem:[%s19172_s1 + $0xb0] sm:$0xff]  ;;  %v13486_v2 = vld [vmem:[%s19172_s1 + $0xa8] sm:$0xff] }
  0x1a   : > { %19710 = vst [vmem:[#allocation6_spill] sm:$0xff] %v13386_v30  ;;  %19711 = vst [vmem:[#allocation7_spill] sm:$0xff] %v13392_v32  ;;  %11355 = vmatprep.subr.mxu0 %v13317_v10  ;;  %v669_v38 = vsub.f32 %v13338_v18, %v19188_v29  ;;  %v19184_v39 = vand.u32 4294901760, %v13389_v31  ;;  %v13414_v40 = vsub.f32 %v198_v8, %v13319_v11  ;;  %v13417_v41 = vand.u32 4294901760, %v13381_v28  ;;  %v13471_v61 = vld [vmem:[%s19172_s1 + $0x30] sm:$0xff]  ;;  %s11349_s29 = sshll.u32 %s13571_s11, 7 }
  0x1b   : > { %19712 = vst [vmem:[#allocation8_spill] sm:$0xff] %v13401_v36  ;;  %11356 = vmatpush3.msra.mxu0 %v13319_v11  ;;  %v557_v42 = vsub.f32 %v13360_v23, %v19187_v33  ;;  %v676_v43 = vsub.f32 %v13366_v25, %v19185_v34  ;;  %v19182_v44 = vand.u32 4294901760, %v13398_v35  ;;  %v13428_v45 = vsub.f32 %v213_v12, %v13331_v15  ;;  %v13628_v33 = vld [vmem:[%s19172_s1 + $0x88] sm:$0xff]  ;;  %s13676_s9 = scalar_lea.vmem %s19171_s0, %s11349_s29  ;;  %s161_s26 = sand.u32 1, %s13211_s13  }
  0x1c   : > { %19713 = vst [vmem:[#allocation9_spill] sm:$0xff] %v13417_v41  ;;  %11357 = vmatprep.subr.mxu0 %v13331_v15  ;;  %v670_v47 = vand.u32 4294901760, %v669_v38  ;;  %v564_v48 = vsub.f32 %v13389_v31, %v19184_v39  ;;  %v19180_v49 = vand.u32 4294901760, %v13414_v40  ;;  %v13441_v50 = vand.u32 4294901760, %v13406_v37  ;;  %s11325_s27 = sshll.u32 %s161_s26, 7  ;;  %s11350_s29 = sshll.u32 %s13264_s16, 11 }
  0x1d   : > { %11358 = vmatpush3.msra.mxu0 %v13333_v16  ;;  %v558_v52 = vand.u32 4294901760, %v557_v42  ;;  %v677_v53 = vand.u32 4294901760, %v676_v43  ;;  %v683_v54 = vsub.f32 %v13398_v35, %v19182_v44  ;;  %v19179_v55 = vand.u32 4294901760, %v13428_v45  ;;  %v13601_v44 = vld [vmem:[%s19172_s1 + $0x90] sm:$0xff]  ;;  %s19102_s28 = scalar_lea.vmem [#allocation2], %s11325_s27  ;;  %s11260_s6 = scalar_lea.hbm %s19174_s3, %s11350_s29 }
  0x1e   : > { %19714 = vst [vmem:[#allocation10_spill] sm:$0xff] %v13441_v50  ;;  %11359 = vmatprep.subr.mxu0 %v13335_v17  ;;  %11386 = vmatprep.subr.mxu1 %v670_v47  ;;  %v565_v57 = vand.u32 4294901760, %v564_v48  ;;  %v571_v58 = vsub.f32 %v13414_v40, %v19180_v49  ;;  %v13463_v59 = vsub.f32 %v197_v13, %v13333_v16  ;;  %v13466_v60 = vand.u32 4294901760, %v13433_v46  ;;  %v13500_v13 = vld [vmem:[%s19172_s1 + $0x28] sm:$0xff]  ;;  %v13585_v49 = vld [vmem:[%s19172_s1 + $0x18] sm:$0xff]  ;;  %s11262_s30 = sshll.u32 %s19102_s28, 4  ;;  %s11263_s30 = int_to_ptr.vmem [resolvable:$true] %s11262_s30 }
  0x1f   : > { %11360 = vmatpush3.msra.mxu0 %v13357_v22  ;;  %11387 = vmatpush3.msra.mxu1 %v558_v52  ;;  %v684_v62 = vand.u32 4294901760, %v683_v54  ;;  %v690_v63 = vsub.f32 %v13428_v45, %v19179_v55  ;;  %v13478_v0 = vsub.f32 %v212_v14, %v13335_v17  ;;  %v13481_v1 = vand.u32 4294901760, %v13446_v51  ;;  %v13527_v52 = vld [vmem:[%s19172_s1 + $0xa0] sm:$0xff]  ;;  %s11248_s7 = scalar_lea.sflag [#allocation3], %s161_s26  ;;  %s13159_s8 = scalar_lea.vmem %s11263_s30, 2048 }
  0x20   : > { %19715 = vst [vmem:[#allocation11_spill] sm:$0xff] %v13466_v60  ;;  %11361 = vmatprep.subr.mxu0 %v13363_v24  ;;  %11388 = vmatprep.subr.mxu1 %v677_v53  ;;  %v572_v6 = vand.u32 4294901760, %v571_v58  ;;  %v19178_v7 = vand.u32 4294901760, %v13463_v59  ;;  %v13492_v8 = vsub.f32 %v13343_v19, %v13357_v22  ;;  %v13495_v12 = vand.u32 4294901760, %v13456_v56  ;;  %p13160_p11 = scmp.ne.s32.totalorder %s11263_s30, %s13159_s8  ;;  %s13222_s16 = smov [#allocation2]  }
  0x21   : > { %19716 = vst [vmem:[#allocation12_spill] sm:$0xff] %v13481_v1  ;;  %11362 = vmatpush3.msra.mxu0 %v13386_v30  ;;  %11389 = vmatpush3.msra.mxu1 %v565_v57  ;;  %v691_v14 = vand.u32 4294901760, %v690_v63  ;;  %v19175_v38 = vand.u32 4294901760, %v13478_v0  ;;  %v13506_v42 = vsub.f32 %v13348_v20, %v13363_v24  ;;  %v13509_v19 = vand.u32 4294901760, %v13471_v61  ;;  %s13163_s10 = sshll.u32 %s13222_s16, 4  ;;  %s13164_s10 = int_to_ptr.vmem [resolvable:$false] %s13163_s10 }
  0x22   : > { %19717 = vst [vmem:[#allocation13_spill] sm:$0xff] %v13495_v12  ;;  %11363 = vmatprep.subr.mxu0 %v13392_v32  ;;  %11390 = vmatprep.subr.mxu1 %v684_v62  ;;  %v578_v43 = vsub.f32 %v13463_v59, %v19178_v7  ;;  %v19176_v47 = vand.u32 4294901760, %v13492_v8  ;;  %v13519_v48 = vsub.f32 %v13353_v21, %v13386_v30  ;;  %v13522_v20 = vand.u32 4294901760, %v13486_v2  ;;  %p13161_p12 = pnand %p13160_p11, %p13281_p5  ;;  %s13165_s11 = scalar_lea.vmem %s13164_s10, 4096 }
  0x23   : > { %19718 = vst [vmem:[#allocation14_spill] sm:$0xff] %v13509_v19  ;;  %11364 = vmatpush3.msra.mxu0 %v13401_v36  ;;  %11391 = vmatpush3.msra.mxu1 %v572_v6  ;;  %v697_v53 = vsub.f32 %v13478_v0, %v19175_v38  ;;  %v19177_v54 = vand.u32 4294901760, %v13506_v42  ;;  %v13536_v21 = vsub.f32 %v13371_v26, %v13392_v32  ;;  %v13539_v57 = vand.u32 4294901760, %v13500_v13  ;;  %v13553_v26 = vld [vmem:[%s19172_s1 + $0x20] sm:$0xff]  ;;  %p13166_p0 = scmp.lt.s32.totalorder %s11263_s30, %s13164_s10  ;;  %p13167_p1 = scmp.lt.s32.totalorder %s13165_s11, %s13159_s8 }
  0x24   : > { %19719 = vst [vmem:[#allocation15_spill] sm:$0xff] %v13522_v20  ;;  %11365 = vmatprep.subr.mxu0 %v13417_v41  ;;  %11392 = vmatprep.subr.mxu1 %v691_v14  ;;  %v579_v58 = vand.u32 4294901760, %v578_v43  ;;  %v585_v62 = vsub.f32 %v13492_v8, %v19176_v47  ;;  %v19181_v63 = vand.u32 4294901760, %v13519_v48  ;;  %v13548_v6 = vsub.f32 %v13376_v27, %v13401_v36  ;;  %v13566_v27 = vld [vmem:[%s19172_s1 + $0x98] sm:$0xff]  ;;  %p13162_p13 = pneg %p13161_p12 }
  0x25   : > { %19720 = vst [vmem:[#allocation16_spill] sm:$0xff] %v13539_v57  ;;  %11366 = vmatpush3.msra.mxu0 %v13441_v50  ;;  %v698_v38 = vand.u32 4294901760, %v697_v53  ;;  %v704_v14 = vsub.f32 %v13506_v42, %v19177_v54  ;;  %v19183_v43 = vand.u32 4294901760, %v13536_v21  ;;  %v13561_v47 = vand.u32 4294901760, %v13527_v52  ;;  %p13168_p2 = por %p13167_p1, %p13166_p0 }
  0x26   : > { %11393 = vmatpush3.msra.mxu1 %v579_v58  ;;  %11367 = vmatprep.subr.mxu0 %v13466_v60  ;;  %v586_v53 = vand.u32 4294901760, %v585_v62  ;;  %v592_v54 = vsub.f32 %v13519_v48, %v19181_v63  ;;  %v19186_v7 = vand.u32 4294901760, %v13548_v6  ;;  %v13580_v55 = vsub.f32 %v13381_v28, %v13417_v41 }
  0x27   : > { %19721 = vst [vmem:[#allocation17_spill] sm:$0xff] %v13561_v47  ;;  %11394 = vmatprep.subr.mxu1 %v698_v38  ;;  %11368 = vmatpush3.msra.mxu0 %v13481_v1  ;;  %v705_v58 = vand.u32 4294901760, %v704_v14  ;;  %v711_v62 = vsub.f32 %v13536_v21, %v19183_v43  ;;  %v13592_v63 = vand.u32 4294901760, %v13553_v26  ;;  %v13596_v28 = vsub.f32 %v13406_v37, %v13441_v50  ;;  %v13614_v37 = vld [vmem:[%s19172_s1 + $0x10] sm:$0xff]  ;;  %p13169_p3 = pnand %p13168_p2, %p13162_p13 }
  0x28   : > { %11395 = vmatpush3.msra.mxu1 %v586_v53  ;;  %11369 = vmatprep.subr.mxu0 %v13495_v12  ;;  %v593_v38 = vand.u32 4294901760, %v592_v54  ;;  %v599_v14 = vsub.f32 %v13548_v6, %v19186_v7  ;;  %v19191_v43 = vand.u32 4294901760, %v13580_v55  ;;  %v13609_v39 = vand.u32 4294901760, %v13566_v27 }
  0x29   : > { %19722 = vst [vmem:[#allocation18_spill] sm:$0xff] %v13592_v63  ;;  %11396 = vmatprep.subr.mxu1 %v705_v58  ;;  %11370 = vmatpush3.msra.mxu0 %v13509_v19  ;;  %v712_v53 = vand.u32 4294901760, %v711_v62  ;;  %v19192_v54 = vand.u32 4294901760, %v13596_v28  ;;  %v13620_v34 = vsub.f32 %v13433_v46, %v13466_v60  ;;  %v13623_v7 = vand.u32 4294901760, %v13585_v49 }
  0x2a   : > { %11397 = vmatpush3.msra.mxu1 %v593_v38  ;;  %11371 = vmatprep.subr.mxu0 %v13522_v20  ;;  %v600_v58 = vand.u32 4294901760, %v599_v14  ;;  %v718_v62 = vsub.f32 %v13580_v55, %v19191_v43  ;;  %v13637_v46 = vsub.f32 %v13446_v51, %v13481_v1  ;;  %v13640_v29 = vand.u32 4294901760, %v13601_v44  ;;  %v13657_v51 = vld [vmem:[%s19172_s1 + $0x8] sm:$0xff] }
  0x2b   : > { %19723 = vst [vmem:[#allocation19_spill] sm:$0xff] %v13623_v7  ;;  %11398 = vmatprep.subr.mxu1 %v712_v53  ;;  %11372 = vmatpush3.msra.mxu0 %v13539_v57  ;;  %v606_v38 = vsub.f32 %v13596_v28, %v19192_v54  ;;  %v13649_v60 = vsub.f32 %v13456_v56, %v13495_v12  ;;  %v13652_v43 = vand.u32 4294901760, %v13614_v37  ;;  %v13666_v56 = vand.u32 4294901760, %v13628_v33  ;;  %v13671_v12 = vld [vmem:[%s19172_s1 + $0x80] sm:$0xff] }
  0x2c   : > { %19724 = vst [vmem:[#allocation20_spill] sm:$0xff] %v13640_v29  ;;  %11399 = vmatpush3.msra.mxu1 %v600_v58  ;;  %11373 = vmatprep.subr.mxu0 %v13561_v47  ;;  %v719_v53 = vand.u32 4294901760, %v718_v62  ;;  %v13663_v14 = vsub.f32 %v13471_v61, %v13509_v19  ;;  %v19727_v62 = vand.u32 4294901760, %v13620_v34  ;;  %v13685_v19 = vsub.f32 %v13486_v2, %v13522_v20  ;;  %v13702_v2 = vld [vmem:[%s19172_s1] sm:$0xff] }
  0x2d   : > { %19725 = vst [vmem:[#allocation21_spill] sm:$0xff] %v13652_v43  ;;  %19726 = vst [vmem:[#allocation22_spill] sm:$0xff] %v13666_v56  ;;  %11374 = vmatpush3.msra.mxu0 %v13592_v63  ;;  %v607_v58 = vand.u32 4294901760, %v606_v38  ;;  %v19211_v54 = vand.u32 4294901760, %v13649_v60  ;;  %v19729_v1 = vand.u32 4294901760, %v13637_v46  ;;  %v13693_v41 = vand.u32 4294901760, %v13657_v51 }
  0x2e   : > { %v725_v61 = vsub.f32 %v13620_v34, %v19727_v62  ;;  %19728 = vst [vmem:[#allocation23_spill] sm:$0xff] %v13685_v19  ;;  %11400 = vmatprep.subr.mxu1 %v719_v53  ;;  %11375 = vmatprep.subr.mxu0 %v13609_v39  ;;  %v13697_v62 = vsub.f32 %v13500_v13, %v13539_v57  ;;  %v13710_v20 = vand.u32 4294901760, %v13671_v12  ;;  %v170_v13 = vld [vmem:[%s13676_s9 + $0x8] sm:$0xff]  ;;  %v19730_v36 = vand.u32 4294901760, %v13663_v14 }
  0x2f   : > { %v613_v50 = vsub.f32 %v13637_v46, %v19729_v1  ;;  %11401 = vmatpush3.msra.mxu1 %v607_v58  ;;  %11376 = vmatpush3.msra.mxu0 %v13623_v7  ;;  %v732_v1 = vsub.f32 %v13649_v60, %v19211_v54  ;;  %v13720_v32 = vsub.f32 %v13527_v52, %v13561_v47  ;;  %v169_v54 = vld [vmem:[%s13676_s9] sm:$0xff]  ;;  %v19731_v30 = vand.u32 4294901760, %v13685_v19 }
  0x30   : > { %v726_v53 = vand.u32 4294901760, %v725_v61  ;;  %11377 = vmatprep.subr.mxu0 %v13640_v29  ;;  %v620_v58 = vsub.f32 %v13663_v14, %v19730_v36  ;;  %v13728_v24 = vand.u32 4294901760, %v13702_v2  ;;  %v13732_v36 = vsub.f32 %v13553_v26, %v13592_v63 }
  0x31   : > { %v614_v57 = vand.u32 4294901760, %v613_v50  ;;  %v733_v38 = vand.u32 4294901760, %v732_v1  ;;  %11378 = vmatpush3.msra.mxu0 %v13652_v43  ;;  %v739_v50 = vsub.f32 %v13685_v19, %v19731_v30  ;;  %v19732_v52 = vand.u32 4294901760, %v13697_v62 }
  0x32   : > { %11402 = vmatprep.subr.mxu1 %v726_v53  ;;  %v621_v61 = vand.u32 4294901760, %v620_v58  ;;  %11379 = vmatprep.subr.mxu0 %v13666_v56  ;;  %v19220_v1 = vand.u32 4294901760, %v13720_v32  ;;  %v13739_v47 = vand.u32 4294901760, %v170_v13  ;;  %v19221_v19 = vand.u32 4294901760, %v13732_v36 }
  0x33   : > { %11403 = vmatpush3.msra.mxu1 %v614_v57  ;;  %v627_v53 = vsub.f32 %v13697_v62, %v19732_v52  ;;  %v740_v30 = vand.u32 4294901760, %v739_v50  ;;  %11380 = vmatpush3.msra.mxu0 %v13693_v41  ;;  %v13745_v57 = vsub.f32 %v13566_v27, %v13609_v39  ;;  %v13747_v26 = vand.u32 4294901760, %v169_v54 }
  0x34   : > { %19733 = vst [vmem:[#allocation24_spill] sm:$0xff] %v13739_v47  ;;  %11404 = vmatprep.subr.mxu1 %v733_v38  ;;  %11381 = vmatprep.subr.mxu0 %v13710_v20  ;;  %v746_v52 = vsub.f32 %v13720_v32, %v19220_v1  ;;  %v13754_v38 = vsub.f32 %v170_v13, %v13739_v47 }
  0x35   : > { %19734 = vst [vmem:[#allocation25_spill] sm:$0xff] %v13747_v26  ;;  %11405 = vmatpush3.msra.mxu1 %v621_v61  ;;  %v628_v58 = vand.u32 4294901760, %v627_v53  ;;  %v13758_v50 = vsub.f32 %v13585_v49, %v13623_v7  ;;  %11382 = vmatpush3.msra.mxu0 %v13728_v24  ;;  %v634_v27 = vsub.f32 %v13732_v36, %v19221_v19 }
  0x36   : > { %11406 = vmatprep.subr.mxu1 %v740_v30  ;;  %v13766_v53 = vsub.f32 %v169_v54, %v13747_v26  ;;  %v13770_v13 = vsub.f32 %v13601_v44, %v13640_v29  ;;  %v747_v1 = vand.u32 4294901760, %v746_v52  ;;  %v19226_v49 = vand.u32 4294901760, %v13754_v38  ;;  %11421 = vmatprep.subr.mxu0 %v13338_v18 }
  0x37   : > { %11407 = vmatpush3.msra.mxu1 %v628_v58  ;;  %v19229_v30 = vand.u32 4294901760, %v13758_v50  ;;  %v13777_v19 = vsub.f32 %v13614_v37, %v13652_v43  ;;  %v635_v61 = vand.u32 4294901760, %v634_v27  ;;  %v19735_v54 = vand.u32 4294901760, %v13745_v57  ;;  %778 = vmatprep.mubr.f32.mxu1 %v13739_v47 }
  0x38   : > { %11408 = vmatprep.subr.mxu1 %v747_v1  ;;  %v540_v52 = vsub.f32 %v13754_v38, %v19226_v49  ;;  %v19736_v58 = vand.u32 4294901760, %v13766_v53  ;;  %v19737_v47 = vand.u32 4294901760, %v13770_v13  ;;  %v13804_v43 = vsub.f32 %v13657_v51, %v13693_v41 }
  0x39   : > { %v753_v7 = vsub.f32 %v13745_v57, %v19735_v54  ;;  %v641_v37 = vsub.f32 %v13758_v50, %v19229_v30  ;;  %v13794_v54 = vsub.f32 %v13628_v33, %v13666_v56  ;;  %11409 = vmatpush3.msra.mxu1 %v635_v61  ;;  %v19739_v29 = vand.u32 4294901760, %v13777_v19 }
  0x3a   : > { %v546_v1 = vsub.f32 %v13766_v53, %v19736_v58  ;;  %v760_v49 = vsub.f32 %v13770_v13, %v19737_v47  ;;  %19738 = vst [vmem:[#allocation26_spill] sm:$0xff] %v13804_v43  ;;  %v541_v30 = vand.u32 4294901760, %v540_v52  ;;  %v19236_v58 = vand.u32 4294901760, %v13804_v43 }
  0x3b   : > { %v754_v44 = vand.u32 4294901760, %v753_v7  ;;  %v642_v27 = vand.u32 4294901760, %v641_v37  ;;  %v648_v33 = vsub.f32 %v13777_v19, %v19739_v29  ;;  %v19237_v7 = vand.u32 4294901760, %v13794_v54 }
  0x3c   : > { %v547_v61 = vand.u32 4294901760, %v546_v1  ;;  %v761_v56 = vand.u32 4294901760, %v760_v49  ;;  %v13813_v47 = vsub.f32 %v13671_v12, %v13710_v20  ;;  %542 = vmatprep.mubr.f32.mxu0 %v541_v30  ;;  %v13820_v29 = vsub.f32 %v13702_v2, %v13728_v24 }
  0x3d   : > { %11410 = vmatprep.subr.mxu1 %v754_v44  ;;  %v649_v51 = vand.u32 4294901760, %v648_v33  ;;  %v767_v52 = vsub.f32 %v13794_v54, %v19237_v7  ;;  %v655_v49 = vsub.f32 %v13804_v43, %v19236_v58  ;;  %v19742_v33 = vld [vmem:[#allocation5_spill] sm:$0xff]  ;;  %v19756_v7 = vand.u32 4294901760, %v13338_v18 }
  0x3e   : > { %19740 = vst [vmem:[#allocation27_spill] sm:$0xff] %v13813_v47  ;;  %11411 = vmatpush3.msra.mxu1 %v642_v27  ;;  %19741 = vst [vmem:[#allocation28_spill] sm:$0xff] %v13820_v29  ;;  %548 = vmatmul.mubr.f32.vlgmr.msra.gmra.mxu0 %v547_v61  ;;  %v19235_v12 = vand.u32 4294901760, %v13813_v47  ;;  %v19234_v44 = vand.u32 4294901760, %v13820_v29  ;;  %v19743_v61 = vld [vmem:[#allocation6_spill] sm:$0xff]  ;;  %v19755_v58 = vld [vmem:[#allocation17_spill] sm:$0xff] }
  0x3f   : > { %11412 = vmatprep.subr.mxu1 %v761_v56  ;;  %11422 = vmatpush3.msra.mxu0 %v13360_v23  ;;  %v768_v30 = vand.u32 4294901760, %v767_v52  ;;  %v656_v37 = vand.u32 4294901760, %v655_v49  ;;  %v19745_v52 = vld [vmem:[#allocation7_spill] sm:$0xff]  ;;  %v19746_v49 = vld [vmem:[#allocation8_spill] sm:$0xff]  ;;  %v19764_v18 = vand.u32 4294901760, %v13398_v35 }
  0x40   : > { %11413 = vmatpush3.msra.mxu1 %v649_v51  ;;  %11423 = vmatprep.subr.mxu0 %v13366_v25  ;;  %v774_v2 = vsub.f32 %v13813_v47, %v19235_v12  ;;  %v662_v56 = vsub.f32 %v13820_v29, %v19234_v44  ;;  %v19744_v51 = vld [vmem:[#allocation23_spill] sm:$0xff]  ;;  %v19754_v12 = vld [vmem:[#allocation16_spill] sm:$0xff] }
  0x41   : > { %915 = vmatprep.mubr.f32.mxu0 %v13754_v38  ;;  %11424 = vmatpush3.msra.mxu0 %v13389_v31  ;;  %v19753_v44 = vld [vmem:[#allocation15_spill] sm:$0xff] }
  0x42   : > { %11414 = vmatprep.subr.mxu1 %v768_v30  ;;  %11425 = vmatprep.subr.mxu0 %v13398_v35  ;;  %v775_v27 = vand.u32 4294901760, %v774_v2  ;;  %v663_v1 = vand.u32 4294901760, %v662_v56  ;;  %v19747_v30 = vld [vmem:[#allocation9_spill] sm:$0xff]  ;;  %v19749_v2 = vld [vmem:[#allocation11_spill] sm:$0xff]  ;;  %v19750_v56 = vld [vmem:[#allocation12_spill] sm:$0xff]  ;;  %v19769_v35 = vand.u32 4294901760, %v13766_v53 }
  0x43   : > { %11415 = vmatpush3.msra.mxu1 %v656_v37  ;;  %11426 = vmatpush3.msra.mxu0 %v13414_v40  ;;  %v19748_v37 = vld [vmem:[#allocation10_spill] sm:$0xff] }
  0x44   : > { %11416 = vmatprep.subr.mxu1 %v775_v27  ;;  %11427 = vmatprep.subr.mxu0 %v13428_v45  ;;  %v19751_v27 = vld [vmem:[#allocation13_spill] sm:$0xff] }
  0x45   : > { %11417 = vmatpush3.msra.mxu1 %v663_v1  ;;  %11428 = vmatpush3.msra.mxu0 %v13463_v59  ;;  %v19752_v1 = vld [vmem:[#allocation14_spill] sm:$0xff] }
  0x46   : > { %780 = vmatmul.mubr.f32.vlgmr.msra.gmra.mxu1 %v13747_v26  ;;  %11429 = vmatprep.subr.mxu0 %v13478_v0  ;;  %v19757_v26 = vld [vmem:[#allocation19_spill] sm:$0xff] }
  0x47   : > { %11456 = vmatprep.subr.mxu1 %v13300_v3  ;;  %11430 = vmatpush3.msra.mxu0 %v13492_v8 }
  0x48   : > { %11457 = vmatpush3.msra.mxu1 %v13302_v4  ;;  %11431 = vmatprep.subr.mxu0 %v13506_v42 }
  0x49   : > { %11458 = vmatprep.subr.mxu1 %v13304_v5  ;;  %11432 = vmatpush3.msra.mxu0 %v13519_v48 }
  0x4a   : > { %11459 = vmatpush3.msra.mxu1 %v13315_v9  ;;  %11433 = vmatprep.subr.mxu0 %v13536_v21 }
  0x4b   : > { %11460 = vmatprep.subr.mxu1 %v13317_v10  ;;  %11434 = vmatpush3.msra.mxu0 %v13548_v6 }
  0x4c   : > { %11461 = vmatpush3.msra.mxu1 %v13319_v11  ;;  %11435 = vmatprep.subr.mxu0 %v13580_v55 }
  0x4d   : > { %11462 = vmatprep.subr.mxu1 %v13331_v15  ;;  %11436 = vmatpush3.msra.mxu0 %v13596_v28 }
  0x4e   : > { %11463 = vmatpush3.msra.mxu1 %v13333_v16  ;;  %11437 = vmatprep.subr.mxu0 %v13620_v34 }
  0x4f   : > { %11464 = vmatprep.subr.mxu1 %v13335_v17  ;;  %11438 = vmatpush3.msra.mxu0 %v13637_v46 }
  0x50   : > { %11465 = vmatpush3.msra.mxu1 %v13357_v22  ;;  %11439 = vmatprep.subr.mxu0 %v13649_v60 }
  0x51   : > { %11466 = vmatprep.subr.mxu1 %v19742_v33  ;;  %11440 = vmatpush3.msra.mxu0 %v13663_v14 }
  0x52   : > { %11467 = vmatpush3.msra.mxu1 %v19743_v61  ;;  %11441 = vmatprep.subr.mxu0 %v19744_v51 }
  0x53   : > { %11468 = vmatprep.subr.mxu1 %v19745_v52  ;;  %11442 = vmatpush3.msra.mxu0 %v13697_v62 }
  0x54   : > { %11469 = vmatpush3.msra.mxu1 %v19746_v49  ;;  %11443 = vmatprep.subr.mxu0 %v13720_v32 }
  0x55   : > { %11470 = vmatprep.subr.mxu1 %v19747_v30  ;;  %11444 = vmatpush3.msra.mxu0 %v13732_v36 }
  0x56   : > { %11471 = vmatpush3.msra.mxu1 %v19748_v37  ;;  %11445 = vmatprep.subr.mxu0 %v13745_v57 }
  0x57   : > { %11472 = vmatprep.subr.mxu1 %v19749_v2  ;;  %11446 = vmatpush3.msra.mxu0 %v13758_v50 }
  0x58   : > { %11473 = vmatpush3.msra.mxu1 %v19750_v56  ;;  %11447 = vmatprep.subr.mxu0 %v13770_v13 }
  0x59   : > { %11474 = vmatprep.subr.mxu1 %v19751_v27  ;;  %11448 = vmatpush3.msra.mxu0 %v13777_v19 }
  0x5a   : > { %11475 = vmatpush3.msra.mxu1 %v19752_v1  ;;  %11449 = vmatprep.subr.mxu0 %v13794_v54 }
  0x5b   : > { %11476 = vmatprep.subr.mxu1 %v19753_v44  ;;  %11450 = vmatpush3.msra.mxu0 %v13804_v43  ;;  %v19758_v43 = vand.u32 4294901760, %v13360_v23  ;;  %v19765_v23 = vand.u32 4294901760, %v13414_v40  ;;  %v19771_v40 = vand.u32 4294901760, %v13492_v8  ;;  %v19777_v8 = vand.u32 4294901760, %v13596_v28 }
  0x5c   : > { %11477 = vmatpush3.msra.mxu1 %v19754_v12  ;;  %11451 = vmatprep.subr.mxu0 %v13813_v47  ;;  %v19759_v12 = vld [vmem:[#allocation20_spill] sm:$0xff]  ;;  %v19763_v47 = vld [vmem:[#allocation22_spill] sm:$0xff] }
  0x5d   : > { %11478 = vmatprep.subr.mxu1 %v19755_v58  ;;  %11452 = vmatpush3.msra.mxu0 %v13820_v29  ;;  %v19760_v58 = vand.u32 4294901760, %v13366_v25  ;;  %v19761_v29 = vld [vmem:[#allocation21_spill] sm:$0xff]  ;;  %v19766_v25 = vand.u32 4294901760, %v13428_v45  ;;  %v19772_v45 = vand.u32 4294901760, %v13506_v42 }
  0x5e   : > { %11479 = vmatpush3.msra.mxu1 %v13592_v63  ;;  %918 = vmatmul.mubr.f32.vlgmr.msra.gmra.mxu0 %v13766_v53  ;;  %v19762_v63 = vand.u32 4294901760, %v13389_v31  ;;  %v19767_v31 = vand.u32 4294901760, %v13754_v38  ;;  %v19783_v38 = vand.u32 4294901760, %v19744_v51 }
  0x5f   : > { %11480 = vmatprep.subr.mxu1 %v13609_v39  ;;  %11491 = vmatprep.subr.mxu0 %v19756_v7  ;;  %v19785_v7 = vand.u32 4294901760, %v13697_v62 }
  0x60   : > { %11481 = vmatpush3.msra.mxu1 %v19757_v26  ;;  %11492 = vmatpush3.msra.mxu0 %v19758_v43  ;;  %v19770_v43 = vand.u32 4294901760, %v13478_v0  ;;  %v19774_v0 = vand.u32 4294901760, %v13536_v21  ;;  %v19779_v21 = vand.u32 4294901760, %v13637_v46 }
  0x61   : > { %11482 = vmatprep.subr.mxu1 %v19759_v12  ;;  %11493 = vmatprep.subr.mxu0 %v19760_v58 }
  0x62   : > { %11483 = vmatpush3.msra.mxu1 %v19761_v29  ;;  %11494 = vmatpush3.msra.mxu0 %v19762_v63  ;;  %v19768_v63 = vand.u32 4294901760, %v13463_v59  ;;  %v19773_v59 = vand.u32 4294901760, %v13519_v48  ;;  %v230_v48 = vld [vmem:[%s19172_s1 + $0x168] sm:$0xff] }
  0x63   : > { %11484 = vmatprep.subr.mxu1 %v19763_v47  ;;  %11495 = vmatprep.subr.mxu0 %v19764_v18  ;;  %v13981_v46 = vand.u32 4294901760, %v230_v48  ;;  %v19789_v18 = vand.u32 4294901760, %v13745_v57 }
  0x64   : > { %11485 = vmatpush3.msra.mxu1 %v13693_v41  ;;  %11496 = vmatpush3.msra.mxu0 %v19765_v23  ;;  %v227_v23 = vld [vmem:[%s19172_s1 + $0x150] sm:$0xff] }
  0x65   : > { %11486 = vmatprep.subr.mxu1 %v13710_v20  ;;  %11497 = vmatprep.subr.mxu0 %v19766_v25  ;;  %19782 = vst [vmem:[#allocation5_spill] sm:$0xff] %v13981_v46  ;;  %v14015_v62 = vsub.f32 %v230_v48, %v13981_v46  ;;  %v19804_v48 = vld [vmem:[#allocation17_spill] sm:$0xff] }
  0x66   : > { %11487 = vmatpush3.msra.mxu1 %v13728_v24  ;;  %1022 = vmatprep.mubr.f32.mxu1 %v19767_v31  ;;  %v19790_v31 = vand.u32 4294901760, %v13758_v50 }
  0x67   : > { %11498 = vmatpush3.msra.mxu0 %v19768_v63  ;;  %1026 = vmatmul.mubr.f32.vlgmr.msra.gmra.mxu1 %v19769_v35  ;;  %v19792_v35 = vand.u32 4294901760, %v13770_v13  ;;  %v226_v13 = vld [vmem:[%s19172_s1 + $0x148] sm:$0xff] }
  0x68   : > { %11499 = vmatprep.subr.mxu0 %v19770_v43  ;;  %11526 = vmatprep.subr.mxu1 %v13300_v3  ;;  %v19775_v3 = vand.u32 4294901760, %v13548_v6  ;;  %v19781_v6 = vand.u32 4294901760, %v13663_v14 }
  0x69   : > { %11500 = vmatpush3.msra.mxu0 %v19771_v40  ;;  %11527 = vmatpush3.msra.mxu1 %v13302_v4  ;;  %v248_v4 = vld [vmem:[%s19172_s1 + $0x1f8] sm:$0xff] }
  0x6a   : > { %11501 = vmatprep.subr.mxu0 %v19772_v45  ;;  %11528 = vmatprep.subr.mxu1 %v13304_v5  ;;  %v232_v5 = vld [vmem:[%s19172_s1 + $0x178] sm:$0xff]  ;;  %v13955_v42 = vand.u32 4294901760, %v248_v4 }
  0x6b   : > { %11502 = vmatpush3.msra.mxu0 %v19773_v59  ;;  %11529 = vmatpush3.msra.mxu1 %v13315_v9  ;;  %v19776_v9 = vand.u32 4294901760, %v13580_v55  ;;  %v13957_v55 = vand.u32 4294901760, %v232_v5  ;;  %v14060_v59 = vand.u32 4294901760, %v227_v23 }
  0x6c   : > { %11503 = vmatprep.subr.mxu0 %v19774_v0  ;;  %11530 = vmatprep.subr.mxu1 %v13317_v10  ;;  %v231_v10 = vld [vmem:[%s19172_s1 + $0x170] sm:$0xff]  ;;  %v13995_v53 = vsub.f32 %v248_v4, %v13955_v42  ;;  %v19797_v0 = vand.u32 4294901760, %v13794_v54  ;;  %v242_v4 = vld [vmem:[%s19172_s1 + $0x1c8] sm:$0xff] }
  0x6d   : > { %11504 = vmatpush3.msra.mxu0 %v19775_v3  ;;  %11531 = vmatpush3.msra.mxu1 %v13319_v11  ;;  %v19778_v11 = vand.u32 4294901760, %v13620_v34  ;;  %v19780_v34 = vand.u32 4294901760, %v13649_v60  ;;  %v13990_v60 = vsub.f32 %v232_v5, %v13957_v55  ;;  %19796 = vst [vmem:[#allocation10_spill] sm:$0xff] %v14060_v59  ;;  %v19799_v5 = vld [vmem:[#allocation26_spill] sm:$0xff] }
  0x6e   : > { %11505 = vmatprep.subr.mxu0 %v19776_v9  ;;  %11532 = vmatprep.subr.mxu1 %v13331_v15  ;;  %v247_v15 = vld [vmem:[%s19172_s1 + $0x1f0] sm:$0xff]  ;;  %v19801_v9 = vld [vmem:[#allocation16_spill] sm:$0xff] }
  0x6f   : > { %11506 = vmatpush3.msra.mxu0 %v19777_v8  ;;  %11533 = vmatpush3.msra.mxu1 %v13333_v16  ;;  %v13968_v16 = vand.u32 4294901760, %v231_v10  ;;  %v13979_v28 = vand.u32 4294901760, %v247_v15 }
  0x70   : > { %11507 = vmatprep.subr.mxu0 %v19778_v11  ;;  %11534 = vmatprep.subr.mxu1 %v13335_v17  ;;  %v246_v17 = vld [vmem:[%s19172_s1 + $0x1e8] sm:$0xff]  ;;  %v19802_v11 = vld [vmem:[#allocation27_spill] sm:$0xff] }
  0x71   : > { %11508 = vmatpush3.msra.mxu0 %v19779_v21  ;;  %11535 = vmatpush3.msra.mxu1 %v13357_v22  ;;  %v229_v22 = vld [vmem:[%s19172_s1 + $0x160] sm:$0xff]  ;;  %v13992_v14 = vand.u32 4294901760, %v246_v17  ;;  %v14001_v58 = vsub.f32 %v231_v10, %v13968_v16 }
  0x72   : > { %11509 = vmatprep.subr.mxu0 %v19780_v34  ;;  %11536 = vmatprep.subr.mxu1 %v19742_v33  ;;  %v19786_v33 = vand.u32 4294901760, %v13720_v32  ;;  %v14009_v51 = vand.u32 4294901760, %v229_v22  ;;  %v244_v32 = vld [vmem:[%s19172_s1 + $0x1d8] sm:$0xff]  ;;  %v241_v34 = vld [vmem:[%s19172_s1 + $0x1c0] sm:$0xff] }
  0x73   : > { %11510 = vmatpush3.msra.mxu0 %v19781_v6  ;;  %11537 = vmatpush3.msra.mxu1 %v19743_v61  ;;  %19784 = vst [vmem:[#allocation6_spill] sm:$0xff] %v13992_v14  ;;  %v245_v61 = vld [vmem:[%s19172_s1 + $0x1e0] sm:$0xff]  ;;  %v14035_v25 = vsub.f32 %v246_v17, %v13992_v14  ;;  %v19247_v63 = vand.u32 4294901760, %v14001_v58  ;;  %v14052_v50 = vand.u32 4294901760, %v244_v32  ;;  %v14102_v17 = vand.u32 4294901760, %v226_v13 }
  0x74   : > { %11511 = vmatprep.subr.mxu0 %v19783_v38  ;;  %11538 = vmatprep.subr.mxu1 %v19745_v52  ;;  %19787 = vst [vmem:[#allocation23_spill] sm:$0xff] %v14009_v51  ;;  %v19788_v52 = vand.u32 4294901760, %v13732_v36  ;;  %v19250_v36 = vand.u32 4294901760, %v13995_v53  ;;  %v14040_v57 = vand.u32 4294901760, %v245_v61  ;;  %v14050_v43 = vsub.f32 %v229_v22, %v14009_v51  ;;  %v225_v6 = vld [vmem:[%s19172_s1 + $0x140] sm:$0xff] }
  0x75   : > { %11512 = vmatpush3.msra.mxu0 %v19785_v7  ;;  %11539 = vmatpush3.msra.mxu1 %v19746_v49  ;;  %v228_v49 = vld [vmem:[%s19172_s1 + $0x158] sm:$0xff]  ;;  %19793 = vst [vmem:[#allocation8_spill] sm:$0xff] %v14052_v50  ;;  %v19246_v54 = vand.u32 4294901760, %v14035_v25  ;;  %v14091_v10 = vsub.f32 %v14001_v58, %v19247_v63  ;;  %19805 = vst [vmem:[#allocation12_spill] sm:$0xff] %v14102_v17  ;;  %v14112_v38 = vsub.f32 %v244_v32, %v14052_v50 }
  0x76   : > { %11513 = vmatprep.subr.mxu0 %v19786_v33  ;;  %11540 = vmatprep.subr.mxu1 %v19747_v30  ;;  %v14024_v30 = vsub.f32 %v247_v15, %v13979_v28  ;;  %19791 = vst [vmem:[#allocation7_spill] sm:$0xff] %v14040_v57  ;;  %v14054_v40 = vand.u32 4294901760, %v228_v49  ;;  %v14094_v8 = vsub.f32 %v245_v61, %v14040_v57  ;;  %v19803_v15 = vand.u32 4294901760, %v19802_v11  ;;  %v19806_v7 = vld [vmem:[#allocation28_spill] sm:$0xff] }
  0x77   : > { %11514 = vmatpush3.msra.mxu0 %v19788_v52  ;;  %11541 = vmatpush3.msra.mxu1 %v19748_v37  ;;  %v19249_v37 = vand.u32 4294901760, %v13990_v60  ;;  %v19245_v22 = vand.u32 4294901760, %v14050_v43  ;;  %v19807_v33 = vand.u32 4294901760, %v19806_v7  ;;  %v19808_v61 = vld [vmem:[#allocation24_spill] sm:$0xff] }
  0x78   : > { %11515 = vmatprep.subr.mxu0 %v19789_v18  ;;  %11542 = vmatprep.subr.mxu1 %v19749_v2  ;;  %v243_v2 = vld [vmem:[%s19172_s1 + $0x1d0] sm:$0xff]  ;;  %19794 = vst [vmem:[#allocation9_spill] sm:$0xff] %v14054_v40  ;;  %v19248_v45 = vand.u32 4294901760, %v14024_v30  ;;  %v14100_v21 = vsub.f32 %v228_v49, %v14054_v40  ;;  %v14123_v49 = vsub.f32 %v227_v23, %v14060_v59  ;;  %v14125_v18 = vand.u32 4294901760, %v242_v4 }
  0x79   : > { %11516 = vmatpush3.msra.mxu0 %v19790_v31  ;;  %11543 = vmatpush3.msra.mxu1 %v19750_v56  ;;  %v19795_v56 = vand.u32 4294901760, %v13777_v19  ;;  %v14072_v19 = vsub.f32 %v13995_v53, %v19250_v36  ;;  %v14079_v3 = vand.u32 4294901760, %v243_v2  ;;  %v19810_v31 = vld [vmem:[#allocation18_spill] sm:$0xff]  ;;  %v14139_v23 = vsub.f32 %v14035_v25, %v19246_v54 }
  0x7a   : > { %11517 = vmatprep.subr.mxu0 %v19792_v35  ;;  %11544 = vmatprep.subr.mxu1 %v19751_v27  ;;  %v19244_v27 = vand.u32 4294901760, %v14015_v62  ;;  %v14120_v52 = vsub.f32 %v14024_v30, %v19248_v45  ;;  %19809 = vst [vmem:[#allocation13_spill] sm:$0xff] %v14125_v18  ;;  %v19811_v35 = vld [vmem:[#allocation25_spill] sm:$0xff]  ;;  %v19251_v11 = vand.u32 4294901760, %v14094_v8  ;;  %v14166_v7 = vsub.f32 %v14050_v43, %v19245_v22  ;;  %v14180_v22 = vld [vmem:[%s19172_s1 + $0x1b0] sm:$0xff]  ;;  %v222_v36 = vld [vmem:[%s19172_s1 + $0x128] sm:$0xff] }
  0x7b   : > { %11518 = vmatpush3.msra.mxu0 %v19795_v56  ;;  %11545 = vmatpush3.msra.mxu1 %v19752_v1  ;;  %v14077_v1 = vsub.f32 %v13990_v60, %v19249_v37  ;;  %19798 = vst [vmem:[#allocation11_spill] sm:$0xff] %v14079_v3  ;;  %v19254_v54 = vand.u32 4294901760, %v14123_v49  ;;  %v14184_v63 = vsub.f32 %v242_v4, %v14125_v18 }
  0x7c   : > { %11519 = vmatprep.subr.mxu0 %v19797_v0  ;;  %11546 = vmatprep.subr.mxu1 %v19753_v44  ;;  %v19800_v44 = vand.u32 4294901760, %v19799_v5  ;;  %v14130_v32 = vsub.f32 %v14015_v62, %v19244_v27  ;;  %v14142_v5 = vsub.f32 %v243_v2, %v14079_v3  ;;  %v224_v2 = vld [vmem:[%s19172_s1 + $0x138] sm:$0xff]  ;;  %v223_v27 = vld [vmem:[%s19172_s1 + $0x130] sm:$0xff] }
  0x7d   : > { %11547 = vmatpush3.msra.mxu1 %v19801_v9  ;;  %1192 = vmatprep.mubr.f32.mxu0 %v19808_v61  ;;  %v14147_v9 = vand.u32 4294901760, %v241_v34 }
  0x7e   : > { %11520 = vmatpush3.msra.mxu0 %v19800_v44  ;;  %11548 = vmatprep.subr.mxu1 %v19804_v48  ;;  %v240_v48 = vld [vmem:[%s19172_s1 + $0x1b8] sm:$0xff]  ;;  %v19255_v37 = vand.u32 4294901760, %v14142_v5  ;;  %v221_v44 = vld [vmem:[%s19172_s1 + $0x120] sm:$0xff] }
  0x7f   : > { %11521 = vmatprep.subr.mxu0 %v19803_v15  ;;  %11549 = vmatpush3.msra.mxu1 %v19810_v31  ;;  %19812 = vst [vmem:[#allocation14_spill] sm:$0xff] %v14147_v9  ;;  %v14150_v15 = vand.u32 4294901760, %v225_v6  ;;  %v19253_v31 = vand.u32 4294901760, %v14100_v21  ;;  %v14189_v45 = vand.u32 4294901760, %v240_v48 }
  0x80   : > { %11522 = vmatpush3.msra.mxu0 %v19807_v33  ;;  %11550 = vmatprep.subr.mxu1 %v13609_v39  ;;  %v14161_v39 = vsub.f32 %v226_v13, %v14102_v17  ;;  %v19252_v33 = vand.u32 4294901760, %v14112_v38  ;;  %v14207_v13 = vand.u32 4294901760, %v223_v27  ;;  %v14256_v56 = vsub.f32 %v14142_v5, %v19255_v37 }
  0x81   : > { %1194 = vmatmul.mubr.f32.vlgmr.msra.gmra.mxu0 %v19811_v35  ;;  %11561 = vmatprep.subr.mxu0 %v13955_v42  ;;  %19813 = vst [vmem:[#allocation15_spill] sm:$0xff] %v14150_v15  ;;  %19815 = vst [vmem:[#allocation20_spill] sm:$0xff] %v14189_v45  ;;  %v14205_v4 = vsub.f32 %v225_v6, %v14150_v15  ;;  %v14261_v0 = vsub.f32 %v240_v48, %v14189_v45  ;;  %v19826_v37 = vand.u32 4294901760, %v14077_v1  ;;  %v219_v1 = vld [vmem:[%s19172_s1 + $0x110] sm:$0xff] }
  0x82   : > { %11551 = vmatpush3.msra.mxu1 %v19757_v26  ;;  %11562 = vmatpush3.msra.mxu0 %v13957_v55  ;;  %19814 = vst [vmem:[#allocation19_spill] sm:$0xff] %v14161_v39  ;;  %v1539_v26 = vand.u32 4294901760, %v14120_v52  ;;  %v14191_v52 = vand.u32 4294901760, %v224_v2  ;;  %19818 = vst [vmem:[#allocation26_spill] sm:$0xff] %v14207_v13  ;;  %v14221_v6 = vsub.f32 %v14112_v38, %v19252_v33  ;;  %v238_v33 = vld [vmem:[%s19172_s1 + $0x1a8] sm:$0xff] }
  0x83   : > { %11552 = vmatprep.subr.mxu1 %v19759_v12  ;;  %11563 = vmatprep.subr.mxu0 %v13979_v28  ;;  %19817 = vst [vmem:[#allocation22_spill] sm:$0xff] %v14205_v4  ;;  %v14210_v12 = vsub.f32 %v241_v34, %v14147_v9  ;;  %v14226_v34 = vsub.f32 %v14100_v21, %v19253_v31  ;;  %v14242_v31 = vand.u32 4294901760, %v222_v36 }
  0x84   : > { %11553 = vmatpush3.msra.mxu1 %v19761_v29  ;;  %11564 = vmatpush3.msra.mxu0 %v13968_v16  ;;  %19816 = vst [vmem:[#allocation21_spill] sm:$0xff] %v14191_v52  ;;  %v14202_v29 = vsub.f32 %v14094_v8, %v19251_v11  ;;  %v14229_v11 = vand.u32 4294901760, %v14180_v22  ;;  %v1560_v48 = vand.u32 4294901760, %v14221_v6 }
  0x85   : > { %11554 = vmatprep.subr.mxu1 %v19763_v47  ;;  %11565 = vmatprep.subr.mxu0 %v13992_v14  ;;  %19819 = vst [vmem:[#allocation16_spill] sm:$0xff] %v14210_v12  ;;  %19821 = vst [vmem:[#allocation17_spill] sm:$0xff] %v14242_v31  ;;  %v14258_v47 = vand.u32 4294901760, %v221_v44 }
  0x86   : > { %11555 = vmatpush3.msra.mxu1 %v13693_v41  ;;  %11566 = vmatpush3.msra.mxu0 %v13981_v46  ;;  %19820 = vst [vmem:[#allocation27_spill] sm:$0xff] %v14229_v11  ;;  %v14236_v41 = vsub.f32 %v14123_v49, %v19254_v54  ;;  %v14251_v54 = vsub.f32 %v224_v2, %v14191_v52  ;;  %v172_v2 = vld [vmem:[%s13676_s9 + $0x18] sm:$0xff] }
  0x87   : > { %11556 = vmatprep.subr.mxu1 %v13710_v20  ;;  %11567 = vmatprep.subr.mxu0 %v14040_v57  ;;  %v237_v20 = vld [vmem:[%s19172_s1 + $0x1a0] sm:$0xff]  ;;  %19822 = vst [vmem:[#allocation28_spill] sm:$0xff] %v14258_v47  ;;  %v19824_v57 = vand.u32 4294901760, %v14072_v19  ;;  %v19827_v19 = vand.u32 4294901760, %v14184_v63 }
  0x88   : > { %11557 = vmatpush3.msra.mxu1 %v13728_v24  ;;  %1296 = vmatprep.mubr.f32.mxu1 %v19808_v61  ;;  %v1553_v24 = vand.u32 4294901760, %v14202_v29  ;;  %v14267_v61 = vsub.f32 %v223_v27, %v14207_v13  ;;  %v14278_v29 = vand.u32 4294901760, %v237_v20  ;;  %v220_v27 = vld [vmem:[%s19172_s1 + $0x118] sm:$0xff] }
  0x89   : > { %11568 = vmatpush3.msra.mxu0 %v14009_v51  ;;  %1298 = vmatmul.mubr.f32.vlgmr.msra.gmra.mxu1 %v19811_v35  ;;  %v1448_v51 = vand.u32 4294901760, %v14226_v34  ;;  %v14276_v35 = vand.u32 4294901760, %v238_v33  ;;  %v14291_v6 = vsub.f32 %v14184_v63, %v19827_v19  ;;  %v14294_v34 = vsub.f32 %v222_v36, %v14242_v31  ;;  %v236_v36 = vld [vmem:[%s19172_s1 + $0x198] sm:$0xff] }
  0x8a   : > { %19823 = vst [vmem:[#allocation24_spill] sm:$0xff] %v14267_v61  ;;  %11569 = vmatprep.subr.mxu0 %v14052_v50  ;;  %11596 = vmatprep.subr.mxu1 %v19824_v57  ;;  %v19828_v50 = vand.u32 4294901760, %v14161_v39  ;;  %v1567_v57 = vand.u32 4294901760, %v14256_v56  ;;  %v14308_v19 = vsub.f32 %v221_v44, %v14258_v47  ;;  %v19831_v56 = vand.u32 4294901760, %v14210_v12 }
  0x8b   : > { %19825 = vst [vmem:[#allocation18_spill] sm:$0xff] %v14276_v35  ;;  %11570 = vmatpush3.msra.mxu0 %v14054_v40  ;;  %11597 = vmatpush3.msra.mxu1 %v19826_v37  ;;  %v171_v37 = vld [vmem:[%s13676_s9 + $0x10] sm:$0xff]  ;;  %v14316_v40 = vsub.f32 %v14180_v22, %v14229_v11  ;;  %v1574_v14 = vand.u32 4294901760, %v14291_v6 }
  0x8c   : > { %v14299_v46 = vsub.f32 %v14161_v39, %v19828_v50  ;;  %11571 = vmatprep.subr.mxu0 %v14079_v3  ;;  %11598 = vmatprep.subr.mxu1 %v1539_v26  ;;  %19829 = vst [vmem:[#allocation25_spill] sm:$0xff] %v14308_v19  ;;  %v19830_v3 = vand.u32 4294901760, %v14091_v10  ;;  %v14324_v44 = vsub.f32 %v14210_v12, %v19831_v56  ;;  %v19832_v26 = vand.u32 4294901760, %v14205_v4  ;;  %v235_v22 = vld [vmem:[%s19172_s1 + $0x190] sm:$0xff] }
  0x8d   : > { %11572 = vmatpush3.msra.mxu0 %v14060_v59  ;;  %v14331_v50 = vand.u32 4294901760, %v220_v27  ;;  %v14336_v59 = vand.u32 4294901760, %v172_v2  ;;  %v14342_v56 = vand.u32 4294901760, %v219_v1  ;;  %v19836_v12 = vand.u32 4294901760, %v14130_v32  ;;  %v218_v32 = vld [vmem:[%s19172_s1 + $0x108] sm:$0xff] }
  0x8e   : > { %11599 = vmatpush3.msra.mxu1 %v19830_v3  ;;  %v14329_v39 = vsub.f32 %v14205_v4, %v19832_v26  ;;  %11573 = vmatprep.subr.mxu0 %v14125_v18  ;;  %v19834_v3 = vand.u32 4294901760, %v14139_v23  ;;  %v14345_v26 = vsub.f32 %v238_v33, %v14276_v35  ;;  %v14347_v4 = vand.u32 4294901760, %v171_v37 }
  0x8f   : > { %19833 = vst [vmem:[#allocation29_spill] sm:$0xff] %v14336_v59  ;;  %11574 = vmatpush3.msra.mxu0 %v14102_v17  ;;  %v1462_v18 = vand.u32 4294901760, %v14299_v46  ;;  %v14354_v23 = vand.u32 4294901760, %v236_v36  ;;  %v19837_v33 = vand.u32 4294901760, %v14261_v0  ;;  %v14363_v17 = vand.u32 4294901760, %v235_v22  ;;  %v234_v46 = vld [vmem:[%s19172_s1 + $0x188] sm:$0xff]  ;;  %1640 = vmatprep.mubr.f32.mxu1 %v14336_v59 }
  0x90   : > { %11600 = vmatprep.subr.mxu1 %v19834_v3  ;;  %19835 = vst [vmem:[#allocation30_spill] sm:$0xff] %v14347_v4  ;;  %11575 = vmatprep.subr.mxu0 %v14147_v9  ;;  %v1581_v6 = vand.u32 4294901760, %v14324_v44  ;;  %v14378_v3 = vsub.f32 %v220_v27, %v14331_v50  ;;  %v14384_v9 = vsub.f32 %v172_v2, %v14336_v59  ;;  %v233_v27 = vld [vmem:[%s19172_s1 + $0x180] sm:$0xff]  ;;  %v19876_v59 = vld [vmem:[#allocation26_spill] sm:$0xff] }
  0x91   : > { %11601 = vmatpush3.msra.mxu1 %v19836_v12  ;;  %v14361_v10 = vsub.f32 %v14261_v0, %v19837_v33  ;;  %19838 = vst [vmem:[#allocation31_spill] sm:$0xff] %v14363_v17  ;;  %v14370_v12 = vsub.f32 %v237_v20, %v14278_v29  ;;  %11576 = vmatpush3.msra.mxu0 %v14150_v15  ;;  %v1469_v33 = vand.u32 4294901760, %v14329_v39  ;;  %v217_v2 = vld [vmem:[%s19172_s1 + $0x100] sm:$0xff]  ;;  %v19842_v15 = vand.u32 4294901760, %v14316_v40 }
  0x92   : > { %11602 = vmatprep.subr.mxu1 %v1553_v24  ;;  %v19839_v24 = vand.u32 4294901760, %v14166_v7  ;;  %11577 = vmatprep.subr.mxu0 %v14189_v45  ;;  %v19840_v7 = vand.u32 4294901760, %v14251_v54  ;;  %v14391_v44 = vsub.f32 %v219_v1, %v14342_v56  ;;  %v14411_v45 = vsub.f32 %v236_v36, %v14354_v23 }
  0x93   : > { %11578 = vmatpush3.msra.mxu0 %v14191_v52  ;;  %v14418_v52 = vand.u32 4294901760, %v218_v32  ;;  %v19843_v39 = vand.u32 4294901760, %v14236_v41  ;;  %v14424_v36 = vand.u32 4294901760, %v233_v27  ;;  %v19298_v41 = vand.u32 4294901760, %v14308_v19 }
  0x94   : > { %11603 = vmatpush3.msra.mxu1 %v19839_v24  ;;  %v1475_v20 = vsub.f32 %v14251_v54, %v19840_v7  ;;  %v14401_v24 = vsub.f32 %v171_v37, %v14347_v4  ;;  %v14407_v7 = vand.u32 4294901760, %v234_v46  ;;  %11579 = vmatprep.subr.mxu0 %v14229_v11  ;;  %v1588_v37 = vand.u32 4294901760, %v14361_v10 }
  0x95   : > { %11604 = vmatprep.subr.mxu1 %v1560_v48  ;;  %v19841_v48 = vand.u32 4294901760, %v14267_v61  ;;  %11580 = vmatpush3.msra.mxu0 %v14207_v13  ;;  %v14430_v10 = vsub.f32 %v235_v22, %v14363_v17 }
  0x96   : > { %11605 = vmatpush3.msra.mxu1 %v1448_v51  ;;  %v1594_v51 = vsub.f32 %v14316_v40, %v19842_v15  ;;  %11581 = vmatprep.subr.mxu0 %v14276_v35  ;;  %v1476_v15 = vand.u32 4294901760, %v1475_v20 }
  0x97   : > { %v1482_v1 = vsub.f32 %v14267_v61, %v19841_v48  ;;  %11606 = vmatprep.subr.mxu1 %v1567_v57  ;;  %v14426_v61 = vand.u32 4294901760, %v217_v2  ;;  %v19844_v48 = vand.u32 4294901760, %v14345_v26  ;;  %11582 = vmatpush3.msra.mxu0 %v14242_v31  ;;  %v19845_v57 = vand.u32 4294901760, %v14294_v34 }
  0x98   : > { %11607 = vmatpush3.msra.mxu1 %v19843_v39  ;;  %11583 = vmatprep.subr.mxu0 %v14278_v29  ;;  %v1595_v20 = vand.u32 4294901760, %v1594_v51  ;;  %v19846_v39 = vand.u32 4294901760, %v14370_v12 }
  0x99   : > { %11608 = vmatprep.subr.mxu1 %v1574_v14  ;;  %v1601_v13 = vsub.f32 %v14345_v26, %v19844_v48  ;;  %v1483_v11 = vand.u32 4294901760, %v1482_v1  ;;  %v1489_v22 = vsub.f32 %v14294_v34, %v19845_v57  ;;  %v14444_v14 = vsub.f32 %v234_v46, %v14407_v7  ;;  %11584 = vmatpush3.msra.mxu0 %v14258_v47 }
  0x9a   : > { %11609 = vmatpush3.msra.mxu1 %v1462_v18  ;;  %v14448_v48 = vsub.f32 %v218_v32, %v14418_v52  ;;  %v1608_v18 = vsub.f32 %v14370_v12, %v19846_v39  ;;  %v14456_v57 = vsub.f32 %v217_v2, %v14426_v61  ;;  %v19848_v46 = vand.u32 4294901760, %v14384_v9  ;;  %11585 = vmatprep.subr.mxu0 %v14354_v23 }
  0x9b   : > { %11610 = vmatprep.subr.mxu1 %v1581_v6  ;;  %v14463_v32 = vsub.f32 %v233_v27, %v14424_v36  ;;  %v1602_v39 = vand.u32 4294901760, %v1601_v13  ;;  %v19850_v2 = vand.u32 4294901760, %v14401_v24  ;;  %11586 = vmatpush3.msra.mxu0 %v14331_v50  ;;  %v19851_v27 = vand.u32 4294901760, %v14411_v45 }
  0x9c   : > { %11611 = vmatpush3.msra.mxu1 %v1469_v33  ;;  %19847 = vst [vmem:[#allocation32_spill] sm:$0xff] %v14456_v57  ;;  %v1402_v6 = vsub.f32 %v14384_v9, %v19848_v46  ;;  %v1496_v33 = vsub.f32 %v14308_v19, %v19298_v41  ;;  %v1490_v46 = vand.u32 4294901760, %v1489_v22  ;;  %11587 = vmatprep.subr.mxu0 %v14363_v17  ;;  %v19852_v41 = vand.u32 4294901760, %v14378_v3 }
  0x9d   : > { %19849 = vst [vmem:[#allocation33_spill] sm:$0xff] %v14463_v32  ;;  %11612 = vmatprep.subr.mxu1 %v1588_v37  ;;  %v1408_v1 = vsub.f32 %v14401_v24, %v19850_v2  ;;  %v1615_v51 = vsub.f32 %v14411_v45, %v19851_v27  ;;  %v1609_v37 = vand.u32 4294901760, %v1608_v18  ;;  %11588 = vmatpush3.msra.mxu0 %v14342_v56  ;;  %v19853_v22 = vand.u32 4294901760, %v14430_v10 }
  0x9e   : > { %11613 = vmatpush3.msra.mxu1 %v1476_v15  ;;  %v1503_v2 = vsub.f32 %v14378_v3, %v19852_v41  ;;  %v1403_v15 = vand.u32 4294901760, %v1402_v6  ;;  %v19302_v13 = vand.u32 4294901760, %v14463_v32  ;;  %11589 = vmatprep.subr.mxu0 %v14407_v7  ;;  %v19854_v17 = vand.u32 4294901760, %v14391_v44 }
  0x9f   : > { %11614 = vmatprep.subr.mxu1 %v1595_v20  ;;  %v1622_v27 = vsub.f32 %v14430_v10, %v19853_v22  ;;  %v1497_v20 = vand.u32 4294901760, %v1496_v33  ;;  %v1409_v18 = vand.u32 4294901760, %v1408_v1  ;;  %v19301_v35 = vand.u32 4294901760, %v14456_v57  ;;  %11590 = vmatpush3.msra.mxu0 %v14418_v52 }
  0xa0   : > { %11615 = vmatpush3.msra.mxu1 %v1483_v11  ;;  %v1510_v41 = vsub.f32 %v14391_v44, %v19854_v17  ;;  %v1616_v11 = vand.u32 4294901760, %v1615_v51  ;;  %v19855_v6 = vand.u32 4294901760, %v14444_v14  ;;  %11591 = vmatprep.subr.mxu0 %v14424_v36  ;;  %v19856_v1 = vand.u32 4294901760, %v14448_v48 }
  0xa1   : > { %11616 = vmatprep.subr.mxu1 %v1602_v39  ;;  %v1504_v39 = vand.u32 4294901760, %v1503_v2  ;;  %11592 = vmatpush3.msra.mxu0 %v14426_v61  ;;  %v1623_v17 = vand.u32 4294901760, %v1622_v27  ;;  %v1636_v51 = vsub.f32 %v14463_v32, %v19302_v13  ;;  %v19874_v13 = vld [vmem:[#allocation21_spill] sm:$0xff] }
  0xa2   : > { %11617 = vmatpush3.msra.mxu1 %v1490_v46  ;;  %v1629_v22 = vsub.f32 %v14444_v14, %v19855_v6  ;;  %v1517_v33 = vsub.f32 %v14448_v48, %v19856_v1  ;;  %1404 = vmatprep.mubr.f32.mxu0 %v1403_v15  ;;  %v1511_v46 = vand.u32 4294901760, %v1510_v41  ;;  %v19858_v41 = vld [vmem:[#allocation19_spill] sm:$0xff]  ;;  %v19860_v6 = vld [vmem:[#allocation16_spill] sm:$0xff] }
  0xa3   : > { %11618 = vmatprep.subr.mxu1 %v1609_v37  ;;  %1410 = vmatmul.mubr.f32.vlgmr.msra.gmra.mxu0 %v1409_v18  ;;  %v1524_v37 = vsub.f32 %v14456_v57, %v19301_v35  ;;  %v1637_v27 = vand.u32 4294901760, %v1636_v51  ;;  %v19857_v18 = vld [vmem:[#allocation6_spill] sm:$0xff]  ;;  %v19863_v1 = vld [vmem:[#allocation23_spill] sm:$0xff]  ;;  %v19873_v35 = vld [vmem:[#allocation20_spill] sm:$0xff] }
  0xa4   : > { %11619 = vmatpush3.msra.mxu1 %v1497_v20  ;;  %11631 = vmatprep.subr.mxu0 %v13995_v53  ;;  %v1630_v2 = vand.u32 4294901760, %v1629_v22  ;;  %v1518_v15 = vand.u32 4294901760, %v1517_v33  ;;  %v19861_v22 = vld [vmem:[#allocation7_spill] sm:$0xff]  ;;  %v19864_v33 = vld [vmem:[#allocation8_spill] sm:$0xff] }
  0xa5   : > { %11620 = vmatprep.subr.mxu1 %v1616_v11  ;;  %11632 = vmatpush3.msra.mxu0 %v13990_v60  ;;  %v1525_v20 = vand.u32 4294901760, %v1524_v37  ;;  %v19859_v11 = vld [vmem:[#allocation5_spill] sm:$0xff]  ;;  %v19866_v51 = vld [vmem:[#allocation11_spill] sm:$0xff]  ;;  %v19868_v37 = vld [vmem:[#allocation10_spill] sm:$0xff] }
  0xa6   : > { %11621 = vmatpush3.msra.mxu1 %v1504_v39  ;;  %11633 = vmatprep.subr.mxu0 %v14024_v30  ;;  %v19862_v39 = vld [vmem:[#allocation22_spill] sm:$0xff] }
  0xa7   : > { %11622 = vmatprep.subr.mxu1 %v1623_v17  ;;  %11634 = vmatpush3.msra.mxu0 %v14001_v58  ;;  %v19865_v17 = vld [vmem:[#allocation9_spill] sm:$0xff] }
  0xa8   : > { %11623 = vmatpush3.msra.mxu1 %v1511_v46  ;;  %11635 = vmatprep.subr.mxu0 %v14035_v25  ;;  %v19867_v46 = vld [vmem:[#allocation24_spill] sm:$0xff] }
  0xa9   : > { %11624 = vmatprep.subr.mxu1 %v1630_v2  ;;  %11636 = vmatpush3.msra.mxu0 %v14015_v62  ;;  %v19869_v2 = vld [vmem:[#allocation13_spill] sm:$0xff] }
  0xaa   : > { %11625 = vmatpush3.msra.mxu1 %v1518_v15  ;;  %11637 = vmatprep.subr.mxu0 %v14094_v8  ;;  %v19870_v15 = vld [vmem:[#allocation12_spill] sm:$0xff] }
  0xab   : > { %11626 = vmatprep.subr.mxu1 %v1637_v27  ;;  %11638 = vmatpush3.msra.mxu0 %v14050_v43  ;;  %v19871_v27 = vld [vmem:[#allocation14_spill] sm:$0xff] }
  0xac   : > { %11627 = vmatpush3.msra.mxu1 %v1525_v20  ;;  %11639 = vmatprep.subr.mxu0 %v14112_v38  ;;  %v19872_v20 = vld [vmem:[#allocation15_spill] sm:$0xff] }
  0xad   : > { %1642 = vmatmul.mubr.f32.vlgmr.msra.gmra.mxu1 %v14347_v4  ;;  %11666 = vmatprep.subr.mxu1 %v13955_v42  ;;  %v19875_v4 = vld [vmem:[#allocation27_spill] sm:$0xff] }
  0xae   : > { %11640 = vmatpush3.msra.mxu0 %v14100_v21  ;;  %11667 = vmatpush3.msra.mxu1 %v13957_v55 }
  0xaf   : > { %11641 = vmatprep.subr.mxu0 %v14142_v5  ;;  %11668 = vmatprep.subr.mxu1 %v13979_v28 }
  0xb0   : > { %11642 = vmatpush3.msra.mxu0 %v14123_v49  ;;  %11669 = vmatpush3.msra.mxu1 %v13968_v16 }
  0xb1   : > { %11643 = vmatprep.subr.mxu0 %v14184_v63  ;;  %11670 = vmatprep.subr.mxu1 %v19857_v18 }
  0xb2   : > { %11644 = vmatpush3.msra.mxu0 %v19858_v41  ;;  %11671 = vmatpush3.msra.mxu1 %v19859_v11 }
  0xb3   : > { %11645 = vmatprep.subr.mxu0 %v19860_v6  ;;  %11672 = vmatprep.subr.mxu1 %v19861_v22 }
  0xb4   : > { %11646 = vmatpush3.msra.mxu0 %v19862_v39  ;;  %11673 = vmatpush3.msra.mxu1 %v19863_v1 }
  0xb5   : > { %11647 = vmatprep.subr.mxu0 %v14261_v0  ;;  %11674 = vmatprep.subr.mxu1 %v19864_v33 }
  0xb6   : > { %11648 = vmatpush3.msra.mxu0 %v14251_v54  ;;  %11675 = vmatpush3.msra.mxu1 %v19865_v17 }
  0xb7   : > { %11649 = vmatprep.subr.mxu0 %v14316_v40  ;;  %11676 = vmatprep.subr.mxu1 %v19866_v51 }
  0xb8   : > { %11650 = vmatpush3.msra.mxu0 %v19867_v46  ;;  %11677 = vmatpush3.msra.mxu1 %v19868_v37 }
  0xb9   : > { %11651 = vmatprep.subr.mxu0 %v14345_v26  ;;  %11678 = vmatprep.subr.mxu1 %v19869_v2 }
  0xba   : > { %11652 = vmatpush3.msra.mxu0 %v14294_v34  ;;  %11679 = vmatpush3.msra.mxu1 %v19870_v15 }
  0xbb   : > { %11653 = vmatprep.subr.mxu0 %v14370_v12  ;;  %11680 = vmatprep.subr.mxu1 %v19871_v27 }
  0xbc   : > { %11654 = vmatpush3.msra.mxu0 %v14308_v19  ;;  %11681 = vmatpush3.msra.mxu1 %v19872_v20  ;;  %v19877_v19 = vld [vmem:[#allocation18_spill] sm:$0xff] }
  0xbd   : > { %11655 = vmatprep.subr.mxu0 %v14411_v45  ;;  %11682 = vmatprep.subr.mxu1 %v19873_v35 }
  0xbe   : > { %11656 = vmatpush3.msra.mxu0 %v14378_v3  ;;  %11683 = vmatpush3.msra.mxu1 %v19874_v13 }
  0xbf   : > { %11657 = vmatprep.subr.mxu0 %v14430_v10  ;;  %11684 = vmatprep.subr.mxu1 %v19875_v4 }
  0xc0   : > { %11658 = vmatpush3.msra.mxu0 %v14391_v44  ;;  %11685 = vmatpush3.msra.mxu1 %v19876_v59 }
  0xc1   : > { %11659 = vmatprep.subr.mxu0 %v14444_v14  ;;  %11686 = vmatprep.subr.mxu1 %v19877_v19  ;;  %v19878_v19 = vand.u32 4294901760, %v13995_v53  ;;  %v19883_v53 = vand.u32 4294901760, %v14035_v25  ;;  %v19888_v25 = vand.u32 4294901760, %v14401_v24 }
  0xc2   : > { %11660 = vmatpush3.msra.mxu0 %v14448_v48  ;;  %11687 = vmatpush3.msra.mxu1 %v14242_v31  ;;  %v19879_v31 = vand.u32 4294901760, %v13990_v60  ;;  %v19884_v60 = vand.u32 4294901760, %v14015_v62  ;;  %v19890_v62 = vand.u32 4294901760, %v14100_v21 }
  0xc3   : > { %11661 = vmatprep.subr.mxu0 %v14463_v32  ;;  %11688 = vmatprep.subr.mxu1 %v14278_v29  ;;  %v19880_v32 = vld [vmem:[#allocation31_spill] sm:$0xff] }
  0xc4   : > { %11662 = vmatpush3.msra.mxu0 %v14456_v57  ;;  %1777 = vmatprep.mubr.f32.mxu0 %v14384_v9  ;;  %v19881_v57 = vand.u32 4294901760, %v14024_v30  ;;  %v19885_v30 = vand.u32 4294901760, %v14094_v8  ;;  %v19891_v8 = vand.u32 4294901760, %v14142_v5  ;;  %v19897_v5 = vand.u32 4294901760, %v14261_v0 }
  0xc5   : > { %11689 = vmatpush3.msra.mxu1 %v14258_v47  ;;  %1780 = vmatmul.mubr.f32.vlgmr.msra.gmra.mxu0 %v14401_v24  ;;  %v19882_v47 = vand.u32 4294901760, %v14001_v58  ;;  %v19886_v58 = vand.u32 4294901760, %v14384_v9  ;;  %v279_v9 = vld [vmem:[%s19172_s1 + $0x2f0] sm:$0xff]  ;;  %v19899_v0 = vand.u32 4294901760, %v14316_v40  ;;  %v261_v40 = vld [vmem:[%s19172_s1 + $0x260] sm:$0xff] }
  0xc6   : > { %11690 = vmatprep.subr.mxu1 %v14354_v23  ;;  %11701 = vmatprep.subr.mxu0 %v19878_v19  ;;  %v19898_v19 = vand.u32 4294901760, %v14251_v54  ;;  %v262_v54 = vld [vmem:[%s19172_s1 + $0x268] sm:$0xff] }
  0xc7   : > { %11691 = vmatpush3.msra.mxu1 %v14331_v50  ;;  %11702 = vmatpush3.msra.mxu0 %v19879_v31  ;;  %v19887_v31 = vand.u32 4294901760, %v14050_v43  ;;  %v19892_v43 = vand.u32 4294901760, %v14123_v49  ;;  %v263_v49 = vld [vmem:[%s19172_s1 + $0x270] sm:$0xff] }
  0xc8   : > { %11692 = vmatprep.subr.mxu1 %v19880_v32  ;;  %11703 = vmatprep.subr.mxu0 %v19881_v57  ;;  %v278_v57 = vld [vmem:[%s19172_s1 + $0x2e8] sm:$0xff] }
  0xc9   : > { %11693 = vmatpush3.msra.mxu1 %v14342_v56  ;;  %11704 = vmatpush3.msra.mxu0 %v19882_v47  ;;  %v19889_v47 = vand.u32 4294901760, %v14112_v38  ;;  %v19893_v38 = vand.u32 4294901760, %v14184_v63  ;;  %v19896_v63 = vand.u32 4294901760, %v19862_v39  ;;  %v14667_v39 = vand.u32 4294901760, %v278_v57 }
  0xca   : > { %11694 = vmatprep.subr.mxu1 %v14407_v7  ;;  %11705 = vmatprep.subr.mxu0 %v19883_v53 }
  0xcb   : > { %11695 = vmatpush3.msra.mxu1 %v14418_v52  ;;  %11706 = vmatpush3.msra.mxu0 %v19884_v60  ;;  %v19908_v60 = vand.u32 4294901760, %v14411_v45  ;;  %v275_v45 = vld [vmem:[%s19172_s1 + $0x2d0] sm:$0xff] }
  0xcc   : > { %11696 = vmatprep.subr.mxu1 %v14424_v36  ;;  %11707 = vmatprep.subr.mxu0 %v19885_v30 }
  0xcd   : > { %11697 = vmatpush3.msra.mxu1 %v14426_v61  ;;  %1884 = vmatprep.mubr.f32.mxu1 %v19886_v58  ;;  %v14707_v58 = vsub.f32 %v278_v57, %v14667_v39 }
  0xce   : > { %11708 = vmatpush3.msra.mxu0 %v19887_v31  ;;  %1888 = vmatmul.mubr.f32.vlgmr.msra.gmra.mxu1 %v19888_v25 }
  0xcf   : > { %11709 = vmatprep.subr.mxu0 %v19889_v47  ;;  %11736 = vmatprep.subr.mxu1 %v13955_v42  ;;  %v264_v42 = vld [vmem:[%s19172_s1 + $0x278] sm:$0xff] }
  0xd0   : > { %11710 = vmatpush3.msra.mxu0 %v19890_v62  ;;  %11737 = vmatpush3.msra.mxu1 %v13957_v55  ;;  %v19894_v55 = vand.u32 4294901760, %v19858_v41  ;;  %v14626_v21 = vand.u32 4294901760, %v264_v42  ;;  %v19900_v41 = vand.u32 4294901760, %v19867_v46 }
  0xd1   : > { %11711 = vmatprep.subr.mxu0 %v19891_v8  ;;  %11738 = vmatprep.subr.mxu1 %v13979_v28  ;;  %v19895_v28 = vand.u32 4294901760, %v19860_v6  ;;  %v14659_v6 = vand.u32 4294901760, %v279_v9 }
  0xd2   : > { %11712 = vmatpush3.msra.mxu0 %v19892_v43  ;;  %11739 = vmatpush3.msra.mxu1 %v13968_v16  ;;  %v280_v16 = vld [vmem:[%s19172_s1 + $0x2f8] sm:$0xff]  ;;  %v19914_v43 = vand.u32 4294901760, %v14391_v44  ;;  %v14748_v44 = vand.u32 4294901760, %v275_v45 }
  0xd3   : > { %11713 = vmatprep.subr.mxu0 %v19893_v38  ;;  %11740 = vmatprep.subr.mxu1 %v19857_v18  ;;  %v14640_v24 = vand.u32 4294901760, %v280_v16  ;;  %v14648_v18 = vand.u32 4294901760, %v263_v49  ;;  %v14699_v53 = vsub.f32 %v279_v9, %v14659_v6 }
  0xd4   : > { %11714 = vmatpush3.msra.mxu0 %v19894_v55  ;;  %11741 = vmatpush3.msra.mxu1 %v19859_v11  ;;  %v14657_v11 = vsub.f32 %v264_v42, %v14626_v21  ;;  %v19915_v42 = vand.u32 4294901760, %v14444_v14  ;;  %v19916_v55 = vld [vmem:[#allocation18_spill] sm:$0xff]  ;;  %19917 = vst [vmem:[#allocation22_spill] sm:$0xff] %v14748_v44  ;;  %v257_v14 = vld [vmem:[%s19172_s1 + $0x240] sm:$0xff] }
  0xd5   : > { %11715 = vmatprep.subr.mxu0 %v19895_v28  ;;  %11742 = vmatprep.subr.mxu1 %v19861_v22  ;;  %v19901_v22 = vand.u32 4294901760, %v14345_v26  ;;  %v19904_v26 = vand.u32 4294901760, %v14370_v12  ;;  %v14684_v46 = vsub.f32 %v263_v49, %v14648_v18  ;;  %v276_v12 = vld [vmem:[%s19172_s1 + $0x2d8] sm:$0xff]  ;;  %v19919_v49 = vand.u32 4294901760, %v14448_v48 }
  0xd6   : > { %11716 = vmatpush3.msra.mxu0 %v19896_v63  ;;  %11743 = vmatpush3.msra.mxu1 %v19863_v1  ;;  %v19902_v1 = vand.u32 4294901760, %v14294_v34  ;;  %v14686_v34 = vand.u32 4294901760, %v261_v40  ;;  %v14730_v62 = vand.u32 4294901760, %v276_v12 }
  0xd7   : > { %11717 = vmatprep.subr.mxu0 %v19897_v5  ;;  %11744 = vmatprep.subr.mxu1 %v19864_v33  ;;  %v14672_v33 = vand.u32 4294901760, %v262_v54  ;;  %v19315_v8 = vand.u32 4294901760, %v14684_v46  ;;  %v19920_v5 = vld [vmem:[#allocation17_spill] sm:$0xff] }
  0xd8   : > { %11718 = vmatpush3.msra.mxu0 %v19898_v19  ;;  %11745 = vmatpush3.msra.mxu1 %v19865_v17  ;;  %v277_v17 = vld [vmem:[%s19172_s1 + $0x2e0] sm:$0xff]  ;;  %19905 = vst [vmem:[#allocation19_spill] sm:$0xff] %v14686_v34  ;;  %19913 = vst [vmem:[#allocation7_spill] sm:$0xff] %v14730_v62 }
  0xd9   : > { %11719 = vmatprep.subr.mxu0 %v19899_v0  ;;  %11746 = vmatprep.subr.mxu1 %v19866_v51  ;;  %19903 = vst [vmem:[#allocation6_spill] sm:$0xff] %v14672_v33  ;;  %v14678_v51 = vsub.f32 %v280_v16, %v14640_v24  ;;  %v14704_v30 = vand.u32 4294901760, %v277_v17  ;;  %v14713_v31 = vsub.f32 %v262_v54, %v14672_v33  ;;  %v19314_v16 = vand.u32 4294901760, %v14707_v58  ;;  %v19921_v0 = vld [vmem:[#allocation33_spill] sm:$0xff] }
  0xda   : > { %11720 = vmatpush3.msra.mxu0 %v19900_v41  ;;  %11747 = vmatpush3.msra.mxu1 %v19868_v37  ;;  %v260_v37 = vld [vmem:[%s19172_s1 + $0x258] sm:$0xff]  ;;  %v19922_v54 = vand.u32 4294901760, %v19921_v0  ;;  %v14780_v48 = vsub.f32 %v14684_v46, %v19315_v8 }
  0xdb   : > { %11721 = vmatprep.subr.mxu0 %v19901_v22  ;;  %11748 = vmatprep.subr.mxu1 %v19869_v2  ;;  %v19906_v2 = vld [vmem:[#allocation25_spill] sm:$0xff]  ;;  %19909 = vst [vmem:[#allocation5_spill] sm:$0xff] %v14704_v30  ;;  %v19319_v25 = vand.u32 4294901760, %v14678_v51  ;;  %v14716_v47 = vand.u32 4294901760, %v260_v37  ;;  %v14757_v63 = vsub.f32 %v277_v17, %v14704_v30  ;;  %v19313_v57 = vand.u32 4294901760, %v14713_v31  ;;  %v19924_v17 = vld [vmem:[#allocation32_spill] sm:$0xff] }
  0xdc   : > { %11722 = vmatpush3.msra.mxu0 %v19902_v1  ;;  %11749 = vmatpush3.msra.mxu1 %v19870_v15  ;;  %v19907_v15 = vand.u32 4294901760, %v19906_v2  ;;  %v14789_v1 = vsub.f32 %v276_v12, %v14730_v62  ;;  %v19930_v12 = vld [vmem:[#allocation30_spill] sm:$0xff] }
  0xdd   : > { %11723 = vmatprep.subr.mxu0 %v19904_v26  ;;  %11750 = vmatprep.subr.mxu1 %v19871_v27  ;;  %v19318_v27 = vand.u32 4294901760, %v14657_v11  ;;  %19911 = vst [vmem:[#allocation16_spill] sm:$0xff] %v14716_v47  ;;  %v14768_v9 = vsub.f32 %v14678_v51, %v19319_v25  ;;  %v14771_v19 = vsub.f32 %v260_v37, %v14716_v47  ;;  %v19925_v26 = vand.u32 4294901760, %v19924_v17  ;;  %v272_v17 = vld [vmem:[%s19172_s1 + $0x2b8] sm:$0xff] }
  0xde   : > { %11724 = vmatpush3.msra.mxu0 %v19907_v15  ;;  %11751 = vmatpush3.msra.mxu1 %v19872_v20  ;;  %v19910_v20 = vand.u32 4294901760, %v14378_v3  ;;  %v19912_v3 = vand.u32 4294901760, %v14430_v10  ;;  %v19317_v10 = vand.u32 4294901760, %v14699_v53  ;;  %v14877_v8 = vand.u32 4294901760, %v272_v17 }
  0xdf   : > { %11725 = vmatprep.subr.mxu0 %v19908_v60  ;;  %11752 = vmatprep.subr.mxu1 %v19873_v35  ;;  %v259_v35 = vld [vmem:[%s19172_s1 + $0x250] sm:$0xff]  ;;  %v14739_v38 = vsub.f32 %v14657_v11, %v19318_v27  ;;  %v14802_v60 = vand.u32 4294901760, %v257_v14 }
  0xe0   : > { %11726 = vmatpush3.msra.mxu0 %v19910_v20  ;;  %11753 = vmatpush3.msra.mxu1 %v19874_v13  ;;  %v14728_v13 = vsub.f32 %v261_v40, %v14686_v34  ;;  %v14750_v28 = vand.u32 4294901760, %v259_v35  ;;  %v273_v40 = vld [vmem:[%s19172_s1 + $0x2c0] sm:$0xff]  ;;  %v14798_v2 = vsub.f32 %v14699_v53, %v19317_v10  ;;  %v19929_v20 = vld [vmem:[#allocation28_spill] sm:$0xff]  ;;  %19935 = vst [vmem:[#allocation14_spill] sm:$0xff] %v14877_v8  ;;  %v254_v10 = vld [vmem:[%s19172_s1 + $0x228] sm:$0xff] }
  0xe1   : > { %11727 = vmatprep.subr.mxu0 %v19912_v3  ;;  %11754 = vmatprep.subr.mxu1 %v19875_v4  ;;  %v258_v4 = vld [vmem:[%s19172_s1 + $0x248] sm:$0xff]  ;;  %19928 = vst [vmem:[#allocation11_spill] sm:$0xff] %v14802_v60  ;;  %v14829_v0 = vand.u32 4294901760, %v273_v40 }
  0xe2   : > { %11728 = vmatpush3.msra.mxu0 %v19914_v43  ;;  %11755 = vmatpush3.msra.mxu1 %v19876_v59  ;;  %19918 = vst [vmem:[#allocation23_spill] sm:$0xff] %v14750_v28  ;;  %v274_v59 = vld [vmem:[%s19172_s1 + $0x2c8] sm:$0xff]  ;;  %v14782_v41 = vand.u32 4294901760, %v258_v4  ;;  %v19312_v22 = vand.u32 4294901760, %v14728_v13  ;;  %v14807_v3 = vsub.f32 %v259_v35, %v14750_v28  ;;  %v14812_v43 = vsub.f32 %v14707_v58, %v19314_v16 }
  0xe3   : > { %11729 = vmatprep.subr.mxu0 %v19915_v42  ;;  %11756 = vmatprep.subr.mxu1 %v19916_v55  ;;  %v14800_v15 = vand.u32 4294901760, %v274_v59  ;;  %v19316_v42 = vand.u32 4294901760, %v14757_v63  ;;  %v256_v55 = vld [vmem:[%s19172_s1 + $0x238] sm:$0xff]  ;;  %v2394_v35 = vand.u32 4294901760, %v14768_v9  ;;  %19931 = vst [vmem:[#allocation24_spill] sm:$0xff] %v14829_v0  ;;  %v14888_v27 = vsub.f32 %v273_v40, %v14829_v0 }
  0xe4   : > { %11730 = vmatpush3.msra.mxu0 %v19919_v49  ;;  %11757 = vmatpush3.msra.mxu1 %v19920_v5  ;;  %19923 = vst [vmem:[#allocation8_spill] sm:$0xff] %v14782_v41  ;;  %v14819_v49 = vsub.f32 %v275_v45, %v14748_v44  ;;  %v14827_v5 = vsub.f32 %v14713_v31, %v19313_v57 }
  0xe5   : > { %11731 = vmatprep.subr.mxu0 %v19922_v54  ;;  %11758 = vmatprep.subr.mxu1 %v14278_v29  ;;  %v19926_v29 = vld [vmem:[#allocation29_spill] sm:$0xff]  ;;  %19927 = vst [vmem:[#allocation9_spill] sm:$0xff] %v14800_v15  ;;  %v19320_v54 = vand.u32 4294901760, %v14771_v19  ;;  %v14841_v9 = vsub.f32 %v14728_v13, %v19312_v22  ;;  %v255_v22 = vld [vmem:[%s19172_s1 + $0x230] sm:$0xff]  ;;  %v14859_v57 = vsub.f32 %v274_v59, %v14800_v15  ;;  %v19323_v59 = vand.u32 4294901760, %v14807_v3 }
  0xe6   : > { %11732 = vmatpush3.msra.mxu0 %v19925_v26  ;;  %2054 = vmatprep.mubr.f32.mxu0 %v19926_v29  ;;  %v19321_v26 = vand.u32 4294901760, %v14789_v1  ;;  %v19322_v16 = vand.u32 4294901760, %v14819_v49  ;;  %19936 = vst [vmem:[#allocation15_spill] sm:$0xff] %v14888_v27 }
  0xe7   : > { %11759 = vmatpush3.msra.mxu1 %v19929_v20  ;;  %2056 = vmatmul.mubr.f32.vlgmr.msra.gmra.mxu0 %v19930_v12  ;;  %v14853_v20 = vand.u32 4294901760, %v256_v55 }
  0xe8   : > { %11760 = vmatprep.subr.mxu1 %v14354_v23  ;;  %11771 = vmatprep.subr.mxu0 %v14640_v24  ;;  %v14836_v23 = vsub.f32 %v258_v4, %v14782_v41  ;;  %v14851_v4 = vsub.f32 %v257_v14, %v14802_v60  ;;  %v14867_v14 = vsub.f32 %v14757_v63, %v19316_v42 }
  0xe9   : > { %11761 = vmatpush3.msra.mxu1 %v14331_v50  ;;  %11772 = vmatpush3.msra.mxu0 %v14626_v21  ;;  %v2401_v50 = vand.u32 4294901760, %v14798_v2  ;;  %19934 = vst [vmem:[#allocation12_spill] sm:$0xff] %v14853_v20  ;;  %v271_v2 = vld [vmem:[%s19172_s1 + $0x2b0] sm:$0xff]  ;;  %v14882_v42 = vsub.f32 %v14771_v19, %v19320_v54  ;;  %v14896_v25 = vsub.f32 %v14789_v1, %v19321_v26  ;;  %v14898_v54 = vand.u32 4294901760, %v255_v22 }
  0xea   : > { %19932 = vst [vmem:[#allocation10_spill] sm:$0xff] %v14836_v23  ;;  %11762 = vmatprep.subr.mxu1 %v19880_v32  ;;  %11773 = vmatprep.subr.mxu0 %v14659_v6  ;;  %19933 = vst [vmem:[#allocation13_spill] sm:$0xff] %v14851_v4  ;;  %v14912_v26 = vand.u32 4294901760, %v271_v2  ;;  %v2415_v37 = vand.u32 4294901760, %v14867_v14  ;;  %v14929_v32 = vand.u32 4294901760, %v254_v10 }
  0xeb   : > { %11763 = vmatpush3.msra.mxu1 %v14342_v56  ;;  %11774 = vmatpush3.msra.mxu0 %v14648_v18  ;;  %19937 = vst [vmem:[#allocation20_spill] sm:$0xff] %v14898_v54  ;;  %v270_v56 = vld [vmem:[%s19172_s1 + $0x2a8] sm:$0xff]  ;;  %v2422_v45 = vand.u32 4294901760, %v14896_v25  ;;  %v14945_v40 = vsub.f32 %v255_v22, %v14898_v54  ;;  %v19945_v25 = vand.u32 4294901760, %v14739_v38  ;;  %v19946_v22 = vand.u32 4294901760, %v14859_v57 }
  0xec   : > { %11764 = vmatprep.subr.mxu1 %v14407_v7  ;;  %11775 = vmatprep.subr.mxu0 %v14667_v39  ;;  %v14910_v7 = vsub.f32 %v256_v55, %v14853_v20  ;;  %19939 = vst [vmem:[#allocation27_spill] sm:$0xff] %v14912_v26  ;;  %v14927_v55 = vsub.f32 %v14807_v3, %v19323_v59  ;;  %19940 = vst [vmem:[#allocation26_spill] sm:$0xff] %v14929_v32  ;;  %v14937_v14 = vand.u32 4294901760, %v270_v56 }
  0xed   : > { %11765 = vmatpush3.msra.mxu1 %v14418_v52  ;;  %11776 = vmatpush3.msra.mxu0 %v14672_v33  ;;  %v253_v52 = vld [vmem:[%s19172_s1 + $0x220] sm:$0xff]  ;;  %v19948_v33 = vand.u32 4294901760, %v14780_v48 }
  0xee   : > { %11766 = vmatprep.subr.mxu1 %v14424_v36  ;;  %11777 = vmatprep.subr.mxu0 %v14704_v30  ;;  %19938 = vst [vmem:[#allocation21_spill] sm:$0xff] %v14910_v7  ;;  %v14922_v36 = vsub.f32 %v14819_v49, %v19322_v16  ;;  %19941 = vst [vmem:[#allocation31_spill] sm:$0xff] %v14937_v14  ;;  %v14940_v59 = vand.u32 4294901760, %v253_v52  ;;  %v252_v16 = vld [vmem:[%s19172_s1 + $0x218] sm:$0xff]  ;;  %v174_v30 = vld [vmem:[%s13676_s9 + $0x28] sm:$0xff] }
  0xef   : > { %11767 = vmatpush3.msra.mxu1 %v14426_v61  ;;  %2158 = vmatprep.mubr.f32.mxu1 %v19926_v29  ;;  %v269_v61 = vld [vmem:[%s19172_s1 + $0x2a0] sm:$0xff]  ;;  %v14953_v29 = vsub.f32 %v272_v17, %v14877_v8  ;;  %v19947_v17 = vand.u32 4294901760, %v14851_v4 }
  0xf0   : > { %11778 = vmatpush3.msra.mxu0 %v14686_v34  ;;  %2160 = vmatmul.mubr.f32.vlgmr.msra.gmra.mxu1 %v19930_v12  ;;  %19942 = vst [vmem:[#allocation25_spill] sm:$0xff] %v14940_v59  ;;  %v19943_v34 = vand.u32 4294901760, %v14836_v23  ;;  %v2429_v38 = vand.u32 4294901760, %v14922_v36 }
  0xf1   : > { %11779 = vmatprep.subr.mxu0 %v14730_v62  ;;  %11806 = vmatprep.subr.mxu1 %v2394_v35  ;;  %19944 = vst [vmem:[#allocation18_spill] sm:$0xff] %v14953_v29  ;;  %v14965_v35 = vsub.f32 %v14859_v57, %v19946_v22  ;;  %v14972_v62 = vsub.f32 %v14851_v4, %v19947_v17 }
  0xf2   : > { %v14950_v12 = vsub.f32 %v14836_v23, %v19943_v34  ;;  %11780 = vmatpush3.msra.mxu0 %v14716_v47  ;;  %11807 = vmatpush3.msra.mxu1 %v19945_v25  ;;  %v14967_v34 = vand.u32 4294901760, %v269_v61  ;;  %v173_v23 = vld [vmem:[%s13676_s9 + $0x20] sm:$0xff]  ;;  %v2317_v25 = vand.u32 4294901760, %v14927_v55  ;;  %v14980_v22 = vsub.f32 %v254_v10, %v14929_v32  ;;  %v268_v47 = vld [vmem:[%s19172_s1 + $0x298] sm:$0xff] }
  0xf3   : > { %11781 = vmatprep.subr.mxu0 %v14748_v44  ;;  %11808 = vmatprep.subr.mxu1 %v2401_v50  ;;  %v14986_v17 = vsub.f32 %v271_v2, %v14912_v26  ;;  %v19949_v50 = vand.u32 4294901760, %v14888_v27  ;;  %v14997_v10 = vsub.f32 %v253_v52, %v14940_v59  ;;  %v14999_v55 = vand.u32 4294901760, %v252_v16  ;;  %v251_v2 = vld [vmem:[%s19172_s1 + $0x210] sm:$0xff] }
  0xf4   : > { %11782 = vmatpush3.msra.mxu0 %v14750_v28  ;;  %11809 = vmatpush3.msra.mxu1 %v19948_v33  ;;  %v15004_v44 = vand.u32 4294901760, %v174_v30  ;;  %v19951_v33 = vand.u32 4294901760, %v14812_v43  ;;  %v2324_v48 = vand.u32 4294901760, %v14950_v12  ;;  %v267_v52 = vld [vmem:[%s19172_s1 + $0x290] sm:$0xff]  ;;  %v15015_v28 = vsub.f32 %v270_v56, %v14937_v14  ;;  %v266_v56 = vld [vmem:[%s19172_s1 + $0x288] sm:$0xff] }
  0xf5   : > { %v14994_v36 = vsub.f32 %v14888_v27, %v19949_v50  ;;  %11783 = vmatprep.subr.mxu0 %v14800_v15  ;;  %v15017_v4 = vand.u32 4294901760, %v173_v23  ;;  %v19953_v15 = vand.u32 4294901760, %v14827_v5  ;;  %v2436_v43 = vand.u32 4294901760, %v14965_v35  ;;  %v250_v35 = vld [vmem:[%s19172_s1 + $0x208] sm:$0xff] }
  0xf6   : > { %19950 = vst [vmem:[#allocation17_spill] sm:$0xff] %v15004_v44  ;;  %11810 = vmatprep.subr.mxu1 %v19951_v33  ;;  %11784 = vmatpush3.msra.mxu0 %v14782_v41  ;;  %v2331_v12 = vand.u32 4294901760, %v14972_v62  ;;  %v15024_v33 = vand.u32 4294901760, %v268_v47  ;;  %v19954_v50 = vand.u32 4294901760, %v14910_v7  ;;  %v15036_v5 = vand.u32 4294901760, %v251_v2 }
  0xf7   : > { %19952 = vst [vmem:[#allocation33_spill] sm:$0xff] %v15017_v4  ;;  %11811 = vmatpush3.msra.mxu1 %v19953_v15  ;;  %11785 = vmatprep.subr.mxu0 %v14829_v0  ;;  %v19955_v41 = vand.u32 4294901760, %v14841_v9  ;;  %v15050_v15 = vsub.f32 %v252_v16, %v14999_v55  ;;  %v15052_v0 = vand.u32 4294901760, %v267_v52  ;;  %v15055_v62 = vsub.f32 %v174_v30, %v15004_v44  ;;  %v265_v16 = vld [vmem:[%s19172_s1 + $0x280] sm:$0xff] }
  0xf8   : > { %v15029_v27 = vsub.f32 %v14910_v7, %v19954_v50  ;;  %11812 = vmatprep.subr.mxu1 %v2415_v37  ;;  %v15043_v50 = vsub.f32 %v269_v61, %v14967_v34  ;;  %11786 = vmatpush3.msra.mxu0 %v14802_v60  ;;  %v2443_v37 = vand.u32 4294901760, %v14994_v36  ;;  %v19957_v61 = vand.u32 4294901760, %v14953_v29  ;;  %v249_v30 = vld [vmem:[%s19172_s1 + $0x200] sm:$0xff] }
  0xf9   : > { %11813 = vmatpush3.msra.mxu1 %v19955_v41  ;;  %19956 = vst [vmem:[#allocation32_spill] sm:$0xff] %v15052_v0  ;;  %11787 = vmatprep.subr.mxu0 %v14877_v8  ;;  %v15061_v7 = vand.u32 4294901760, %v266_v56  ;;  %v15071_v9 = vsub.f32 %v173_v23, %v15017_v4  ;;  %v15081_v8 = vsub.f32 %v268_v47, %v15024_v33  ;;  %v19959_v23 = vand.u32 4294901760, %v14986_v17 }
  0xfa   : > { %11814 = vmatprep.subr.mxu1 %v2422_v45  ;;  %v2449_v60 = vsub.f32 %v14953_v29, %v19957_v61  ;;  %11788 = vmatpush3.msra.mxu0 %v14853_v20  ;;  %v19958_v45 = vand.u32 4294901760, %v14882_v42  ;;  %v2338_v36 = vand.u32 4294901760, %v15029_v27  ;;  %v15077_v61 = vand.u32 4294901760, %v250_v35 }
  0xfb   : > { %11789 = vmatprep.subr.mxu0 %v14912_v26  ;;  %v2456_v29 = vsub.f32 %v14986_v17, %v19959_v23  ;;  %v15088_v20 = vsub.f32 %v251_v2, %v15036_v5  ;;  %v19960_v42 = vand.u32 4294901760, %v14945_v40  ;;  %v15095_v47 = vand.u32 4294901760, %v265_v16  ;;  %2502 = vmatprep.mubr.f32.mxu1 %v15004_v44  ;;  %v19994_v44 = vld [vmem:[#allocation31_spill] sm:$0xff] }
  0xfc   : > { %11815 = vmatpush3.msra.mxu1 %v19958_v45  ;;  %11790 = vmatpush3.msra.mxu0 %v14898_v54  ;;  %v15097_v41 = vand.u32 4294901760, %v249_v30  ;;  %v15101_v23 = vsub.f32 %v267_v52, %v15052_v0  ;;  %v2450_v2 = vand.u32 4294901760, %v2449_v60  ;;  %v19962_v52 = vand.u32 4294901760, %v14980_v22 }
  0xfd   : > { %11816 = vmatprep.subr.mxu1 %v2429_v38  ;;  %v2344_v27 = vsub.f32 %v14945_v40, %v19960_v42  ;;  %11791 = vmatprep.subr.mxu0 %v14937_v14  ;;  %v19961_v42 = vand.u32 4294901760, %v15015_v28  ;;  %v15111_v38 = vsub.f32 %v250_v35, %v15077_v61  ;;  %v19963_v54 = vand.u32 4294901760, %v15043_v50 }
  0xfe   : > { %11817 = vmatpush3.msra.mxu1 %v2317_v25  ;;  %11792 = vmatpush3.msra.mxu0 %v14929_v32  ;;  %v2351_v14 = vsub.f32 %v14980_v22, %v19962_v52  ;;  %v15127_v52 = vsub.f32 %v249_v30, %v15097_v41  ;;  %v19968_v30 = vand.u32 4294901760, %v15071_v9 }
  0xff   : > { %11818 = vmatprep.subr.mxu1 %v2436_v43  ;;  %v2463_v45 = vsub.f32 %v15015_v28, %v19961_v42  ;;  %v15118_v43 = vsub.f32 %v266_v56, %v15061_v7  ;;  %11793 = vmatprep.subr.mxu0 %v14967_v34  ;;  %v2457_v42 = vand.u32 4294901760, %v2456_v29  ;;  %v2345_v25 = vand.u32 4294901760, %v2344_v27 }
 0x100   : > { %11819 = vmatpush3.msra.mxu1 %v2324_v48  ;;  %v2470_v48 = vsub.f32 %v15043_v50, %v19963_v54  ;;  %11794 = vmatpush3.msra.mxu0 %v14940_v59  ;;  %19964 = vst [vmem:[#allocation29_spill] sm:$0xff] %v15127_v52  ;;  %v19965_v56 = vand.u32 4294901760, %v15055_v62  ;;  %v15134_v29 = vsub.f32 %v265_v16, %v15095_v47  ;;  %v19967_v27 = vand.u32 4294901760, %v14997_v10 }
 0x101   : > { %11820 = vmatprep.subr.mxu1 %v2443_v37  ;;  %11795 = vmatprep.subr.mxu0 %v15024_v33  ;;  %v2464_v54 = vand.u32 4294901760, %v2463_v45  ;;  %v2270_v35 = vsub.f32 %v15071_v9, %v19968_v30  ;;  %v19969_v16 = vand.u32 4294901760, %v15081_v8  ;;  %v19368_v59 = vand.u32 4294901760, %v15127_v52 }
 0x102   : > { %11821 = vmatpush3.msra.mxu1 %v2331_v12  ;;  %v2264_v60 = vsub.f32 %v15055_v62, %v19965_v56  ;;  %19966 = vst [vmem:[#allocation28_spill] sm:$0xff] %v15134_v29  ;;  %v2358_v12 = vsub.f32 %v14997_v10, %v19967_v27  ;;  %11796 = vmatpush3.msra.mxu0 %v14999_v55  ;;  %v2352_v56 = vand.u32 4294901760, %v2351_v14  ;;  %v19970_v27 = vand.u32 4294901760, %v15050_v15 }
 0x103   : > { %11822 = vmatprep.subr.mxu1 %v2450_v2  ;;  %v2477_v37 = vsub.f32 %v15081_v8, %v19969_v16  ;;  %11797 = vmatprep.subr.mxu0 %v15052_v0  ;;  %v2471_v2 = vand.u32 4294901760, %v2470_v48  ;;  %v19369_v45 = vand.u32 4294901760, %v15134_v29  ;;  %v2271_v48 = vand.u32 4294901760, %v2270_v35 }
 0x104   : > { %11823 = vmatpush3.msra.mxu1 %v2338_v36  ;;  %v2365_v30 = vsub.f32 %v15050_v15, %v19970_v27  ;;  %11798 = vmatpush3.msra.mxu0 %v15036_v5  ;;  %v2265_v14 = vand.u32 4294901760, %v2264_v60  ;;  %v19971_v36 = vand.u32 4294901760, %v15101_v23  ;;  %v19972_v0 = vand.u32 4294901760, %v15088_v20 }
 0x105   : > { %11824 = vmatprep.subr.mxu1 %v2457_v42  ;;  %11799 = vmatprep.subr.mxu0 %v15061_v7  ;;  %v2359_v42 = vand.u32 4294901760, %v2358_v12  ;;  %v19973_v60 = vand.u32 4294901760, %v15118_v43  ;;  %v19974_v35 = vand.u32 4294901760, %v15111_v38 }
 0x106   : > { %11825 = vmatpush3.msra.mxu1 %v2345_v25  ;;  %v2484_v16 = vsub.f32 %v15101_v23, %v19971_v36  ;;  %v2372_v27 = vsub.f32 %v15088_v20, %v19972_v0  ;;  %11800 = vmatpush3.msra.mxu0 %v15077_v61  ;;  %v2478_v25 = vand.u32 4294901760, %v2477_v37  ;;  %v2498_v37 = vsub.f32 %v15134_v29, %v19369_v45  ;;  %v19992_v45 = vld [vmem:[#allocation12_spill] sm:$0xff] }
 0x107   : > { %11826 = vmatprep.subr.mxu1 %v2464_v54  ;;  %v2491_v36 = vsub.f32 %v15118_v43, %v19973_v60  ;;  %11801 = vmatprep.subr.mxu0 %v15095_v47  ;;  %v2366_v54 = vand.u32 4294901760, %v2365_v30  ;;  %v2379_v12 = vsub.f32 %v15111_v38, %v19974_v35  ;;  %v19978_v60 = vld [vmem:[#allocation5_spill] sm:$0xff]  ;;  %v19981_v35 = vld [vmem:[#allocation18_spill] sm:$0xff] }
 0x108   : > { %11827 = vmatpush3.msra.mxu1 %v2352_v56  ;;  %11802 = vmatpush3.msra.mxu0 %v15097_v41  ;;  %v2485_v0 = vand.u32 4294901760, %v2484_v16  ;;  %v2373_v56 = vand.u32 4294901760, %v2372_v27  ;;  %v2499_v16 = vand.u32 4294901760, %v2498_v37  ;;  %v19976_v27 = vld [vmem:[#allocation6_spill] sm:$0xff]  ;;  %v19984_v37 = vld [vmem:[#allocation16_spill] sm:$0xff] }
 0x109   : > { %11828 = vmatprep.subr.mxu1 %v2471_v2  ;;  %2266 = vmatprep.mubr.f32.mxu0 %v2265_v14  ;;  %v2386_v2 = vsub.f32 %v15127_v52, %v19368_v59  ;;  %v2492_v30 = vand.u32 4294901760, %v2491_v36  ;;  %v2380_v14 = vand.u32 4294901760, %v2379_v12  ;;  %v19979_v36 = vld [vmem:[#allocation13_spill] sm:$0xff]  ;;  %v19982_v12 = vld [vmem:[#allocation7_spill] sm:$0xff]  ;;  %v19991_v59 = vld [vmem:[#allocation14_spill] sm:$0xff] }
 0x10a   : > { %11829 = vmatpush3.msra.mxu1 %v2359_v42  ;;  %2272 = vmatmul.mubr.f32.vlgmr.msra.gmra.mxu0 %v2271_v48  ;;  %v19975_v48 = vld [vmem:[#allocation10_spill] sm:$0xff] }
 0x10b   : > { %11830 = vmatprep.subr.mxu1 %v2478_v25  ;;  %11841 = vmatprep.subr.mxu0 %v14678_v51  ;;  %v2387_v42 = vand.u32 4294901760, %v2386_v2  ;;  %v19977_v25 = vld [vmem:[#allocation15_spill] sm:$0xff] }
 0x10c   : > { %11831 = vmatpush3.msra.mxu1 %v2366_v54  ;;  %11842 = vmatpush3.msra.mxu0 %v14657_v11  ;;  %v19980_v54 = vld [vmem:[#allocation19_spill] sm:$0xff] }
 0x10d   : > { %11832 = vmatprep.subr.mxu1 %v2485_v0  ;;  %11843 = vmatprep.subr.mxu0 %v14699_v53  ;;  %v19983_v0 = vld [vmem:[#allocation21_spill] sm:$0xff]  ;;  %v19986_v2 = vld [vmem:[#allocation23_spill] sm:$0xff] }
 0x10e   : > { %11833 = vmatpush3.msra.mxu1 %v2373_v56  ;;  %11844 = vmatpush3.msra.mxu0 %v14684_v46  ;;  %v19985_v56 = vld [vmem:[#allocation22_spill] sm:$0xff] }
 0x10f   : > { %11834 = vmatprep.subr.mxu1 %v2492_v30  ;;  %11845 = vmatprep.subr.mxu0 %v14707_v58  ;;  %v19987_v30 = vld [vmem:[#allocation9_spill] sm:$0xff] }
 0x110   : > { %11835 = vmatpush3.msra.mxu1 %v2380_v14  ;;  %11846 = vmatpush3.msra.mxu0 %v14713_v31  ;;  %v19988_v14 = vld [vmem:[#allocation8_spill] sm:$0xff] }
 0x111   : > { %11836 = vmatprep.subr.mxu1 %v2499_v16  ;;  %11847 = vmatprep.subr.mxu0 %v14757_v63  ;;  %v19989_v16 = vld [vmem:[#allocation24_spill] sm:$0xff] }
 0x112   : > { %11837 = vmatpush3.msra.mxu1 %v2387_v42  ;;  %11848 = vmatpush3.msra.mxu0 %v14728_v13  ;;  %v19990_v42 = vld [vmem:[#allocation11_spill] sm:$0xff] }
 0x113   : > { %2504 = vmatmul.mubr.f32.vlgmr.msra.gmra.mxu1 %v15017_v4  ;;  %11849 = vmatprep.subr.mxu0 %v14789_v1  ;;  %v19993_v4 = vld [vmem:[#allocation20_spill] sm:$0xff] }
 0x114   : > { %11876 = vmatprep.subr.mxu1 %v14640_v24  ;;  %11850 = vmatpush3.msra.mxu0 %v14771_v19 }
 0x115   : > { %11877 = vmatpush3.msra.mxu1 %v14626_v21  ;;  %11851 = vmatprep.subr.mxu0 %v14819_v49 }
 0x116   : > { %11878 = vmatprep.subr.mxu1 %v14659_v6  ;;  %11852 = vmatpush3.msra.mxu0 %v14807_v3 }
 0x117   : > { %11879 = vmatpush3.msra.mxu1 %v14648_v18  ;;  %11853 = vmatprep.subr.mxu0 %v14859_v57 }
 0x118   : > { %11880 = vmatprep.subr.mxu1 %v14667_v39  ;;  %11854 = vmatpush3.msra.mxu0 %v19975_v48 }
 0x119   : > { %11881 = vmatpush3.msra.mxu1 %v19976_v27  ;;  %11855 = vmatprep.subr.mxu0 %v19977_v25 }
 0x11a   : > { %11882 = vmatprep.subr.mxu1 %v19978_v60  ;;  %11856 = vmatpush3.msra.mxu0 %v19979_v36 }
 0x11b   : > { %11883 = vmatpush3.msra.mxu1 %v19980_v54  ;;  %11857 = vmatprep.subr.mxu0 %v19981_v35 }
 0x11c   : > { %11884 = vmatprep.subr.mxu1 %v19982_v12  ;;  %11858 = vmatpush3.msra.mxu0 %v19983_v0 }
 0x11d   : > { %11885 = vmatpush3.msra.mxu1 %v19984_v37  ;;  %11859 = vmatprep.subr.mxu0 %v14986_v17 }
 0x11e   : > { %11886 = vmatprep.subr.mxu1 %v19985_v56  ;;  %11860 = vmatpush3.msra.mxu0 %v14945_v40 }
 0x11f   : > { %11887 = vmatpush3.msra.mxu1 %v19986_v2  ;;  %11861 = vmatprep.subr.mxu0 %v15015_v28 }
 0x120   : > { %11888 = vmatprep.subr.mxu1 %v19987_v30  ;;  %11862 = vmatpush3.msra.mxu0 %v14980_v22 }
 0x121   : > { %11889 = vmatpush3.msra.mxu1 %v19988_v14  ;;  %11863 = vmatprep.subr.mxu0 %v15043_v50 }
 0x122   : > { %11890 = vmatprep.subr.mxu1 %v19989_v16  ;;  %11864 = vmatpush3.msra.mxu0 %v14997_v10 }
 0x123   : > { %11891 = vmatpush3.msra.mxu1 %v19990_v42  ;;  %11865 = vmatprep.subr.mxu0 %v15081_v8 }
 0x124   : > { %11892 = vmatprep.subr.mxu1 %v19991_v59  ;;  %11866 = vmatpush3.msra.mxu0 %v15050_v15 }
 0x125   : > { %11893 = vmatpush3.msra.mxu1 %v19992_v45  ;;  %11867 = vmatprep.subr.mxu0 %v15101_v23 }
 0x126   : > { %11894 = vmatprep.subr.mxu1 %v14912_v26  ;;  %11868 = vmatpush3.msra.mxu0 %v15088_v20  ;;  %v19995_v26 = vld [vmem:[#allocation25_spill] sm:$0xff] }
 0x127   : > { %11895 = vmatpush3.msra.mxu1 %v19993_v4  ;;  %11869 = vmatprep.subr.mxu0 %v15118_v43 }
 0x128   : > { %11896 = vmatprep.subr.mxu1 %v19994_v44  ;;  %11870 = vmatpush3.msra.mxu0 %v15111_v38  ;;  %v19996_v44 = vand.u32 4294901760, %v14678_v51  ;;  %v20001_v51 = vand.u32 4294901760, %v14707_v58  ;;  %v20006_v58 = vand.u32 4294901760, %v15071_v9 }
 0x129   : > { %11897 = vmatpush3.msra.mxu1 %v14929_v32  ;;  %11871 = vmatprep.subr.mxu0 %v15134_v29  ;;  %v19997_v32 = vand.u32 4294901760, %v14657_v11  ;;  %v19998_v29 = vld [vmem:[#allocation32_spill] sm:$0xff]  ;;  %v20002_v11 = vand.u32 4294901760, %v14713_v31  ;;  %v20008_v31 = vand.u32 4294901760, %v14771_v19  ;;  %v311_v19 = vld [vmem:[%s19172_s1 + $0x3f0] sm:$0xff] }
 0x12a   : > { %11898 = vmatprep.subr.mxu1 %v14967_v34  ;;  %11872 = vmatpush3.msra.mxu0 %v15127_v52  ;;  %v19999_v52 = vand.u32 4294901760, %v14699_v53  ;;  %v20003_v53 = vand.u32 4294901760, %v14757_v63  ;;  %v20009_v63 = vand.u32 4294901760, %v14819_v49  ;;  %v20016_v49 = vand.u32 4294901760, %v19983_v0 }
 0x12b   : > { %2639 = vmatprep.mubr.f32.mxu0 %v15055_v62  ;;  %11899 = vmatpush3.msra.mxu1 %v19995_v26  ;;  %v20000_v26 = vand.u32 4294901760, %v14684_v46  ;;  %v20004_v46 = vand.u32 4294901760, %v15055_v62  ;;  %v295_v62 = vld [vmem:[%s19172_s1 + $0x370] sm:$0xff]  ;;  %v20022_v0 = vand.u32 4294901760, %v15043_v50 }
 0x12c   : > { %2642 = vmatmul.mubr.f32.vlgmr.msra.gmra.mxu0 %v15071_v9  ;;  %11900 = vmatprep.subr.mxu1 %v15024_v33  ;;  %v310_v9 = vld [vmem:[%s19172_s1 + $0x3e8] sm:$0xff] }
 0x12d   : > { %11911 = vmatprep.subr.mxu0 %v19996_v44  ;;  %11901 = vmatpush3.msra.mxu1 %v14999_v55  ;;  %v20005_v44 = vand.u32 4294901760, %v14728_v13  ;;  %v20010_v13 = vand.u32 4294901760, %v14807_v3 }
 0x12e   : > { %11912 = vmatpush3.msra.mxu0 %v19997_v32  ;;  %11902 = vmatprep.subr.mxu1 %v19998_v29 }
 0x12f   : > { %11913 = vmatprep.subr.mxu0 %v19999_v52  ;;  %11903 = vmatpush3.msra.mxu1 %v15036_v5  ;;  %v20017_v52 = vand.u32 4294901760, %v14986_v17  ;;  %v15330_v17 = vand.u32 4294901760, %v295_v62 }
 0x130   : > { %11914 = vmatpush3.msra.mxu0 %v20000_v26  ;;  %11904 = vmatprep.subr.mxu1 %v15061_v7  ;;  %v20007_v26 = vand.u32 4294901760, %v14789_v1  ;;  %v20011_v1 = vand.u32 4294901760, %v14859_v57  ;;  %v20015_v57 = vand.u32 4294901760, %v19981_v35 }
 0x131   : > { %11915 = vmatprep.subr.mxu0 %v20001_v51  ;;  %11905 = vmatpush3.msra.mxu1 %v15077_v61  ;;  %v20027_v51 = vand.u32 4294901760, %v15081_v8 }
 0x132   : > { %11916 = vmatpush3.msra.mxu0 %v20002_v11  ;;  %11906 = vmatprep.subr.mxu1 %v15095_v47  ;;  %v307_v11 = vld [vmem:[%s19172_s1 + $0x3d0] sm:$0xff] }
 0x133   : > { %11917 = vmatprep.subr.mxu0 %v20003_v53  ;;  %11907 = vmatpush3.msra.mxu1 %v15097_v41 }
 0x134   : > { %2746 = vmatprep.mubr.f32.mxu1 %v20004_v46  ;;  %11918 = vmatpush3.msra.mxu0 %v20005_v44  ;;  %v20028_v46 = vand.u32 4294901760, %v15050_v15  ;;  %v306_v44 = vld [vmem:[%s19172_s1 + $0x3c8] sm:$0xff] }
 0x135   : > { %2750 = vmatmul.mubr.f32.vlgmr.msra.gmra.mxu1 %v20006_v58  ;;  %11919 = vmatprep.subr.mxu0 %v20007_v26  ;;  %v20030_v58 = vand.u32 4294901760, %v15101_v23  ;;  %v20031_v26 = vld [vmem:[#allocation27_spill] sm:$0xff]  ;;  %v15412_v23 = vand.u32 4294901760, %v307_v11 }
 0x136   : > { %11946 = vmatprep.subr.mxu1 %v14640_v24  ;;  %11920 = vmatpush3.msra.mxu0 %v20008_v31  ;;  %v20012_v24 = vand.u32 4294901760, %v19975_v48  ;;  %v15319_v48 = vand.u32 4294901760, %v311_v19 }
 0x137   : > { %11947 = vmatpush3.msra.mxu1 %v14626_v21  ;;  %11921 = vmatprep.subr.mxu0 %v20009_v63  ;;  %v312_v21 = vld [vmem:[%s19172_s1 + $0x3f8] sm:$0xff]  ;;  %20035 = vst [vmem:[#allocation18_spill] sm:$0xff] %v15412_v23 }
 0x138   : > { %11948 = vmatprep.subr.mxu1 %v14659_v6  ;;  %11922 = vmatpush3.msra.mxu0 %v20010_v13  ;;  %v20013_v6 = vand.u32 4294901760, %v19977_v25  ;;  %v15303_v3 = vand.u32 4294901760, %v312_v21  ;;  %v294_v25 = vld [vmem:[%s19172_s1 + $0x368] sm:$0xff]  ;;  %v20034_v13 = vand.u32 4294901760, %v15088_v20 }
 0x139   : > { %11949 = vmatpush3.msra.mxu1 %v14648_v18  ;;  %11923 = vmatprep.subr.mxu0 %v20011_v1  ;;  %v296_v18 = vld [vmem:[%s19172_s1 + $0x378] sm:$0xff] }
 0x13a   : > { %11950 = vmatprep.subr.mxu1 %v14667_v39  ;;  %11924 = vmatpush3.msra.mxu0 %v20012_v24  ;;  %v20014_v39 = vand.u32 4294901760, %v19979_v36  ;;  %v15308_v32 = vand.u32 4294901760, %v296_v18  ;;  %v15332_v36 = vand.u32 4294901760, %v310_v9  ;;  %v15341_v35 = vsub.f32 %v312_v21, %v15303_v3 }
 0x13b   : > { %11951 = vmatpush3.msra.mxu1 %v19976_v27  ;;  %11925 = vmatprep.subr.mxu0 %v20013_v6  ;;  %v20018_v27 = vand.u32 4294901760, %v14945_v40  ;;  %v309_v40 = vld [vmem:[%s19172_s1 + $0x3e0] sm:$0xff]  ;;  %v20036_v21 = vand.u32 4294901760, %v15118_v43  ;;  %v20037_v6 = vld [vmem:[#allocation31_spill] sm:$0xff]  ;;  %v20039_v43 = vand.u32 4294901760, %v15111_v38 }
 0x13c   : > { %11952 = vmatprep.subr.mxu1 %v19978_v60  ;;  %11926 = vmatpush3.msra.mxu0 %v20014_v39  ;;  %v20019_v60 = vand.u32 4294901760, %v15015_v28  ;;  %20020 = vst [vmem:[#allocation30_spill] sm:$0xff] %v15332_v36  ;;  %v20021_v28 = vand.u32 4294901760, %v14980_v22  ;;  %v20024_v22 = vand.u32 4294901760, %v14997_v10  ;;  %v15377_v10 = vsub.f32 %v295_v62, %v15330_v17 }
 0x13d   : > { %11953 = vmatpush3.msra.mxu1 %v19980_v54  ;;  %11927 = vmatprep.subr.mxu0 %v20015_v57  ;;  %v293_v54 = vld [vmem:[%s19172_s1 + $0x360] sm:$0xff]  ;;  %v15384_v53 = vsub.f32 %v310_v9, %v15332_v36  ;;  %v20040_v57 = vld [vmem:[#allocation26_spill] sm:$0xff]  ;;  %v20041_v9 = vld [vmem:[#allocation28_spill] sm:$0xff] }
 0x13e   : > { %11954 = vmatprep.subr.mxu1 %v19982_v12  ;;  %11928 = vmatpush3.msra.mxu0 %v20016_v49  ;;  %v15347_v12 = vsub.f32 %v296_v18, %v15308_v32  ;;  %v15365_v50 = vand.u32 4294901760, %v293_v54  ;;  %v15426_v18 = vand.u32 4294901760, %v306_v44 }
 0x13f   : > { %11955 = vmatpush3.msra.mxu1 %v19984_v37  ;;  %11929 = vmatprep.subr.mxu0 %v20017_v52  ;;  %v15352_v37 = vand.u32 4294901760, %v294_v25  ;;  %v19379_v39 = vand.u32 4294901760, %v15384_v53  ;;  %v20042_v52 = vand.u32 4294901760, %v20041_v9 }
 0x140   : > { %11956 = vmatprep.subr.mxu1 %v19985_v56  ;;  %11930 = vmatpush3.msra.mxu0 %v20018_v27  ;;  %v308_v56 = vld [vmem:[%s19172_s1 + $0x3d8] sm:$0xff]  ;;  %20026 = vst [vmem:[#allocation15_spill] sm:$0xff] %v15365_v50  ;;  %v15410_v1 = vsub.f32 %v293_v54, %v15365_v50  ;;  %20038 = vst [vmem:[#allocation7_spill] sm:$0xff] %v15426_v18  ;;  %v20043_v54 = vld [vmem:[#allocation29_spill] sm:$0xff] }
 0x141   : > { %11957 = vmatpush3.msra.mxu1 %v19986_v2  ;;  %11931 = vmatprep.subr.mxu0 %v20019_v60  ;;  %20023 = vst [vmem:[#allocation10_spill] sm:$0xff] %v15352_v37  ;;  %v15358_v2 = vsub.f32 %v311_v19, %v15319_v48  ;;  %v15389_v8 = vand.u32 4294901760, %v308_v56  ;;  %v15399_v31 = vsub.f32 %v294_v25, %v15352_v37  ;;  %v290_v19 = vld [vmem:[%s19172_s1 + $0x348] sm:$0xff] }
 0x142   : > { %11958 = vmatprep.subr.mxu1 %v19987_v30  ;;  %11932 = vmatpush3.msra.mxu0 %v20021_v28  ;;  %v15363_v30 = vand.u32 4294901760, %v309_v40  ;;  %v20044_v28 = vand.u32 4294901760, %v20043_v54 }
 0x143   : > { %11959 = vmatpush3.msra.mxu1 %v19988_v14  ;;  %11933 = vmatprep.subr.mxu0 %v20022_v0  ;;  %v292_v14 = vld [vmem:[%s19172_s1 + $0x358] sm:$0xff]  ;;  %20029 = vst [vmem:[#allocation5_spill] sm:$0xff] %v15389_v8  ;;  %v15441_v62 = vsub.f32 %v308_v56, %v15389_v8  ;;  %v19378_v60 = vand.u32 4294901760, %v15399_v31  ;;  %v20045_v0 = vld [vmem:[#allocation17_spill] sm:$0xff]  ;;  %v15467_v56 = vand.u32 4294901760, %v290_v19 }
 0x144   : > { %11960 = vmatprep.subr.mxu1 %v19989_v16  ;;  %11934 = vmatpush3.msra.mxu0 %v20024_v22  ;;  %20025 = vst [vmem:[#allocation6_spill] sm:$0xff] %v15363_v30  ;;  %v291_v16 = vld [vmem:[%s19172_s1 + $0x350] sm:$0xff]  ;;  %v15401_v15 = vand.u32 4294901760, %v292_v14  ;;  %v15415_v24 = vsub.f32 %v309_v40, %v15363_v30  ;;  %v305_v40 = vld [vmem:[%s19172_s1 + $0x3c0] sm:$0xff] }
 0x145   : > { %11961 = vmatpush3.msra.mxu1 %v19990_v42  ;;  %11935 = vmatprep.subr.mxu0 %v20027_v51  ;;  %v19385_v42 = vand.u32 4294901760, %v15341_v35  ;;  %v15404_v63 = vand.u32 4294901760, %v291_v16  ;;  %20046 = vst [vmem:[#allocation21_spill] sm:$0xff] %v15467_v56  ;;  %v20047_v51 = vld [vmem:[#allocation25_spill] sm:$0xff]  ;;  %v19386_v9 = vand.u32 4294901760, %v15441_v62 }
 0x146   : > { %11962 = vmatprep.subr.mxu1 %v19991_v59  ;;  %11936 = vmatpush3.msra.mxu0 %v20028_v46  ;;  %v19384_v59 = vand.u32 4294901760, %v15347_v12  ;;  %20032 = vst [vmem:[#allocation13_spill] sm:$0xff] %v15401_v15  ;;  %v15447_v27 = vsub.f32 %v292_v14, %v15401_v15  ;;  %v19380_v22 = vand.u32 4294901760, %v15415_v24  ;;  %v19383_v14 = vand.u32 4294901760, %v15410_v1  ;;  %v20048_v46 = vld [vmem:[#allocation33_spill] sm:$0xff] }
 0x147   : > { %11963 = vmatpush3.msra.mxu1 %v19992_v45  ;;  %11937 = vmatprep.subr.mxu0 %v20030_v58  ;;  %v19382_v45 = vand.u32 4294901760, %v15358_v2  ;;  %20033 = vst [vmem:[#allocation19_spill] sm:$0xff] %v15404_v63  ;;  %v15423_v20 = vsub.f32 %v15341_v35, %v19385_v42  ;;  %v15455_v25 = vsub.f32 %v291_v16, %v15404_v63  ;;  %v176_v58 = vld [vmem:[%s13676_s9 + $0x38] sm:$0xff] }
 0x148   : > { %11964 = vmatprep.subr.mxu1 %v20031_v26  ;;  %11938 = vmatpush3.msra.mxu0 %v20034_v13  ;;  %v15438_v49 = vsub.f32 %v15347_v12, %v19384_v59  ;;  %v15472_v16 = vsub.f32 %v307_v11, %v15412_v23  ;;  %v15485_v13 = vsub.f32 %v15384_v53, %v19379_v39  ;;  %v19387_v54 = vand.u32 4294901760, %v15447_v27 }
 0x149   : > { %11965 = vmatpush3.msra.mxu1 %v19993_v4  ;;  %11939 = vmatprep.subr.mxu0 %v20036_v21  ;;  %v19381_v4 = vand.u32 4294901760, %v15377_v10  ;;  %v15452_v38 = vsub.f32 %v15358_v2, %v19382_v45  ;;  %v15488_v21 = vsub.f32 %v306_v44, %v15426_v18  ;;  %v15507_v44 = vsub.f32 %v15399_v31, %v19378_v60 }
 0x14a   : > { %11966 = vmatprep.subr.mxu1 %v20037_v6  ;;  %11940 = vmatpush3.msra.mxu0 %v20039_v43  ;;  %v15493_v6 = vand.u32 4294901760, %v305_v40  ;;  %v15527_v60 = vsub.f32 %v15410_v1, %v19383_v14  ;;  %v19389_v39 = vand.u32 4294901760, %v15472_v16  ;;  %v20062_v11 = vand.u32 4294901760, %v15438_v49 }
 0x14b   : > { %11967 = vmatpush3.msra.mxu1 %v20040_v57  ;;  %11941 = vmatprep.subr.mxu0 %v20042_v52  ;;  %v15480_v26 = vsub.f32 %v15377_v10, %v19381_v4  ;;  %v304_v57 = vld [vmem:[%s19172_s1 + $0x3b8] sm:$0xff]  ;;  %v19390_v45 = vand.u32 4294901760, %v15488_v21  ;;  %v20065_v49 = vand.u32 4294901760, %v15452_v38 }
 0x14c   : > { %11968 = vmatprep.subr.mxu1 %v14967_v34  ;;  %v289_v34 = vld [vmem:[%s19172_s1 + $0x340] sm:$0xff]  ;;  %11942 = vmatpush3.msra.mxu0 %v20044_v28  ;;  %20049 = vst [vmem:[#allocation16_spill] sm:$0xff] %v15493_v6  ;;  %v288_v52 = vld [vmem:[%s19172_s1 + $0x338] sm:$0xff]  ;;  %v19388_v28 = vand.u32 4294901760, %v15455_v25  ;;  %v15537_v4 = vand.u32 4294901760, %v304_v57  ;;  %v15559_v42 = vsub.f32 %v305_v40, %v15493_v6 }
 0x14d   : > { %2916 = vmatprep.mubr.f32.mxu0 %v20045_v0  ;;  %11969 = vmatpush3.msra.mxu1 %v20047_v51  ;;  %v15495_v43 = vand.u32 4294901760, %v289_v34  ;;  %v15522_v51 = vsub.f32 %v15415_v24, %v19380_v22  ;;  %v15550_v59 = vand.u32 4294901760, %v288_v52 }
 0x14e   : > { %2918 = vmatmul.mubr.f32.vlgmr.msra.gmra.mxu0 %v20048_v46  ;;  %11970 = vmatprep.subr.mxu1 %v15024_v33  ;;  %20052 = vst [vmem:[#allocation9_spill] sm:$0xff] %v15537_v4  ;;  %20055 = vst [vmem:[#allocation11_spill] sm:$0xff] %v15559_v42  ;;  %v15574_v33 = vsub.f32 %v15455_v25, %v19388_v28  ;;  %v20066_v38 = vand.u32 4294901760, %v15559_v42 }
 0x14f   : > { %11981 = vmatprep.subr.mxu0 %v15303_v3  ;;  %20050 = vst [vmem:[#allocation22_spill] sm:$0xff] %v15495_v43  ;;  %11971 = vmatpush3.msra.mxu1 %v14999_v55  ;;  %v15517_v55 = vsub.f32 %v290_v19, %v15467_v56  ;;  %v3151_v19 = vand.u32 4294901760, %v15480_v26  ;;  %v15543_v14 = vsub.f32 %v289_v34, %v15495_v43  ;;  %20054 = vst [vmem:[#allocation24_spill] sm:$0xff] %v15550_v59  ;;  %v303_v26 = vld [vmem:[%s19172_s1 + $0x3b0] sm:$0xff] }
 0x150   : > { %11982 = vmatpush3.msra.mxu0 %v15308_v32  ;;  %11972 = vmatprep.subr.mxu1 %v19998_v29  ;;  %v287_v29 = vld [vmem:[%s19172_s1 + $0x330] sm:$0xff]  ;;  %v3158_v34 = vand.u32 4294901760, %v15507_v44  ;;  %v15583_v44 = vsub.f32 %v15472_v16, %v19389_v39  ;;  %v301_v39 = vld [vmem:[%s19172_s1 + $0x3a0] sm:$0xff]  ;;  %v15613_v28 = vsub.f32 %v288_v52, %v15550_v59  ;;  %v284_v52 = vld [vmem:[%s19172_s1 + $0x318] sm:$0xff] }
 0x151   : > { %11983 = vmatprep.subr.mxu0 %v15319_v48  ;;  %20051 = vst [vmem:[#allocation23_spill] sm:$0xff] %v15517_v55  ;;  %11973 = vmatpush3.msra.mxu1 %v15036_v5  ;;  %20053 = vst [vmem:[#allocation8_spill] sm:$0xff] %v15543_v14  ;;  %v15548_v5 = vsub.f32 %v15441_v62, %v19386_v9  ;;  %v15567_v9 = vsub.f32 %v15447_v27, %v19387_v54  ;;  %v15569_v22 = vand.u32 4294901760, %v287_v29  ;;  %v302_v54 = vld [vmem:[%s19172_s1 + $0x3a8] sm:$0xff] }
 0x152   : > { %11984 = vmatpush3.msra.mxu0 %v15330_v17  ;;  %11974 = vmatprep.subr.mxu1 %v15061_v7  ;;  %v286_v7 = vld [vmem:[%s19172_s1 + $0x328] sm:$0xff] }
 0x153   : > { %11985 = vmatprep.subr.mxu0 %v15332_v36  ;;  %11975 = vmatpush3.msra.mxu1 %v15077_v61  ;;  %20056 = vst [vmem:[#allocation14_spill] sm:$0xff] %v15569_v22  ;;  %v3277_v61 = vand.u32 4294901760, %v15522_v51  ;;  %v15596_v51 = vsub.f32 %v15488_v21, %v19390_v45  ;;  %v15598_v40 = vand.u32 4294901760, %v286_v7  ;;  %v3284_v45 = vand.u32 4294901760, %v15548_v5 }
 0x154   : > { %11986 = vmatpush3.msra.mxu0 %v15352_v37  ;;  %11976 = vmatprep.subr.mxu1 %v15095_v47  ;;  %v15591_v47 = vand.u32 4294901760, %v303_v26  ;;  %v15625_v5 = vand.u32 4294901760, %v302_v54  ;;  %v175_v37 = vld [vmem:[%s13676_s9 + $0x30] sm:$0xff] }
 0x155   : > { %11987 = vmatprep.subr.mxu0 %v15363_v30  ;;  %11977 = vmatpush3.msra.mxu1 %v15097_v41  ;;  %20058 = vst [vmem:[#allocation20_spill] sm:$0xff] %v15598_v40  ;;  %v285_v41 = vld [vmem:[%s19172_s1 + $0x320] sm:$0xff]  ;;  %v20059_v30 = vand.u32 4294901760, %v15423_v20  ;;  %v20063_v20 = vand.u32 4294901760, %v15517_v55 }
 0x156   : > { %3020 = vmatprep.mubr.f32.mxu1 %v20045_v0  ;;  %20057 = vst [vmem:[#allocation12_spill] sm:$0xff] %v15591_v47  ;;  %v15607_v0 = vsub.f32 %v304_v57, %v15537_v4  ;;  %11988 = vmatpush3.msra.mxu0 %v15365_v50  ;;  %v3172_v57 = vand.u32 4294901760, %v15567_v9  ;;  %v15622_v50 = vsub.f32 %v287_v29, %v15569_v22  ;;  %20061 = vst [vmem:[#allocation27_spill] sm:$0xff] %v15625_v5 }
 0x157   : > { %3022 = vmatmul.mubr.f32.vlgmr.msra.gmra.mxu1 %v20048_v46  ;;  %11989 = vmatprep.subr.mxu0 %v15389_v8  ;;  %v15638_v9 = vsub.f32 %v15517_v55, %v20063_v20  ;;  %v15640_v29 = vand.u32 4294901760, %v301_v39  ;;  %v15642_v46 = vand.u32 4294901760, %v285_v41  ;;  %v283_v8 = vld [vmem:[%s19172_s1 + $0x310] sm:$0xff]  ;;  %v300_v20 = vld [vmem:[%s19172_s1 + $0x398] sm:$0xff]  ;;  %v15660_v55 = vsub.f32 %v303_v26, %v15591_v47 }
 0x158   : > { %12016 = vmatprep.subr.mxu1 %v20059_v30  ;;  %20060 = vst [vmem:[#allocation32_spill] sm:$0xff] %v15622_v50  ;;  %11990 = vmatpush3.msra.mxu0 %v15401_v15  ;;  %v3291_v30 = vand.u32 4294901760, %v15583_v44  ;;  %v15653_v44 = vsub.f32 %v286_v7, %v15598_v40  ;;  %v20067_v7 = vand.u32 4294901760, %v15543_v14  ;;  %v299_v26 = vld [vmem:[%s19172_s1 + $0x390] sm:$0xff]  ;;  %v15678_v15 = vand.u32 4294901760, %v176_v58 }
 0x159   : > { %12017 = vmatpush3.msra.mxu1 %v20062_v11  ;;  %20064 = vst [vmem:[#allocation31_spill] sm:$0xff] %v15642_v46  ;;  %11991 = vmatprep.subr.mxu0 %v15412_v23  ;;  %v15673_v23 = vand.u32 4294901760, %v284_v52  ;;  %v15694_v36 = vsub.f32 %v285_v41, %v15642_v46  ;;  %v298_v41 = vld [vmem:[%s19172_s1 + $0x388] sm:$0xff] }
 0x15a   : > { %12018 = vmatprep.subr.mxu1 %v20065_v49  ;;  %11992 = vmatpush3.msra.mxu0 %v15404_v63  ;;  %v15666_v49 = vsub.f32 %v15559_v42, %v20066_v38  ;;  %v15671_v11 = vsub.f32 %v15543_v14, %v20067_v7  ;;  %20068 = vst [vmem:[#allocation26_spill] sm:$0xff] %v15678_v15  ;;  %v15684_v63 = vand.u32 4294901760, %v283_v8  ;;  %v15689_v14 = vand.u32 4294901760, %v175_v37 }
 0x15b   : > { %12019 = vmatpush3.msra.mxu1 %v3151_v19  ;;  %11993 = vmatprep.subr.mxu0 %v15426_v18  ;;  %v20069_v19 = vand.u32 4294901760, %v15485_v13  ;;  %v15687_v7 = vsub.f32 %v302_v54, %v15625_v5  ;;  %v3186_v42 = vand.u32 4294901760, %v15638_v9  ;;  %20071 = vst [vmem:[#allocation29_spill] sm:$0xff] %v15694_v36  ;;  %v15696_v18 = vand.u32 4294901760, %v300_v20 }
 0x15c   : > { %20070 = vst [vmem:[#allocation28_spill] sm:$0xff] %v15689_v14  ;;  %11994 = vmatpush3.msra.mxu0 %v15467_v56  ;;  %v20072_v54 = vand.u32 4294901760, %v15607_v0  ;;  %v15705_v38 = vand.u32 4294901760, %v299_v26  ;;  %v15712_v9 = vsub.f32 %v301_v39, %v15640_v29  ;;  %v3305_v13 = vand.u32 4294901760, %v15666_v49  ;;  %3364 = vmatprep.mubr.f32.mxu1 %v15678_v15 }
 0x15d   : > { %12020 = vmatprep.subr.mxu1 %v20069_v19  ;;  %11995 = vmatprep.subr.mxu0 %v15493_v6  ;;  %v15720_v6 = vsub.f32 %v284_v52, %v15673_v23  ;;  %v15726_v56 = vsub.f32 %v176_v58, %v15678_v15  ;;  %v20075_v39 = vand.u32 4294901760, %v15613_v28  ;;  %v15733_v49 = vsub.f32 %v283_v8, %v15684_v63  ;;  %v281_v58 = vld [vmem:[%s19172_s1 + $0x300] sm:$0xff]  ;;  %v20112_v15 = vld [vmem:[#allocation14_spill] sm:$0xff] }
 0x15e   : > { %12021 = vmatpush3.msra.mxu1 %v3158_v34  ;;  %v15703_v19 = vsub.f32 %v15607_v0, %v20072_v54  ;;  %20073 = vst [vmem:[#allocation17_spill] sm:$0xff] %v15705_v38  ;;  %11996 = vmatpush3.msra.mxu0 %v15495_v43  ;;  %v3193_v54 = vand.u32 4294901760, %v15671_v11  ;;  %v282_v34 = vld [vmem:[%s19172_s1 + $0x308] sm:$0xff]  ;;  %v297_v11 = vld [vmem:[%s19172_s1 + $0x380] sm:$0xff]  ;;  %v20077_v43 = vand.u32 4294901760, %v15660_v55  ;;  %v20078_v52 = vand.u32 4294901760, %v15574_v33 }
 0x15f   : > { %12022 = vmatprep.subr.mxu1 %v3277_v61  ;;  %v20074_v61 = vand.u32 4294901760, %v15527_v60  ;;  %11997 = vmatprep.subr.mxu0 %v15537_v4  ;;  %v3199_v60 = vsub.f32 %v15613_v28, %v20075_v39  ;;  %v15749_v39 = vand.u32 4294901760, %v298_v41  ;;  %v15753_v4 = vsub.f32 %v300_v20, %v15696_v18 }
 0x160   : > { %11998 = vmatpush3.msra.mxu0 %v15550_v59  ;;  %v15760_v59 = vand.u32 4294901760, %v282_v34  ;;  %v15766_v20 = vand.u32 4294901760, %v297_v11 }
 0x161   : > { %12023 = vmatpush3.msra.mxu1 %v20074_v61  ;;  %v15743_v61 = vsub.f32 %v175_v37, %v15689_v14  ;;  %11999 = vmatprep.subr.mxu0 %v15591_v47  ;;  %v3312_v37 = vand.u32 4294901760, %v15703_v19  ;;  %v15772_v19 = vsub.f32 %v299_v26, %v15705_v38  ;;  %v20081_v26 = vand.u32 4294901760, %v15653_v44 }
 0x162   : > { %12024 = vmatprep.subr.mxu1 %v3284_v45  ;;  %v20076_v45 = vand.u32 4294901760, %v15622_v50  ;;  %12000 = vmatpush3.msra.mxu0 %v15569_v22  ;;  %v20080_v22 = vand.u32 4294901760, %v15687_v7  ;;  %v20082_v47 = vand.u32 4294901760, %v15712_v9 }
 0x163   : > { %12025 = vmatpush3.msra.mxu1 %v3172_v57  ;;  %v3318_v57 = vsub.f32 %v15660_v55, %v20077_v43  ;;  %12001 = vmatprep.subr.mxu0 %v15625_v5  ;;  %v20079_v43 = vand.u32 4294901760, %v15596_v51  ;;  %v3213_v5 = vsub.f32 %v15653_v44, %v20081_v26 }
 0x164   : > { %v3206_v8 = vsub.f32 %v15622_v50, %v20076_v45  ;;  %12026 = vmatprep.subr.mxu1 %v3291_v30  ;;  %v15768_v50 = vand.u32 4294901760, %v281_v58  ;;  %v3200_v45 = vand.u32 4294901760, %v3199_v60  ;;  %v3325_v33 = vsub.f32 %v15687_v7, %v20080_v22  ;;  %12002 = vmatpush3.msra.mxu0 %v15598_v40 }
 0x165   : > { %12027 = vmatpush3.msra.mxu1 %v20078_v52  ;;  %v19433_v52 = vand.u32 4294901760, %v15694_v36  ;;  %v15788_v60 = vsub.f32 %v298_v41, %v15749_v39  ;;  %12003 = vmatprep.subr.mxu0 %v15640_v29  ;;  %v3319_v22 = vand.u32 4294901760, %v3318_v57  ;;  %v20084_v41 = vand.u32 4294901760, %v15726_v56 }
 0x166   : > { %12028 = vmatprep.subr.mxu1 %v20079_v43  ;;  %v3207_v30 = vand.u32 4294901760, %v3206_v8  ;;  %v15792_v43 = vsub.f32 %v282_v34, %v15760_v59  ;;  %12004 = vmatpush3.msra.mxu0 %v15642_v46  ;;  %v15800_v26 = vsub.f32 %v281_v58, %v15768_v50  ;;  %v15807_v34 = vsub.f32 %v297_v11, %v15766_v20 }
 0x167   : > { %12029 = vmatpush3.msra.mxu1 %v3186_v42  ;;  %v3332_v42 = vsub.f32 %v15712_v9, %v20082_v47  ;;  %12005 = vmatprep.subr.mxu0 %v15696_v18  ;;  %v3326_v47 = vand.u32 4294901760, %v3325_v33  ;;  %v20086_v58 = vand.u32 4294901760, %v15743_v61  ;;  %v20087_v11 = vand.u32 4294901760, %v15753_v4 }
 0x168   : > { %12030 = vmatprep.subr.mxu1 %v3305_v13  ;;  %20083 = vst [vmem:[#allocation25_spill] sm:$0xff] %v15800_v26  ;;  %v3126_v13 = vsub.f32 %v15726_v56, %v20084_v41  ;;  %20085 = vst [vmem:[#allocation33_spill] sm:$0xff] %v15807_v34  ;;  %12006 = vmatpush3.msra.mxu0 %v15673_v23  ;;  %v3214_v41 = vand.u32 4294901760, %v3213_v5  ;;  %v19436_v51 = vand.u32 4294901760, %v15800_v26 }
 0x169   : > { %12031 = vmatpush3.msra.mxu1 %v3193_v54  ;;  %v3220_v54 = vsub.f32 %v15694_v36, %v19433_v52  ;;  %v3132_v8 = vsub.f32 %v15743_v61, %v20086_v58  ;;  %v3339_v57 = vsub.f32 %v15753_v4, %v20087_v11  ;;  %12007 = vmatprep.subr.mxu0 %v15705_v38  ;;  %v3333_v33 = vand.u32 4294901760, %v3332_v42 }
 0x16a   : > { %12032 = vmatprep.subr.mxu1 %v3312_v37  ;;  %v20088_v52 = vand.u32 4294901760, %v15720_v6  ;;  %12008 = vmatpush3.msra.mxu0 %v15684_v63  ;;  %v3127_v5 = vand.u32 4294901760, %v3126_v13  ;;  %v19437_v37 = vand.u32 4294901760, %v15807_v34  ;;  %v20090_v38 = vand.u32 4294901760, %v15733_v49 }
 0x16b   : > { %12033 = vmatpush3.msra.mxu1 %v3200_v45  ;;  %v20089_v45 = vand.u32 4294901760, %v15772_v19  ;;  %12009 = vmatprep.subr.mxu0 %v15749_v39  ;;  %v3133_v42 = vand.u32 4294901760, %v3132_v8  ;;  %v20091_v13 = vand.u32 4294901760, %v15788_v60  ;;  %v20092_v8 = vand.u32 4294901760, %v15792_v43 }
 0x16c   : > { %12034 = vmatprep.subr.mxu1 %v3319_v22  ;;  %v3227_v58 = vsub.f32 %v15720_v6, %v20088_v52  ;;  %v3221_v22 = vand.u32 4294901760, %v3220_v54  ;;  %v3234_v52 = vsub.f32 %v15733_v49, %v20090_v38  ;;  %12010 = vmatpush3.msra.mxu0 %v15760_v59 }
 0x16d   : > { %12035 = vmatpush3.msra.mxu1 %v3207_v30  ;;  %v3346_v11 = vsub.f32 %v15772_v19, %v20089_v45  ;;  %v3340_v30 = vand.u32 4294901760, %v3339_v57  ;;  %v3353_v45 = vsub.f32 %v15788_v60, %v20091_v13  ;;  %12011 = vmatprep.subr.mxu0 %v15766_v20  ;;  %v3241_v54 = vsub.f32 %v15792_v43, %v20092_v8  ;;  %v20096_v13 = vld [vmem:[#allocation11_spill] sm:$0xff] }
 0x16e   : > { %12036 = vmatprep.subr.mxu1 %v3326_v47  ;;  %v3228_v47 = vand.u32 4294901760, %v3227_v58  ;;  %12012 = vmatpush3.msra.mxu0 %v15768_v50  ;;  %v3360_v57 = vsub.f32 %v15807_v34, %v19437_v37  ;;  %v20099_v8 = vld [vmem:[#allocation15_spill] sm:$0xff]  ;;  %v20110_v37 = vld [vmem:[#allocation24_spill] sm:$0xff] }
 0x16f   : > { %12037 = vmatpush3.msra.mxu1 %v3214_v41  ;;  %3128 = vmatprep.mubr.f32.mxu0 %v3127_v5  ;;  %v3347_v38 = vand.u32 4294901760, %v3346_v11  ;;  %v3235_v41 = vand.u32 4294901760, %v3234_v52  ;;  %v3354_v58 = vand.u32 4294901760, %v3353_v45  ;;  %v3242_v5 = vand.u32 4294901760, %v3241_v54  ;;  %v20094_v52 = vld [vmem:[#allocation23_spill] sm:$0xff]  ;;  %v20097_v45 = vld [vmem:[#allocation6_spill] sm:$0xff] }
 0x170   : > { %12038 = vmatprep.subr.mxu1 %v3333_v33  ;;  %3134 = vmatmul.mubr.f32.vlgmr.msra.gmra.mxu0 %v3133_v42  ;;  %v3248_v33 = vsub.f32 %v15800_v26, %v19436_v51  ;;  %v3361_v11 = vand.u32 4294901760, %v3360_v57  ;;  %v20093_v42 = vld [vmem:[#allocation30_spill] sm:$0xff]  ;;  %v20100_v54 = vld [vmem:[#allocation5_spill] sm:$0xff] }
 0x171   : > { %12039 = vmatpush3.msra.mxu1 %v3221_v22  ;;  %12051 = vmatprep.subr.mxu0 %v15341_v35  ;;  %v20102_v57 = vld [vmem:[#allocation18_spill] sm:$0xff]  ;;  %v20109_v51 = vld [vmem:[#allocation9_spill] sm:$0xff] }
 0x172   : > { %12040 = vmatprep.subr.mxu1 %v3340_v30  ;;  %12052 = vmatpush3.msra.mxu0 %v15347_v12  ;;  %v3249_v22 = vand.u32 4294901760, %v3248_v33  ;;  %v20095_v30 = vld [vmem:[#allocation10_spill] sm:$0xff]  ;;  %v20104_v33 = vld [vmem:[#allocation19_spill] sm:$0xff] }
 0x173   : > { %12041 = vmatpush3.msra.mxu1 %v3228_v47  ;;  %12053 = vmatprep.subr.mxu0 %v15358_v2  ;;  %v20098_v47 = vld [vmem:[#allocation8_spill] sm:$0xff] }
 0x174   : > { %12042 = vmatprep.subr.mxu1 %v3347_v38  ;;  %12054 = vmatpush3.msra.mxu0 %v15377_v10  ;;  %v20101_v38 = vld [vmem:[#allocation13_spill] sm:$0xff] }
 0x175   : > { %12043 = vmatpush3.msra.mxu1 %v3235_v41  ;;  %12055 = vmatprep.subr.mxu0 %v15384_v53  ;;  %v20103_v41 = vld [vmem:[#allocation32_spill] sm:$0xff] }
 0x176   : > { %12044 = vmatprep.subr.mxu1 %v3354_v58  ;;  %12056 = vmatpush3.msra.mxu0 %v15399_v31  ;;  %v20105_v58 = vld [vmem:[#allocation7_spill] sm:$0xff] }
 0x177   : > { %12045 = vmatpush3.msra.mxu1 %v3242_v5  ;;  %12057 = vmatprep.subr.mxu0 %v15415_v24  ;;  %v20106_v5 = vld [vmem:[#allocation21_spill] sm:$0xff] }
 0x178   : > { %12046 = vmatprep.subr.mxu1 %v3361_v11  ;;  %12058 = vmatpush3.msra.mxu0 %v15410_v1  ;;  %v20107_v11 = vld [vmem:[#allocation16_spill] sm:$0xff] }
 0x179   : > { %12047 = vmatpush3.msra.mxu1 %v3249_v22  ;;  %12059 = vmatprep.subr.mxu0 %v15441_v62  ;;  %v20108_v22 = vld [vmem:[#allocation22_spill] sm:$0xff] }
 0x17a   : > { %3366 = vmatmul.mubr.f32.vlgmr.msra.gmra.mxu1 %v15689_v14  ;;  %12086 = vmatprep.subr.mxu1 %v15303_v3  ;;  %v20111_v14 = vld [vmem:[#allocation12_spill] sm:$0xff] }
 0x17b   : > { %12060 = vmatpush3.msra.mxu0 %v15447_v27  ;;  %12087 = vmatpush3.msra.mxu1 %v15308_v32 }
 0x17c   : > { %12061 = vmatprep.subr.mxu0 %v15472_v16  ;;  %12088 = vmatprep.subr.mxu1 %v15319_v48 }
 0x17d   : > { %12062 = vmatpush3.msra.mxu0 %v15455_v25  ;;  %12089 = vmatpush3.msra.mxu1 %v15330_v17 }
 0x17e   : > { %12063 = vmatprep.subr.mxu0 %v15488_v21  ;;  %12090 = vmatprep.subr.mxu1 %v20093_v42 }
 0x17f   : > { %12064 = vmatpush3.msra.mxu0 %v20094_v52  ;;  %12091 = vmatpush3.msra.mxu1 %v20095_v30 }
 0x180   : > { %12065 = vmatprep.subr.mxu0 %v20096_v13  ;;  %12092 = vmatprep.subr.mxu1 %v20097_v45 }
 0x181   : > { %12066 = vmatpush3.msra.mxu0 %v20098_v47  ;;  %12093 = vmatpush3.msra.mxu1 %v20099_v8 }
 0x182   : > { %12067 = vmatprep.subr.mxu0 %v15607_v0  ;;  %12094 = vmatprep.subr.mxu1 %v20100_v54 }
 0x183   : > { %12068 = vmatpush3.msra.mxu0 %v15613_v28  ;;  %12095 = vmatpush3.msra.mxu1 %v20101_v38 }
 0x184   : > { %12069 = vmatprep.subr.mxu0 %v15660_v55  ;;  %12096 = vmatprep.subr.mxu1 %v20102_v57 }
 0x185   : > { %12070 = vmatpush3.msra.mxu0 %v20103_v41  ;;  %12097 = vmatpush3.msra.mxu1 %v20104_v33 }
 0x186   : > { %12071 = vmatprep.subr.mxu0 %v15687_v7  ;;  %12098 = vmatprep.subr.mxu1 %v20105_v58 }
 0x187   : > { %12072 = vmatpush3.msra.mxu0 %v15653_v44  ;;  %12099 = vmatpush3.msra.mxu1 %v20106_v5 }
 0x188   : > { %12073 = vmatprep.subr.mxu0 %v15712_v9  ;;  %12100 = vmatprep.subr.mxu1 %v20107_v11 }
 0x189   : > { %12074 = vmatpush3.msra.mxu0 %v15694_v36  ;;  %12101 = vmatpush3.msra.mxu1 %v20108_v22  ;;  %v20113_v36 = vld [vmem:[#allocation27_spill] sm:$0xff] }
 0x18a   : > { %12075 = vmatprep.subr.mxu0 %v15753_v4  ;;  %12102 = vmatprep.subr.mxu1 %v20109_v51 }
 0x18b   : > { %12076 = vmatpush3.msra.mxu0 %v15720_v6  ;;  %12103 = vmatpush3.msra.mxu1 %v20110_v37 }
 0x18c   : > { %12077 = vmatprep.subr.mxu0 %v15772_v19  ;;  %12104 = vmatprep.subr.mxu1 %v20111_v14 }
 0x18d   : > { %12078 = vmatpush3.msra.mxu0 %v15733_v49  ;;  %12105 = vmatpush3.msra.mxu1 %v20112_v15 }
 0x18e   : > { %12079 = vmatprep.subr.mxu0 %v15788_v60  ;;  %12106 = vmatprep.subr.mxu1 %v20113_v36  ;;  %v20114_v36 = vand.u32 4294901760, %v15341_v35  ;;  %v20119_v35 = vand.u32 4294901760, %v15384_v53  ;;  %v20124_v53 = vand.u32 4294901760, %v15743_v61 }
 0x18f   : > { %12080 = vmatpush3.msra.mxu0 %v15792_v43  ;;  %12107 = vmatpush3.msra.mxu1 %v15598_v40  ;;  %v20115_v40 = vand.u32 4294901760, %v15347_v12  ;;  %v20121_v12 = vand.u32 4294901760, %v15415_v24  ;;  %v20127_v24 = vand.u32 4294901760, %v15472_v16 }
 0x190   : > { %12081 = vmatprep.subr.mxu0 %v15807_v34  ;;  %12108 = vmatprep.subr.mxu1 %v15640_v29  ;;  %v20116_v34 = vld [vmem:[#allocation17_spill] sm:$0xff] }
 0x191   : > { %12082 = vmatpush3.msra.mxu0 %v15800_v26  ;;  %3501 = vmatprep.mubr.f32.mxu0 %v15726_v56  ;;  %v20117_v26 = vand.u32 4294901760, %v15358_v2  ;;  %v20122_v2 = vand.u32 4294901760, %v15726_v56  ;;  %v20133_v56 = vand.u32 4294901760, %v15607_v0  ;;  %v20135_v0 = vand.u32 4294901760, %v15660_v55  ;;  %v326_v55 = vld [vmem:[%s19172_s1 + $0x468] sm:$0xff] }
 0x192   : > { %12109 = vmatpush3.msra.mxu1 %v15642_v46  ;;  %3504 = vmatmul.mubr.f32.vlgmr.msra.gmra.mxu0 %v15743_v61  ;;  %v20118_v46 = vand.u32 4294901760, %v15377_v10  ;;  %v20123_v10 = vand.u32 4294901760, %v15410_v1  ;;  %v20128_v1 = vand.u32 4294901760, %v15455_v25  ;;  %v20132_v25 = vand.u32 4294901760, %v20098_v47  ;;  %v327_v61 = vld [vmem:[%s19172_s1 + $0x470] sm:$0xff] }
 0x193   : > { %12110 = vmatprep.subr.mxu1 %v15696_v18  ;;  %12121 = vmatprep.subr.mxu0 %v20114_v36  ;;  %v20120_v36 = vand.u32 4294901760, %v15399_v31  ;;  %v20126_v31 = vand.u32 4294901760, %v15447_v27  ;;  %v16012_v47 = vand.u32 4294901760, %v327_v61 }
 0x194   : > { %12111 = vmatpush3.msra.mxu1 %v15673_v23  ;;  %12122 = vmatpush3.msra.mxu0 %v20115_v40  ;;  %v20125_v40 = vand.u32 4294901760, %v15441_v62  ;;  %v344_v62 = vld [vmem:[%s19172_s1 + $0x4f8] sm:$0xff] }
 0x195   : > { %12112 = vmatprep.subr.mxu1 %v20116_v34  ;;  %12123 = vmatprep.subr.mxu0 %v20117_v26  ;;  %v15967_v27 = vand.u32 4294901760, %v344_v62  ;;  %v342_v26 = vld [vmem:[%s19172_s1 + $0x4e8] sm:$0xff] }
 0x196   : > { %12113 = vmatpush3.msra.mxu1 %v15684_v63  ;;  %12124 = vmatpush3.msra.mxu0 %v20118_v46  ;;  %v20134_v46 = vand.u32 4294901760, %v15613_v28  ;;  %v20136_v28 = vand.u32 4294901760, %v20103_v41  ;;  %v16028_v41 = vand.u32 4294901760, %v326_v55 }
 0x197   : > { %12114 = vmatprep.subr.mxu1 %v15749_v39  ;;  %12125 = vmatprep.subr.mxu0 %v20119_v35 }
 0x198   : > { %12115 = vmatpush3.msra.mxu1 %v15760_v59  ;;  %12126 = vmatpush3.msra.mxu0 %v20120_v36  ;;  %20140 = vst [vmem:[#allocation30_spill] sm:$0xff] %v16028_v41 }
 0x199   : > { %12116 = vmatprep.subr.mxu1 %v15766_v20  ;;  %12127 = vmatprep.subr.mxu0 %v20121_v12  ;;  %v20145_v12 = vand.u32 4294901760, %v15753_v4  ;;  %v323_v4 = vld [vmem:[%s19172_s1 + $0x450] sm:$0xff] }
 0x19a   : > { %12117 = vmatpush3.msra.mxu1 %v15768_v50  ;;  %3608 = vmatprep.mubr.f32.mxu1 %v20122_v2  ;;  %v16051_v2 = vsub.f32 %v327_v61, %v16012_v47 }
 0x19b   : > { %12128 = vmatpush3.msra.mxu0 %v20123_v10  ;;  %3612 = vmatmul.mubr.f32.vlgmr.msra.gmra.mxu1 %v20124_v53  ;;  %v20147_v53 = vand.u32 4294901760, %v15720_v6 }
 0x19c   : > { %12129 = vmatprep.subr.mxu0 %v20125_v40  ;;  %12156 = vmatprep.subr.mxu1 %v15303_v3  ;;  %v20129_v3 = vand.u32 4294901760, %v15488_v21  ;;  %v343_v21 = vld [vmem:[%s19172_s1 + $0x4f0] sm:$0xff] }
 0x19d   : > { %12130 = vmatpush3.msra.mxu0 %v20126_v31  ;;  %12157 = vmatpush3.msra.mxu1 %v15308_v32  ;;  %v20130_v32 = vand.u32 4294901760, %v20094_v52  ;;  %v15998_v52 = vand.u32 4294901760, %v343_v21  ;;  %v20149_v31 = vand.u32 4294901760, %v15772_v19 }
 0x19e   : > { %12131 = vmatprep.subr.mxu0 %v20127_v24  ;;  %12158 = vmatprep.subr.mxu1 %v15319_v48  ;;  %v328_v48 = vld [vmem:[%s19172_s1 + $0x478] sm:$0xff]  ;;  %v16071_v24 = vsub.f32 %v326_v55, %v16028_v41 }
 0x19f   : > { %12132 = vmatpush3.msra.mxu0 %v20128_v1  ;;  %12159 = vmatpush3.msra.mxu1 %v15330_v17  ;;  %v20131_v17 = vand.u32 4294901760, %v20096_v13  ;;  %v15975_v16 = vand.u32 4294901760, %v328_v48  ;;  %v20137_v13 = vand.u32 4294901760, %v15687_v7  ;;  %v340_v7 = vld [vmem:[%s19172_s1 + $0x4d8] sm:$0xff] }
 0x1a0   : > { %12133 = vmatprep.subr.mxu0 %v20129_v3  ;;  %12160 = vmatprep.subr.mxu1 %v20093_v42  ;;  %v15993_v42 = vsub.f32 %v344_v62, %v15967_v27  ;;  %v16053_v10 = vand.u32 4294901760, %v340_v7  ;;  %v20151_v62 = vand.u32 4294901760, %v15733_v49  ;;  %v20152_v3 = vand.u32 4294901760, %v15788_v60  ;;  %v322_v60 = vld [vmem:[%s19172_s1 + $0x448] sm:$0xff] }
 0x1a1   : > { %12134 = vmatpush3.msra.mxu0 %v20130_v32  ;;  %12161 = vmatpush3.msra.mxu1 %v20095_v30  ;;  %v341_v30 = vld [vmem:[%s19172_s1 + $0x4e0] sm:$0xff]  ;;  %v20153_v32 = vld [vmem:[#allocation27_spill] sm:$0xff]  ;;  %v19450_v49 = vand.u32 4294901760, %v16051_v2  ;;  %v19448_v55 = vand.u32 4294901760, %v16071_v24 }
 0x1a2   : > { %12135 = vmatprep.subr.mxu0 %v20131_v17  ;;  %12162 = vmatprep.subr.mxu1 %v20097_v45  ;;  %v16010_v45 = vsub.f32 %v328_v48, %v15975_v16  ;;  %20146 = vst [vmem:[#allocation11_spill] sm:$0xff] %v16053_v10  ;;  %v16098_v17 = vand.u32 4294901760, %v323_v4 }
 0x1a3   : > { %12136 = vmatpush3.msra.mxu0 %v20132_v25  ;;  %12163 = vmatpush3.msra.mxu1 %v20099_v8  ;;  %v325_v8 = vld [vmem:[%s19172_s1 + $0x460] sm:$0xff]  ;;  %v16108_v25 = vsub.f32 %v340_v7, %v16053_v10 }
 0x1a4   : > { %12137 = vmatprep.subr.mxu0 %v20133_v56  ;;  %12164 = vmatprep.subr.mxu1 %v20100_v54  ;;  %v20138_v54 = vand.u32 4294901760, %v15653_v44  ;;  %v19457_v44 = vand.u32 4294901760, %v15993_v42  ;;  %v16039_v36 = vand.u32 4294901760, %v325_v8  ;;  %20154 = vst [vmem:[#allocation15_spill] sm:$0xff] %v16098_v17  ;;  %v20155_v56 = vand.u32 4294901760, %v15792_v43  ;;  %v337_v43 = vld [vmem:[%s19172_s1 + $0x4c0] sm:$0xff] }
 0x1a5   : > { %12138 = vmatpush3.msra.mxu0 %v20134_v46  ;;  %12165 = vmatpush3.msra.mxu1 %v20101_v38  ;;  %v16020_v38 = vand.u32 4294901760, %v342_v26 }
 0x1a6   : > { %12139 = vmatprep.subr.mxu0 %v20135_v0  ;;  %12166 = vmatprep.subr.mxu1 %v20102_v57  ;;  %v20139_v57 = vand.u32 4294901760, %v15712_v9  ;;  %20144 = vst [vmem:[#allocation10_spill] sm:$0xff] %v16039_v36  ;;  %v339_v9 = vld [vmem:[%s19172_s1 + $0x4d0] sm:$0xff]  ;;  %v16076_v6 = vsub.f32 %v15993_v42, %v19457_v44  ;;  %v20157_v0 = vld [vmem:[#allocation33_spill] sm:$0xff] }
 0x1a7   : > { %12140 = vmatpush3.msra.mxu0 %v20136_v28  ;;  %12167 = vmatpush3.msra.mxu1 %v20104_v33  ;;  %v16030_v33 = vand.u32 4294901760, %v341_v30  ;;  %v317_v44 = vld [vmem:[%s19172_s1 + $0x420] sm:$0xff] }
 0x1a8   : > { %12141 = vmatprep.subr.mxu0 %v20137_v13  ;;  %12168 = vmatprep.subr.mxu1 %v20105_v58  ;;  %v324_v58 = vld [vmem:[%s19172_s1 + $0x458] sm:$0xff]  ;;  %v4118_v28 = vand.u32 4294901760, %v16076_v6  ;;  %v321_v13 = vld [vmem:[%s19172_s1 + $0x440] sm:$0xff] }
 0x1a9   : > { %12142 = vmatpush3.msra.mxu0 %v20138_v54  ;;  %12169 = vmatpush3.msra.mxu1 %v20106_v5  ;;  %20141 = vst [vmem:[#allocation23_spill] sm:$0xff] %v16030_v33  ;;  %v20142_v5 = vld [vmem:[#allocation29_spill] sm:$0xff]  ;;  %v16059_v40 = vand.u32 4294901760, %v324_v58  ;;  %v16081_v1 = vsub.f32 %v341_v30, %v16030_v33 }
 0x1aa   : > { %12143 = vmatprep.subr.mxu0 %v20139_v57  ;;  %12170 = vmatprep.subr.mxu1 %v20107_v11  ;;  %v20143_v35 = vand.u32 4294901760, %v20142_v5  ;;  %v16045_v11 = vsub.f32 %v343_v21, %v15998_v52  ;;  %v20156_v21 = vld [vmem:[#allocation20_spill] sm:$0xff]  ;;  %v20159_v54 = vld [vmem:[#allocation25_spill] sm:$0xff]  ;;  %v16142_v5 = vand.u32 4294901760, %v322_v60 }
 0x1ab   : > { %12171 = vmatpush3.msra.mxu1 %v20108_v22  ;;  %v19456_v22 = vand.u32 4294901760, %v16010_v45  ;;  %20148 = vst [vmem:[#allocation6_spill] sm:$0xff] %v16059_v40  ;;  %v16114_v46 = vsub.f32 %v324_v58, %v16059_v40  ;;  %v19449_v30 = vand.u32 4294901760, %v16081_v1  ;;  %v20160_v7 = vand.u32 4294901760, %v20159_v54 }
 0x1ac   : > { %12144 = vmatpush3.msra.mxu0 %v20143_v35  ;;  %12172 = vmatprep.subr.mxu1 %v20109_v51  ;;  %v16065_v51 = vsub.f32 %v342_v26, %v16020_v38  ;;  %v19453_v19 = vand.u32 4294901760, %v16045_v11  ;;  %v20158_v26 = vand.u32 4294901760, %v20157_v0  ;;  %20163 = vst [vmem:[#allocation13_spill] sm:$0xff] %v16142_v5  ;;  %v320_v0 = vld [vmem:[%s19172_s1 + $0x438] sm:$0xff] }
 0x1ad   : > { %12145 = vmatprep.subr.mxu0 %v20145_v12  ;;  %12173 = vmatpush3.msra.mxu1 %v20110_v37  ;;  %v16078_v37 = vand.u32 4294901760, %v339_v9  ;;  %v16096_v48 = vsub.f32 %v16010_v45, %v19456_v22  ;;  %v20164_v12 = vld [vmem:[#allocation31_spill] sm:$0xff]  ;;  %v16185_v54 = vsub.f32 %v16081_v1, %v19449_v30 }
 0x1ae   : > { %12146 = vmatpush3.msra.mxu0 %v20147_v53  ;;  %12174 = vmatprep.subr.mxu1 %v20111_v14  ;;  %v16087_v14 = vsub.f32 %v325_v8, %v16039_v36  ;;  %v19447_v61 = vand.u32 4294901760, %v16065_v51  ;;  %v16138_v57 = vsub.f32 %v16045_v11, %v19453_v19  ;;  %v20165_v53 = vld [vmem:[#allocation28_spill] sm:$0xff]  ;;  %v319_v30 = vld [vmem:[%s19172_s1 + $0x430] sm:$0xff] }
 0x1af   : > { %12147 = vmatprep.subr.mxu0 %v20149_v31  ;;  %20150 = vst [vmem:[#allocation8_spill] sm:$0xff] %v16078_v37  ;;  %12175 = vmatpush3.msra.mxu1 %v20112_v15  ;;  %v338_v15 = vld [vmem:[%s19172_s1 + $0x4c8] sm:$0xff]  ;;  %v16130_v8 = vsub.f32 %v339_v9, %v16078_v37  ;;  %v336_v9 = vld [vmem:[%s19172_s1 + $0x4b8] sm:$0xff] }
 0x1b0   : > { %12148 = vmatpush3.msra.mxu0 %v20151_v62  ;;  %12176 = vmatprep.subr.mxu1 %v20153_v32  ;;  %v16140_v58 = vand.u32 4294901760, %v338_v15  ;;  %v19451_v35 = vand.u32 4294901760, %v16087_v14  ;;  %v16152_v62 = vsub.f32 %v323_v4, %v16098_v17  ;;  %v19452_v32 = vand.u32 4294901760, %v16108_v25 }
 0x1b1   : > { %12149 = vmatprep.subr.mxu0 %v20152_v3  ;;  %12177 = vmatpush3.msra.mxu1 %v20156_v21  ;;  %v16157_v3 = vsub.f32 %v16051_v2, %v19450_v49  ;;  %v16167_v21 = vand.u32 4294901760, %v337_v43  ;;  %v16169_v4 = vand.u32 4294901760, %v321_v13 }
 0x1b2   : > { %12150 = vmatpush3.msra.mxu0 %v20155_v56  ;;  %12178 = vmatprep.subr.mxu1 %v15640_v29  ;;  %v20161_v29 = vld [vmem:[#allocation26_spill] sm:$0xff]  ;;  %20162 = vst [vmem:[#allocation5_spill] sm:$0xff] %v16140_v58  ;;  %v16165_v56 = vsub.f32 %v16065_v51, %v19447_v61  ;;  %v16194_v61 = vsub.f32 %v322_v60, %v16142_v5 }
 0x1b3   : > { %12151 = vmatprep.subr.mxu0 %v20158_v26  ;;  %3778 = vmatprep.mubr.f32.mxu0 %v20161_v29  ;;  %20166 = vst [vmem:[#allocation18_spill] sm:$0xff] %v16167_v21  ;;  %20167 = vst [vmem:[#allocation32_spill] sm:$0xff] %v16169_v4  ;;  %v19454_v26 = vand.u32 4294901760, %v16114_v46  ;;  %v16205_v49 = vsub.f32 %v338_v15, %v16140_v58  ;;  %v16213_v60 = vsub.f32 %v16108_v25, %v19452_v32  ;;  %v335_v32 = vld [vmem:[%s19172_s1 + $0x4b0] sm:$0xff] }
 0x1b4   : > { %12152 = vmatpush3.msra.mxu0 %v20160_v7  ;;  %12179 = vmatpush3.msra.mxu1 %v20164_v12  ;;  %v16187_v7 = vand.u32 4294901760, %v336_v9  ;;  %v19455_v12 = vand.u32 4294901760, %v16130_v8  ;;  %20169 = vst [vmem:[#allocation7_spill] sm:$0xff] %v16194_v61  ;;  %v4132_v15 = vand.u32 4294901760, %v16165_v56  ;;  %v16233_v19 = vsub.f32 %v337_v43, %v16167_v21 }
 0x1b5   : > { %3780 = vmatmul.mubr.f32.vlgmr.msra.gmra.mxu0 %v20165_v53  ;;  %12180 = vmatprep.subr.mxu1 %v15696_v18  ;;  %v16180_v18 = vsub.f32 %v16071_v24, %v19448_v55  ;;  %v16199_v55 = vsub.f32 %v16087_v14, %v19451_v35  ;;  %v19458_v35 = vand.u32 4294901760, %v16152_v62  ;;  %v16243_v56 = vand.u32 4294901760, %v319_v30 }
 0x1b6   : > { %12191 = vmatprep.subr.mxu0 %v15967_v27  ;;  %12181 = vmatpush3.msra.mxu1 %v15673_v23  ;;  %20168 = vst [vmem:[#allocation19_spill] sm:$0xff] %v16187_v7  ;;  %v4125_v23 = vand.u32 4294901760, %v16138_v57  ;;  %v16215_v57 = vand.u32 4294901760, %v320_v0  ;;  %20172 = vst [vmem:[#allocation22_spill] sm:$0xff] %v16233_v19  ;;  %v16249_v43 = vsub.f32 %v336_v9, %v16187_v7  ;;  %v20179_v22 = vand.u32 4294901760, %v16205_v49 }
 0x1b7   : > { %12192 = vmatpush3.msra.mxu0 %v15975_v16  ;;  %12182 = vmatprep.subr.mxu1 %v20116_v34  ;;  %v4013_v34 = vand.u32 4294901760, %v16157_v3  ;;  %v16227_v3 = vsub.f32 %v16114_v46, %v19454_v26  ;;  %v318_v26 = vld [vmem:[%s19172_s1 + $0x428] sm:$0xff] }
 0x1b8   : > { %12193 = vmatprep.subr.mxu0 %v15998_v52  ;;  %12183 = vmatpush3.msra.mxu1 %v15684_v63  ;;  %20170 = vst [vmem:[#allocation21_spill] sm:$0xff] %v16215_v57  ;;  %v16222_v63 = vsub.f32 %v321_v13, %v16169_v4  ;;  %v16241_v13 = vsub.f32 %v16130_v8, %v19455_v12  ;;  %20173 = vst [vmem:[#allocation9_spill] sm:$0xff] %v16249_v43  ;;  %v334_v12 = vld [vmem:[%s19172_s1 + $0x4a8] sm:$0xff] }
 0x1b9   : > { %12194 = vmatpush3.msra.mxu0 %v16012_v47  ;;  %12184 = vmatprep.subr.mxu1 %v15749_v39  ;;  %v4020_v39 = vand.u32 4294901760, %v16180_v18  ;;  %v16264_v9 = vsub.f32 %v320_v0, %v16215_v57  ;;  %v16271_v18 = vsub.f32 %v16152_v62, %v19458_v35  ;;  %v16282_v0 = vand.u32 4294901760, %v318_v26  ;;  %v333_v35 = vld [vmem:[%s19172_s1 + $0x4a0] sm:$0xff] }
 0x1ba   : > { %12195 = vmatprep.subr.mxu0 %v16020_v38  ;;  %20171 = vst [vmem:[#allocation16_spill] sm:$0xff] %v16222_v63  ;;  %12185 = vmatpush3.msra.mxu1 %v15760_v59  ;;  %v4139_v59 = vand.u32 4294901760, %v16185_v54  ;;  %v16266_v54 = vand.u32 4294901760, %v335_v32  ;;  %v16296_v31 = vand.u32 4294901760, %v334_v12  ;;  %v16306_v6 = vsub.f32 %v16205_v49, %v20179_v22 }
 0x1bb   : > { %12196 = vmatpush3.msra.mxu0 %v16028_v41  ;;  %12186 = vmatprep.subr.mxu1 %v15766_v20  ;;  %20174 = vst [vmem:[#allocation24_spill] sm:$0xff] %v16264_v9  ;;  %20176 = vst [vmem:[#allocation14_spill] sm:$0xff] %v16282_v0  ;;  %v20178_v20 = vand.u32 4294901760, %v16096_v48  ;;  %v177_v48 = vld [vmem:[%s13676_s9 + $0x40] sm:$0xff]  ;;  %v4041_v22 = vand.u32 4294901760, %v16271_v18  ;;  %v16331_v41 = vsub.f32 %v318_v26, %v16282_v0  ;;  %v20185_v26 = vand.u32 4294901760, %v16249_v43 }
 0x1bc   : > { %12197 = vmatprep.subr.mxu0 %v16030_v33  ;;  %12187 = vmatpush3.msra.mxu1 %v15768_v50  ;;  %20175 = vst [vmem:[#allocation12_spill] sm:$0xff] %v16266_v54  ;;  %v316_v50 = vld [vmem:[%s19172_s1 + $0x418] sm:$0xff]  ;;  %20177 = vst [vmem:[#allocation17_spill] sm:$0xff] %v16296_v31  ;;  %v178_v33 = vld [vmem:[%s13676_s9 + $0x48] sm:$0xff] }
 0x1bd   : > { %3882 = vmatprep.mubr.f32.mxu1 %v20161_v29  ;;  %12198 = vmatpush3.msra.mxu0 %v16039_v36  ;;  %v16294_v29 = vsub.f32 %v319_v30, %v16243_v56  ;;  %v332_v36 = vld [vmem:[%s19172_s1 + $0x498] sm:$0xff] }
 0x1be   : > { %3884 = vmatmul.mubr.f32.vlgmr.msra.gmra.mxu1 %v20165_v53  ;;  %12199 = vmatprep.subr.mxu0 %v16053_v10  ;;  %v16313_v53 = vand.u32 4294901760, %v317_v44  ;;  %v16343_v10 = vand.u32 4294901760, %v178_v33 }
 0x1bf   : > { %12226 = vmatprep.subr.mxu1 %v4118_v28  ;;  %12200 = vmatpush3.msra.mxu0 %v16059_v40  ;;  %v20180_v28 = vand.u32 4294901760, %v16194_v61  ;;  %v16318_v40 = vand.u32 4294901760, %v316_v50 }
 0x1c0   : > { %12227 = vmatpush3.msra.mxu1 %v20178_v20  ;;  %20181 = vst [vmem:[#allocation29_spill] sm:$0xff] %v16313_v53  ;;  %12201 = vmatprep.subr.mxu0 %v16078_v37  ;;  %v16323_v20 = vand.u32 4294901760, %v333_v35  ;;  %20184 = vst [vmem:[#allocation27_spill] sm:$0xff] %v16343_v10 }
 0x1c1   : > { %v16311_v30 = vsub.f32 %v16194_v61, %v20180_v28  ;;  %12228 = vmatprep.subr.mxu1 %v4125_v23  ;;  %v16327_v28 = vsub.f32 %v335_v32, %v16266_v54  ;;  %12202 = vmatpush3.msra.mxu0 %v16098_v17  ;;  %v20182_v61 = vand.u32 4294901760, %v16233_v19  ;;  %v20183_v23 = vand.u32 4294901760, %v16222_v63 }
 0x1c2   : > { %12229 = vmatpush3.msra.mxu1 %v4013_v34  ;;  %12203 = vmatprep.subr.mxu0 %v16140_v58  ;;  %v16346_v32 = vand.u32 4294901760, %v332_v36  ;;  %v16351_v34 = vsub.f32 %v16249_v43, %v20185_v26  ;;  %v16357_v17 = vsub.f32 %v334_v12, %v16296_v31  ;;  %v16368_v26 = vsub.f32 %v316_v50, %v16318_v40  ;;  %v315_v12 = vld [vmem:[%s19172_s1 + $0x410] sm:$0xff]  ;;  %v330_v50 = vld [vmem:[%s19172_s1 + $0x488] sm:$0xff] }
 0x1c3   : > { %v16336_v37 = vsub.f32 %v16233_v19, %v20182_v61  ;;  %v16341_v18 = vsub.f32 %v16222_v63, %v20183_v23  ;;  %12230 = vmatprep.subr.mxu1 %v4132_v15  ;;  %v331_v61 = vld [vmem:[%s19172_s1 + $0x490] sm:$0xff]  ;;  %v16359_v23 = vand.u32 4294901760, %v177_v48  ;;  %12204 = vmatpush3.msra.mxu0 %v16142_v5  ;;  %v4160_v15 = vand.u32 4294901760, %v16306_v6 }
 0x1c4   : > { %12231 = vmatpush3.msra.mxu1 %v4020_v39  ;;  %v4048_v58 = vand.u32 4294901760, %v16311_v30  ;;  %v16365_v63 = vsub.f32 %v317_v44, %v16313_v53  ;;  %12205 = vmatprep.subr.mxu0 %v16167_v21  ;;  %v20187_v5 = vand.u32 4294901760, %v16264_v9  ;;  %v314_v30 = vld [vmem:[%s19172_s1 + $0x408] sm:$0xff]  ;;  %v16388_v21 = vsub.f32 %v333_v35, %v16323_v20 }
 0x1c5   : > { %20186 = vst [vmem:[#allocation20_spill] sm:$0xff] %v16359_v23  ;;  %12232 = vmatprep.subr.mxu1 %v4139_v59  ;;  %12206 = vmatpush3.msra.mxu0 %v16169_v4  ;;  %v4167_v59 = vand.u32 4294901760, %v16336_v37  ;;  %v4055_v44 = vand.u32 4294901760, %v16341_v18  ;;  %v16395_v6 = vand.u32 4294901760, %v331_v61  ;;  %v20190_v43 = vand.u32 4294901760, %v16213_v60  ;;  %v329_v37 = vld [vmem:[%s19172_s1 + $0x480] sm:$0xff] }
 0x1c6   : > { %v16377_v39 = vsub.f32 %v16264_v9, %v20187_v5  ;;  %v20188_v5 = vand.u32 4294901760, %v16199_v55  ;;  %v16398_v9 = vsub.f32 %v178_v33, %v16343_v10  ;;  %12207 = vmatprep.subr.mxu0 %v16187_v7  ;;  %v4174_v35 = vand.u32 4294901760, %v16351_v34  ;;  %v313_v33 = vld [vmem:[%s19172_s1 + $0x400] sm:$0xff]  ;;  %4226 = vmatprep.mubr.f32.mxu1 %v16343_v10 }
 0x1c7   : > { %20189 = vst [vmem:[#allocation33_spill] sm:$0xff] %v16395_v6  ;;  %v16404_v4 = vand.u32 4294901760, %v315_v12  ;;  %v16414_v18 = vsub.f32 %v177_v48, %v16359_v23  ;;  %12208 = vmatpush3.msra.mxu0 %v16215_v57  ;;  %v20191_v60 = vand.u32 4294901760, %v16227_v3  ;;  %v16421_v34 = vand.u32 4294901760, %v314_v30  ;;  %v20228_v10 = vld [vmem:[#allocation17_spill] sm:$0xff] }
 0x1c8   : > { %12233 = vmatpush3.msra.mxu1 %v20188_v5  ;;  %v16425_v55 = vsub.f32 %v332_v36, %v16346_v32  ;;  %12209 = vmatprep.subr.mxu0 %v16266_v54  ;;  %v20192_v7 = vand.u32 4294901760, %v16241_v13  ;;  %v4062_v48 = vand.u32 4294901760, %v16377_v39  ;;  %v20193_v57 = vand.u32 4294901760, %v16327_v28 }
 0x1c9   : > { %12234 = vmatprep.subr.mxu1 %v20190_v43  ;;  %v16419_v43 = vand.u32 4294901760, %v330_v50  ;;  %12210 = vmatpush3.msra.mxu0 %v16243_v56  ;;  %v16439_v36 = vand.u32 4294901760, %v329_v37  ;;  %v16441_v54 = vand.u32 4294901760, %v313_v33  ;;  %v16445_v13 = vsub.f32 %v331_v61, %v16395_v6 }
 0x1ca   : > { %12235 = vmatpush3.msra.mxu1 %v20191_v60  ;;  %v4180_v3 = vsub.f32 %v16327_v28, %v20193_v57  ;;  %v20194_v60 = vand.u32 4294901760, %v16294_v29  ;;  %12211 = vmatprep.subr.mxu0 %v16296_v31  ;;  %v16449_v57 = vsub.f32 %v315_v12, %v16404_v4  ;;  %v20195_v39 = vand.u32 4294901760, %v16357_v17 }
 0x1cb   : > { %12236 = vmatprep.subr.mxu1 %v20192_v7  ;;  %12212 = vmatpush3.msra.mxu0 %v16282_v0  ;;  %v16458_v61 = vsub.f32 %v314_v30, %v16421_v34  ;;  %v20196_v7 = vand.u32 4294901760, %v16331_v41  ;;  %v16465_v31 = vsub.f32 %v330_v50, %v16419_v43  ;;  %v20199_v50 = vand.u32 4294901760, %v16398_v9 }
 0x1cc   : > { %v4068_v19 = vsub.f32 %v16294_v29, %v20194_v60  ;;  %12237 = vmatpush3.msra.mxu1 %v4041_v22  ;;  %v4187_v60 = vsub.f32 %v16357_v17, %v20195_v39  ;;  %12213 = vmatprep.subr.mxu0 %v16323_v20  ;;  %v4181_v39 = vand.u32 4294901760, %v4180_v3  ;;  %v20197_v22 = vand.u32 4294901760, %v16388_v21 }
 0x1cd   : > { %12238 = vmatprep.subr.mxu1 %v4160_v15  ;;  %v4075_v15 = vsub.f32 %v16331_v41, %v20196_v7  ;;  %12214 = vmatpush3.msra.mxu0 %v16313_v53  ;;  %v16474_v7 = vsub.f32 %v313_v33, %v16441_v54  ;;  %v3988_v12 = vsub.f32 %v16398_v9, %v20199_v50  ;;  %v20202_v33 = vand.u32 4294901760, %v16414_v18 }
 0x1ce   : > { %12239 = vmatpush3.msra.mxu1 %v4048_v58  ;;  %v4069_v5 = vand.u32 4294901760, %v4068_v19  ;;  %v4194_v58 = vsub.f32 %v16388_v21, %v20197_v22  ;;  %v16481_v19 = vsub.f32 %v329_v37, %v16439_v36  ;;  %12215 = vmatprep.subr.mxu0 %v16346_v32  ;;  %v4188_v3 = vand.u32 4294901760, %v4187_v60 }
 0x1cf   : > { %12240 = vmatprep.subr.mxu1 %v4167_v59  ;;  %20198 = vst [vmem:[#allocation25_spill] sm:$0xff] %v16474_v7  ;;  %v20201_v22 = vand.u32 4294901760, %v16365_v63  ;;  %v3994_v30 = vsub.f32 %v16414_v18, %v20202_v33  ;;  %12216 = vmatpush3.msra.mxu0 %v16318_v40  ;;  %v4076_v50 = vand.u32 4294901760, %v4075_v15  ;;  %v20203_v37 = vand.u32 4294901760, %v16425_v55 }
 0x1d0   : > { %12241 = vmatpush3.msra.mxu1 %v4055_v44  ;;  %20200 = vst [vmem:[#allocation26_spill] sm:$0xff] %v16481_v19  ;;  %12217 = vmatprep.subr.mxu0 %v16395_v6  ;;  %v4195_v60 = vand.u32 4294901760, %v4194_v58  ;;  %v20205_v15 = vand.u32 4294901760, %v16445_v13  ;;  %v20206_v6 = vand.u32 4294901760, %v16449_v57  ;;  %v19503_v53 = vand.u32 4294901760, %v16474_v7 }
 0x1d1   : > { %12242 = vmatprep.subr.mxu1 %v4174_v35  ;;  %v4082_v44 = vsub.f32 %v16365_v63, %v20201_v22  ;;  %v4201_v59 = vsub.f32 %v16425_v55, %v20203_v37  ;;  %v20204_v22 = vand.u32 4294901760, %v16368_v26  ;;  %12218 = vmatpush3.msra.mxu0 %v16404_v4  ;;  %v19504_v35 = vand.u32 4294901760, %v16481_v19 }
 0x1d2   : > { %12243 = vmatpush3.msra.mxu1 %v4062_v48  ;;  %v3989_v48 = vand.u32 4294901760, %v3988_v12  ;;  %v4208_v37 = vsub.f32 %v16445_v13, %v20205_v15  ;;  %12219 = vmatprep.subr.mxu0 %v16419_v43  ;;  %v3995_v58 = vand.u32 4294901760, %v3994_v30  ;;  %v20207_v12 = vand.u32 4294901760, %v16465_v31 }
 0x1d3   : > { %12244 = vmatprep.subr.mxu1 %v4181_v39  ;;  %v4089_v33 = vsub.f32 %v16368_v26, %v20204_v22  ;;  %v4083_v39 = vand.u32 4294901760, %v4082_v44  ;;  %v4096_v22 = vsub.f32 %v16449_v57, %v20206_v6  ;;  %12220 = vmatpush3.msra.mxu0 %v16421_v34  ;;  %v20208_v30 = vand.u32 4294901760, %v16458_v61 }
 0x1d4   : > { %12245 = vmatpush3.msra.mxu1 %v4069_v5  ;;  %v4202_v5 = vand.u32 4294901760, %v4201_v59  ;;  %v4215_v15 = vsub.f32 %v16465_v31, %v20207_v12  ;;  %12221 = vmatprep.subr.mxu0 %v16439_v36  ;;  %v4209_v6 = vand.u32 4294901760, %v4208_v37  ;;  %v4222_v59 = vsub.f32 %v16481_v19, %v19504_v35  ;;  %v20212_v12 = vld [vmem:[#allocation23_spill] sm:$0xff]  ;;  %v20226_v35 = vld [vmem:[#allocation21_spill] sm:$0xff] }
 0x1d5   : > { %12246 = vmatprep.subr.mxu1 %v4188_v3  ;;  %v4090_v3 = vand.u32 4294901760, %v4089_v33  ;;  %v4103_v44 = vsub.f32 %v16458_v61, %v20208_v30  ;;  %12222 = vmatpush3.msra.mxu0 %v16441_v54  ;;  %v20215_v30 = vld [vmem:[#allocation9_spill] sm:$0xff] }
 0x1d6   : > { %12247 = vmatpush3.msra.mxu1 %v4076_v50  ;;  %3990 = vmatprep.mubr.f32.mxu0 %v3989_v48  ;;  %v4097_v50 = vand.u32 4294901760, %v4096_v22  ;;  %v4216_v33 = vand.u32 4294901760, %v4215_v15  ;;  %v4223_v37 = vand.u32 4294901760, %v4222_v59  ;;  %v20210_v22 = vld [vmem:[#allocation30_spill] sm:$0xff]  ;;  %v20213_v15 = vld [vmem:[#allocation16_spill] sm:$0xff] }
 0x1d7   : > { %12248 = vmatprep.subr.mxu1 %v4195_v60  ;;  %3996 = vmatmul.mubr.f32.vlgmr.msra.gmra.mxu0 %v3995_v58  ;;  %v4110_v60 = vsub.f32 %v16474_v7, %v19503_v53  ;;  %v4104_v48 = vand.u32 4294901760, %v4103_v44  ;;  %v20209_v58 = vld [vmem:[#allocation7_spill] sm:$0xff]  ;;  %v20218_v59 = vld [vmem:[#allocation6_spill] sm:$0xff] }
 0x1d8   : > { %12249 = vmatpush3.msra.mxu1 %v4083_v39  ;;  %12261 = vmatprep.subr.mxu0 %v15993_v42  ;;  %v20216_v44 = vld [vmem:[#allocation11_spill] sm:$0xff] }
 0x1d9   : > { %12250 = vmatprep.subr.mxu1 %v4202_v5  ;;  %12262 = vmatpush3.msra.mxu0 %v16010_v45  ;;  %v4111_v39 = vand.u32 4294901760, %v4110_v60  ;;  %v20211_v5 = vld [vmem:[#allocation22_spill] sm:$0xff]  ;;  %v20220_v60 = vld [vmem:[#allocation15_spill] sm:$0xff] }
 0x1da   : > { %12251 = vmatpush3.msra.mxu1 %v4090_v3  ;;  %12263 = vmatprep.subr.mxu0 %v16045_v11  ;;  %v20214_v3 = vld [vmem:[#allocation10_spill] sm:$0xff]  ;;  %v20225_v53 = vld [vmem:[#allocation19_spill] sm:$0xff] }
 0x1db   : > { %12252 = vmatprep.subr.mxu1 %v4209_v6  ;;  %12264 = vmatpush3.msra.mxu0 %v16051_v2  ;;  %v20217_v6 = vld [vmem:[#allocation24_spill] sm:$0xff] }
 0x1dc   : > { %12253 = vmatpush3.msra.mxu1 %v4097_v50  ;;  %12265 = vmatprep.subr.mxu0 %v16065_v51  ;;  %v20219_v50 = vld [vmem:[#allocation8_spill] sm:$0xff] }
 0x1dd   : > { %12254 = vmatprep.subr.mxu1 %v4216_v33  ;;  %12266 = vmatpush3.msra.mxu0 %v16071_v24  ;;  %v20221_v33 = vld [vmem:[#allocation5_spill] sm:$0xff] }
 0x1de   : > { %12255 = vmatpush3.msra.mxu1 %v4104_v48  ;;  %12267 = vmatprep.subr.mxu0 %v16081_v1  ;;  %v20222_v48 = vld [vmem:[#allocation13_spill] sm:$0xff] }
 0x1df   : > { %12256 = vmatprep.subr.mxu1 %v4223_v37  ;;  %12268 = vmatpush3.msra.mxu0 %v16087_v14  ;;  %v20223_v37 = vld [vmem:[#allocation18_spill] sm:$0xff] }
 0x1e0   : > { %12257 = vmatpush3.msra.mxu1 %v4111_v39  ;;  %12269 = vmatprep.subr.mxu0 %v16108_v25  ;;  %v20224_v39 = vld [vmem:[#allocation32_spill] sm:$0xff] }
 0x1e1   : > { %4228 = vmatmul.mubr.f32.vlgmr.msra.gmra.mxu1 %v16359_v23  ;;  %12296 = vmatprep.subr.mxu1 %v15967_v27  ;;  %v20227_v23 = vld [vmem:[#allocation12_spill] sm:$0xff] }
 0x1e2   : > { %12270 = vmatpush3.msra.mxu0 %v16114_v46  ;;  %12297 = vmatpush3.msra.mxu1 %v15975_v16 }
 0x1e3   : > { %12271 = vmatprep.subr.mxu0 %v16130_v8  ;;  %12298 = vmatprep.subr.mxu1 %v15998_v52 }
 0x1e4   : > { %12272 = vmatpush3.msra.mxu0 %v16152_v62  ;;  %12299 = vmatpush3.msra.mxu1 %v16012_v47 }
 0x1e5   : > { %12273 = vmatprep.subr.mxu0 %v16205_v49  ;;  %12300 = vmatprep.subr.mxu1 %v16020_v38 }
 0x1e6   : > { %12274 = vmatpush3.msra.mxu0 %v20209_v58  ;;  %12301 = vmatpush3.msra.mxu1 %v20210_v22 }
 0x1e7   : > { %12275 = vmatprep.subr.mxu0 %v20211_v5  ;;  %12302 = vmatprep.subr.mxu1 %v20212_v12 }
 0x1e8   : > { %12276 = vmatpush3.msra.mxu0 %v20213_v15  ;;  %12303 = vmatpush3.msra.mxu1 %v20214_v3 }
 0x1e9   : > { %12277 = vmatprep.subr.mxu0 %v20215_v30  ;;  %12304 = vmatprep.subr.mxu1 %v20216_v44 }
 0x1ea   : > { %12278 = vmatpush3.msra.mxu0 %v20217_v6  ;;  %12305 = vmatpush3.msra.mxu1 %v20218_v59 }
 0x1eb   : > { %12279 = vmatprep.subr.mxu0 %v16327_v28  ;;  %12306 = vmatprep.subr.mxu1 %v20219_v50 }
 0x1ec   : > { %12280 = vmatpush3.msra.mxu0 %v16294_v29  ;;  %12307 = vmatpush3.msra.mxu1 %v20220_v60 }
 0x1ed   : > { %12281 = vmatprep.subr.mxu0 %v16357_v17  ;;  %12308 = vmatprep.subr.mxu1 %v20221_v33 }
 0x1ee   : > { %12282 = vmatpush3.msra.mxu0 %v16331_v41  ;;  %12309 = vmatpush3.msra.mxu1 %v20222_v48 }
 0x1ef   : > { %12283 = vmatprep.subr.mxu0 %v16388_v21  ;;  %12310 = vmatprep.subr.mxu1 %v20223_v37 }
 0x1f0   : > { %12284 = vmatpush3.msra.mxu0 %v16365_v63  ;;  %12311 = vmatpush3.msra.mxu1 %v20224_v39 }
 0x1f1   : > { %12285 = vmatprep.subr.mxu0 %v16425_v55  ;;  %12312 = vmatprep.subr.mxu1 %v20225_v53 }
 0x1f2   : > { %12286 = vmatpush3.msra.mxu0 %v16368_v26  ;;  %12313 = vmatpush3.msra.mxu1 %v20226_v35 }
 0x1f3   : > { %12287 = vmatprep.subr.mxu0 %v16445_v13  ;;  %12314 = vmatprep.subr.mxu1 %v20227_v23  ;;  %v20229_v23 = vld [vmem:[#allocation29_spill] sm:$0xff] }
 0x1f4   : > { %12288 = vmatpush3.msra.mxu0 %v16449_v57  ;;  %12315 = vmatpush3.msra.mxu1 %v16243_v56 }
 0x1f5   : > { %12289 = vmatprep.subr.mxu0 %v16465_v31  ;;  %12316 = vmatprep.subr.mxu1 %v20228_v10  ;;  %v20230_v10 = vand.u32 4294901760, %v15993_v42  ;;  %v20235_v42 = vand.u32 4294901760, %v16065_v51  ;;  %v20240_v51 = vand.u32 4294901760, %v16414_v18 }
 0x1f6   : > { %12290 = vmatpush3.msra.mxu0 %v16458_v61  ;;  %12317 = vmatpush3.msra.mxu1 %v16282_v0  ;;  %v20231_v0 = vand.u32 4294901760, %v16010_v45  ;;  %v20236_v45 = vand.u32 4294901760, %v16071_v24  ;;  %v20242_v24 = vand.u32 4294901760, %v16114_v46 }
 0x1f7   : > { %12291 = vmatprep.subr.mxu0 %v16481_v19  ;;  %12318 = vmatprep.subr.mxu1 %v16323_v20  ;;  %v20232_v19 = vld [vmem:[#allocation33_spill] sm:$0xff] }
 0x1f8   : > { %12292 = vmatpush3.msra.mxu0 %v16474_v7  ;;  %4363 = vmatprep.mubr.f32.mxu0 %v16398_v9  ;;  %v20233_v7 = vand.u32 4294901760, %v16045_v11  ;;  %v20237_v11 = vand.u32 4294901760, %v16081_v1  ;;  %v20243_v1 = vand.u32 4294901760, %v16130_v8 }
 0x1f9   : > { %12319 = vmatpush3.msra.mxu1 %v20229_v23  ;;  %4366 = vmatmul.mubr.f32.vlgmr.msra.gmra.mxu0 %v16414_v18  ;;  %v20234_v23 = vand.u32 4294901760, %v16051_v2  ;;  %v20238_v2 = vand.u32 4294901760, %v16398_v9  ;;  %v20250_v9 = vand.u32 4294901760, %v20217_v6  ;;  %v20251_v18 = vand.u32 4294901760, %v16327_v28  ;;  %v358_v28 = vld [vmem:[%s19172_s1 + $0x568] sm:$0xff] }
 0x1fa   : > { %12320 = vmatprep.subr.mxu1 %v16346_v32  ;;  %12331 = vmatprep.subr.mxu0 %v20230_v10  ;;  %v20239_v10 = vand.u32 4294901760, %v16087_v14  ;;  %v20244_v14 = vand.u32 4294901760, %v16152_v62  ;;  %v375_v62 = vld [vmem:[%s19172_s1 + $0x5f0] sm:$0xff] }
 0x1fb   : > { %12321 = vmatpush3.msra.mxu1 %v16318_v40  ;;  %12332 = vmatpush3.msra.mxu0 %v20231_v0  ;;  %v20241_v0 = vand.u32 4294901760, %v16108_v25  ;;  %v376_v25 = vld [vmem:[%s19172_s1 + $0x5f8] sm:$0xff] }
 0x1fc   : > { %12322 = vmatprep.subr.mxu1 %v20232_v19  ;;  %12333 = vmatprep.subr.mxu0 %v20233_v7  ;;  %v16641_v46 = vand.u32 4294901760, %v376_v25  ;;  %v374_v7 = vld [vmem:[%s19172_s1 + $0x5e8] sm:$0xff] }
 0x1fd   : > { %12323 = vmatpush3.msra.mxu1 %v16404_v4  ;;  %12334 = vmatpush3.msra.mxu0 %v20234_v23  ;;  %v359_v23 = vld [vmem:[%s19172_s1 + $0x570] sm:$0xff]  ;;  %v16694_v6 = vand.u32 4294901760, %v374_v7 }
 0x1fe   : > { %12324 = vmatprep.subr.mxu1 %v16419_v43  ;;  %12335 = vmatprep.subr.mxu0 %v20235_v42 }
 0x1ff   : > { %12325 = vmatpush3.msra.mxu1 %v16421_v34  ;;  %12336 = vmatpush3.msra.mxu0 %v20236_v45  ;;  %v20260_v45 = vand.u32 4294901760, %v16425_v55  ;;  %v355_v55 = vld [vmem:[%s19172_s1 + $0x550] sm:$0xff] }
 0x200   : > { %12326 = vmatprep.subr.mxu1 %v16439_v36  ;;  %12337 = vmatprep.subr.mxu0 %v20237_v11 }
 0x201   : > { %12327 = vmatpush3.msra.mxu1 %v16441_v54  ;;  %4470 = vmatprep.mubr.f32.mxu1 %v20238_v2  ;;  %v20262_v2 = vand.u32 4294901760, %v16368_v26 }
 0x202   : > { %12338 = vmatpush3.msra.mxu0 %v20239_v10  ;;  %4474 = vmatmul.mubr.f32.vlgmr.msra.gmra.mxu1 %v20240_v51  ;;  %v20264_v51 = vand.u32 4294901760, %v16445_v13 }
 0x203   : > { %12339 = vmatprep.subr.mxu0 %v20241_v0  ;;  %12366 = vmatprep.subr.mxu1 %v15967_v27  ;;  %v20245_v27 = vand.u32 4294901760, %v16205_v49  ;;  %v20248_v49 = vand.u32 4294901760, %v20213_v15  ;;  %v20253_v15 = vand.u32 4294901760, %v16357_v17  ;;  %v372_v17 = vld [vmem:[%s19172_s1 + $0x5d8] sm:$0xff] }
 0x204   : > { %12340 = vmatpush3.msra.mxu0 %v20242_v24  ;;  %12367 = vmatpush3.msra.mxu1 %v15975_v16  ;;  %v20246_v16 = vand.u32 4294901760, %v20209_v58  ;;  %v16667_v58 = vsub.f32 %v376_v25, %v16641_v46  ;;  %v20265_v0 = vld [vmem:[#allocation12_spill] sm:$0xff] }
 0x205   : > { %12341 = vmatprep.subr.mxu0 %v20243_v1  ;;  %12368 = vmatprep.subr.mxu1 %v15998_v52  ;;  %v360_v52 = vld [vmem:[%s19172_s1 + $0x578] sm:$0xff] }
 0x206   : > { %12342 = vmatpush3.msra.mxu0 %v20244_v14  ;;  %12369 = vmatpush3.msra.mxu1 %v16012_v47  ;;  %v20247_v47 = vand.u32 4294901760, %v20211_v5  ;;  %v16649_v8 = vand.u32 4294901760, %v360_v52  ;;  %v16672_v5 = vand.u32 4294901760, %v375_v62  ;;  %v20267_v14 = vand.u32 4294901760, %v16449_v57 }
 0x207   : > { %12343 = vmatprep.subr.mxu0 %v20245_v27  ;;  %12370 = vmatprep.subr.mxu1 %v16020_v38  ;;  %v20249_v38 = vand.u32 4294901760, %v20215_v30  ;;  %v357_v30 = vld [vmem:[%s19172_s1 + $0x560] sm:$0xff]  ;;  %v20268_v27 = vand.u32 4294901760, %v16465_v31  ;;  %v354_v31 = vld [vmem:[%s19172_s1 + $0x548] sm:$0xff] }
 0x208   : > { %12344 = vmatpush3.msra.mxu0 %v20246_v16  ;;  %12371 = vmatpush3.msra.mxu1 %v20210_v22  ;;  %v20252_v22 = vand.u32 4294901760, %v16294_v29  ;;  %v16684_v29 = vsub.f32 %v360_v52, %v16649_v8  ;;  %v16713_v42 = vand.u32 4294901760, %v357_v30  ;;  %v20269_v16 = vld [vmem:[#allocation17_spill] sm:$0xff] }
 0x209   : > { %12345 = vmatprep.subr.mxu0 %v20247_v47  ;;  %12372 = vmatprep.subr.mxu1 %v20212_v12  ;;  %v373_v12 = vld [vmem:[%s19172_s1 + $0x5e0] sm:$0xff]  ;;  %v16772_v47 = vand.u32 4294901760, %v355_v55 }
 0x20a   : > { %12346 = vmatpush3.msra.mxu0 %v20248_v49  ;;  %12373 = vmatpush3.msra.mxu1 %v20214_v3  ;;  %v16686_v3 = vand.u32 4294901760, %v359_v23  ;;  %20259 = vst [vmem:[#allocation7_spill] sm:$0xff] %v16713_v42  ;;  %v16761_v13 = vsub.f32 %v357_v30, %v16713_v42 }
 0x20b   : > { %12347 = vmatprep.subr.mxu0 %v20249_v38  ;;  %12374 = vmatprep.subr.mxu1 %v20216_v44  ;;  %v20254_v44 = vand.u32 4294901760, %v16331_v41  ;;  %v19522_v41 = vand.u32 4294901760, %v16667_v58  ;;  %20270 = vst [vmem:[#allocation16_spill] sm:$0xff] %v16772_v47  ;;  %v20271_v38 = vand.u32 4294901760, %v16458_v61  ;;  %v369_v61 = vld [vmem:[%s19172_s1 + $0x5c0] sm:$0xff] }
 0x20c   : > { %12348 = vmatpush3.msra.mxu0 %v20250_v9  ;;  %12375 = vmatpush3.msra.mxu1 %v20218_v59  ;;  %v20255_v59 = vand.u32 4294901760, %v16388_v21  ;;  %v371_v21 = vld [vmem:[%s19172_s1 + $0x5d0] sm:$0xff]  ;;  %v16725_v11 = vsub.f32 %v359_v23, %v16686_v3 }
 0x20d   : > { %12349 = vmatprep.subr.mxu0 %v20251_v18  ;;  %12376 = vmatprep.subr.mxu1 %v20219_v50  ;;  %v16702_v50 = vand.u32 4294901760, %v358_v28  ;;  %v16750_v26 = vsub.f32 %v16667_v58, %v19522_v41  ;;  %v20273_v18 = vld [vmem:[#allocation26_spill] sm:$0xff]  ;;  %v349_v41 = vld [vmem:[%s19172_s1 + $0x520] sm:$0xff] }
 0x20e   : > { %12350 = vmatpush3.msra.mxu0 %v20252_v22  ;;  %12377 = vmatpush3.msra.mxu1 %v20220_v60  ;;  %v16704_v60 = vand.u32 4294901760, %v373_v12  ;;  %v19515_v57 = vand.u32 4294901760, %v16725_v11 }
 0x20f   : > { %12351 = vmatprep.subr.mxu0 %v20253_v15  ;;  %12378 = vmatprep.subr.mxu1 %v20221_v33  ;;  %20256 = vst [vmem:[#allocation31_spill] sm:$0xff] %v16702_v50  ;;  %v356_v33 = vld [vmem:[%s19172_s1 + $0x558] sm:$0xff]  ;;  %v16745_v24 = vsub.f32 %v358_v28, %v16702_v50  ;;  %v4980_v22 = vand.u32 4294901760, %v16750_v26  ;;  %v353_v15 = vld [vmem:[%s19172_s1 + $0x540] sm:$0xff] }
 0x210   : > { %12352 = vmatpush3.msra.mxu0 %v20254_v44  ;;  %12379 = vmatpush3.msra.mxu1 %v20222_v48  ;;  %20257 = vst [vmem:[#allocation28_spill] sm:$0xff] %v16704_v60  ;;  %v20258_v48 = vand.u32 4294901760, %v16365_v63  ;;  %v16727_v63 = vand.u32 4294901760, %v372_v17  ;;  %v16733_v10 = vand.u32 4294901760, %v356_v33  ;;  %v16755_v1 = vsub.f32 %v373_v12, %v16704_v60  ;;  %v20275_v44 = vld [vmem:[#allocation25_spill] sm:$0xff] }
 0x211   : > { %12353 = vmatprep.subr.mxu0 %v20255_v59  ;;  %12380 = vmatprep.subr.mxu1 %v20223_v37  ;;  %v16719_v37 = vsub.f32 %v375_v62, %v16672_v5  ;;  %v20272_v62 = vld [vmem:[#allocation14_spill] sm:$0xff]  ;;  %v19513_v28 = vand.u32 4294901760, %v16745_v24 }
 0x212   : > { %12354 = vmatpush3.msra.mxu0 %v20258_v48  ;;  %12381 = vmatpush3.msra.mxu1 %v20224_v39  ;;  %20261 = vst [vmem:[#allocation30_spill] sm:$0xff] %v16727_v63  ;;  %v19521_v39 = vand.u32 4294901760, %v16684_v29  ;;  %20263 = vst [vmem:[#allocation22_spill] sm:$0xff] %v16733_v10  ;;  %v16782_v49 = vsub.f32 %v372_v17, %v16727_v63  ;;  %v16788_v9 = vsub.f32 %v356_v33, %v16733_v10 }
 0x213   : > { %12355 = vmatprep.subr.mxu0 %v20260_v45  ;;  %12382 = vmatprep.subr.mxu1 %v20225_v53  ;;  %v16739_v53 = vsub.f32 %v374_v7, %v16694_v6  ;;  %v19518_v25 = vand.u32 4294901760, %v16719_v37  ;;  %v20274_v7 = vand.u32 4294901760, %v20273_v18  ;;  %v19514_v12 = vand.u32 4294901760, %v16755_v1  ;;  %v352_v18 = vld [vmem:[%s19172_s1 + $0x538] sm:$0xff] }
 0x214   : > { %12356 = vmatpush3.msra.mxu0 %v20262_v2  ;;  %12383 = vmatpush3.msra.mxu1 %v20226_v35  ;;  %v16752_v35 = vand.u32 4294901760, %v371_v21  ;;  %v16770_v52 = vsub.f32 %v16684_v29, %v19521_v39  ;;  %v20276_v17 = vand.u32 4294901760, %v20275_v44  ;;  %v16816_v48 = vand.u32 4294901760, %v354_v31  ;;  %v20280_v2 = vld [vmem:[#allocation29_spill] sm:$0xff] }
 0x215   : > { %12357 = vmatprep.subr.mxu0 %v20264_v51  ;;  %12384 = vmatprep.subr.mxu1 %v20265_v0  ;;  %v19512_v23 = vand.u32 4294901760, %v16739_v53  ;;  %v16812_v59 = vsub.f32 %v16719_v37, %v19518_v25  ;;  %v19516_v45 = vand.u32 4294901760, %v16761_v13  ;;  %v20281_v51 = vld [vmem:[#allocation20_spill] sm:$0xff]  ;;  %v16859_v44 = vsub.f32 %v16755_v1, %v19514_v12  ;;  %v351_v12 = vld [vmem:[%s19172_s1 + $0x530] sm:$0xff] }
 0x216   : > { %20266 = vst [vmem:[#allocation23_spill] sm:$0xff] %v16752_v35  ;;  %12358 = vmatpush3.msra.mxu0 %v20267_v14  ;;  %12385 = vmatpush3.msra.mxu1 %v16243_v56  ;;  %v370_v56 = vld [vmem:[%s19172_s1 + $0x5c8] sm:$0xff]  ;;  %v16804_v30 = vsub.f32 %v371_v21, %v16752_v35  ;;  %20279 = vst [vmem:[#allocation9_spill] sm:$0xff] %v16816_v48  ;;  %v368_v21 = vld [vmem:[%s19172_s1 + $0x5b8] sm:$0xff]  ;;  %v16826_v14 = vsub.f32 %v355_v55, %v16772_v47  ;;  %v16843_v55 = vand.u32 4294901760, %v353_v15 }
 0x217   : > { %12359 = vmatprep.subr.mxu0 %v20268_v27  ;;  %12386 = vmatprep.subr.mxu1 %v20269_v16  ;;  %v16814_v33 = vand.u32 4294901760, %v370_v56  ;;  %v16831_v27 = vsub.f32 %v16725_v11, %v19515_v57  ;;  %v19517_v16 = vand.u32 4294901760, %v16782_v49 }
 0x218   : > { %12360 = vmatpush3.msra.mxu0 %v20271_v38  ;;  %12387 = vmatpush3.msra.mxu1 %v20272_v62  ;;  %v16839_v38 = vsub.f32 %v16739_v53, %v19512_v23  ;;  %v16841_v62 = vand.u32 4294901760, %v369_v61  ;;  %20283 = vst [vmem:[#allocation24_spill] sm:$0xff] %v16843_v55  ;;  %v16868_v23 = vsub.f32 %v354_v31, %v16816_v48 }
 0x219   : > { %12361 = vmatprep.subr.mxu0 %v20274_v7  ;;  %12388 = vmatprep.subr.mxu1 %v16323_v20  ;;  %v20277_v20 = vld [vmem:[#allocation27_spill] sm:$0xff]  ;;  %20278 = vst [vmem:[#allocation10_spill] sm:$0xff] %v16814_v33  ;;  %v19519_v7 = vand.u32 4294901760, %v16788_v9  ;;  %v16879_v57 = vsub.f32 %v370_v56, %v16814_v33  ;;  %v16887_v31 = vsub.f32 %v16782_v49, %v19517_v16 }
 0x21a   : > { %12362 = vmatpush3.msra.mxu0 %v20276_v17  ;;  %4640 = vmatprep.mubr.f32.mxu0 %v20277_v20  ;;  %20282 = vst [vmem:[#allocation11_spill] sm:$0xff] %v16841_v62  ;;  %v16861_v17 = vand.u32 4294901760, %v368_v21  ;;  %20285 = vst [vmem:[#allocation8_spill] sm:$0xff] %v16868_v23  ;;  %v4994_v56 = vand.u32 4294901760, %v16839_v38  ;;  %v367_v16 = vld [vmem:[%s19172_s1 + $0x5b0] sm:$0xff]  ;;  %v16907_v25 = vsub.f32 %v369_v61, %v16841_v62  ;;  %v16917_v38 = vand.u32 4294901760, %v351_v12 }
 0x21b   : > { %12389 = vmatpush3.msra.mxu1 %v20280_v2  ;;  %4642 = vmatmul.mubr.f32.vlgmr.msra.gmra.mxu0 %v20281_v51  ;;  %v19520_v2 = vand.u32 4294901760, %v16804_v30  ;;  %v20295_v39 = vand.u32 4294901760, %v16879_v57 }
 0x21c   : > { %12390 = vmatprep.subr.mxu1 %v16346_v32  ;;  %12401 = vmatprep.subr.mxu0 %v16641_v46  ;;  %v16854_v32 = vsub.f32 %v16745_v24, %v19513_v28  ;;  %20284 = vst [vmem:[#allocation6_spill] sm:$0xff] %v16861_v17  ;;  %v16873_v28 = vsub.f32 %v16761_v13, %v19516_v45  ;;  %v19523_v45 = vand.u32 4294901760, %v16826_v14  ;;  %20288 = vst [vmem:[#allocation13_spill] sm:$0xff] %v16907_v25 }
 0x21d   : > { %12391 = vmatpush3.msra.mxu1 %v16318_v40  ;;  %12402 = vmatpush3.msra.mxu0 %v16649_v8  ;;  %v4987_v40 = vand.u32 4294901760, %v16812_v59  ;;  %v16889_v59 = vand.u32 4294901760, %v352_v18  ;;  %v16923_v61 = vsub.f32 %v368_v21, %v16861_v17  ;;  %v16980_v26 = vsub.f32 %v16879_v57, %v20295_v39 }
 0x21e   : > { %12392 = vmatprep.subr.mxu1 %v20232_v19  ;;  %12403 = vmatprep.subr.mxu0 %v16672_v5  ;;  %v4875_v19 = vand.u32 4294901760, %v16831_v27  ;;  %v16901_v27 = vsub.f32 %v16788_v9, %v19519_v7  ;;  %v350_v7 = vld [vmem:[%s19172_s1 + $0x528] sm:$0xff] }
 0x21f   : > { %12393 = vmatpush3.msra.mxu1 %v16404_v4  ;;  %12404 = vmatpush3.msra.mxu0 %v16686_v3  ;;  %20286 = vst [vmem:[#allocation15_spill] sm:$0xff] %v16889_v59  ;;  %v16896_v4 = vsub.f32 %v353_v15, %v16843_v55  ;;  %v16915_v15 = vsub.f32 %v16804_v30, %v19520_v2  ;;  %20289 = vst [vmem:[#allocation18_spill] sm:$0xff] %v16923_v61  ;;  %v366_v2 = vld [vmem:[%s19172_s1 + $0x5a8] sm:$0xff] }
 0x220   : > { %12394 = vmatprep.subr.mxu1 %v16419_v43  ;;  %12405 = vmatprep.subr.mxu0 %v16694_v6  ;;  %v4882_v43 = vand.u32 4294901760, %v16854_v32  ;;  %v16938_v21 = vsub.f32 %v352_v18, %v16889_v59  ;;  %v16945_v32 = vsub.f32 %v16826_v14, %v19523_v45  ;;  %v16956_v18 = vand.u32 4294901760, %v350_v7  ;;  %v365_v45 = vld [vmem:[%s19172_s1 + $0x5a0] sm:$0xff] }
 0x221   : > { %20287 = vst [vmem:[#allocation5_spill] sm:$0xff] %v16896_v4  ;;  %12395 = vmatpush3.msra.mxu1 %v16421_v34  ;;  %12406 = vmatpush3.msra.mxu0 %v16702_v50  ;;  %v5001_v34 = vand.u32 4294901760, %v16859_v44  ;;  %v16940_v44 = vand.u32 4294901760, %v367_v16  ;;  %v16970_v0 = vand.u32 4294901760, %v366_v2 }
 0x222   : > { %12396 = vmatprep.subr.mxu1 %v16439_v36  ;;  %12407 = vmatprep.subr.mxu0 %v16704_v60  ;;  %20290 = vst [vmem:[#allocation32_spill] sm:$0xff] %v16938_v21  ;;  %20292 = vst [vmem:[#allocation21_spill] sm:$0xff] %v16956_v18  ;;  %v180_v60 = vld [vmem:[%s13676_s9 + $0x58] sm:$0xff]  ;;  %v20294_v36 = vand.u32 4294901760, %v16770_v52  ;;  %v179_v52 = vld [vmem:[%s13676_s9 + $0x50] sm:$0xff]  ;;  %v4903_v39 = vand.u32 4294901760, %v16945_v32  ;;  %v17005_v50 = vsub.f32 %v350_v7, %v16956_v18 }
 0x223   : > { %12397 = vmatpush3.msra.mxu1 %v16441_v54  ;;  %4744 = vmatprep.mubr.f32.mxu1 %v20277_v20  ;;  %20291 = vst [vmem:[#allocation19_spill] sm:$0xff] %v16940_v44  ;;  %v348_v54 = vld [vmem:[%s19172_s1 + $0x518] sm:$0xff]  ;;  %v16968_v20 = vsub.f32 %v351_v12, %v16917_v38  ;;  %20293 = vst [vmem:[#allocation33_spill] sm:$0xff] %v16970_v0  ;;  %v20301_v7 = vand.u32 4294901760, %v16923_v61 }
 0x224   : > { %12408 = vmatpush3.msra.mxu0 %v16713_v42  ;;  %4746 = vmatmul.mubr.f32.vlgmr.msra.gmra.mxu1 %v20281_v51  ;;  %v16987_v51 = vand.u32 4294901760, %v349_v41  ;;  %v364_v42 = vld [vmem:[%s19172_s1 + $0x598] sm:$0xff] }
 0x225   : > { %12409 = vmatprep.subr.mxu0 %v16727_v63  ;;  %12436 = vmatprep.subr.mxu1 %v4980_v22  ;;  %v20296_v22 = vand.u32 4294901760, %v16868_v23  ;;  %v17017_v63 = vand.u32 4294901760, %v180_v60 }
 0x226   : > { %12410 = vmatpush3.msra.mxu0 %v16733_v10  ;;  %12437 = vmatpush3.msra.mxu1 %v20294_v36  ;;  %20297 = vst [vmem:[#allocation12_spill] sm:$0xff] %v16987_v51  ;;  %v16992_v10 = vand.u32 4294901760, %v348_v54  ;;  %v16997_v36 = vand.u32 4294901760, %v365_v45 }
 0x227   : > { %v16985_v12 = vsub.f32 %v16868_v23, %v20296_v22  ;;  %12411 = vmatprep.subr.mxu0 %v16752_v35  ;;  %12438 = vmatprep.subr.mxu1 %v4987_v40  ;;  %v17001_v22 = vsub.f32 %v367_v16, %v16940_v44  ;;  %v20298_v23 = vand.u32 4294901760, %v16907_v25  ;;  %v20299_v40 = vand.u32 4294901760, %v16896_v4  ;;  %20300 = vst [vmem:[#allocation17_spill] sm:$0xff] %v17017_v63 }
 0x228   : > { %12412 = vmatpush3.msra.mxu0 %v16772_v47  ;;  %12439 = vmatpush3.msra.mxu1 %v4875_v19  ;;  %v17020_v16 = vand.u32 4294901760, %v364_v42  ;;  %v17025_v19 = vsub.f32 %v16923_v61, %v20301_v7  ;;  %v17031_v47 = vsub.f32 %v366_v2, %v16970_v0  ;;  %v17042_v7 = vsub.f32 %v348_v54, %v16992_v10  ;;  %v347_v2 = vld [vmem:[%s19172_s1 + $0x510] sm:$0xff]  ;;  %v362_v54 = vld [vmem:[%s19172_s1 + $0x588] sm:$0xff] }
 0x229   : > { %v17010_v35 = vsub.f32 %v16907_v25, %v20298_v23  ;;  %v17015_v32 = vsub.f32 %v16896_v4, %v20299_v40  ;;  %12413 = vmatprep.subr.mxu0 %v16814_v33  ;;  %12440 = vmatprep.subr.mxu1 %v4994_v56  ;;  %v363_v23 = vld [vmem:[%s19172_s1 + $0x590] sm:$0xff]  ;;  %v17033_v40 = vand.u32 4294901760, %v179_v52  ;;  %v5022_v56 = vand.u32 4294901760, %v16980_v26 }
 0x22a   : > { %12414 = vmatpush3.msra.mxu0 %v16816_v48  ;;  %12441 = vmatpush3.msra.mxu1 %v4882_v43  ;;  %v4910_v33 = vand.u32 4294901760, %v16985_v12  ;;  %v17039_v4 = vsub.f32 %v349_v41, %v16987_v51  ;;  %v20303_v48 = vand.u32 4294901760, %v16938_v21  ;;  %v346_v12 = vld [vmem:[%s19172_s1 + $0x508] sm:$0xff]  ;;  %v17069_v26 = vand.u32 4294901760, %v363_v23 }
 0x22b   : > { %20302 = vst [vmem:[#allocation14_spill] sm:$0xff] %v17033_v40  ;;  %12415 = vmatprep.subr.mxu0 %v16841_v62  ;;  %12442 = vmatprep.subr.mxu1 %v5001_v34  ;;  %v17062_v62 = vsub.f32 %v365_v45, %v16997_v36  ;;  %v5029_v34 = vand.u32 4294901760, %v17010_v35  ;;  %v4917_v41 = vand.u32 4294901760, %v17015_v32  ;;  %v20306_v61 = vand.u32 4294901760, %v16887_v31  ;;  %v361_v35 = vld [vmem:[%s19172_s1 + $0x580] sm:$0xff] }
 0x22c   : > { %v17051_v43 = vsub.f32 %v16938_v21, %v20303_v48  ;;  %12416 = vmatpush3.msra.mxu0 %v16843_v55  ;;  %v20304_v48 = vand.u32 4294901760, %v16873_v28  ;;  %20305 = vst [vmem:[#allocation26_spill] sm:$0xff] %v17069_v26  ;;  %v17072_v21 = vsub.f32 %v180_v60, %v17017_v63  ;;  %v5036_v45 = vand.u32 4294901760, %v17025_v19  ;;  %v345_v60 = vld [vmem:[%s19172_s1 + $0x500] sm:$0xff]  ;;  %5088 = vmatprep.mubr.f32.mxu1 %v17017_v63 }
 0x22d   : > { %12417 = vmatprep.subr.mxu0 %v16861_v17  ;;  %v17078_v55 = vand.u32 4294901760, %v347_v2  ;;  %v17088_v32 = vsub.f32 %v179_v52, %v17033_v40  ;;  %v20307_v31 = vand.u32 4294901760, %v16901_v27  ;;  %v17095_v19 = vand.u32 4294901760, %v346_v12  ;;  %v20344_v63 = vld [vmem:[#allocation33_spill] sm:$0xff] }
 0x22e   : > { %12443 = vmatpush3.msra.mxu1 %v20304_v48  ;;  %12418 = vmatpush3.msra.mxu0 %v16889_v59  ;;  %v17099_v28 = vsub.f32 %v364_v42, %v17020_v16  ;;  %v20308_v17 = vand.u32 4294901760, %v16915_v15  ;;  %v4924_v52 = vand.u32 4294901760, %v17051_v43  ;;  %v20309_v59 = vand.u32 4294901760, %v17001_v22 }
 0x22f   : > { %12444 = vmatprep.subr.mxu1 %v20306_v61  ;;  %v17093_v61 = vand.u32 4294901760, %v362_v54  ;;  %12419 = vmatprep.subr.mxu0 %v16940_v44  ;;  %v17113_v42 = vand.u32 4294901760, %v361_v35  ;;  %v17115_v44 = vand.u32 4294901760, %v345_v60  ;;  %v17119_v15 = vsub.f32 %v363_v23, %v17069_v26 }
 0x230   : > { %12445 = vmatpush3.msra.mxu1 %v20307_v31  ;;  %v5042_v27 = vsub.f32 %v17001_v22, %v20309_v59  ;;  %v20310_v31 = vand.u32 4294901760, %v16968_v20  ;;  %12420 = vmatpush3.msra.mxu0 %v16917_v38  ;;  %v17123_v59 = vsub.f32 %v347_v2, %v17078_v55  ;;  %v20311_v43 = vand.u32 4294901760, %v17031_v47 }
 0x231   : > { %12446 = vmatprep.subr.mxu1 %v20308_v17  ;;  %12421 = vmatprep.subr.mxu0 %v16970_v0  ;;  %v17132_v23 = vsub.f32 %v346_v12, %v17095_v19  ;;  %v20312_v17 = vand.u32 4294901760, %v17005_v50  ;;  %v17139_v0 = vsub.f32 %v362_v54, %v17093_v61  ;;  %v20315_v54 = vand.u32 4294901760, %v17072_v21 }
 0x232   : > { %v4930_v25 = vsub.f32 %v16968_v20, %v20310_v31  ;;  %12447 = vmatpush3.msra.mxu1 %v4903_v39  ;;  %v5049_v31 = vsub.f32 %v17031_v47, %v20311_v43  ;;  %12422 = vmatpush3.msra.mxu0 %v16956_v18  ;;  %v5043_v43 = vand.u32 4294901760, %v5042_v27  ;;  %v20313_v39 = vand.u32 4294901760, %v17062_v62 }
 0x233   : > { %12448 = vmatprep.subr.mxu1 %v5022_v56  ;;  %v4937_v56 = vsub.f32 %v17005_v50, %v20312_v17  ;;  %12423 = vmatprep.subr.mxu0 %v16997_v36  ;;  %v17148_v17 = vsub.f32 %v345_v60, %v17115_v44  ;;  %v4850_v2 = vsub.f32 %v17072_v21, %v20315_v54  ;;  %v20318_v60 = vand.u32 4294901760, %v17088_v32 }
 0x234   : > { %12449 = vmatpush3.msra.mxu1 %v4910_v33  ;;  %v4931_v48 = vand.u32 4294901760, %v4930_v25  ;;  %v5056_v33 = vsub.f32 %v17062_v62, %v20313_v39  ;;  %12424 = vmatpush3.msra.mxu0 %v16987_v51  ;;  %v17155_v25 = vsub.f32 %v361_v35, %v17113_v42  ;;  %v5050_v27 = vand.u32 4294901760, %v5049_v31 }
 0x235   : > { %12450 = vmatprep.subr.mxu1 %v5029_v34  ;;  %20314 = vst [vmem:[#allocation25_spill] sm:$0xff] %v17148_v17  ;;  %12425 = vmatprep.subr.mxu0 %v17020_v16  ;;  %v20317_v39 = vand.u32 4294901760, %v17039_v4  ;;  %v4856_v12 = vsub.f32 %v17088_v32, %v20318_v60  ;;  %v4938_v54 = vand.u32 4294901760, %v4937_v56  ;;  %v20319_v35 = vand.u32 4294901760, %v17099_v28 }
 0x236   : > { %12451 = vmatpush3.msra.mxu1 %v4917_v41  ;;  %20316 = vst [vmem:[#allocation27_spill] sm:$0xff] %v17155_v25  ;;  %12426 = vmatpush3.msra.mxu0 %v16992_v10  ;;  %v5057_v31 = vand.u32 4294901760, %v5056_v33  ;;  %v20321_v56 = vand.u32 4294901760, %v17119_v15  ;;  %v19568_v51 = vand.u32 4294901760, %v17148_v17 }
 0x237   : > { %12452 = vmatprep.subr.mxu1 %v5036_v45  ;;  %v4944_v41 = vsub.f32 %v17039_v4, %v20317_v39  ;;  %v5063_v34 = vsub.f32 %v17099_v28, %v20319_v35  ;;  %12427 = vmatprep.subr.mxu0 %v17069_v26  ;;  %v20320_v39 = vand.u32 4294901760, %v17042_v7  ;;  %v19569_v45 = vand.u32 4294901760, %v17155_v25 }
 0x238   : > { %12453 = vmatpush3.msra.mxu1 %v4924_v52  ;;  %12428 = vmatpush3.msra.mxu0 %v17078_v55  ;;  %v4851_v52 = vand.u32 4294901760, %v4850_v2  ;;  %v5070_v35 = vsub.f32 %v17119_v15, %v20321_v56  ;;  %v4857_v33 = vand.u32 4294901760, %v4856_v12  ;;  %v20322_v26 = vand.u32 4294901760, %v17123_v59 }
 0x239   : > { %12454 = vmatprep.subr.mxu1 %v5043_v43  ;;  %v4951_v60 = vsub.f32 %v17042_v7, %v20320_v39  ;;  %12429 = vmatprep.subr.mxu0 %v17093_v61  ;;  %v4945_v43 = vand.u32 4294901760, %v4944_v41  ;;  %v20323_v2 = vand.u32 4294901760, %v17139_v0  ;;  %v20324_v12 = vand.u32 4294901760, %v17132_v23 }
 0x23a   : > { %12455 = vmatpush3.msra.mxu1 %v4931_v48  ;;  %v4958_v39 = vsub.f32 %v17123_v59, %v20322_v26  ;;  %12430 = vmatpush3.msra.mxu0 %v17095_v19  ;;  %v5064_v48 = vand.u32 4294901760, %v5063_v34  ;;  %v5071_v26 = vand.u32 4294901760, %v5070_v35  ;;  %v5084_v34 = vsub.f32 %v17155_v25, %v19569_v45  ;;  %v20342_v45 = vld [vmem:[#allocation15_spill] sm:$0xff] }
 0x23b   : > { %12456 = vmatprep.subr.mxu1 %v5050_v27  ;;  %v5077_v56 = vsub.f32 %v17139_v0, %v20323_v2  ;;  %12431 = vmatprep.subr.mxu0 %v17113_v42  ;;  %v4952_v27 = vand.u32 4294901760, %v4951_v60  ;;  %v4965_v41 = vsub.f32 %v17132_v23, %v20324_v12  ;;  %v20328_v2 = vld [vmem:[#allocation28_spill] sm:$0xff]  ;;  %v20331_v12 = vld [vmem:[#allocation18_spill] sm:$0xff] }
 0x23c   : > { %12457 = vmatpush3.msra.mxu1 %v4938_v54  ;;  %12432 = vmatpush3.msra.mxu0 %v17115_v44  ;;  %v4959_v54 = vand.u32 4294901760, %v4958_v39  ;;  %v5085_v35 = vand.u32 4294901760, %v5084_v34  ;;  %v20326_v39 = vld [vmem:[#allocation31_spill] sm:$0xff]  ;;  %v20334_v34 = vld [vmem:[#allocation22_spill] sm:$0xff] }
 0x23d   : > { %12458 = vmatprep.subr.mxu1 %v5057_v31  ;;  %4852 = vmatprep.mubr.f32.mxu0 %v4851_v52  ;;  %v4972_v31 = vsub.f32 %v17148_v17, %v19568_v51  ;;  %v5078_v60 = vand.u32 4294901760, %v5077_v56  ;;  %v4966_v52 = vand.u32 4294901760, %v4965_v41  ;;  %v20329_v56 = vld [vmem:[#allocation5_spill] sm:$0xff]  ;;  %v20332_v41 = vld [vmem:[#allocation30_spill] sm:$0xff] }
 0x23e   : > { %12459 = vmatpush3.msra.mxu1 %v4945_v43  ;;  %4858 = vmatmul.mubr.f32.vlgmr.msra.gmra.mxu0 %v4857_v33  ;;  %v20325_v33 = vld [vmem:[#allocation8_spill] sm:$0xff]  ;;  %v20341_v51 = vld [vmem:[#allocation6_spill] sm:$0xff] }
 0x23f   : > { %12460 = vmatprep.subr.mxu1 %v5064_v48  ;;  %12471 = vmatprep.subr.mxu0 %v16667_v58  ;;  %v4973_v43 = vand.u32 4294901760, %v4972_v31  ;;  %v20327_v48 = vld [vmem:[#allocation13_spill] sm:$0xff]  ;;  %v20336_v31 = vld [vmem:[#allocation16_spill] sm:$0xff] }
 0x240   : > { %12461 = vmatpush3.msra.mxu1 %v4952_v27  ;;  %12472 = vmatpush3.msra.mxu0 %v16684_v29  ;;  %v20330_v27 = vld [vmem:[#allocation7_spill] sm:$0xff] }
 0x241   : > { %12462 = vmatprep.subr.mxu1 %v5071_v26  ;;  %12473 = vmatprep.subr.mxu0 %v16719_v37  ;;  %v20333_v26 = vld [vmem:[#allocation32_spill] sm:$0xff] }
 0x242   : > { %12463 = vmatpush3.msra.mxu1 %v4959_v54  ;;  %12474 = vmatpush3.msra.mxu0 %v16725_v11  ;;  %v20335_v54 = vld [vmem:[#allocation23_spill] sm:$0xff] }
 0x243   : > { %12464 = vmatprep.subr.mxu1 %v5078_v60  ;;  %12475 = vmatprep.subr.mxu0 %v16739_v53  ;;  %v20337_v60 = vld [vmem:[#allocation10_spill] sm:$0xff] }
 0x244   : > { %12465 = vmatpush3.msra.mxu1 %v4966_v52  ;;  %12476 = vmatpush3.msra.mxu0 %v16745_v24  ;;  %v20338_v52 = vld [vmem:[#allocation9_spill] sm:$0xff] }
 0x245   : > { %12466 = vmatprep.subr.mxu1 %v5085_v35  ;;  %12477 = vmatprep.subr.mxu0 %v16755_v1  ;;  %v20339_v35 = vld [vmem:[#allocation11_spill] sm:$0xff] }
 0x246   : > { %12467 = vmatpush3.msra.mxu1 %v4973_v43  ;;  %12478 = vmatpush3.msra.mxu0 %v16761_v13  ;;  %v20340_v43 = vld [vmem:[#allocation24_spill] sm:$0xff] }
 0x247   : > { %5090 = vmatmul.mubr.f32.vlgmr.msra.gmra.mxu1 %v17033_v40  ;;  %12479 = vmatprep.subr.mxu0 %v16782_v49  ;;  %v20343_v40 = vld [vmem:[#allocation19_spill] sm:$0xff] }
 0x248   : > { %12506 = vmatprep.subr.mxu1 %v16641_v46  ;;  %12480 = vmatpush3.msra.mxu0 %v16788_v9 }
 0x249   : > { %12507 = vmatpush3.msra.mxu1 %v16649_v8  ;;  %12481 = vmatprep.subr.mxu0 %v16804_v30 }
 0x24a   : > { %12508 = vmatprep.subr.mxu1 %v16672_v5  ;;  %12482 = vmatpush3.msra.mxu0 %v16826_v14 }
 0x24b   : > { %12509 = vmatpush3.msra.mxu1 %v16686_v3  ;;  %12483 = vmatprep.subr.mxu0 %v16879_v57 }
 0x24c   : > { %12510 = vmatprep.subr.mxu1 %v16694_v6  ;;  %12484 = vmatpush3.msra.mxu0 %v20325_v33 }
 0x24d   : > { %12511 = vmatpush3.msra.mxu1 %v20326_v39  ;;  %12485 = vmatprep.subr.mxu0 %v20327_v48 }
 0x24e   : > { %12512 = vmatprep.subr.mxu1 %v20328_v2  ;;  %12486 = vmatpush3.msra.mxu0 %v20329_v56 }
 0x24f   : > { %12513 = vmatpush3.msra.mxu1 %v20330_v27  ;;  %12487 = vmatprep.subr.mxu0 %v20331_v12 }
 0x250   : > { %12514 = vmatprep.subr.mxu1 %v20332_v41  ;;  %12488 = vmatpush3.msra.mxu0 %v20333_v26 }
 0x251   : > { %12515 = vmatpush3.msra.mxu1 %v20334_v34  ;;  %12489 = vmatprep.subr.mxu0 %v17001_v22 }
 0x252   : > { %12516 = vmatprep.subr.mxu1 %v20335_v54  ;;  %12490 = vmatpush3.msra.mxu0 %v16968_v20 }
 0x253   : > { %12517 = vmatpush3.msra.mxu1 %v20336_v31  ;;  %12491 = vmatprep.subr.mxu0 %v17031_v47 }
 0x254   : > { %12518 = vmatprep.subr.mxu1 %v20337_v60  ;;  %12492 = vmatpush3.msra.mxu0 %v17005_v50 }
 0x255   : > { %12519 = vmatpush3.msra.mxu1 %v20338_v52  ;;  %12493 = vmatprep.subr.mxu0 %v17062_v62 }
 0x256   : > { %12520 = vmatprep.subr.mxu1 %v20339_v35  ;;  %12494 = vmatpush3.msra.mxu0 %v17039_v4 }
 0x257   : > { %12521 = vmatpush3.msra.mxu1 %v20340_v43  ;;  %12495 = vmatprep.subr.mxu0 %v17099_v28 }
 0x258   : > { %12522 = vmatprep.subr.mxu1 %v20341_v51  ;;  %12496 = vmatpush3.msra.mxu0 %v17042_v7 }
 0x259   : > { %12523 = vmatpush3.msra.mxu1 %v20342_v45  ;;  %12497 = vmatprep.subr.mxu0 %v17119_v15 }
 0x25a   : > { %12524 = vmatprep.subr.mxu1 %v20343_v40  ;;  %12498 = vmatpush3.msra.mxu0 %v17123_v59  ;;  %v20345_v40 = vld [vmem:[#allocation12_spill] sm:$0xff] }
 0x25b   : > { %12525 = vmatpush3.msra.mxu1 %v16917_v38  ;;  %12499 = vmatprep.subr.mxu0 %v17139_v0 }
 0x25c   : > { %12526 = vmatprep.subr.mxu1 %v20344_v63  ;;  %12500 = vmatpush3.msra.mxu0 %v17132_v23  ;;  %v20346_v63 = vand.u32 4294901760, %v16667_v58  ;;  %v20351_v58 = vand.u32 4294901760, %v16739_v53  ;;  %v20356_v53 = vand.u32 4294901760, %v17088_v32 }
 0x25d   : > { %12527 = vmatpush3.msra.mxu1 %v16956_v18  ;;  %12501 = vmatprep.subr.mxu0 %v17155_v25  ;;  %v20347_v18 = vand.u32 4294901760, %v16684_v29  ;;  %v20348_v25 = vld [vmem:[#allocation26_spill] sm:$0xff]  ;;  %v20352_v29 = vand.u32 4294901760, %v16745_v24  ;;  %v20358_v24 = vand.u32 4294901760, %v16788_v9 }
 0x25e   : > { %12528 = vmatprep.subr.mxu1 %v16997_v36  ;;  %12502 = vmatpush3.msra.mxu0 %v17148_v17  ;;  %v20349_v17 = vand.u32 4294901760, %v16719_v37  ;;  %v20353_v37 = vand.u32 4294901760, %v16755_v1  ;;  %v20359_v1 = vand.u32 4294901760, %v16804_v30 }
 0x25f   : > { %5225 = vmatprep.mubr.f32.mxu0 %v17072_v21  ;;  %12529 = vmatpush3.msra.mxu1 %v20345_v40  ;;  %v20350_v40 = vand.u32 4294901760, %v16725_v11  ;;  %v20354_v11 = vand.u32 4294901760, %v17072_v21  ;;  %v20366_v21 = vand.u32 4294901760, %v20333_v26 }
 0x260   : > { %5228 = vmatmul.mubr.f32.vlgmr.msra.gmra.mxu0 %v17088_v32  ;;  %12530 = vmatprep.subr.mxu1 %v17020_v16  ;;  %v20367_v32 = vand.u32 4294901760, %v17001_v22  ;;  %v390_v22 = vld [vmem:[%s19172_s1 + $0x668] sm:$0xff] }
 0x261   : > { %12541 = vmatprep.subr.mxu0 %v20346_v63  ;;  %12531 = vmatpush3.msra.mxu1 %v16992_v10  ;;  %v20355_v63 = vand.u32 4294901760, %v16761_v13  ;;  %v20360_v13 = vand.u32 4294901760, %v16826_v14  ;;  %v407_v14 = vld [vmem:[%s19172_s1 + $0x6f0] sm:$0xff] }
 0x262   : > { %12542 = vmatpush3.msra.mxu0 %v20347_v18  ;;  %12532 = vmatprep.subr.mxu1 %v20348_v25  ;;  %v20357_v18 = vand.u32 4294901760, %v16782_v49  ;;  %v408_v49 = vld [vmem:[%s19172_s1 + $0x6f8] sm:$0xff] }
 0x263   : > { %12543 = vmatprep.subr.mxu0 %v20349_v17  ;;  %12533 = vmatpush3.msra.mxu1 %v17078_v55  ;;  %v17315_v9 = vand.u32 4294901760, %v408_v49  ;;  %v406_v17 = vld [vmem:[%s19172_s1 + $0x6e8] sm:$0xff] }
 0x264   : > { %12544 = vmatpush3.msra.mxu0 %v20350_v40  ;;  %12534 = vmatprep.subr.mxu1 %v17093_v61  ;;  %v391_v40 = vld [vmem:[%s19172_s1 + $0x670] sm:$0xff]  ;;  %v17368_v26 = vand.u32 4294901760, %v406_v17 }
 0x265   : > { %12545 = vmatprep.subr.mxu0 %v20351_v58  ;;  %12535 = vmatpush3.msra.mxu1 %v17095_v19 }
 0x266   : > { %12546 = vmatpush3.msra.mxu0 %v20352_v29  ;;  %12536 = vmatprep.subr.mxu1 %v17113_v42  ;;  %v20376_v29 = vand.u32 4294901760, %v17099_v28  ;;  %v387_v28 = vld [vmem:[%s19172_s1 + $0x650] sm:$0xff] }
 0x267   : > { %12547 = vmatprep.subr.mxu0 %v20353_v37  ;;  %12537 = vmatpush3.msra.mxu1 %v17115_v44 }
 0x268   : > { %5332 = vmatprep.mubr.f32.mxu1 %v20354_v11  ;;  %12548 = vmatpush3.msra.mxu0 %v20355_v63  ;;  %v20378_v11 = vand.u32 4294901760, %v17042_v7 }
 0x269   : > { %5336 = vmatmul.mubr.f32.vlgmr.msra.gmra.mxu1 %v20356_v53  ;;  %12549 = vmatprep.subr.mxu0 %v20357_v18  ;;  %v20380_v53 = vand.u32 4294901760, %v17119_v15  ;;  %v20381_v18 = vld [vmem:[#allocation19_spill] sm:$0xff] }
 0x26a   : > { %12576 = vmatprep.subr.mxu1 %v16641_v46  ;;  %12550 = vmatpush3.msra.mxu0 %v20358_v24  ;;  %v20361_v46 = vand.u32 4294901760, %v16879_v57  ;;  %v20364_v57 = vand.u32 4294901760, %v20329_v56  ;;  %v20369_v56 = vand.u32 4294901760, %v17031_v47  ;;  %v404_v47 = vld [vmem:[%s19172_s1 + $0x6d8] sm:$0xff] }
 0x26b   : > { %12577 = vmatpush3.msra.mxu1 %v16649_v8  ;;  %12551 = vmatprep.subr.mxu0 %v20359_v1  ;;  %v20362_v8 = vand.u32 4294901760, %v20325_v33  ;;  %v17341_v33 = vsub.f32 %v408_v49, %v17315_v9 }
 0x26c   : > { %12578 = vmatprep.subr.mxu1 %v16672_v5  ;;  %12552 = vmatpush3.msra.mxu0 %v20360_v13  ;;  %v392_v5 = vld [vmem:[%s19172_s1 + $0x678] sm:$0xff]  ;;  %v20383_v13 = vand.u32 4294901760, %v17123_v59 }
 0x26d   : > { %12579 = vmatpush3.msra.mxu1 %v16686_v3  ;;  %12553 = vmatprep.subr.mxu0 %v20361_v46  ;;  %v20363_v3 = vand.u32 4294901760, %v20327_v48  ;;  %v17323_v30 = vand.u32 4294901760, %v392_v5  ;;  %v17346_v48 = vand.u32 4294901760, %v407_v14  ;;  %v20384_v46 = vand.u32 4294901760, %v17139_v0  ;;  %v386_v0 = vld [vmem:[%s19172_s1 + $0x648] sm:$0xff] }
 0x26e   : > { %12580 = vmatprep.subr.mxu1 %v16694_v6  ;;  %12554 = vmatpush3.msra.mxu0 %v20362_v8  ;;  %v20365_v6 = vand.u32 4294901760, %v20331_v12  ;;  %v389_v12 = vld [vmem:[%s19172_s1 + $0x660] sm:$0xff] }
 0x26f   : > { %12581 = vmatpush3.msra.mxu1 %v20326_v39  ;;  %12555 = vmatprep.subr.mxu0 %v20363_v3  ;;  %v20368_v39 = vand.u32 4294901760, %v16968_v20  ;;  %v17358_v20 = vsub.f32 %v392_v5, %v17323_v30  ;;  %v17387_v58 = vand.u32 4294901760, %v389_v12  ;;  %v20385_v8 = vld [vmem:[#allocation33_spill] sm:$0xff]  ;;  %v17446_v3 = vand.u32 4294901760, %v387_v28 }
 0x270   : > { %12582 = vmatprep.subr.mxu1 %v20328_v2  ;;  %12556 = vmatpush3.msra.mxu0 %v20364_v57  ;;  %v405_v2 = vld [vmem:[%s19172_s1 + $0x6e0] sm:$0xff] }
 0x271   : > { %12583 = vmatpush3.msra.mxu1 %v20330_v27  ;;  %12557 = vmatprep.subr.mxu0 %v20365_v6  ;;  %v17360_v27 = vand.u32 4294901760, %v391_v40  ;;  %20375 = vst [vmem:[#allocation8_spill] sm:$0xff] %v17387_v58  ;;  %v17435_v15 = vsub.f32 %v389_v12, %v17387_v58  ;;  %20386 = vst [vmem:[#allocation5_spill] sm:$0xff] %v17446_v3  ;;  %v20387_v6 = vand.u32 4294901760, %v17132_v23  ;;  %v401_v23 = vld [vmem:[%s19172_s1 + $0x6c0] sm:$0xff] }
 0x272   : > { %12584 = vmatprep.subr.mxu1 %v20332_v41  ;;  %12558 = vmatpush3.msra.mxu0 %v20366_v21  ;;  %v20370_v41 = vand.u32 4294901760, %v17005_v50  ;;  %v19587_v50 = vand.u32 4294901760, %v17341_v33 }
 0x273   : > { %12585 = vmatpush3.msra.mxu1 %v20334_v34  ;;  %12559 = vmatprep.subr.mxu0 %v20367_v32  ;;  %v20371_v34 = vand.u32 4294901760, %v17062_v62  ;;  %v403_v62 = vld [vmem:[%s19172_s1 + $0x6d0] sm:$0xff]  ;;  %v17399_v37 = vsub.f32 %v391_v40, %v17360_v27 }
 0x274   : > { %12586 = vmatprep.subr.mxu1 %v20335_v54  ;;  %12560 = vmatpush3.msra.mxu0 %v20368_v39  ;;  %v17376_v54 = vand.u32 4294901760, %v390_v22  ;;  %v17424_v7 = vsub.f32 %v17341_v33, %v19587_v50  ;;  %v20389_v32 = vld [vmem:[#allocation27_spill] sm:$0xff]  ;;  %v381_v50 = vld [vmem:[%s19172_s1 + $0x620] sm:$0xff] }
 0x275   : > { %12587 = vmatpush3.msra.mxu1 %v20336_v31  ;;  %12561 = vmatprep.subr.mxu0 %v20369_v56  ;;  %v17378_v31 = vand.u32 4294901760, %v405_v2  ;;  %v19580_v59 = vand.u32 4294901760, %v17399_v37  ;;  %v385_v56 = vld [vmem:[%s19172_s1 + $0x640] sm:$0xff] }
 0x276   : > { %12588 = vmatprep.subr.mxu1 %v20337_v60  ;;  %12562 = vmatpush3.msra.mxu0 %v20370_v41  ;;  %20372 = vst [vmem:[#allocation29_spill] sm:$0xff] %v17376_v54  ;;  %v388_v60 = vld [vmem:[%s19172_s1 + $0x658] sm:$0xff]  ;;  %v17419_v24 = vsub.f32 %v390_v22, %v17376_v54  ;;  %v5842_v39 = vand.u32 4294901760, %v17424_v7  ;;  %v20391_v41 = vld [vmem:[#allocation25_spill] sm:$0xff] }
 0x277   : > { %12589 = vmatpush3.msra.mxu1 %v20338_v52  ;;  %12563 = vmatprep.subr.mxu0 %v20371_v34  ;;  %20373 = vst [vmem:[#allocation20_spill] sm:$0xff] %v17378_v31  ;;  %v20374_v52 = vand.u32 4294901760, %v17039_v4  ;;  %v17401_v4 = vand.u32 4294901760, %v404_v47  ;;  %v17407_v63 = vand.u32 4294901760, %v388_v60  ;;  %v17429_v1 = vsub.f32 %v405_v2, %v17378_v31 }
 0x278   : > { %12590 = vmatprep.subr.mxu1 %v20339_v35  ;;  %v17393_v35 = vsub.f32 %v407_v14, %v17346_v48  ;;  %v20388_v14 = vld [vmem:[#allocation21_spill] sm:$0xff]  ;;  %v19578_v22 = vand.u32 4294901760, %v17419_v24 }
 0x279   : > { %12564 = vmatpush3.msra.mxu0 %v20374_v52  ;;  %12591 = vmatpush3.msra.mxu1 %v20340_v43  ;;  %20377 = vst [vmem:[#allocation31_spill] sm:$0xff] %v17401_v4  ;;  %v19586_v43 = vand.u32 4294901760, %v17358_v20  ;;  %20379 = vst [vmem:[#allocation13_spill] sm:$0xff] %v17407_v63  ;;  %v17456_v57 = vsub.f32 %v404_v47, %v17401_v4  ;;  %v17462_v21 = vsub.f32 %v388_v60, %v17407_v63 }
 0x27a   : > { %12565 = vmatprep.subr.mxu0 %v20376_v29  ;;  %12592 = vmatprep.subr.mxu1 %v20341_v51  ;;  %v17413_v51 = vsub.f32 %v406_v17, %v17368_v26  ;;  %v19583_v49 = vand.u32 4294901760, %v17393_v35  ;;  %v20390_v17 = vand.u32 4294901760, %v20389_v32  ;;  %v19579_v2 = vand.u32 4294901760, %v17429_v1  ;;  %v384_v32 = vld [vmem:[%s19172_s1 + $0x638] sm:$0xff] }
 0x27b   : > { %12566 = vmatpush3.msra.mxu0 %v20378_v11  ;;  %12593 = vmatpush3.msra.mxu1 %v20342_v45  ;;  %v17426_v45 = vand.u32 4294901760, %v403_v62  ;;  %v17444_v5 = vsub.f32 %v17358_v20, %v19586_v43  ;;  %v20392_v47 = vand.u32 4294901760, %v20391_v41  ;;  %v17490_v52 = vand.u32 4294901760, %v386_v0  ;;  %v20396_v11 = vld [vmem:[#allocation12_spill] sm:$0xff] }
 0x27c   : > { %12567 = vmatprep.subr.mxu0 %v20380_v53  ;;  %12594 = vmatprep.subr.mxu1 %v20381_v18  ;;  %v19577_v40 = vand.u32 4294901760, %v17413_v51  ;;  %v17486_v34 = vsub.f32 %v17393_v35, %v19583_v49  ;;  %v19581_v29 = vand.u32 4294901760, %v17435_v15  ;;  %v20397_v53 = vld [vmem:[#allocation14_spill] sm:$0xff]  ;;  %v17533_v41 = vsub.f32 %v17429_v1, %v19579_v2  ;;  %v383_v2 = vld [vmem:[%s19172_s1 + $0x630] sm:$0xff] }
 0x27d   : > { %20382 = vst [vmem:[#allocation28_spill] sm:$0xff] %v17426_v45  ;;  %12568 = vmatpush3.msra.mxu0 %v20383_v13  ;;  %12595 = vmatpush3.msra.mxu1 %v16917_v38  ;;  %v402_v38 = vld [vmem:[%s19172_s1 + $0x6c8] sm:$0xff]  ;;  %v17478_v12 = vsub.f32 %v403_v62, %v17426_v45  ;;  %20395 = vst [vmem:[#allocation18_spill] sm:$0xff] %v17490_v52  ;;  %v400_v62 = vld [vmem:[%s19172_s1 + $0x6b8] sm:$0xff]  ;;  %v17500_v13 = vsub.f32 %v387_v28, %v17446_v3  ;;  %v17517_v28 = vand.u32 4294901760, %v385_v56 }
 0x27e   : > { %12569 = vmatprep.subr.mxu0 %v20384_v46  ;;  %12596 = vmatprep.subr.mxu1 %v20385_v8  ;;  %v17488_v60 = vand.u32 4294901760, %v402_v38  ;;  %v17505_v46 = vsub.f32 %v17399_v37, %v19580_v59  ;;  %v19582_v8 = vand.u32 4294901760, %v17456_v57 }
 0x27f   : > { %12570 = vmatpush3.msra.mxu0 %v20387_v6  ;;  %12597 = vmatpush3.msra.mxu1 %v20388_v14  ;;  %v17513_v6 = vsub.f32 %v17413_v51, %v19577_v40  ;;  %v17515_v14 = vand.u32 4294901760, %v401_v23  ;;  %20399 = vst [vmem:[#allocation32_spill] sm:$0xff] %v17517_v28  ;;  %v17542_v40 = vsub.f32 %v386_v0, %v17490_v52 }
 0x280   : > { %12571 = vmatprep.subr.mxu0 %v20390_v17  ;;  %12598 = vmatprep.subr.mxu1 %v16997_v36  ;;  %v20393_v36 = vld [vmem:[#allocation17_spill] sm:$0xff]  ;;  %20394 = vst [vmem:[#allocation7_spill] sm:$0xff] %v17488_v60  ;;  %v19584_v17 = vand.u32 4294901760, %v17462_v21  ;;  %v17553_v59 = vsub.f32 %v402_v38, %v17488_v60  ;;  %v17561_v0 = vsub.f32 %v17456_v57, %v19582_v8  ;;  %v399_v8 = vld [vmem:[%s19172_s1 + $0x6b0] sm:$0xff] }
 0x281   : > { %12572 = vmatpush3.msra.mxu0 %v20392_v47  ;;  %5502 = vmatprep.mubr.f32.mxu0 %v20393_v36  ;;  %20398 = vst [vmem:[#allocation30_spill] sm:$0xff] %v17515_v14  ;;  %v17535_v47 = vand.u32 4294901760, %v400_v62  ;;  %20401 = vst [vmem:[#allocation23_spill] sm:$0xff] %v17542_v40  ;;  %v5856_v38 = vand.u32 4294901760, %v17513_v6  ;;  %v17581_v49 = vsub.f32 %v401_v23, %v17515_v14  ;;  %v17591_v6 = vand.u32 4294901760, %v383_v2 }
 0x282   : > { %12599 = vmatpush3.msra.mxu1 %v20396_v11  ;;  %5504 = vmatmul.mubr.f32.vlgmr.msra.gmra.mxu0 %v20397_v53  ;;  %v19585_v11 = vand.u32 4294901760, %v17478_v12  ;;  %v20411_v43 = vand.u32 4294901760, %v17553_v59 }
 0x283   : > { %12600 = vmatprep.subr.mxu1 %v17020_v16  ;;  %12611 = vmatprep.subr.mxu0 %v17315_v9  ;;  %v17528_v16 = vsub.f32 %v17419_v24, %v19578_v22  ;;  %20400 = vst [vmem:[#allocation22_spill] sm:$0xff] %v17535_v47  ;;  %v17547_v22 = vsub.f32 %v17435_v15, %v19581_v29  ;;  %v19588_v29 = vand.u32 4294901760, %v17500_v13  ;;  %20404 = vst [vmem:[#allocation9_spill] sm:$0xff] %v17581_v49 }
 0x284   : > { %12601 = vmatpush3.msra.mxu1 %v16992_v10  ;;  %12612 = vmatpush3.msra.mxu0 %v17323_v30  ;;  %v5849_v10 = vand.u32 4294901760, %v17486_v34  ;;  %v17563_v34 = vand.u32 4294901760, %v384_v32  ;;  %v17597_v23 = vsub.f32 %v400_v62, %v17535_v47  ;;  %v17654_v7 = vsub.f32 %v17553_v59, %v20411_v43 }
 0x285   : > { %12602 = vmatprep.subr.mxu1 %v20348_v25  ;;  %12613 = vmatprep.subr.mxu0 %v17346_v48  ;;  %v5737_v25 = vand.u32 4294901760, %v17505_v46  ;;  %v17575_v46 = vsub.f32 %v17462_v21, %v19584_v17  ;;  %v382_v17 = vld [vmem:[%s19172_s1 + $0x628] sm:$0xff] }
 0x286   : > { %12603 = vmatpush3.msra.mxu1 %v17078_v55  ;;  %12614 = vmatpush3.msra.mxu0 %v17360_v27  ;;  %20402 = vst [vmem:[#allocation16_spill] sm:$0xff] %v17563_v34  ;;  %v17570_v55 = vsub.f32 %v385_v56, %v17517_v28  ;;  %v17589_v56 = vsub.f32 %v17478_v12, %v19585_v11  ;;  %20405 = vst [vmem:[#allocation11_spill] sm:$0xff] %v17597_v23  ;;  %v398_v11 = vld [vmem:[%s19172_s1 + $0x6a8] sm:$0xff] }
 0x287   : > { %12604 = vmatprep.subr.mxu1 %v17093_v61  ;;  %12615 = vmatprep.subr.mxu0 %v17368_v26  ;;  %v5744_v61 = vand.u32 4294901760, %v17528_v16  ;;  %v17612_v62 = vsub.f32 %v384_v32, %v17563_v34  ;;  %v17619_v16 = vsub.f32 %v17500_v13, %v19588_v29  ;;  %v17630_v32 = vand.u32 4294901760, %v382_v17  ;;  %v397_v29 = vld [vmem:[%s19172_s1 + $0x6a0] sm:$0xff] }
 0x288   : > { %20403 = vst [vmem:[#allocation10_spill] sm:$0xff] %v17570_v55  ;;  %12605 = vmatpush3.msra.mxu1 %v17095_v19  ;;  %12616 = vmatpush3.msra.mxu0 %v17376_v54  ;;  %v5863_v19 = vand.u32 4294901760, %v17533_v41  ;;  %v17614_v41 = vand.u32 4294901760, %v399_v8  ;;  %v17644_v18 = vand.u32 4294901760, %v398_v11 }
 0x289   : > { %12606 = vmatprep.subr.mxu1 %v17113_v42  ;;  %12617 = vmatprep.subr.mxu0 %v17378_v31  ;;  %20406 = vst [vmem:[#allocation24_spill] sm:$0xff] %v17612_v62  ;;  %20408 = vst [vmem:[#allocation15_spill] sm:$0xff] %v17630_v32  ;;  %v182_v31 = vld [vmem:[%s13676_s9 + $0x68] sm:$0xff]  ;;  %v20410_v42 = vand.u32 4294901760, %v17444_v5  ;;  %v181_v5 = vld [vmem:[%s13676_s9 + $0x60] sm:$0xff]  ;;  %v5765_v43 = vand.u32 4294901760, %v17619_v16  ;;  %v17679_v54 = vsub.f32 %v382_v17, %v17630_v32 }
 0x28a   : > { %12607 = vmatpush3.msra.mxu1 %v17115_v44  ;;  %5606 = vmatprep.mubr.f32.mxu1 %v20393_v36  ;;  %20407 = vst [vmem:[#allocation6_spill] sm:$0xff] %v17614_v41  ;;  %v380_v44 = vld [vmem:[%s19172_s1 + $0x618] sm:$0xff]  ;;  %v17642_v36 = vsub.f32 %v383_v2, %v17591_v6  ;;  %20409 = vst [vmem:[#allocation26_spill] sm:$0xff] %v17644_v18  ;;  %v20417_v17 = vand.u32 4294901760, %v17597_v23 }
 0x28b   : > { %12618 = vmatpush3.msra.mxu0 %v17387_v58  ;;  %5608 = vmatmul.mubr.f32.vlgmr.msra.gmra.mxu1 %v20397_v53  ;;  %v17661_v53 = vand.u32 4294901760, %v381_v50  ;;  %v396_v58 = vld [vmem:[%s19172_s1 + $0x698] sm:$0xff] }
 0x28c   : > { %12619 = vmatprep.subr.mxu0 %v17401_v4  ;;  %12646 = vmatprep.subr.mxu1 %v5842_v39  ;;  %v20412_v39 = vand.u32 4294901760, %v17542_v40  ;;  %v17691_v4 = vand.u32 4294901760, %v182_v31 }
 0x28d   : > { %12620 = vmatpush3.msra.mxu0 %v17407_v63  ;;  %12647 = vmatpush3.msra.mxu1 %v20410_v42  ;;  %20413 = vst [vmem:[#allocation19_spill] sm:$0xff] %v17661_v53  ;;  %v17666_v63 = vand.u32 4294901760, %v380_v44  ;;  %v17671_v42 = vand.u32 4294901760, %v397_v29 }
 0x28e   : > { %v17659_v2 = vsub.f32 %v17542_v40, %v20412_v39  ;;  %12621 = vmatprep.subr.mxu0 %v17426_v45  ;;  %12648 = vmatprep.subr.mxu1 %v5849_v10  ;;  %v17675_v39 = vsub.f32 %v399_v8, %v17614_v41  ;;  %v20414_v40 = vand.u32 4294901760, %v17581_v49  ;;  %v20415_v10 = vand.u32 4294901760, %v17570_v55  ;;  %20416 = vst [vmem:[#allocation33_spill] sm:$0xff] %v17691_v4 }
 0x28f   : > { %12622 = vmatpush3.msra.mxu0 %v17446_v3  ;;  %12649 = vmatpush3.msra.mxu1 %v5737_v25  ;;  %v17694_v8 = vand.u32 4294901760, %v396_v58  ;;  %v17699_v25 = vsub.f32 %v17597_v23, %v20417_v17  ;;  %v17705_v3 = vsub.f32 %v398_v11, %v17644_v18  ;;  %v17716_v17 = vsub.f32 %v380_v44, %v17666_v63  ;;  %v379_v11 = vld [vmem:[%s19172_s1 + $0x610] sm:$0xff]  ;;  %v394_v44 = vld [vmem:[%s19172_s1 + $0x688] sm:$0xff] }
 0x290   : > { %v17684_v45 = vsub.f32 %v17581_v49, %v20414_v40  ;;  %v17689_v16 = vsub.f32 %v17570_v55, %v20415_v10  ;;  %12623 = vmatprep.subr.mxu0 %v17488_v60  ;;  %12650 = vmatprep.subr.mxu1 %v5856_v38  ;;  %v395_v40 = vld [vmem:[%s19172_s1 + $0x690] sm:$0xff]  ;;  %v17707_v10 = vand.u32 4294901760, %v181_v5  ;;  %v5884_v38 = vand.u32 4294901760, %v17654_v7 }
 0x291   : > { %12624 = vmatpush3.msra.mxu0 %v17490_v52  ;;  %12651 = vmatpush3.msra.mxu1 %v5744_v61  ;;  %v5772_v60 = vand.u32 4294901760, %v17659_v2  ;;  %v17713_v55 = vsub.f32 %v381_v50, %v17661_v53  ;;  %v20419_v52 = vand.u32 4294901760, %v17612_v62  ;;  %v378_v2 = vld [vmem:[%s19172_s1 + $0x608] sm:$0xff]  ;;  %v17743_v7 = vand.u32 4294901760, %v395_v40 }
 0x292   : > { %20418 = vst [vmem:[#allocation21_spill] sm:$0xff] %v17707_v10  ;;  %12625 = vmatprep.subr.mxu0 %v17515_v14  ;;  %12652 = vmatprep.subr.mxu1 %v5863_v19  ;;  %v17736_v14 = vsub.f32 %v397_v29, %v17671_v42  ;;  %v5891_v19 = vand.u32 4294901760, %v17684_v45  ;;  %v5779_v50 = vand.u32 4294901760, %v17689_v16  ;;  %v20422_v23 = vand.u32 4294901760, %v17561_v0  ;;  %v393_v45 = vld [vmem:[%s19172_s1 + $0x680] sm:$0xff] }
 0x293   : > { %v17725_v61 = vsub.f32 %v17612_v62, %v20419_v52  ;;  %12626 = vmatpush3.msra.mxu0 %v17517_v28  ;;  %v20420_v52 = vand.u32 4294901760, %v17547_v22  ;;  %20421 = vst [vmem:[#allocation27_spill] sm:$0xff] %v17743_v7  ;;  %v17746_v62 = vsub.f32 %v182_v31, %v17691_v4  ;;  %v5898_v29 = vand.u32 4294901760, %v17699_v25  ;;  %v377_v31 = vld [vmem:[%s19172_s1 + $0x600] sm:$0xff]  ;;  %5950 = vmatprep.mubr.f32.mxu1 %v17691_v4  ;;  %v20460_v4 = vld [vmem:[#allocation26_spill] sm:$0xff] }
 0x294   : > { %12627 = vmatprep.subr.mxu0 %v17535_v47  ;;  %v17752_v28 = vand.u32 4294901760, %v379_v11  ;;  %v17762_v16 = vsub.f32 %v181_v5, %v17707_v10  ;;  %v20423_v0 = vand.u32 4294901760, %v17575_v46  ;;  %v17769_v25 = vand.u32 4294901760, %v378_v2 }
 0x295   : > { %12653 = vmatpush3.msra.mxu1 %v20420_v52  ;;  %12628 = vmatpush3.msra.mxu0 %v17563_v34  ;;  %v17773_v22 = vsub.f32 %v396_v58, %v17694_v8  ;;  %v20424_v47 = vand.u32 4294901760, %v17589_v56  ;;  %v5786_v5 = vand.u32 4294901760, %v17725_v61  ;;  %v20425_v34 = vand.u32 4294901760, %v17675_v39 }
 0x296   : > { %12654 = vmatprep.subr.mxu1 %v20422_v23  ;;  %v17767_v23 = vand.u32 4294901760, %v394_v44  ;;  %12629 = vmatprep.subr.mxu0 %v17614_v41  ;;  %v17787_v58 = vand.u32 4294901760, %v393_v45  ;;  %v17789_v41 = vand.u32 4294901760, %v377_v31  ;;  %v17793_v56 = vsub.f32 %v395_v40, %v17743_v7 }
 0x297   : > { %12655 = vmatpush3.msra.mxu1 %v20423_v0  ;;  %v5904_v46 = vsub.f32 %v17675_v39, %v20425_v34  ;;  %v20426_v0 = vand.u32 4294901760, %v17642_v36  ;;  %12630 = vmatpush3.msra.mxu0 %v17591_v6  ;;  %v17797_v34 = vsub.f32 %v379_v11, %v17752_v28  ;;  %v20427_v61 = vand.u32 4294901760, %v17705_v3 }
 0x298   : > { %12656 = vmatprep.subr.mxu1 %v20424_v47  ;;  %12631 = vmatprep.subr.mxu0 %v17644_v18  ;;  %v17806_v40 = vsub.f32 %v378_v2, %v17769_v25  ;;  %v20428_v47 = vand.u32 4294901760, %v17679_v54  ;;  %v17813_v18 = vsub.f32 %v394_v44, %v17767_v23  ;;  %v20431_v44 = vand.u32 4294901760, %v17746_v62 }
 0x299   : > { %v5792_v49 = vsub.f32 %v17642_v36, %v20426_v0  ;;  %12657 = vmatpush3.msra.mxu1 %v5765_v43  ;;  %v5911_v0 = vsub.f32 %v17705_v3, %v20427_v61  ;;  %12632 = vmatpush3.msra.mxu0 %v17630_v32  ;;  %v5905_v61 = vand.u32 4294901760, %v5904_v46  ;;  %v20429_v43 = vand.u32 4294901760, %v17736_v14 }
 0x29a   : > { %12658 = vmatprep.subr.mxu1 %v5884_v38  ;;  %v5799_v38 = vsub.f32 %v17679_v54, %v20428_v47  ;;  %12633 = vmatprep.subr.mxu0 %v17671_v42  ;;  %v17822_v47 = vsub.f32 %v377_v31, %v17789_v41  ;;  %v5712_v11 = vsub.f32 %v17746_v62, %v20431_v44  ;;  %v20434_v31 = vand.u32 4294901760, %v17762_v16 }
 0x29b   : > { %12659 = vmatpush3.msra.mxu1 %v5772_v60  ;;  %v5793_v52 = vand.u32 4294901760, %v5792_v49  ;;  %v5918_v60 = vsub.f32 %v17736_v14, %v20429_v43  ;;  %12634 = vmatpush3.msra.mxu0 %v17661_v53  ;;  %v17829_v49 = vsub.f32 %v393_v45, %v17787_v58  ;;  %v5912_v46 = vand.u32 4294901760, %v5911_v0 }
 0x29c   : > { %12660 = vmatprep.subr.mxu1 %v5891_v19  ;;  %20430 = vst [vmem:[#allocation25_spill] sm:$0xff] %v17822_v47  ;;  %12635 = vmatprep.subr.mxu0 %v17694_v8  ;;  %v20433_v43 = vand.u32 4294901760, %v17713_v55  ;;  %v5718_v2 = vsub.f32 %v17762_v16, %v20434_v31  ;;  %v5800_v44 = vand.u32 4294901760, %v5799_v38  ;;  %v20435_v45 = vand.u32 4294901760, %v17773_v22 }
 0x29d   : > { %12661 = vmatpush3.msra.mxu1 %v5779_v50  ;;  %20432 = vst [vmem:[#allocation17_spill] sm:$0xff] %v17829_v49  ;;  %12636 = vmatpush3.msra.mxu0 %v17666_v63  ;;  %v5919_v0 = vand.u32 4294901760, %v5918_v60  ;;  %v20437_v38 = vand.u32 4294901760, %v17793_v56  ;;  %v19633_v53 = vand.u32 4294901760, %v17822_v47 }
 0x29e   : > { %12662 = vmatprep.subr.mxu1 %v5898_v29  ;;  %v5806_v50 = vsub.f32 %v17713_v55, %v20433_v43  ;;  %v5925_v19 = vsub.f32 %v17773_v22, %v20435_v45  ;;  %12637 = vmatprep.subr.mxu0 %v17743_v7  ;;  %v20436_v43 = vand.u32 4294901760, %v17716_v17  ;;  %v19634_v29 = vand.u32 4294901760, %v17829_v49 }
 0x29f   : > { %12663 = vmatpush3.msra.mxu1 %v5786_v5  ;;  %12638 = vmatpush3.msra.mxu0 %v17752_v28  ;;  %v5713_v5 = vand.u32 4294901760, %v5712_v11  ;;  %v5932_v45 = vsub.f32 %v17793_v56, %v20437_v38  ;;  %v5719_v60 = vand.u32 4294901760, %v5718_v2  ;;  %v20438_v7 = vand.u32 4294901760, %v17797_v34 }
 0x2a0   : > { %12664 = vmatprep.subr.mxu1 %v5905_v61  ;;  %v5813_v31 = vsub.f32 %v17716_v17, %v20436_v43  ;;  %12639 = vmatprep.subr.mxu0 %v17767_v23  ;;  %v5807_v61 = vand.u32 4294901760, %v5806_v50  ;;  %v20439_v11 = vand.u32 4294901760, %v17813_v18  ;;  %v20440_v2 = vand.u32 4294901760, %v17806_v40 }
 0x2a1   : > { %12665 = vmatpush3.msra.mxu1 %v5793_v52  ;;  %v5820_v43 = vsub.f32 %v17797_v34, %v20438_v7  ;;  %12640 = vmatpush3.msra.mxu0 %v17769_v25  ;;  %v5926_v52 = vand.u32 4294901760, %v5925_v19  ;;  %v5933_v7 = vand.u32 4294901760, %v5932_v45  ;;  %v5946_v19 = vsub.f32 %v17829_v49, %v19634_v29  ;;  %v20458_v29 = vld [vmem:[#allocation16_spill] sm:$0xff] }
 0x2a2   : > { %12666 = vmatprep.subr.mxu1 %v5912_v46  ;;  %v5939_v38 = vsub.f32 %v17813_v18, %v20439_v11  ;;  %12641 = vmatprep.subr.mxu0 %v17787_v58  ;;  %v5814_v46 = vand.u32 4294901760, %v5813_v31  ;;  %v5827_v50 = vsub.f32 %v17806_v40, %v20440_v2  ;;  %v20444_v11 = vld [vmem:[#allocation20_spill] sm:$0xff]  ;;  %v20447_v2 = vld [vmem:[#allocation11_spill] sm:$0xff] }
 0x2a3   : > { %12667 = vmatpush3.msra.mxu1 %v5800_v44  ;;  %12642 = vmatpush3.msra.mxu0 %v17789_v41  ;;  %v5821_v44 = vand.u32 4294901760, %v5820_v43  ;;  %v5947_v45 = vand.u32 4294901760, %v5946_v19  ;;  %v20442_v43 = vld [vmem:[#allocation29_spill] sm:$0xff] }
 0x2a4   : > { %12668 = vmatprep.subr.mxu1 %v5919_v0  ;;  %5714 = vmatprep.mubr.f32.mxu0 %v5713_v5  ;;  %v5834_v0 = vsub.f32 %v17822_v47, %v19633_v53  ;;  %v5940_v31 = vand.u32 4294901760, %v5939_v38  ;;  %v5828_v5 = vand.u32 4294901760, %v5827_v50  ;;  %v20445_v38 = vld [vmem:[#allocation10_spill] sm:$0xff]  ;;  %v20448_v50 = vld [vmem:[#allocation31_spill] sm:$0xff]  ;;  %v20450_v19 = vld [vmem:[#allocation13_spill] sm:$0xff] }
 0x2a5   : > { %12669 = vmatpush3.msra.mxu1 %v5807_v61  ;;  %5720 = vmatmul.mubr.f32.vlgmr.msra.gmra.mxu0 %v5719_v60  ;;  %v20441_v60 = vld [vmem:[#allocation23_spill] sm:$0xff]  ;;  %v20457_v53 = vld [vmem:[#allocation22_spill] sm:$0xff] }
 0x2a6   : > { %12670 = vmatprep.subr.mxu1 %v5926_v52  ;;  %12681 = vmatprep.subr.mxu0 %v17341_v33  ;;  %v5835_v61 = vand.u32 4294901760, %v5834_v0  ;;  %v20443_v52 = vld [vmem:[#allocation9_spill] sm:$0xff] }
 0x2a7   : > { %12671 = vmatpush3.msra.mxu1 %v5814_v46  ;;  %12682 = vmatpush3.msra.mxu0 %v17358_v20  ;;  %v20446_v46 = vld [vmem:[#allocation8_spill] sm:$0xff]  ;;  %v20452_v0 = vld [vmem:[#allocation5_spill] sm:$0xff] }
 0x2a8   : > { %12672 = vmatprep.subr.mxu1 %v5933_v7  ;;  %12683 = vmatprep.subr.mxu0 %v17393_v35  ;;  %v20449_v7 = vld [vmem:[#allocation24_spill] sm:$0xff] }
 0x2a9   : > { %12673 = vmatpush3.msra.mxu1 %v5821_v44  ;;  %12684 = vmatpush3.msra.mxu0 %v17399_v37  ;;  %v20451_v44 = vld [vmem:[#allocation28_spill] sm:$0xff] }
 0x2aa   : > { %12674 = vmatprep.subr.mxu1 %v5940_v31  ;;  %12685 = vmatprep.subr.mxu0 %v17413_v51  ;;  %v20453_v31 = vld [vmem:[#allocation7_spill] sm:$0xff] }
 0x2ab   : > { %12675 = vmatpush3.msra.mxu1 %v5828_v5  ;;  %12686 = vmatpush3.msra.mxu0 %v17419_v24  ;;  %v20454_v5 = vld [vmem:[#allocation18_spill] sm:$0xff] }
 0x2ac   : > { %12676 = vmatprep.subr.mxu1 %v5947_v45  ;;  %12687 = vmatprep.subr.mxu0 %v17429_v1  ;;  %v20455_v45 = vld [vmem:[#allocation30_spill] sm:$0xff] }
 0x2ad   : > { %12677 = vmatpush3.msra.mxu1 %v5835_v61  ;;  %12688 = vmatpush3.msra.mxu0 %v17435_v15  ;;  %v20456_v61 = vld [vmem:[#allocation32_spill] sm:$0xff] }
 0x2ae   : > { %5952 = vmatmul.mubr.f32.vlgmr.msra.gmra.mxu1 %v17707_v10  ;;  %12689 = vmatprep.subr.mxu0 %v17456_v57  ;;  %v20459_v10 = vld [vmem:[#allocation6_spill] sm:$0xff] }
 0x2af   : > { %12716 = vmatprep.subr.mxu1 %v17315_v9  ;;  %12690 = vmatpush3.msra.mxu0 %v17462_v21 }
 0x2b0   : > { %12717 = vmatpush3.msra.mxu1 %v17323_v30  ;;  %12691 = vmatprep.subr.mxu0 %v17478_v12 }
 0x2b1   : > { %12718 = vmatprep.subr.mxu1 %v17346_v48  ;;  %12692 = vmatpush3.msra.mxu0 %v17500_v13 }
 0x2b2   : > { %12719 = vmatpush3.msra.mxu1 %v17360_v27  ;;  %12693 = vmatprep.subr.mxu0 %v17553_v59 }
 0x2b3   : > { %12720 = vmatprep.subr.mxu1 %v17368_v26  ;;  %12694 = vmatpush3.msra.mxu0 %v20441_v60 }
 0x2b4   : > { %12721 = vmatpush3.msra.mxu1 %v20442_v43  ;;  %12695 = vmatprep.subr.mxu0 %v20443_v52 }
 0x2b5   : > { %12722 = vmatprep.subr.mxu1 %v20444_v11  ;;  %12696 = vmatpush3.msra.mxu0 %v20445_v38 }
 0x2b6   : > { %12723 = vmatpush3.msra.mxu1 %v20446_v46  ;;  %12697 = vmatprep.subr.mxu0 %v20447_v2 }
 0x2b7   : > { %12724 = vmatprep.subr.mxu1 %v20448_v50  ;;  %12698 = vmatpush3.msra.mxu0 %v20449_v7 }
 0x2b8   : > { %12725 = vmatpush3.msra.mxu1 %v20450_v19  ;;  %12699 = vmatprep.subr.mxu0 %v17675_v39 }
 0x2b9   : > { %12726 = vmatprep.subr.mxu1 %v20451_v44  ;;  %12700 = vmatpush3.msra.mxu0 %v17642_v36 }
 0x2ba   : > { %12727 = vmatpush3.msra.mxu1 %v20452_v0  ;;  %12701 = vmatprep.subr.mxu0 %v17705_v3 }
 0x2bb   : > { %12728 = vmatprep.subr.mxu1 %v20453_v31  ;;  %12702 = vmatpush3.msra.mxu0 %v17679_v54 }
 0x2bc   : > { %12729 = vmatpush3.msra.mxu1 %v20454_v5  ;;  %12703 = vmatprep.subr.mxu0 %v17736_v14 }
 0x2bd   : > { %12730 = vmatprep.subr.mxu1 %v20455_v45  ;;  %12704 = vmatpush3.msra.mxu0 %v17713_v55 }
 0x2be   : > { %12731 = vmatpush3.msra.mxu1 %v20456_v61  ;;  %12705 = vmatprep.subr.mxu0 %v17773_v22 }
 0x2bf   : > { %12732 = vmatprep.subr.mxu1 %v20457_v53  ;;  %12706 = vmatpush3.msra.mxu0 %v17716_v17 }
 0x2c0   : > { %12733 = vmatpush3.msra.mxu1 %v20458_v29  ;;  %12707 = vmatprep.subr.mxu0 %v17793_v56 }
 0x2c1   : > { %12734 = vmatprep.subr.mxu1 %v20459_v10  ;;  %12708 = vmatpush3.msra.mxu0 %v17797_v34  ;;  %v20461_v10 = vld [vmem:[#allocation19_spill] sm:$0xff] }
 0x2c2   : > { %12735 = vmatpush3.msra.mxu1 %v17591_v6  ;;  %12709 = vmatprep.subr.mxu0 %v17813_v18 }
 0x2c3   : > { %12736 = vmatprep.subr.mxu1 %v20460_v4  ;;  %12710 = vmatpush3.msra.mxu0 %v17806_v40  ;;  %v20462_v4 = vand.u32 4294901760, %v17341_v33  ;;  %v20467_v33 = vand.u32 4294901760, %v17413_v51  ;;  %v20472_v51 = vand.u32 4294901760, %v17762_v16 }
 0x2c4   : > { %12737 = vmatpush3.msra.mxu1 %v17630_v32  ;;  %12711 = vmatprep.subr.mxu0 %v17829_v49  ;;  %v20463_v32 = vand.u32 4294901760, %v17358_v20  ;;  %v20464_v49 = vld [vmem:[#allocation27_spill] sm:$0xff]  ;;  %v20468_v20 = vand.u32 4294901760, %v17419_v24  ;;  %v20474_v24 = vand.u32 4294901760, %v17462_v21 }
 0x2c5   : > { %12738 = vmatprep.subr.mxu1 %v17671_v42  ;;  %12712 = vmatpush3.msra.mxu0 %v17822_v47  ;;  %v20465_v47 = vand.u32 4294901760, %v17393_v35  ;;  %v20469_v35 = vand.u32 4294901760, %v17429_v1  ;;  %v20475_v1 = vand.u32 4294901760, %v17478_v12 }
 0x2c6   : > { %6087 = vmatprep.mubr.f32.mxu0 %v17746_v62  ;;  %12739 = vmatpush3.msra.mxu1 %v20461_v10  ;;  %v20466_v10 = vand.u32 4294901760, %v17399_v37  ;;  %v20470_v37 = vand.u32 4294901760, %v17746_v62  ;;  %v20482_v62 = vand.u32 4294901760, %v20449_v7 }
 0x2c7   : > { %6090 = vmatmul.mubr.f32.vlgmr.msra.gmra.mxu0 %v17762_v16  ;;  %12740 = vmatprep.subr.mxu1 %v17694_v8  ;;  %v20483_v16 = vand.u32 4294901760, %v17675_v39  ;;  %v422_v39 = vld [vmem:[%s19172_s1 + $0x768] sm:$0xff] }
 0x2c8   : > { %12751 = vmatprep.subr.mxu0 %v20462_v4  ;;  %12741 = vmatpush3.msra.mxu1 %v17666_v63  ;;  %v20471_v4 = vand.u32 4294901760, %v17435_v15  ;;  %v20476_v15 = vand.u32 4294901760, %v17500_v13  ;;  %v439_v13 = vld [vmem:[%s19172_s1 + $0x7f0] sm:$0xff] }
 0x2c9   : > { %12752 = vmatpush3.msra.mxu0 %v20463_v32  ;;  %12742 = vmatprep.subr.mxu1 %v20464_v49  ;;  %v20473_v32 = vand.u32 4294901760, %v17456_v57  ;;  %v440_v57 = vld [vmem:[%s19172_s1 + $0x7f8] sm:$0xff] }
 0x2ca   : > { %12753 = vmatprep.subr.mxu0 %v20465_v47  ;;  %12743 = vmatpush3.msra.mxu1 %v17752_v28  ;;  %v17989_v21 = vand.u32 4294901760, %v440_v57  ;;  %v438_v47 = vld [vmem:[%s19172_s1 + $0x7e8] sm:$0xff] }
 0x2cb   : > { %12754 = vmatpush3.msra.mxu0 %v20466_v10  ;;  %12744 = vmatprep.subr.mxu1 %v17767_v23  ;;  %v423_v10 = vld [vmem:[%s19172_s1 + $0x770] sm:$0xff]  ;;  %v18042_v7 = vand.u32 4294901760, %v438_v47 }
 0x2cc   : > { %12755 = vmatprep.subr.mxu0 %v20467_v33  ;;  %12745 = vmatpush3.msra.mxu1 %v17769_v25 }
 0x2cd   : > { %12756 = vmatpush3.msra.mxu0 %v20468_v20  ;;  %12746 = vmatprep.subr.mxu1 %v17787_v58  ;;  %v20492_v20 = vand.u32 4294901760, %v17773_v22  ;;  %v419_v22 = vld [vmem:[%s19172_s1 + $0x750] sm:$0xff] }
 0x2ce   : > { %12757 = vmatprep.subr.mxu0 %v20469_v35  ;;  %12747 = vmatpush3.msra.mxu1 %v17789_v41 }
 0x2cf   : > { %6194 = vmatprep.mubr.f32.mxu1 %v20470_v37  ;;  %12758 = vmatpush3.msra.mxu0 %v20471_v4  ;;  %v20494_v37 = vand.u32 4294901760, %v17716_v17 }
 0x2d0   : > { %6198 = vmatmul.mubr.f32.vlgmr.msra.gmra.mxu1 %v20472_v51  ;;  %12759 = vmatprep.subr.mxu0 %v20473_v32  ;;  %v20496_v51 = vand.u32 4294901760, %v17793_v56  ;;  %v20497_v32 = vld [vmem:[#allocation6_spill] sm:$0xff] }
 0x2d1   : > { %12786 = vmatprep.subr.mxu1 %v17315_v9  ;;  %12760 = vmatpush3.msra.mxu0 %v20474_v24  ;;  %v20477_v9 = vand.u32 4294901760, %v17553_v59  ;;  %v20480_v59 = vand.u32 4294901760, %v20445_v38  ;;  %v20485_v38 = vand.u32 4294901760, %v17705_v3  ;;  %v436_v3 = vld [vmem:[%s19172_s1 + $0x7d8] sm:$0xff] }
 0x2d2   : > { %12787 = vmatpush3.msra.mxu1 %v17323_v30  ;;  %12761 = vmatprep.subr.mxu0 %v20475_v1  ;;  %v20478_v30 = vand.u32 4294901760, %v20441_v60  ;;  %v18015_v60 = vsub.f32 %v440_v57, %v17989_v21 }
 0x2d3   : > { %12788 = vmatprep.subr.mxu1 %v17346_v48  ;;  %12762 = vmatpush3.msra.mxu0 %v20476_v15  ;;  %v424_v48 = vld [vmem:[%s19172_s1 + $0x778] sm:$0xff]  ;;  %v20499_v15 = vand.u32 4294901760, %v17797_v34 }
 0x2d4   : > { %12789 = vmatpush3.msra.mxu1 %v17360_v27  ;;  %12763 = vmatprep.subr.mxu0 %v20477_v9  ;;  %v20479_v27 = vand.u32 4294901760, %v20443_v52  ;;  %v17997_v12 = vand.u32 4294901760, %v424_v48  ;;  %v18020_v52 = vand.u32 4294901760, %v439_v13  ;;  %v20500_v9 = vand.u32 4294901760, %v17813_v18  ;;  %v418_v18 = vld [vmem:[%s19172_s1 + $0x748] sm:$0xff] }
 0x2d5   : > { %12790 = vmatprep.subr.mxu1 %v17368_v26  ;;  %12764 = vmatpush3.msra.mxu0 %v20478_v30  ;;  %v20481_v26 = vand.u32 4294901760, %v20447_v2  ;;  %v421_v2 = vld [vmem:[%s19172_s1 + $0x760] sm:$0xff]  ;;  %v20501_v30 = vld [vmem:[#allocation26_spill] sm:$0xff] }
 0x2d6   : > { %12791 = vmatpush3.msra.mxu1 %v20442_v43  ;;  %12765 = vmatprep.subr.mxu0 %v20479_v27  ;;  %v20484_v43 = vand.u32 4294901760, %v17642_v36  ;;  %v18032_v36 = vsub.f32 %v424_v48, %v17997_v12  ;;  %v18061_v33 = vand.u32 4294901760, %v421_v2  ;;  %v18120_v27 = vand.u32 4294901760, %v419_v22 }
 0x2d7   : > { %12792 = vmatprep.subr.mxu1 %v20444_v11  ;;  %12766 = vmatpush3.msra.mxu0 %v20480_v59  ;;  %v437_v11 = vld [vmem:[%s19172_s1 + $0x7e0] sm:$0xff] }
 0x2d8   : > { %12793 = vmatpush3.msra.mxu1 %v20446_v46  ;;  %12767 = vmatprep.subr.mxu0 %v20481_v26  ;;  %v18034_v46 = vand.u32 4294901760, %v423_v10  ;;  %20491 = vst [vmem:[#allocation23_spill] sm:$0xff] %v18061_v33  ;;  %v18109_v56 = vsub.f32 %v421_v2, %v18061_v33  ;;  %20502 = vst [vmem:[#allocation10_spill] sm:$0xff] %v18120_v27  ;;  %v20503_v26 = vand.u32 4294901760, %v17806_v40  ;;  %v433_v40 = vld [vmem:[%s19172_s1 + $0x7c0] sm:$0xff] }
 0x2d9   : > { %12794 = vmatprep.subr.mxu1 %v20448_v50  ;;  %12768 = vmatpush3.msra.mxu0 %v20482_v62  ;;  %v20486_v50 = vand.u32 4294901760, %v17679_v54  ;;  %v19652_v54 = vand.u32 4294901760, %v18015_v60 }
 0x2da   : > { %12795 = vmatpush3.msra.mxu1 %v20450_v19  ;;  %12769 = vmatprep.subr.mxu0 %v20483_v16  ;;  %v20487_v19 = vand.u32 4294901760, %v17736_v14  ;;  %v435_v14 = vld [vmem:[%s19172_s1 + $0x7d0] sm:$0xff]  ;;  %v18073_v35 = vsub.f32 %v423_v10, %v18034_v46  ;;  %v20505_v16 = vld [vmem:[#allocation17_spill] sm:$0xff] }
 0x2db   : > { %12796 = vmatprep.subr.mxu1 %v20451_v44  ;;  %12770 = vmatpush3.msra.mxu0 %v20484_v43  ;;  %v18050_v44 = vand.u32 4294901760, %v422_v39  ;;  %v18098_v17 = vsub.f32 %v18015_v60, %v19652_v54  ;;  %v413_v54 = vld [vmem:[%s19172_s1 + $0x720] sm:$0xff] }
 0x2dc   : > { %12797 = vmatpush3.msra.mxu1 %v20452_v0  ;;  %12771 = vmatprep.subr.mxu0 %v20485_v38  ;;  %v18052_v0 = vand.u32 4294901760, %v437_v11  ;;  %v19645_v34 = vand.u32 4294901760, %v18073_v35  ;;  %v417_v38 = vld [vmem:[%s19172_s1 + $0x740] sm:$0xff] }
 0x2dd   : > { %12798 = vmatprep.subr.mxu1 %v20453_v31  ;;  %12772 = vmatpush3.msra.mxu0 %v20486_v50  ;;  %20488 = vst [vmem:[#allocation12_spill] sm:$0xff] %v18050_v44  ;;  %v420_v31 = vld [vmem:[%s19172_s1 + $0x758] sm:$0xff]  ;;  %v18093_v24 = vsub.f32 %v422_v39, %v18050_v44  ;;  %v6704_v43 = vand.u32 4294901760, %v18098_v17  ;;  %v20507_v50 = vld [vmem:[#allocation25_spill] sm:$0xff] }
 0x2de   : > { %12799 = vmatpush3.msra.mxu1 %v20454_v5  ;;  %12773 = vmatprep.subr.mxu0 %v20487_v19  ;;  %20489 = vst [vmem:[#allocation14_spill] sm:$0xff] %v18052_v0  ;;  %v20490_v5 = vand.u32 4294901760, %v17713_v55  ;;  %v18075_v55 = vand.u32 4294901760, %v436_v3  ;;  %v18081_v4 = vand.u32 4294901760, %v420_v31  ;;  %v18103_v1 = vsub.f32 %v437_v11, %v18052_v0 }
 0x2df   : > { %12800 = vmatprep.subr.mxu1 %v20455_v45  ;;  %v18067_v45 = vsub.f32 %v439_v13, %v18020_v52  ;;  %v20504_v13 = vld [vmem:[#allocation15_spill] sm:$0xff]  ;;  %v19643_v39 = vand.u32 4294901760, %v18093_v24 }
 0x2e0   : > { %12774 = vmatpush3.msra.mxu0 %v20490_v5  ;;  %12801 = vmatpush3.msra.mxu1 %v20456_v61  ;;  %20493 = vst [vmem:[#allocation29_spill] sm:$0xff] %v18075_v55  ;;  %v19651_v61 = vand.u32 4294901760, %v18032_v36  ;;  %20495 = vst [vmem:[#allocation9_spill] sm:$0xff] %v18081_v4  ;;  %v18130_v59 = vsub.f32 %v436_v3, %v18075_v55  ;;  %v18136_v62 = vsub.f32 %v420_v31, %v18081_v4 }
 0x2e1   : > { %12775 = vmatprep.subr.mxu0 %v20492_v20  ;;  %12802 = vmatprep.subr.mxu1 %v20457_v53  ;;  %v18087_v53 = vsub.f32 %v438_v47, %v18042_v7  ;;  %v19648_v57 = vand.u32 4294901760, %v18067_v45  ;;  %v20506_v47 = vand.u32 4294901760, %v20505_v16  ;;  %v19644_v11 = vand.u32 4294901760, %v18103_v1  ;;  %v416_v16 = vld [vmem:[%s19172_s1 + $0x738] sm:$0xff] }
 0x2e2   : > { %12776 = vmatpush3.msra.mxu0 %v20494_v37  ;;  %12803 = vmatpush3.msra.mxu1 %v20458_v29  ;;  %v18100_v29 = vand.u32 4294901760, %v435_v14  ;;  %v18118_v48 = vsub.f32 %v18032_v36, %v19651_v61  ;;  %v20508_v3 = vand.u32 4294901760, %v20507_v50  ;;  %v18164_v5 = vand.u32 4294901760, %v418_v18  ;;  %v20512_v37 = vld [vmem:[#allocation19_spill] sm:$0xff] }
 0x2e3   : > { %12777 = vmatprep.subr.mxu0 %v20496_v51  ;;  %12804 = vmatprep.subr.mxu1 %v20497_v32  ;;  %v19642_v10 = vand.u32 4294901760, %v18087_v53  ;;  %v18160_v19 = vsub.f32 %v18067_v45, %v19648_v57  ;;  %v19646_v20 = vand.u32 4294901760, %v18109_v56  ;;  %v20513_v51 = vld [vmem:[#allocation21_spill] sm:$0xff]  ;;  %v18207_v50 = vsub.f32 %v18103_v1, %v19644_v11  ;;  %v415_v11 = vld [vmem:[%s19172_s1 + $0x730] sm:$0xff] }
 0x2e4   : > { %20498 = vst [vmem:[#allocation20_spill] sm:$0xff] %v18100_v29  ;;  %12778 = vmatpush3.msra.mxu0 %v20499_v15  ;;  %12805 = vmatpush3.msra.mxu1 %v17591_v6  ;;  %v434_v6 = vld [vmem:[%s19172_s1 + $0x7c8] sm:$0xff]  ;;  %v18152_v2 = vsub.f32 %v435_v14, %v18100_v29  ;;  %20511 = vst [vmem:[#allocation11_spill] sm:$0xff] %v18164_v5  ;;  %v432_v14 = vld [vmem:[%s19172_s1 + $0x7b8] sm:$0xff]  ;;  %v18174_v15 = vsub.f32 %v419_v22, %v18120_v27  ;;  %v18191_v22 = vand.u32 4294901760, %v417_v38 }
 0x2e5   : > { %12779 = vmatprep.subr.mxu0 %v20500_v9  ;;  %12806 = vmatprep.subr.mxu1 %v20501_v30  ;;  %v18162_v31 = vand.u32 4294901760, %v434_v6  ;;  %v18179_v9 = vsub.f32 %v18073_v35, %v19645_v34  ;;  %v19647_v30 = vand.u32 4294901760, %v18130_v59 }
 0x2e6   : > { %12780 = vmatpush3.msra.mxu0 %v20503_v26  ;;  %12807 = vmatpush3.msra.mxu1 %v20504_v13  ;;  %v18187_v26 = vsub.f32 %v18087_v53, %v19642_v10  ;;  %v18189_v13 = vand.u32 4294901760, %v433_v40  ;;  %20515 = vst [vmem:[#allocation24_spill] sm:$0xff] %v18191_v22  ;;  %v18216_v10 = vsub.f32 %v418_v18, %v18164_v5 }
 0x2e7   : > { %12781 = vmatprep.subr.mxu0 %v20506_v47  ;;  %12808 = vmatprep.subr.mxu1 %v17671_v42  ;;  %v20509_v42 = vld [vmem:[#allocation33_spill] sm:$0xff]  ;;  %20510 = vst [vmem:[#allocation8_spill] sm:$0xff] %v18162_v31  ;;  %v19649_v47 = vand.u32 4294901760, %v18136_v62  ;;  %v18227_v34 = vsub.f32 %v434_v6, %v18162_v31  ;;  %v18235_v18 = vsub.f32 %v18130_v59, %v19647_v30  ;;  %v431_v30 = vld [vmem:[%s19172_s1 + $0x7b0] sm:$0xff] }
 0x2e8   : > { %12782 = vmatpush3.msra.mxu0 %v20508_v3  ;;  %6364 = vmatprep.mubr.f32.mxu0 %v20509_v42  ;;  %20514 = vst [vmem:[#allocation31_spill] sm:$0xff] %v18189_v13  ;;  %v18209_v3 = vand.u32 4294901760, %v432_v14  ;;  %20517 = vst [vmem:[#allocation28_spill] sm:$0xff] %v18216_v10  ;;  %v6718_v6 = vand.u32 4294901760, %v18187_v26  ;;  %v18255_v57 = vsub.f32 %v433_v40, %v18189_v13  ;;  %v18265_v26 = vand.u32 4294901760, %v415_v11 }
 0x2e9   : > { %12809 = vmatpush3.msra.mxu1 %v20512_v37  ;;  %6366 = vmatmul.mubr.f32.vlgmr.msra.gmra.mxu0 %v20513_v51  ;;  %v19650_v37 = vand.u32 4294901760, %v18152_v2  ;;  %v20527_v61 = vand.u32 4294901760, %v18227_v34 }
 0x2ea   : > { %12810 = vmatprep.subr.mxu1 %v17694_v8  ;;  %12821 = vmatprep.subr.mxu0 %v17989_v21  ;;  %v18202_v8 = vsub.f32 %v18093_v24, %v19643_v39  ;;  %20516 = vst [vmem:[#allocation13_spill] sm:$0xff] %v18209_v3  ;;  %v18221_v39 = vsub.f32 %v18109_v56, %v19646_v20  ;;  %v19653_v20 = vand.u32 4294901760, %v18174_v15  ;;  %20520 = vst [vmem:[#allocation18_spill] sm:$0xff] %v18255_v57 }
 0x2eb   : > { %12811 = vmatpush3.msra.mxu1 %v17666_v63  ;;  %12822 = vmatpush3.msra.mxu0 %v17997_v12  ;;  %v6711_v63 = vand.u32 4294901760, %v18160_v19  ;;  %v18237_v19 = vand.u32 4294901760, %v416_v16  ;;  %v18271_v40 = vsub.f32 %v432_v14, %v18209_v3  ;;  %v18328_v17 = vsub.f32 %v18227_v34, %v20527_v61 }
 0x2ec   : > { %12812 = vmatprep.subr.mxu1 %v20464_v49  ;;  %12823 = vmatprep.subr.mxu0 %v18020_v52  ;;  %v6599_v49 = vand.u32 4294901760, %v18179_v9  ;;  %v18249_v9 = vsub.f32 %v18136_v62, %v19649_v47  ;;  %v414_v47 = vld [vmem:[%s19172_s1 + $0x728] sm:$0xff] }
 0x2ed   : > { %12813 = vmatpush3.msra.mxu1 %v17752_v28  ;;  %12824 = vmatpush3.msra.mxu0 %v18034_v46  ;;  %20518 = vst [vmem:[#allocation5_spill] sm:$0xff] %v18237_v19  ;;  %v18244_v28 = vsub.f32 %v417_v38, %v18191_v22  ;;  %v18263_v38 = vsub.f32 %v18152_v2, %v19650_v37  ;;  %20521 = vst [vmem:[#allocation30_spill] sm:$0xff] %v18271_v40  ;;  %v430_v37 = vld [vmem:[%s19172_s1 + $0x7a8] sm:$0xff] }
 0x2ee   : > { %12814 = vmatprep.subr.mxu1 %v17767_v23  ;;  %12825 = vmatprep.subr.mxu0 %v18042_v7  ;;  %v6606_v23 = vand.u32 4294901760, %v18202_v8  ;;  %v18286_v14 = vsub.f32 %v416_v16, %v18237_v19  ;;  %v18293_v8 = vsub.f32 %v18174_v15, %v19653_v20  ;;  %v18304_v16 = vand.u32 4294901760, %v414_v47  ;;  %v429_v20 = vld [vmem:[%s19172_s1 + $0x7a0] sm:$0xff] }
 0x2ef   : > { %20519 = vst [vmem:[#allocation7_spill] sm:$0xff] %v18244_v28  ;;  %12815 = vmatpush3.msra.mxu1 %v17769_v25  ;;  %12826 = vmatpush3.msra.mxu0 %v18050_v44  ;;  %v6725_v25 = vand.u32 4294901760, %v18207_v50  ;;  %v18288_v50 = vand.u32 4294901760, %v431_v30  ;;  %v18318_v32 = vand.u32 4294901760, %v430_v37 }
 0x2f0   : > { %12816 = vmatprep.subr.mxu1 %v17787_v58  ;;  %12827 = vmatprep.subr.mxu0 %v18052_v0  ;;  %20522 = vst [vmem:[#allocation32_spill] sm:$0xff] %v18286_v14  ;;  %20524 = vst [vmem:[#allocation16_spill] sm:$0xff] %v18304_v16  ;;  %v184_v0 = vld [vmem:[%s13676_s9 + $0x78] sm:$0xff]  ;;  %v20526_v58 = vand.u32 4294901760, %v18118_v48  ;;  %v183_v48 = vld [vmem:[%s13676_s9 + $0x70] sm:$0xff]  ;;  %v6627_v61 = vand.u32 4294901760, %v18293_v8  ;;  %v18353_v44 = vsub.f32 %v414_v47, %v18304_v16 }
 0x2f1   : > { %12817 = vmatpush3.msra.mxu1 %v17789_v41  ;;  %6468 = vmatprep.mubr.f32.mxu1 %v20509_v42  ;;  %20523 = vst [vmem:[#allocation22_spill] sm:$0xff] %v18288_v50  ;;  %v412_v41 = vld [vmem:[%s19172_s1 + $0x718] sm:$0xff]  ;;  %v18316_v42 = vsub.f32 %v415_v11, %v18265_v26  ;;  %20525 = vst [vmem:[#allocation27_spill] sm:$0xff] %v18318_v32  ;;  %v20533_v47 = vand.u32 4294901760, %v18271_v40 }
 0x2f2   : > { %12828 = vmatpush3.msra.mxu0 %v18061_v33  ;;  %6470 = vmatmul.mubr.f32.vlgmr.msra.gmra.mxu1 %v20513_v51  ;;  %v18335_v51 = vand.u32 4294901760, %v413_v54  ;;  %v428_v33 = vld [vmem:[%s19172_s1 + $0x798] sm:$0xff] }
 0x2f3   : > { %12829 = vmatprep.subr.mxu0 %v18075_v55  ;;  %12856 = vmatprep.subr.mxu1 %v6704_v43  ;;  %v20528_v43 = vand.u32 4294901760, %v18216_v10  ;;  %v18365_v55 = vand.u32 4294901760, %v184_v0 }
 0x2f4   : > { %12830 = vmatpush3.msra.mxu0 %v18081_v4  ;;  %12857 = vmatpush3.msra.mxu1 %v20526_v58  ;;  %20529 = vst [vmem:[#allocation6_spill] sm:$0xff] %v18335_v51  ;;  %v18340_v4 = vand.u32 4294901760, %v412_v41  ;;  %v18345_v58 = vand.u32 4294901760, %v429_v20 }
 0x2f5   : > { %v18333_v11 = vsub.f32 %v18216_v10, %v20528_v43  ;;  %12831 = vmatprep.subr.mxu0 %v18100_v29  ;;  %12858 = vmatprep.subr.mxu1 %v6711_v63  ;;  %v18349_v43 = vsub.f32 %v431_v30, %v18288_v50  ;;  %v20530_v10 = vand.u32 4294901760, %v18255_v57  ;;  %v20531_v63 = vand.u32 4294901760, %v18244_v28  ;;  %20532 = vst [vmem:[#allocation26_spill] sm:$0xff] %v18365_v55 }
 0x2f6   : > { %12832 = vmatpush3.msra.mxu0 %v18120_v27  ;;  %12859 = vmatpush3.msra.mxu1 %v6599_v49  ;;  %v18368_v30 = vand.u32 4294901760, %v428_v33  ;;  %v18373_v49 = vsub.f32 %v18271_v40, %v20533_v47  ;;  %v18379_v27 = vsub.f32 %v430_v37, %v18318_v32  ;;  %v18390_v47 = vsub.f32 %v412_v41, %v18340_v4  ;;  %v411_v37 = vld [vmem:[%s19172_s1 + $0x710] sm:$0xff]  ;;  %v426_v41 = vld [vmem:[%s19172_s1 + $0x788] sm:$0xff] }
 0x2f7   : > { %v18358_v29 = vsub.f32 %v18255_v57, %v20530_v10  ;;  %v18363_v8 = vsub.f32 %v18244_v28, %v20531_v63  ;;  %12833 = vmatprep.subr.mxu0 %v18162_v31  ;;  %12860 = vmatprep.subr.mxu1 %v6718_v6  ;;  %v427_v10 = vld [vmem:[%s19172_s1 + $0x790] sm:$0xff]  ;;  %v18381_v63 = vand.u32 4294901760, %v183_v48  ;;  %v6746_v6 = vand.u32 4294901760, %v18328_v17 }
 0x2f8   : > { %12834 = vmatpush3.msra.mxu0 %v18164_v5  ;;  %12861 = vmatpush3.msra.mxu1 %v6606_v23  ;;  %v6634_v31 = vand.u32 4294901760, %v18333_v11  ;;  %v18387_v28 = vsub.f32 %v413_v54, %v18335_v51  ;;  %v20535_v5 = vand.u32 4294901760, %v18286_v14  ;;  %v410_v11 = vld [vmem:[%s19172_s1 + $0x708] sm:$0xff]  ;;  %v18417_v17 = vand.u32 4294901760, %v427_v10 }
 0x2f9   : > { %20534 = vst [vmem:[#allocation15_spill] sm:$0xff] %v18381_v63  ;;  %12835 = vmatprep.subr.mxu0 %v18189_v13  ;;  %12862 = vmatprep.subr.mxu1 %v6725_v25  ;;  %v18410_v13 = vsub.f32 %v429_v20, %v18345_v58  ;;  %v6753_v25 = vand.u32 4294901760, %v18358_v29  ;;  %v6641_v54 = vand.u32 4294901760, %v18363_v8  ;;  %v20538_v40 = vand.u32 4294901760, %v18235_v18  ;;  %v425_v29 = vld [vmem:[%s19172_s1 + $0x780] sm:$0xff] }
 0x2fa   : > { %v18399_v23 = vsub.f32 %v18286_v14, %v20535_v5  ;;  %12836 = vmatpush3.msra.mxu0 %v18191_v22  ;;  %v20536_v5 = vand.u32 4294901760, %v18221_v39  ;;  %20537 = vst [vmem:[#allocation17_spill] sm:$0xff] %v18417_v17  ;;  %v18420_v14 = vsub.f32 %v184_v0, %v18365_v55  ;;  %v6760_v20 = vand.u32 4294901760, %v18373_v49  ;;  %v409_v0 = vld [vmem:[%s19172_s1 + $0x700] sm:$0xff]  ;;  %6812 = vmatprep.mubr.f32.mxu1 %v18365_v55  ;;  %v20576_v55 = vld [vmem:[#allocation27_spill] sm:$0xff] }
 0x2fb   : > { %12837 = vmatprep.subr.mxu0 %v18209_v3  ;;  %v18426_v22 = vand.u32 4294901760, %v411_v37  ;;  %v18436_v8 = vsub.f32 %v183_v48, %v18381_v63  ;;  %v20539_v18 = vand.u32 4294901760, %v18249_v9  ;;  %v18443_v49 = vand.u32 4294901760, %v410_v11 }
 0x2fc   : > { %12863 = vmatpush3.msra.mxu1 %v20536_v5  ;;  %12838 = vmatpush3.msra.mxu0 %v18237_v19  ;;  %v18447_v39 = vsub.f32 %v428_v33, %v18368_v30  ;;  %v20540_v3 = vand.u32 4294901760, %v18263_v38  ;;  %v6648_v48 = vand.u32 4294901760, %v18399_v23  ;;  %v20541_v19 = vand.u32 4294901760, %v18349_v43 }
 0x2fd   : > { %12864 = vmatprep.subr.mxu1 %v20538_v40  ;;  %v18441_v40 = vand.u32 4294901760, %v426_v41  ;;  %12839 = vmatprep.subr.mxu0 %v18288_v50  ;;  %v18461_v33 = vand.u32 4294901760, %v425_v29  ;;  %v18463_v50 = vand.u32 4294901760, %v409_v0  ;;  %v18467_v38 = vsub.f32 %v427_v10, %v18417_v17 }
 0x2fe   : > { %12865 = vmatpush3.msra.mxu1 %v20539_v18  ;;  %v6766_v9 = vsub.f32 %v18349_v43, %v20541_v19  ;;  %v20542_v18 = vand.u32 4294901760, %v18316_v42  ;;  %12840 = vmatpush3.msra.mxu0 %v18265_v26  ;;  %v18471_v19 = vsub.f32 %v411_v37, %v18426_v22  ;;  %v20543_v23 = vand.u32 4294901760, %v18379_v27 }
 0x2ff   : > { %12866 = vmatprep.subr.mxu1 %v20540_v3  ;;  %12841 = vmatprep.subr.mxu0 %v18318_v32  ;;  %v18480_v10 = vsub.f32 %v410_v11, %v18443_v49  ;;  %v20544_v3 = vand.u32 4294901760, %v18353_v44  ;;  %v18487_v32 = vsub.f32 %v426_v41, %v18441_v40  ;;  %v20547_v41 = vand.u32 4294901760, %v18420_v14 }
 0x300   : > { %v6654_v57 = vsub.f32 %v18316_v42, %v20542_v18  ;;  %12867 = vmatpush3.msra.mxu1 %v6627_v61  ;;  %v6773_v18 = vsub.f32 %v18379_v27, %v20543_v23  ;;  %12842 = vmatpush3.msra.mxu0 %v18304_v16  ;;  %v6767_v23 = vand.u32 4294901760, %v6766_v9  ;;  %v20545_v61 = vand.u32 4294901760, %v18410_v13 }
 0x301   : > { %12868 = vmatprep.subr.mxu1 %v6746_v6  ;;  %v6661_v6 = vsub.f32 %v18353_v44, %v20544_v3  ;;  %12843 = vmatprep.subr.mxu0 %v18345_v58  ;;  %v18496_v3 = vsub.f32 %v409_v0, %v18463_v50  ;;  %v6574_v37 = vsub.f32 %v18420_v14, %v20547_v41  ;;  %v20550_v0 = vand.u32 4294901760, %v18436_v8 }
 0x302   : > { %12869 = vmatpush3.msra.mxu1 %v6634_v31  ;;  %v6655_v5 = vand.u32 4294901760, %v6654_v57  ;;  %v6780_v31 = vsub.f32 %v18410_v13, %v20545_v61  ;;  %12844 = vmatpush3.msra.mxu0 %v18335_v51  ;;  %v18503_v57 = vsub.f32 %v425_v29, %v18461_v33  ;;  %v6774_v9 = vand.u32 4294901760, %v6773_v18 }
 0x303   : > { %12870 = vmatprep.subr.mxu1 %v6753_v25  ;;  %20546 = vst [vmem:[#allocation25_spill] sm:$0xff] %v18496_v3  ;;  %12845 = vmatprep.subr.mxu0 %v18368_v30  ;;  %v20549_v61 = vand.u32 4294901760, %v18387_v28  ;;  %v6580_v11 = vsub.f32 %v18436_v8, %v20550_v0  ;;  %v6662_v41 = vand.u32 4294901760, %v6661_v6  ;;  %v20551_v29 = vand.u32 4294901760, %v18447_v39 }
 0x304   : > { %12871 = vmatpush3.msra.mxu1 %v6641_v54  ;;  %20548 = vst [vmem:[#allocation33_spill] sm:$0xff] %v18503_v57  ;;  %12846 = vmatpush3.msra.mxu0 %v18340_v4  ;;  %v6781_v18 = vand.u32 4294901760, %v6780_v31  ;;  %v20553_v6 = vand.u32 4294901760, %v18467_v38  ;;  %v19698_v51 = vand.u32 4294901760, %v18496_v3 }
 0x305   : > { %12872 = vmatprep.subr.mxu1 %v6760_v20  ;;  %v6668_v54 = vsub.f32 %v18387_v28, %v20549_v61  ;;  %v6787_v25 = vsub.f32 %v18447_v39, %v20551_v29  ;;  %12847 = vmatprep.subr.mxu0 %v18417_v17  ;;  %v20552_v61 = vand.u32 4294901760, %v18390_v47  ;;  %v19699_v20 = vand.u32 4294901760, %v18503_v57 }
 0x306   : > { %12873 = vmatpush3.msra.mxu1 %v6648_v48  ;;  %12848 = vmatpush3.msra.mxu0 %v18426_v22  ;;  %v6575_v48 = vand.u32 4294901760, %v6574_v37  ;;  %v6794_v29 = vsub.f32 %v18467_v38, %v20553_v6  ;;  %v6581_v31 = vand.u32 4294901760, %v6580_v11  ;;  %v20554_v17 = vand.u32 4294901760, %v18471_v19 }
 0x307   : > { %12874 = vmatprep.subr.mxu1 %v6767_v23  ;;  %v6675_v0 = vsub.f32 %v18390_v47, %v20552_v61  ;;  %12849 = vmatprep.subr.mxu0 %v18441_v40  ;;  %v6669_v23 = vand.u32 4294901760, %v6668_v54  ;;  %v20555_v37 = vand.u32 4294901760, %v18487_v32  ;;  %v20556_v11 = vand.u32 4294901760, %v18480_v10 }
 0x308   : > { %12875 = vmatpush3.msra.mxu1 %v6655_v5  ;;  %v6682_v61 = vsub.f32 %v18471_v19, %v20554_v17  ;;  %12850 = vmatpush3.msra.mxu0 %v18443_v49  ;;  %v6788_v5 = vand.u32 4294901760, %v6787_v25  ;;  %v6795_v17 = vand.u32 4294901760, %v6794_v29  ;;  %v6808_v25 = vsub.f32 %v18503_v57, %v19699_v20  ;;  %v20574_v20 = vld [vmem:[#allocation5_spill] sm:$0xff] }
 0x309   : > { %12876 = vmatprep.subr.mxu1 %v6774_v9  ;;  %v6801_v6 = vsub.f32 %v18487_v32, %v20555_v37  ;;  %12851 = vmatprep.subr.mxu0 %v18461_v33  ;;  %v6676_v9 = vand.u32 4294901760, %v6675_v0  ;;  %v6689_v54 = vsub.f32 %v18480_v10, %v20556_v11  ;;  %v20560_v37 = vld [vmem:[#allocation14_spill] sm:$0xff] }
 0x30a   : > { %12877 = vmatpush3.msra.mxu1 %v6662_v41  ;;  %12852 = vmatpush3.msra.mxu0 %v18463_v50  ;;  %v6683_v41 = vand.u32 4294901760, %v6682_v61  ;;  %v6809_v29 = vand.u32 4294901760, %v6808_v25  ;;  %v20558_v61 = vld [vmem:[#allocation12_spill] sm:$0xff]  ;;  %v20563_v11 = vld [vmem:[#allocation30_spill] sm:$0xff]  ;;  %v20566_v25 = vld [vmem:[#allocation9_spill] sm:$0xff] }
 0x30b   : > { %12878 = vmatprep.subr.mxu1 %v6781_v18  ;;  %6576 = vmatprep.mubr.f32.mxu0 %v6575_v48  ;;  %v6696_v18 = vsub.f32 %v18496_v3, %v19698_v51  ;;  %v6802_v0 = vand.u32 4294901760, %v6801_v6  ;;  %v6690_v48 = vand.u32 4294901760, %v6689_v54  ;;  %v20561_v6 = vld [vmem:[#allocation7_spill] sm:$0xff]  ;;  %v20564_v54 = vld [vmem:[#allocation29_spill] sm:$0xff] }
 0x30c   : > { %12879 = vmatpush3.msra.mxu1 %v6669_v23  ;;  %6582 = vmatmul.mubr.f32.vlgmr.msra.gmra.mxu0 %v6581_v31  ;;  %v20557_v31 = vld [vmem:[#allocation28_spill] sm:$0xff]  ;;  %v20573_v51 = vld [vmem:[#allocation13_spill] sm:$0xff] }
 0x30d   : > { %12880 = vmatprep.subr.mxu1 %v6788_v5  ;;  %12891 = vmatprep.subr.mxu0 %v18015_v60  ;;  %v6697_v23 = vand.u32 4294901760, %v6696_v18  ;;  %v20559_v5 = vld [vmem:[#allocation18_spill] sm:$0xff] }
 0x30e   : > { %12881 = vmatpush3.msra.mxu1 %v6676_v9  ;;  %12892 = vmatpush3.msra.mxu0 %v18032_v36  ;;  %v20562_v9 = vld [vmem:[#allocation23_spill] sm:$0xff]  ;;  %v20568_v18 = vld [vmem:[#allocation10_spill] sm:$0xff] }
 0x30f   : > { %12882 = vmatprep.subr.mxu1 %v6795_v17  ;;  %12893 = vmatprep.subr.mxu0 %v18067_v45  ;;  %v20565_v17 = vld [vmem:[#allocation32_spill] sm:$0xff] }
 0x310   : > { %12883 = vmatpush3.msra.mxu1 %v6683_v41  ;;  %12894 = vmatpush3.msra.mxu0 %v18073_v35  ;;  %v20567_v41 = vld [vmem:[#allocation20_spill] sm:$0xff] }
 0x311   : > { %12884 = vmatprep.subr.mxu1 %v6802_v0  ;;  %12895 = vmatprep.subr.mxu0 %v18087_v53  ;;  %v20569_v0 = vld [vmem:[#allocation8_spill] sm:$0xff] }
 0x312   : > { %12885 = vmatpush3.msra.mxu1 %v6690_v48  ;;  %12896 = vmatpush3.msra.mxu0 %v18093_v24  ;;  %v20570_v48 = vld [vmem:[#allocation11_spill] sm:$0xff] }
 0x313   : > { %12886 = vmatprep.subr.mxu1 %v6809_v29  ;;  %12897 = vmatprep.subr.mxu0 %v18103_v1  ;;  %v20571_v29 = vld [vmem:[#allocation31_spill] sm:$0xff] }
 0x314   : > { %12887 = vmatpush3.msra.mxu1 %v6697_v23  ;;  %12898 = vmatpush3.msra.mxu0 %v18109_v56  ;;  %v20572_v23 = vld [vmem:[#allocation24_spill] sm:$0xff] }
 0x315   : > { %6814 = vmatmul.mubr.f32.vlgmr.msra.gmra.mxu1 %v18381_v63  ;;  %12899 = vmatprep.subr.mxu0 %v18130_v59  ;;  %v20575_v63 = vld [vmem:[#allocation22_spill] sm:$0xff] }
 0x316   : > { %12926 = vmatprep.subr.mxu1 %v17989_v21  ;;  %12900 = vmatpush3.msra.mxu0 %v18136_v62 }
 0x317   : > { %12927 = vmatpush3.msra.mxu1 %v17997_v12  ;;  %12901 = vmatprep.subr.mxu0 %v18152_v2 }
 0x318   : > { %12928 = vmatprep.subr.mxu1 %v18020_v52  ;;  %12902 = vmatpush3.msra.mxu0 %v18174_v15 }
 0x319   : > { %12929 = vmatpush3.msra.mxu1 %v18034_v46  ;;  %12903 = vmatprep.subr.mxu0 %v18227_v34 }
 0x31a   : > { %12930 = vmatprep.subr.mxu1 %v18042_v7  ;;  %12904 = vmatpush3.msra.mxu0 %v20557_v31 }
 0x31b   : > { %12931 = vmatpush3.msra.mxu1 %v20558_v61  ;;  %12905 = vmatprep.subr.mxu0 %v20559_v5 }
 0x31c   : > { %12932 = vmatprep.subr.mxu1 %v20560_v37  ;;  %12906 = vmatpush3.msra.mxu0 %v20561_v6 }
 0x31d   : > { %12933 = vmatpush3.msra.mxu1 %v20562_v9  ;;  %12907 = vmatprep.subr.mxu0 %v20563_v11 }
 0x31e   : > { %12934 = vmatprep.subr.mxu1 %v20564_v54  ;;  %12908 = vmatpush3.msra.mxu0 %v20565_v17 }
 0x31f   : > { %12935 = vmatpush3.msra.mxu1 %v20566_v25  ;;  %12909 = vmatprep.subr.mxu0 %v18349_v43 }
 0x320   : > { %12936 = vmatprep.subr.mxu1 %v20567_v41  ;;  %12910 = vmatpush3.msra.mxu0 %v18316_v42 }
 0x321   : > { %12937 = vmatpush3.msra.mxu1 %v20568_v18  ;;  %12911 = vmatprep.subr.mxu0 %v18379_v27 }
 0x322   : > { %12938 = vmatprep.subr.mxu1 %v20569_v0  ;;  %12912 = vmatpush3.msra.mxu0 %v18353_v44 }
 0x323   : > { %12939 = vmatpush3.msra.mxu1 %v20570_v48  ;;  %12913 = vmatprep.subr.mxu0 %v18410_v13 }
 0x324   : > { %12940 = vmatprep.subr.mxu1 %v20571_v29  ;;  %12914 = vmatpush3.msra.mxu0 %v18387_v28 }
 0x325   : > { %12941 = vmatpush3.msra.mxu1 %v20572_v23  ;;  %12915 = vmatprep.subr.mxu0 %v18447_v39 }
 0x326   : > { %12942 = vmatprep.subr.mxu1 %v20573_v51  ;;  %12916 = vmatpush3.msra.mxu0 %v18390_v47 }
 0x327   : > { %12943 = vmatpush3.msra.mxu1 %v20574_v20  ;;  %12917 = vmatprep.subr.mxu0 %v18467_v38 }
 0x328   : > { %12944 = vmatprep.subr.mxu1 %v20575_v63  ;;  %12918 = vmatpush3.msra.mxu0 %v18471_v19  ;;  %v20577_v63 = vld [vmem:[#allocation6_spill] sm:$0xff] }
 0x329   : > { %12945 = vmatpush3.msra.mxu1 %v18265_v26  ;;  %12919 = vmatprep.subr.mxu0 %v18487_v32 }
 0x32a   : > { %12946 = vmatprep.subr.mxu1 %v20576_v55  ;;  %12920 = vmatpush3.msra.mxu0 %v18480_v10  ;;  %v20578_v55 = vand.u32 4294901760, %v18015_v60  ;;  %v20583_v60 = vand.u32 4294901760, %v18087_v53  ;;  %v20588_v53 = vand.u32 4294901760, %v18436_v8 }
 0x32b   : > { %12947 = vmatpush3.msra.mxu1 %v18304_v16  ;;  %12921 = vmatprep.subr.mxu0 %v18503_v57  ;;  %v20579_v16 = vand.u32 4294901760, %v18032_v36  ;;  %v20580_v57 = vld [vmem:[#allocation17_spill] sm:$0xff]  ;;  %v20584_v36 = vand.u32 4294901760, %v18093_v24  ;;  %v20590_v24 = vand.u32 4294901760, %v18136_v62  ;;  %v20600_v62 = vand.u32 4294901760, %v18316_v42 }
 0x32c   : > { %12948 = vmatprep.subr.mxu1 %v18345_v58  ;;  %12922 = vmatpush3.msra.mxu0 %v18496_v3  ;;  %v20581_v3 = vand.u32 4294901760, %v18067_v45  ;;  %v20585_v45 = vand.u32 4294901760, %v18103_v1  ;;  %v20591_v1 = vand.u32 4294901760, %v18152_v2  ;;  %v20601_v2 = vand.u32 4294901760, %v18379_v27 }
 0x32d   : > { %6949 = vmatprep.mubr.f32.mxu0 %v18420_v14  ;;  %12949 = vmatpush3.msra.mxu1 %v20577_v63  ;;  %v20582_v63 = vand.u32 4294901760, %v18073_v35  ;;  %v20586_v35 = vand.u32 4294901760, %v18420_v14  ;;  %v20603_v14 = vand.u32 4294901760, %v18410_v13  ;;  %v20604_v42 = vand.u32 4294901760, %v18387_v28 }
 0x32e   : > { %6952 = vmatmul.mubr.f32.vlgmr.msra.gmra.mxu0 %v18436_v8  ;;  %12950 = vmatprep.subr.mxu1 %v18368_v30  ;;  %v20605_v27 = vand.u32 4294901760, %v18447_v39  ;;  %v20607_v13 = vand.u32 4294901760, %v18467_v38  ;;  %v20609_v28 = vand.u32 4294901760, %v18471_v19  ;;  %v20611_v39 = vld [vmem:[#allocation27_spill] sm:$0xff]  ;;  %v20614_v8 = vld [vmem:[#allocation33_spill] sm:$0xff] }
 0x32f   : > { %12961 = vmatprep.subr.mxu0 %v20578_v55  ;;  %12951 = vmatpush3.msra.mxu1 %v18340_v4  ;;  %v20587_v55 = vand.u32 4294901760, %v18109_v56  ;;  %v20592_v56 = vand.u32 4294901760, %v18174_v15  ;;  %v20602_v15 = vand.u32 4294901760, %v18353_v44  ;;  %v20606_v44 = vand.u32 4294901760, %v18390_v47  ;;  %v20613_v47 = vld [vmem:[#allocation16_spill] sm:$0xff] }
 0x330   : > { %12962 = vmatpush3.msra.mxu0 %v20579_v16  ;;  %12952 = vmatprep.subr.mxu1 %v20580_v57  ;;  %v20589_v16 = vand.u32 4294901760, %v18130_v59  ;;  %v20593_v59 = vand.u32 4294901760, %v18227_v34  ;;  %v20599_v34 = vand.u32 4294901760, %v18349_v43  ;;  %v20608_v43 = vld [vmem:[#allocation22_spill] sm:$0xff]  ;;  %v20615_v38 = vand.u32 4294901760, %v20614_v8 }
 0x331   : > { %12963 = vmatprep.subr.mxu0 %v20581_v3  ;;  %12953 = vmatpush3.msra.mxu1 %v18426_v22  ;;  %v20616_v3 = vld [vmem:[#allocation25_spill] sm:$0xff] }
 0x332   : > { %12964 = vmatpush3.msra.mxu0 %v20582_v63  ;;  %12954 = vmatprep.subr.mxu1 %v18441_v40  ;;  %v20610_v63 = vand.u32 4294901760, %v18487_v32  ;;  %v20617_v19 = vand.u32 4294901760, %v20616_v3  ;;  %v20620_v32 = vld [vmem:[#allocation15_spill] sm:$0xff] }
 0x333   : > { %12965 = vmatprep.subr.mxu0 %v20583_v60  ;;  %12955 = vmatpush3.msra.mxu1 %v18443_v49 }
 0x334   : > { %12966 = vmatpush3.msra.mxu0 %v20584_v36  ;;  %12956 = vmatprep.subr.mxu1 %v18461_v33 }
 0x335   : > { %12967 = vmatprep.subr.mxu0 %v20585_v45  ;;  %12957 = vmatpush3.msra.mxu1 %v18463_v50 }
 0x336   : > { %7056 = vmatprep.mubr.f32.mxu1 %v20586_v35  ;;  %12968 = vmatpush3.msra.mxu0 %v20587_v55 }
 0x337   : > { %7060 = vmatmul.mubr.f32.vlgmr.msra.gmra.mxu1 %v20588_v53  ;;  %12969 = vmatprep.subr.mxu0 %v20589_v16 }
 0x338   : > { %12996 = vmatprep.subr.mxu1 %v17989_v21  ;;  %12970 = vmatpush3.msra.mxu0 %v20590_v24  ;;  %v20594_v21 = vand.u32 4294901760, %v20557_v31  ;;  %v13221_v24 = vmov 0.0  }
 0x339   : > { %12997 = vmatpush3.msra.mxu1 %v17997_v12  ;;  %12971 = vmatprep.subr.mxu0 %v20591_v1  ;;  %v20595_v12 = vand.u32 4294901760, %v20559_v5 }
 0x33a   : > { %12998 = vmatprep.subr.mxu1 %v18020_v52  ;;  %12972 = vmatpush3.msra.mxu0 %v20592_v56  ;;  %v20596_v52 = vand.u32 4294901760, %v20561_v6 }
 0x33b   : > { %12999 = vmatpush3.msra.mxu1 %v18034_v46  ;;  %12973 = vmatprep.subr.mxu0 %v20593_v59  ;;  %v20597_v46 = vand.u32 4294901760, %v20563_v11 }
 0x33c   : > { %13000 = vmatprep.subr.mxu1 %v18042_v7  ;;  %12974 = vmatpush3.msra.mxu0 %v20594_v21  ;;  %v20598_v7 = vand.u32 4294901760, %v20565_v17 }
 0x33d   : > { %13001 = vmatpush3.msra.mxu1 %v20558_v61  ;;  %12975 = vmatprep.subr.mxu0 %v20595_v12 }
 0x33e   : > { %13002 = vmatprep.subr.mxu1 %v20560_v37  ;;  %12976 = vmatpush3.msra.mxu0 %v20596_v52 }
 0x33f   : > { %13003 = vmatpush3.msra.mxu1 %v20562_v9  ;;  %12977 = vmatprep.subr.mxu0 %v20597_v46 }
 0x340   : > { %13004 = vmatprep.subr.mxu1 %v20564_v54  ;;  %12978 = vmatpush3.msra.mxu0 %v20598_v7 }
 0x341   : > { %13005 = vmatpush3.msra.mxu1 %v20566_v25  ;;  %12979 = vmatprep.subr.mxu0 %v20599_v34 }
 0x342   : > { %13006 = vmatprep.subr.mxu1 %v20567_v41  ;;  %12980 = vmatpush3.msra.mxu0 %v20600_v62 }
 0x343   : > { %13007 = vmatpush3.msra.mxu1 %v20568_v18  ;;  %12981 = vmatprep.subr.mxu0 %v20601_v2 }
 0x344   : > { %13008 = vmatprep.subr.mxu1 %v20569_v0  ;;  %12982 = vmatpush3.msra.mxu0 %v20602_v15 }
 0x345   : > { %13009 = vmatpush3.msra.mxu1 %v20570_v48  ;;  %12983 = vmatprep.subr.mxu0 %v20603_v14 }
 0x346   : > { %13010 = vmatprep.subr.mxu1 %v20571_v29  ;;  %12984 = vmatpush3.msra.mxu0 %v20604_v42 }
 0x347   : > { %13011 = vmatpush3.msra.mxu1 %v20572_v23  ;;  %12985 = vmatprep.subr.mxu0 %v20605_v27 }
 0x348   : > { %13012 = vmatprep.subr.mxu1 %v20573_v51  ;;  %12986 = vmatpush3.msra.mxu0 %v20606_v44  ;;  %v20612_v51 = vand.u32 4294901760, %v18480_v10  ;;  %v11418_v10 = vpop.f32.mrf.mxu1 }
 0x349   : > { %13013 = vmatpush3.msra.mxu1 %v20574_v20  ;;  %12987 = vmatprep.subr.mxu0 %v20607_v13  ;;  %v20618_v20 = vld [vmem:[#allocation26_spill] sm:$0xff] }
 0x34a   : > { %13014 = vmatprep.subr.mxu1 %v20608_v43  ;;  %12988 = vmatpush3.msra.mxu0 %v20609_v28  ;;  %v11419_v61 = vpop.f32.mrf.mxu1 }
 0x34b   : > { %13015 = vmatpush3.msra.mxu1 %v18265_v26  ;;  %12989 = vmatprep.subr.mxu0 %v20610_v63  ;;  %v20619_v26 = vld [vmem:[#allocation6_spill] sm:$0xff]  ;;  %v11420_v43 = vadd.f32 %v11419_v61, %v11418_v10 }
 0x34c   : > { %13016 = vmatprep.subr.mxu1 %v20611_v39  ;;  %12990 = vmatpush3.msra.mxu0 %v20612_v51  ;;  %v11488_v5 = vpop.f32.mrf.mxu1 }
 0x34d   : > { %13017 = vmatpush3.msra.mxu1 %v20613_v47  ;;  %12991 = vmatprep.subr.mxu0 %v20615_v38 }
 0x34e   : > { %13018 = vmatprep.subr.mxu1 %v18345_v58  ;;  %12992 = vmatpush3.msra.mxu0 %v20617_v19  ;;  %v11383_v58 = vpop.f32.mrf.mxu0 }
 0x34f   : > { %7226 = vmatprep.mubr.f32.mxu0 %v20618_v20  ;;  %13019 = vmatpush3.msra.mxu1 %v20619_v26 }
 0x350   : > { %7228 = vmatmul.mubr.f32.vlgmr.msra.gmra.mxu0 %v20620_v32  ;;  %13020 = vmatprep.subr.mxu1 %v18368_v30  ;;  %v11384_v30 = vpop.f32.mrf.mxu0 }
 0x351   : > { %7330 = vmatprep.mubr.f32.mxu1 %v20618_v20  ;;  %13021 = vmatpush3.msra.mxu1 %v18340_v4  ;;  %v11385_v63 = vadd.f32 %v11384_v30, %v11383_v58 }
 0x352   : > { %13022 = vmatprep.subr.mxu1 %v20580_v57  ;;  %v11453_v31 = vpop.f32.mrf.mxu0  ;;  %7465 = vmatprep.mubr.f32.mxu0 %v13221_v24 }
 0x353   : > { %13023 = vmatpush3.msra.mxu1 %v18426_v22  ;;  %v11489_v22 = vpop.f32.mrf.mxu1  ;;  %v782_v8 = vadd.f32 %v11420_v43, %v11385_v63 }
 0x354   : > { %13024 = vmatprep.subr.mxu1 %v18441_v40  ;;  %v11454_v4 = vpop.f32.mrf.mxu0  ;;  %v7338_v40 = vld [vmem:[%s19173_s2] sm:$0xff]  ;;  %v11490_v38 = vadd.f32 %v11489_v22, %v11488_v5 }
 0x355   : > { %13025 = vmatpush3.msra.mxu1 %v18443_v49  ;;  %v7354_v49 = vcombine.high %v7338_v40, %v7338_v40  ;;  %v11558_v37 = vpop.f32.mrf.mxu1  ;;  %v7367_v11 = vsel %vm7366_vm0, %v7338_v40, 0  ;;  %v11455_v39 = vadd.f32 %v11454_v4, %v11453_v31 }
 0x356   : > { %13026 = vmatprep.subr.mxu1 %v18461_v33  ;;  %v18720_v57 = vpop.f32.mrf.mxu0  ;;  %v18729_v54 = vand.u32 4294901760, %v7367_v11 }
 0x357   : > { %13027 = vmatpush3.msra.mxu1 %v18463_v50  ;;  %v7369_v50 = vsel %vm7366_vm0, %v7354_v49, 0  ;;  %v11559_v17 = vpop.f32.mrf.mxu1  ;;  %v920_v19 = vadd.f32 %v11455_v39, %v782_v8 }
 0x358   : > { %7332 = vmatmul.mubr.f32.vlgmr.msra.gmra.mxu1 %v20620_v32  ;;  %v11524_v33 = vpop.f32.mrf.mxu0  ;;  %v18726_v9 = vand.u32 4294901760, %v7369_v50  ;;  %v18736_v41 = vsub.f32 %v7367_v11, %v18729_v54  ;;  %v11560_v40 = vadd.f32 %v11559_v17, %v11558_v37 }
 0x359   : > { %v11628_v0 = vpop.f32.mrf.mxu1  ;;  %7551 = vmatprep.mubr.f32.mxu1 %v13221_v24  ;;  %v11525_v20 = vadd.f32 %v11524_v33, %v18720_v57  ;;  %v1028_v32 = vadd.f32 %v11490_v38, %v920_v19 }
 0x35a   : > { %v11593_v6 = vpop.f32.mrf.mxu0  ;;  %v18732_v25 = vsub.f32 %v7369_v50, %v18726_v9  ;;  %7430 = vmatprep.subr.mxu0 %v18726_v9  ;;  %v7515_v29 = vand.u32 4294901760, %v18736_v41 }
 0x35b   : > { %7432 = vmatpush1.msra.mxu0 %v18729_v54  ;;  %v11629_v45 = vpop.f32.mrf.mxu1  ;;  %v1196_v11 = vadd.f32 %v11525_v20, %v1028_v32 }
 0x35c   : > { %v11594_v18 = vpop.f32.mrf.mxu0  ;;  %v7509_v48 = vand.u32 4294901760, %v18732_v25  ;;  %7591 = vmatprep.subr.mxu0 %v18732_v25  ;;  %v7516_v36 = vsub.f32 %v18736_v41, %v7515_v29  ;;  %v11630_v61 = vadd.f32 %v11629_v45, %v11628_v0 }
 0x35d   : > { %v11698_v16 = vpop.f32.mrf.mxu1  ;;  %v1300_v10 = vadd.f32 %v11560_v40, %v1196_v11 }
 0x35e   : > { %v11663_v23 = vpop.f32.mrf.mxu0  ;;  %v7510_v60 = vsub.f32 %v18732_v25, %v7509_v48  ;;  %v7517_v55 = vand.u32 4294901760, %v7516_v36  ;;  %v7342_v25 = vld [vmem:[%s19173_s2 + $0x20] sm:$0xff] }
 0x35f   : > { %v11699_v56 = vpop.f32.mrf.mxu1 }
 0x360   : > { %v7511_v35 = vand.u32 4294901760, %v7510_v60  ;;  %v11664_v53 = vpop.f32.mrf.mxu0  ;;  %v11595_v60 = vadd.f32 %v11594_v18, %v11593_v6  ;;  %v11700_v22 = vadd.f32 %v11699_v56, %v11698_v16 }
 0x361   : > { %v11768_v21 = vpop.f32.mrf.mxu1  ;;  %v11665_v31 = vadd.f32 %v11664_v53, %v11663_v23 }
 0x362   : > { %7512 = vmatprep.subr.mxu1 %v7511_v35  ;;  %v11733_v1 = vpop.f32.mrf.mxu0  ;;  %v1412_v30 = vadd.f32 %v11595_v60, %v1300_v10 }
 0x363   : > { %7518 = vmatpush1.msra.mxu1 %v7517_v55  ;;  %v11769_v52 = vpop.f32.mrf.mxu1 }
 0x364   : > { %7667 = vmatprep.subr.mxu1 %v18726_v9  ;;  %v11734_v59 = vpop.f32.mrf.mxu0  ;;  %v1644_v5 = vadd.f32 %v11630_v61, %v1412_v30  ;;  %v11770_v37 = vadd.f32 %v11769_v52, %v11768_v21 }
 0x365   : > { %v11838_v7 = vpop.f32.mrf.mxu1  ;;  %v11735_v57 = vadd.f32 %v11734_v59, %v11733_v1 }
 0x366   : > { %v11803_v12 = vpop.f32.mrf.mxu0  ;;  %v1782_v43 = vadd.f32 %v11665_v31, %v1644_v5 }
 0x367   : > { %v11839_v62 = vpop.f32.mrf.mxu1 }
 0x368   : > { %v11804_v46 = vpop.f32.mrf.mxu0  ;;  %v1890_v63 = vadd.f32 %v11700_v22, %v1782_v43  ;;  %v11840_v0 = vadd.f32 %v11839_v62, %v11838_v7 }
 0x369   : > { %v11908_v15 = vpop.f32.mrf.mxu1  ;;  %v11805_v6 = vadd.f32 %v11804_v46, %v11803_v12 }
 0x36a   : > { %v11873_v34 = vpop.f32.mrf.mxu0  ;;  %v2058_v8 = vadd.f32 %v11735_v57, %v1890_v63 }
 0x36b   : > { %v11909_v42 = vpop.f32.mrf.mxu1 }
 0x36c   : > { %v11874_v2 = vpop.f32.mrf.mxu0  ;;  %v2162_v38 = vadd.f32 %v11770_v37, %v2058_v8  ;;  %v11910_v16 = vadd.f32 %v11909_v42, %v11908_v15 }
 0x36d   : > { %v11978_v44 = vpop.f32.mrf.mxu1  ;;  %v11875_v23 = vadd.f32 %v11874_v2, %v11873_v34 }
 0x36e   : > { %v11943_v14 = vpop.f32.mrf.mxu0  ;;  %v2274_v19 = vadd.f32 %v11805_v6, %v2162_v38 }
 0x36f   : > { %v11979_v28 = vpop.f32.mrf.mxu1 }
 0x370   : > { %v11944_v27 = vpop.f32.mrf.mxu0  ;;  %v2506_v32 = vadd.f32 %v11840_v0, %v2274_v19  ;;  %v11980_v21 = vadd.f32 %v11979_v28, %v11978_v44 }
 0x371   : > { %v12048_v47 = vpop.f32.mrf.mxu1  ;;  %v11945_v1 = vadd.f32 %v11944_v27, %v11943_v14 }
 0x372   : > { %v12013_v13 = vpop.f32.mrf.mxu0  ;;  %v2644_v40 = vadd.f32 %v11875_v23, %v2506_v32 }
 0x373   : > { %v12049_v26 = vpop.f32.mrf.mxu1 }
 0x374   : > { %v12014_v51 = vpop.f32.mrf.mxu0  ;;  %v2752_v11 = vadd.f32 %v11910_v16, %v2644_v40  ;;  %v12050_v7 = vadd.f32 %v12049_v26, %v12048_v47 }
 0x375   : > { %v12118_v50 = vpop.f32.mrf.mxu1  ;;  %v12015_v12 = vadd.f32 %v12014_v51, %v12013_v13 }
 0x376   : > { %v12083_v3 = vpop.f32.mrf.mxu0  ;;  %v2920_v10 = vadd.f32 %v11945_v1, %v2752_v11 }
 0x377   : > { %v12119_v58 = vpop.f32.mrf.mxu1 }
 0x378   : > { %v12084_v49 = vpop.f32.mrf.mxu0  ;;  %v3024_v61 = vadd.f32 %v11980_v21, %v2920_v10  ;;  %v12120_v15 = vadd.f32 %v12119_v58, %v12118_v50 }
 0x379   : > { %v12188_v35 = vpop.f32.mrf.mxu1  ;;  %v12085_v34 = vadd.f32 %v12084_v49, %v12083_v3 }
 0x37a   : > { %v12153_v36 = vpop.f32.mrf.mxu0  ;;  %v3136_v30 = vadd.f32 %v12015_v12, %v3024_v61 }
 0x37b   : > { %v12189_v33 = vpop.f32.mrf.mxu1 }
 0x37c   : > { %v12154_v4 = vpop.f32.mrf.mxu0  ;;  %v3368_v5 = vadd.f32 %v12050_v7, %v3136_v30  ;;  %v12190_v44 = vadd.f32 %v12189_v33, %v12188_v35 }
 0x37d   : > { %v12258_v39 = vpop.f32.mrf.mxu1  ;;  %v12155_v14 = vadd.f32 %v12154_v4, %v12153_v36 }
 0x37e   : > { %v12223_v55 = vpop.f32.mrf.mxu0  ;;  %v3506_v22 = vadd.f32 %v12085_v34, %v3368_v5 }
 0x37f   : > { %v12259_v45 = vpop.f32.mrf.mxu1 }
 0x380   : > { %v12224_v17 = vpop.f32.mrf.mxu0  ;;  %v3614_v43 = vadd.f32 %v12120_v15, %v3506_v22  ;;  %v12260_v47 = vadd.f32 %v12259_v45, %v12258_v39 }
 0x381   : > { %v12328_v20 = vpop.f32.mrf.mxu1  ;;  %v12225_v13 = vadd.f32 %v12224_v17, %v12223_v55 }
 0x382   : > { %v12293_v18 = vpop.f32.mrf.mxu0  ;;  %v3782_v63 = vadd.f32 %v12155_v14, %v3614_v43 }
 0x383   : > { %v12329_v59 = vpop.f32.mrf.mxu1 }
 0x384   : > { %v12294_v53 = vpop.f32.mrf.mxu0  ;;  %v3886_v37 = vadd.f32 %v12190_v44, %v3782_v63  ;;  %v12330_v50 = vadd.f32 %v12329_v59, %v12328_v20 }
 0x385   : > { %v12398_v60 = vpop.f32.mrf.mxu1  ;;  %v12295_v3 = vadd.f32 %v12294_v53, %v12293_v18 }
 0x386   : > { %v12363_v56 = vpop.f32.mrf.mxu0  ;;  %v3998_v8 = vadd.f32 %v12225_v13, %v3886_v37 }
 0x387   : > { %v12399_v62 = vpop.f32.mrf.mxu1 }
 0x388   : > { %v12364_v52 = vpop.f32.mrf.mxu0  ;;  %v4230_v38 = vadd.f32 %v12260_v47, %v3998_v8  ;;  %v12400_v35 = vadd.f32 %v12399_v62, %v12398_v60 }
 0x389   : > { %v12468_v31 = vpop.f32.mrf.mxu1  ;;  %v12365_v36 = vadd.f32 %v12364_v52, %v12363_v56 }
 0x38a   : > { %v12433_v46 = vpop.f32.mrf.mxu0  ;;  %v4368_v0 = vadd.f32 %v12295_v3, %v4230_v38 }
 0x38b   : > { %v12469_v27 = vpop.f32.mrf.mxu1 }
 0x38c   : > { %v12434_v2 = vpop.f32.mrf.mxu0  ;;  %v4476_v19 = vadd.f32 %v12330_v50, %v4368_v0  ;;  %v12470_v39 = vadd.f32 %v12469_v27, %v12468_v31 }
 0x38d   : > { %v12538_v57 = vpop.f32.mrf.mxu1  ;;  %v12435_v55 = vadd.f32 %v12434_v2, %v12433_v46 }
 0x38e   : > { %v12503_v42 = vpop.f32.mrf.mxu0  ;;  %v4644_v32 = vadd.f32 %v12365_v36, %v4476_v19 }
 0x38f   : > { %v12539_v26 = vpop.f32.mrf.mxu1 }
 0x390   : > { %v12504_v28 = vpop.f32.mrf.mxu0  ;;  %v4748_v16 = vadd.f32 %v12400_v35, %v4644_v32  ;;  %v12540_v20 = vadd.f32 %v12539_v26, %v12538_v57  ;;  %v7339_v57 = vld [vmem:[%s19173_s2 + $0x8] sm:$0xff] }
 0x391   : > { %v12608_v6 = vpop.f32.mrf.mxu1  ;;  %v12505_v18 = vadd.f32 %v12504_v28, %v12503_v42  ;;  %v7355_v8 = vcombine.high %v7339_v57, %v7339_v57  ;;  %v7371_v32 = vsel %vm7366_vm0, %v7339_v57, 0 }
 0x392   : > { %v12573_v51 = vpop.f32.mrf.mxu0  ;;  %v4860_v40 = vadd.f32 %v12435_v55, %v4748_v16  ;;  %v7340_v16 = vld [vmem:[%s19173_s2 + $0x10] sm:$0xff] }
 0x393   : > { %v12609_v4 = vpop.f32.mrf.mxu1  ;;  %v7373_v0 = vsel %vm7366_vm0, %v7355_v8, 0 }
 0x394   : > { %v12574_v49 = vpop.f32.mrf.mxu0  ;;  %v5092_v11 = vadd.f32 %v12470_v39, %v4860_v40  ;;  %v12610_v60 = vadd.f32 %v12609_v4, %v12608_v6  ;;  %v18756_v35 = vand.u32 4294901760, %v7373_v0  ;;  %v18765_v40 = vand.u32 4294901760, %v7371_v32 }
 0x395   : > { %v12678_v23 = vpop.f32.mrf.mxu1  ;;  %v12575_v56 = vadd.f32 %v12574_v49, %v12573_v51 }
 0x396   : > { %v12643_v58 = vpop.f32.mrf.mxu0  ;;  %v5230_v21 = vadd.f32 %v12505_v18, %v5092_v11 }
 0x397   : > { %v12679_v45 = vpop.f32.mrf.mxu1 }
 0x398   : > { %v12644_v33 = vpop.f32.mrf.mxu0  ;;  %v5338_v10 = vadd.f32 %v12540_v20, %v5230_v21  ;;  %v12680_v34 = vadd.f32 %v12679_v45, %v12678_v23  ;;  %v18763_v45 = vsub.f32 %v7373_v0, %v18756_v35 }
 0x399   : > { %v12748_v1 = vpop.f32.mrf.mxu1  ;;  %v12645_v46 = vadd.f32 %v12644_v33, %v12643_v58 }
 0x39a   : > { %v12713_v17 = vpop.f32.mrf.mxu0  ;;  %v5506_v7 = vadd.f32 %v12575_v56, %v5338_v10  ;;  %v7974_v20 = vand.u32 4294901760, %v18763_v45 }
 0x39b   : > { %v12749_v52 = vpop.f32.mrf.mxu1 }
 0x39c   : > { %v12714_v53 = vpop.f32.mrf.mxu0  ;;  %v5610_v30 = vadd.f32 %v12610_v60, %v5506_v7  ;;  %v12750_v14 = vadd.f32 %v12749_v52, %v12748_v1  ;;  %v7356_v1 = vcombine.high %v7340_v16, %v7340_v16  ;;  %v7975_v60 = vsub.f32 %v18763_v45, %v7974_v20 }
 0x39d   : > { %v12715_v5 = vadd.f32 %v12714_v53, %v12713_v17  ;;  %v7375_v7 = vsel %vm7366_vm0, %v7340_v16, 0 }
 0x39e   : > { %v5722_v31 = vadd.f32 %v12645_v46, %v5610_v30  ;;  %v7377_v56 = vsel %vm7366_vm0, %v7356_v1, 0 }
 0x3a0   : > { %v5954_v22 = vadd.f32 %v12680_v34, %v5722_v31  ;;  %v7976_v34 = vand.u32 4294901760, %v7975_v60  ;;  %v18797_v31 = vand.u32 4294901760, %v7375_v7 }
 0x3a2   : > { %v6092_v43 = vadd.f32 %v12715_v5, %v5954_v22 }
 0x3a4   : > { %v6200_v63 = vadd.f32 %v12750_v14, %v6092_v43  ;;  %v18810_v14 = vsub.f32 %v7375_v7, %v18797_v31 }
 0x3a9   : > { %v12783_v59 = vpop.f32.mrf.mxu0 }
 0x3ab   : > { %v12784_v12 = vpop.f32.mrf.mxu0 }
 0x3ac   : > { %v12785_v44 = vadd.f32 %v12784_v12, %v12783_v59  ;;  %v18769_v59 = vsub.f32 %v7371_v32, %v18765_v40 }
 0x3ae   : > { %v6368_v47 = vadd.f32 %v12785_v44, %v6200_v63  ;;  %v7980_v12 = vand.u32 4294901760, %v18769_v59 }
 0x3b2   : > { %v12818_v61 = vpop.f32.mrf.mxu1 }
 0x3b4   : > { %v12819_v2 = vpop.f32.mrf.mxu1 }
 0x3b5   : > { %v12820_v13 = vadd.f32 %v12819_v2, %v12818_v61  ;;  %v18778_v61 = vand.u32 4294901760, %v7377_v56  ;;  %v7981_v2 = vsub.f32 %v18769_v59, %v7980_v12 }
 0x3b7   : > { %v6472_v49 = vadd.f32 %v12820_v13, %v6368_v47  ;;  %v18800_v5 = vsub.f32 %v7377_v56, %v18778_v61  ;;  %v7982_v22 = vand.u32 4294901760, %v7981_v2  ;;  %v7358_v13 = vcombine.high %v7342_v25, %v7342_v25 }
 0x3cc   : > { %v12853_v62 = vpop.f32.mrf.mxu0 }
 0x3ce   : > { %v12854_v15 = vpop.f32.mrf.mxu0 }
 0x3cf   : > { %v12855_v26 = vadd.f32 %v12854_v15, %v12853_v62  ;;  %v7341_v62 = vld [vmem:[%s19173_s2 + $0x18] sm:$0xff] }
 0x3d0   : > { %v7379_v57 = vsel %vm7366_vm0, %v7341_v62, 0 }
 0x3d1   : > { %v6584_v50 = vadd.f32 %v12855_v26, %v6472_v49  ;;  %v18842_v63 = vand.u32 4294901760, %v7379_v57  ;;  %v7385_v26 = vsel %vm7366_vm0, %v7358_v13, 0 }
 0x3d2   : > { %v18873_v49 = vand.u32 4294901760, %v7385_v26 }
 0x3d5   : > { %v12888_v42 = vpop.f32.mrf.mxu1 }
 0x3d7   : > { %v12889_v28 = vpop.f32.mrf.mxu1 }
 0x3d8   : > { %v12890_v6 = vadd.f32 %v12889_v28, %v12888_v42  ;;  %v7357_v42 = vcombine.high %v7341_v62, %v7341_v62 }
 0x3da   : > { %v6816_v4 = vadd.f32 %v12890_v6, %v6584_v50  ;;  %v7381_v43 = vsel %vm7366_vm0, %v7357_v42, 0  ;;  %v7383_v6 = vsel %vm7366_vm0, %v7342_v25, 0 }
 0x3db   : > { %v18826_v28 = vand.u32 4294901760, %v7381_v43 }
 0x3ee   : > { %v12923_v27 = vpop.f32.mrf.mxu0 }
 0x3f0   : > { %v12924_v51 = vpop.f32.mrf.mxu0 }
 0x3f1   : > { %v12925_v58 = vadd.f32 %v12924_v51, %v12923_v27  ;;  %v8439_v27 = vand.u32 4294901760, %v18800_v5 }
 0x3f3   : > { %v6954_v33 = vadd.f32 %v12925_v58, %v6816_v4  ;;  %v8440_v44 = vsub.f32 %v18800_v5, %v8439_v27  ;;  %v18889_v58 = vand.u32 4294901760, %v7383_v6 }
 0x3f7   : > { %v12958_v37 = vpop.f32.mrf.mxu1 }
 0x3f9   : > { %v12959_v38 = vpop.f32.mrf.mxu1 }
 0x3fa   : > { %v12960_v19 = vadd.f32 %v12959_v38, %v12958_v37  ;;  %v18856_v37 = vsub.f32 %v7379_v57, %v18842_v63  ;;  %v7343_v38 = vld [vmem:[%s19173_s2 + $0x28] sm:$0xff] }
 0x3fb   : > { %v7359_v4 = vcombine.high %v7343_v38, %v7343_v38  ;;  %v7387_v16 = vsel %vm7366_vm0, %v7343_v38, 0 }
 0x3fc   : > { %v7062_v17 = vadd.f32 %v12960_v19, %v6954_v33  ;;  %v8910_v8 = vand.u32 4294901760, %v18856_v37 }
 0x3fe   : > { %v8911_v50 = vsub.f32 %v18856_v37, %v8910_v8 }
 0x400   : > { %v8912_v19 = vand.u32 4294901760, %v8911_v50 }
 0x410   : > { %v12993_v3 = vpop.f32.mrf.mxu0 }
 0x412   : > { %v12994_v36 = vpop.f32.mrf.mxu0 }
 0x413   : > { %v12995_v23 = vadd.f32 %v12994_v36, %v12993_v3  ;;  %v18894_v36 = vsub.f32 %v7385_v26, %v18873_v49 }
 0x415   : > { %v7230_v18 = vadd.f32 %v12995_v23, %v7062_v17  ;;  %v9369_v33 = vand.u32 4294901760, %v18894_v36  ;;  %v7389_v23 = vsel %vm7366_vm0, %v7359_v4, 0 }
 0x416   : > { %v18920_v17 = vand.u32 4294901760, %v7389_v23 }
 0x418   : > { %v13028_v55 = vpop.f32.mrf.mxu1 }
 0x41a   : > { %v13029_v39 = vpop.f32.mrf.mxu1 }
 0x41b   : > { %v13030_v53 = vadd.f32 %v13029_v39, %v13028_v55  ;;  %v9370_v55 = vsub.f32 %v18894_v36, %v9369_v33  ;;  %v7344_v39 = vld [vmem:[%s19173_s2 + $0x30] sm:$0xff] }
 0x41c   : > { %v7360_v1 = vcombine.high %v7344_v39, %v7344_v39 }
 0x41d   : > { %v7334_v11 = vadd.f32 %v13030_v53, %v7230_v18  ;;  %v9371_v18 = vand.u32 4294901760, %v9370_v55  ;;  %v18941_v53 = vsub.f32 %v7389_v23, %v18920_v17 }
 0x41f   : > { %v7337_v21 = vmax.f32 %v7334_v11, 0.0 }
 0x421   : > { %v7364_v52 = vsel %vm7362_vm1, %v7337_v21, 0  ;;  %v7393_v21 = vsel %vm7366_vm0, %v7360_v1, 0 }
 0x422   : > { %v18772_v10 = vand.u32 4294901760, %v7364_v52  ;;  %v18967_v60 = vand.u32 4294901760, %v7393_v21 }
 0x424   : > { %v18782_v46 = vsub.f32 %v7364_v52, %v18772_v10  ;;  %7553 = vmatmul.mubr.f32.vlgmr.msra.gmra.mxu1 %v18772_v10  ;;  %v18988_v2 = vsub.f32 %v7393_v21, %v18967_v60 }
 0x425   : > { %7669 = vmatpush1.msra.mxu1 %v18729_v54  ;;  %7702 = vmatprep.mubr.f32.mxu1 %v13221_v24 }
 0x426   : > { %v18791_v30 = vand.u32 4294901760, %v18782_v46  ;;  %7821 = vmatprep.subr.mxu1 %v18726_v9  ;;  %v10299_v42 = vand.u32 4294901760, %v18988_v2 }
 0x428   : > { %7706 = vmatmul.mubr.f32.vlgmr.msra.gmra.mxu1 %v18791_v30  ;;  %v7469_v15 = vsub.f32 %v18782_v46, %v18791_v30 }
 0x429   : > { %7823 = vmatpush1.msra.mxu1 %v18729_v54  ;;  %7856 = vmatprep.mubr.f32.mxu1 %v13221_v24  ;;  %v8445_v54 = vand.u32 4294901760, %v18810_v14 }
 0x42a   : > { %v18807_v9 = vand.u32 4294901760, %v7469_v15  ;;  %7977 = vmatprep.subr.mxu1 %v7976_v34 }
 0x42c   : > { %7471 = vmatmul.mubr.f32.vlgmr.msra.gmra.mxu0 %v18807_v9  ;;  %7858 = vmatmul.mubr.f32.vlgmr.msra.gmra.mxu1 %v18772_v10 }
 0x42d   : > { %7594 = vmatpush1.msra.mxu0 %v18736_v41  ;;  %7627 = vmatprep.mubr.f32.mxu0 %v13221_v24  ;;  %v8441_v41 = vand.u32 4294901760, %v8440_v44 }
 0x42e   : > { %7745 = vmatprep.subr.mxu0 %v7509_v48  ;;  %7983 = vmatpush1.msra.mxu1 %v7982_v22  ;;  %v8446_v48 = vsub.f32 %v18810_v14, %v8445_v54 }
 0x42f   : > { %8016 = vmatprep.mubr.f32.mxu1 %v13221_v24  ;;  %8132 = vmatprep.subr.mxu1 %v18756_v35 }
 0x430   : > { %7630 = vmatmul.mubr.f32.vlgmr.msra.gmra.mxu0 %v18782_v46  ;;  %8018 = vmatmul.mubr.f32.vlgmr.msra.gmra.mxu1 %v18772_v10  ;;  %v8447_v51 = vand.u32 4294901760, %v8446_v48 }
 0x431   : > { %7749 = vmatpush1.msra.mxu0 %v7515_v29  ;;  %7782 = vmatprep.mubr.f32.mxu0 %v13221_v24  ;;  %v18847_v29 = vsub.f32 %v7381_v43, %v18826_v28 }
 0x432   : > { %7895 = vmatprep.subr.mxu0 %v18756_v35  ;;  %8134 = vmatpush1.msra.mxu1 %v18765_v40 }
 0x433   : > { %8167 = vmatprep.mubr.f32.mxu1 %v13221_v24  ;;  %8286 = vmatprep.subr.mxu1 %v18756_v35  ;;  %v8904_v47 = vand.u32 4294901760, %v18847_v29  ;;  %v18903_v35 = vsub.f32 %v7383_v6, %v18889_v58 }
 0x434   : > { %7784 = vmatmul.mubr.f32.vlgmr.msra.gmra.mxu0 %v18772_v10  ;;  %8171 = vmatmul.mubr.f32.vlgmr.msra.gmra.mxu1 %v18791_v30 }
 0x435   : > { %7897 = vmatpush1.msra.mxu0 %v18765_v40  ;;  %7930 = vmatprep.mubr.f32.mxu0 %v13221_v24  ;;  %v8905_v3 = vsub.f32 %v18847_v29, %v8904_v47  ;;  %v9375_v32 = vand.u32 4294901760, %v18903_v35 }
 0x436   : > { %8056 = vmatprep.subr.mxu0 %v18763_v45  ;;  %8288 = vmatpush1.msra.mxu1 %v18765_v40  ;;  %v18936_v40 = vand.u32 4294901760, %v7387_v16 }
 0x437   : > { %8321 = vmatprep.mubr.f32.mxu1 %v13221_v24  ;;  %8442 = vmatprep.subr.mxu1 %v8441_v41  ;;  %v8906_v0 = vand.u32 4294901760, %v8905_v3  ;;  %v9376_v45 = vsub.f32 %v18903_v35, %v9375_v32 }
 0x438   : > { %7936 = vmatmul.mubr.f32.vlgmr.msra.gmra.mxu0 %v18807_v9  ;;  %8323 = vmatmul.mubr.f32.vlgmr.msra.gmra.mxu1 %v18772_v10 }
 0x439   : > { %8059 = vmatpush1.msra.mxu0 %v18769_v59  ;;  %8092 = vmatprep.mubr.f32.mxu0 %v13221_v24  ;;  %v9377_v11 = vand.u32 4294901760, %v9376_v45  ;;  %v9834_v59 = vand.u32 4294901760, %v18941_v53 }
 0x43a   : > { %8210 = vmatprep.subr.mxu0 %v7974_v20  ;;  %8448 = vmatpush1.msra.mxu1 %v8447_v51  ;;  %v18950_v20 = vsub.f32 %v7387_v16, %v18936_v40 }
 0x43b   : > { %8481 = vmatprep.mubr.f32.mxu1 %v13221_v24  ;;  %8597 = vmatprep.subr.mxu1 %v18778_v61  ;;  %v9835_v52 = vsub.f32 %v18941_v53, %v9834_v59 }
 0x43c   : > { %8095 = vmatmul.mubr.f32.vlgmr.msra.gmra.mxu0 %v18782_v46  ;;  %8483 = vmatmul.mubr.f32.vlgmr.msra.gmra.mxu1 %v18772_v10  ;;  %v9840_v56 = vand.u32 4294901760, %v18950_v20 }
 0x43d   : > { %8214 = vmatpush1.msra.mxu0 %v7980_v12  ;;  %8247 = vmatprep.mubr.f32.mxu0 %v13221_v24  ;;  %v7391_v12 = vsel %vm7366_vm0, %v7344_v39, 0  ;;  %v9836_v34 = vand.u32 4294901760, %v9835_v52 }
 0x43e   : > { %8360 = vmatprep.subr.mxu0 %v18778_v61  ;;  %8599 = vmatpush1.msra.mxu1 %v18797_v31  ;;  %v9841_v7 = vsub.f32 %v18950_v20, %v9840_v56  ;;  %v18983_v62 = vand.u32 4294901760, %v7391_v12 }
 0x43f   : > { %8632 = vmatprep.mubr.f32.mxu1 %v13221_v24  ;;  %8751 = vmatprep.subr.mxu1 %v18778_v61  ;;  %v7345_v61 = vld [vmem:[%s19173_s2 + $0x38] sm:$0xff] }
 0x440   : > { %8249 = vmatmul.mubr.f32.vlgmr.msra.gmra.mxu0 %v18772_v10  ;;  %8636 = vmatmul.mubr.f32.vlgmr.msra.gmra.mxu1 %v18791_v30  ;;  %v18997_v15 = vsub.f32 %v7391_v12, %v18983_v62 }
 0x441   : > { %8362 = vmatpush1.msra.mxu0 %v18797_v31  ;;  %8395 = vmatprep.mubr.f32.mxu0 %v13221_v24 }
 0x442   : > { %8521 = vmatprep.subr.mxu0 %v18800_v5  ;;  %8753 = vmatpush1.msra.mxu1 %v18797_v31  ;;  %v7361_v31 = vcombine.high %v7345_v61, %v7345_v61  ;;  %v9842_v5 = vand.u32 4294901760, %v9841_v7 }
 0x443   : > { %8786 = vmatprep.mubr.f32.mxu1 %v13221_v24  ;;  %8907 = vmatprep.subr.mxu1 %v8906_v0 }
 0x444   : > { %8401 = vmatmul.mubr.f32.vlgmr.msra.gmra.mxu0 %v18807_v9  ;;  %8788 = vmatmul.mubr.f32.vlgmr.msra.gmra.mxu1 %v18772_v10  ;;  %v7397_v22 = vsel %vm7366_vm0, %v7361_v31, 0 }
 0x445   : > { %8524 = vmatpush1.msra.mxu0 %v18810_v14  ;;  %8557 = vmatprep.mubr.f32.mxu0 %v13221_v24  ;;  %v10305_v14 = vand.u32 4294901760, %v18997_v15  ;;  %v19014_v43 = vand.u32 4294901760, %v7397_v22 }
 0x446   : > { %8675 = vmatprep.subr.mxu0 %v8439_v27  ;;  %8913 = vmatpush1.msra.mxu1 %v8912_v19  ;;  %v10300_v27 = vsub.f32 %v18988_v2, %v10299_v42 }
 0x447   : > { %8946 = vmatprep.mubr.f32.mxu1 %v13221_v24  ;;  %9062 = vmatprep.subr.mxu1 %v18826_v28  ;;  %v10306_v44 = vsub.f32 %v18997_v15, %v10305_v14  ;;  %v19032_v25 = vsub.f32 %v7397_v22, %v19014_v43 }
 0x448   : > { %8560 = vmatmul.mubr.f32.vlgmr.msra.gmra.mxu0 %v18782_v46  ;;  %8948 = vmatmul.mubr.f32.vlgmr.msra.gmra.mxu1 %v18772_v10  ;;  %v10301_v57 = vand.u32 4294901760, %v10300_v27 }
 0x449   : > { %8679 = vmatpush1.msra.mxu0 %v8445_v54  ;;  %8712 = vmatprep.mubr.f32.mxu0 %v13221_v24  ;;  %v7395_v54 = vsel %vm7366_vm0, %v7345_v61, 0  ;;  %v10307_v48 = vand.u32 4294901760, %v10306_v44  ;;  %v10764_v41 = vand.u32 4294901760, %v19032_v25 }
 0x44a   : > { %8825 = vmatprep.subr.mxu0 %v18826_v28  ;;  %9064 = vmatpush1.msra.mxu1 %v18842_v63 }
 0x44b   : > { %9097 = vmatprep.mubr.f32.mxu1 %v13221_v24  ;;  %9216 = vmatprep.subr.mxu1 %v18826_v28  ;;  %v19027_v28 = vand.u32 4294901760, %v7395_v54  ;;  %v10765_v13 = vsub.f32 %v19032_v25, %v10764_v41 }
 0x44c   : > { %8714 = vmatmul.mubr.f32.vlgmr.msra.gmra.mxu0 %v18772_v10  ;;  %9101 = vmatmul.mubr.f32.vlgmr.msra.gmra.mxu1 %v18791_v30 }
 0x44d   : > { %8827 = vmatpush1.msra.mxu0 %v18842_v63  ;;  %8860 = vmatprep.mubr.f32.mxu0 %v13221_v24 }
 0x44e   : > { %8986 = vmatprep.subr.mxu0 %v18847_v29  ;;  %9218 = vmatpush1.msra.mxu1 %v18842_v63  ;;  %v10769_v63 = vsub.f32 %v7395_v54, %v19027_v28 }
 0x44f   : > { %9251 = vmatprep.mubr.f32.mxu1 %v13221_v24  ;;  %9372 = vmatprep.subr.mxu1 %v9371_v18 }
 0x450   : > { %8866 = vmatmul.mubr.f32.vlgmr.msra.gmra.mxu0 %v18807_v9  ;;  %9253 = vmatmul.mubr.f32.vlgmr.msra.gmra.mxu1 %v18772_v10  ;;  %v10770_v29 = vand.u32 4294901760, %v10769_v63 }
 0x451   : > { %8989 = vmatpush1.msra.mxu0 %v18856_v37  ;;  %9022 = vmatprep.mubr.f32.mxu0 %v13221_v24  ;;  %v10766_v37 = vand.u32 4294901760, %v10765_v13 }
 0x452   : > { %9140 = vmatprep.subr.mxu0 %v8904_v47  ;;  %9378 = vmatpush1.msra.mxu1 %v9377_v11  ;;  %v10771_v51 = vsub.f32 %v10769_v63, %v10770_v29 }
 0x453   : > { %9411 = vmatprep.mubr.f32.mxu1 %v13221_v24  ;;  %9527 = vmatprep.subr.mxu1 %v18873_v49 }
 0x454   : > { %9025 = vmatmul.mubr.f32.vlgmr.msra.gmra.mxu0 %v18782_v46  ;;  %9413 = vmatmul.mubr.f32.vlgmr.msra.gmra.mxu1 %v18772_v10  ;;  %v10772_v47 = vand.u32 4294901760, %v10771_v51 }
 0x455   : > { %9144 = vmatpush1.msra.mxu0 %v8910_v8  ;;  %9177 = vmatprep.mubr.f32.mxu0 %v13221_v24 }
 0x456   : > { %9290 = vmatprep.subr.mxu0 %v18873_v49  ;;  %9529 = vmatpush1.msra.mxu1 %v18889_v58 }
 0x457   : > { %9562 = vmatprep.mubr.f32.mxu1 %v13221_v24  ;;  %9681 = vmatprep.subr.mxu1 %v18873_v49 }
 0x458   : > { %9179 = vmatmul.mubr.f32.vlgmr.msra.gmra.mxu0 %v18772_v10  ;;  %9566 = vmatmul.mubr.f32.vlgmr.msra.gmra.mxu1 %v18791_v30 }
 0x459   : > { %9292 = vmatpush1.msra.mxu0 %v18889_v58  ;;  %9325 = vmatprep.mubr.f32.mxu0 %v13221_v24 }
 0x45a   : > { %9451 = vmatprep.subr.mxu0 %v18894_v36  ;;  %9683 = vmatpush1.msra.mxu1 %v18889_v58 }
 0x45b   : > { %9716 = vmatprep.mubr.f32.mxu1 %v13221_v24  ;;  %9837 = vmatprep.subr.mxu1 %v9836_v34 }
 0x45c   : > { %9331 = vmatmul.mubr.f32.vlgmr.msra.gmra.mxu0 %v18807_v9  ;;  %9718 = vmatmul.mubr.f32.vlgmr.msra.gmra.mxu1 %v18772_v10 }
 0x45d   : > { %9454 = vmatpush1.msra.mxu0 %v18903_v35  ;;  %9487 = vmatprep.mubr.f32.mxu0 %v13221_v24 }
 0x45e   : > { %9605 = vmatprep.subr.mxu0 %v9369_v33  ;;  %9843 = vmatpush1.msra.mxu1 %v9842_v5 }
 0x45f   : > { %9876 = vmatprep.mubr.f32.mxu1 %v13221_v24  ;;  %9992 = vmatprep.subr.mxu1 %v18920_v17 }
 0x460   : > { %9490 = vmatmul.mubr.f32.vlgmr.msra.gmra.mxu0 %v18782_v46  ;;  %9878 = vmatmul.mubr.f32.vlgmr.msra.gmra.mxu1 %v18772_v10 }
 0x461   : > { %9609 = vmatpush1.msra.mxu0 %v9375_v32  ;;  %9642 = vmatprep.mubr.f32.mxu0 %v13221_v24 }
 0x462   : > { %9755 = vmatprep.subr.mxu0 %v18920_v17  ;;  %9994 = vmatpush1.msra.mxu1 %v18936_v40 }
 0x463   : > { %10027 = vmatprep.mubr.f32.mxu1 %v13221_v24  ;;  %10146 = vmatprep.subr.mxu1 %v18920_v17 }
 0x464   : > { %9644 = vmatmul.mubr.f32.vlgmr.msra.gmra.mxu0 %v18772_v10  ;;  %10031 = vmatmul.mubr.f32.vlgmr.msra.gmra.mxu1 %v18791_v30 }
 0x465   : > { %9757 = vmatpush1.msra.mxu0 %v18936_v40  ;;  %9790 = vmatprep.mubr.f32.mxu0 %v13221_v24 }
 0x466   : > { %9916 = vmatprep.subr.mxu0 %v18941_v53  ;;  %10148 = vmatpush1.msra.mxu1 %v18936_v40 }
 0x467   : > { %10181 = vmatprep.mubr.f32.mxu1 %v13221_v24  ;;  %10302 = vmatprep.subr.mxu1 %v10301_v57 }
 0x468   : > { %9796 = vmatmul.mubr.f32.vlgmr.msra.gmra.mxu0 %v18807_v9  ;;  %10183 = vmatmul.mubr.f32.vlgmr.msra.gmra.mxu1 %v18772_v10 }
 0x469   : > { %9919 = vmatpush1.msra.mxu0 %v18950_v20  ;;  %9952 = vmatprep.mubr.f32.mxu0 %v13221_v24 }
 0x46a   : > { %10070 = vmatprep.subr.mxu0 %v9834_v59  ;;  %10308 = vmatpush1.msra.mxu1 %v10307_v48 }
 0x46b   : > { %10341 = vmatprep.mubr.f32.mxu1 %v13221_v24  ;;  %10457 = vmatprep.subr.mxu1 %v18967_v60 }
 0x46c   : > { %9955 = vmatmul.mubr.f32.vlgmr.msra.gmra.mxu0 %v18782_v46  ;;  %10343 = vmatmul.mubr.f32.vlgmr.msra.gmra.mxu1 %v18772_v10 }
 0x46d   : > { %10074 = vmatpush1.msra.mxu0 %v9840_v56  ;;  %10107 = vmatprep.mubr.f32.mxu0 %v13221_v24 }
 0x46e   : > { %10220 = vmatprep.subr.mxu0 %v18967_v60  ;;  %10459 = vmatpush1.msra.mxu1 %v18983_v62 }
 0x46f   : > { %10492 = vmatprep.mubr.f32.mxu1 %v13221_v24  ;;  %10611 = vmatprep.subr.mxu1 %v18967_v60 }
 0x470   : > { %10109 = vmatmul.mubr.f32.vlgmr.msra.gmra.mxu0 %v18772_v10  ;;  %10496 = vmatmul.mubr.f32.vlgmr.msra.gmra.mxu1 %v18791_v30 }
 0x471   : > { %10222 = vmatpush1.msra.mxu0 %v18983_v62  ;;  %10255 = vmatprep.mubr.f32.mxu0 %v13221_v24 }
 0x472   : > { %10381 = vmatprep.subr.mxu0 %v18988_v2  ;;  %10613 = vmatpush1.msra.mxu1 %v18983_v62 }
 0x473   : > { %10646 = vmatprep.mubr.f32.mxu1 %v13221_v24  ;;  %10767 = vmatprep.subr.mxu1 %v10766_v37 }
 0x474   : > { %10261 = vmatmul.mubr.f32.vlgmr.msra.gmra.mxu0 %v18807_v9  ;;  %10648 = vmatmul.mubr.f32.vlgmr.msra.gmra.mxu1 %v18772_v10 }
 0x475   : > { %10384 = vmatpush1.msra.mxu0 %v18997_v15  ;;  %10417 = vmatprep.mubr.f32.mxu0 %v13221_v24 }
 0x476   : > { %10535 = vmatprep.subr.mxu0 %v10299_v42  ;;  %10773 = vmatpush1.msra.mxu1 %v10772_v47 }
 0x477   : > { %10806 = vmatprep.mubr.f32.mxu1 %v13221_v24  ;;  %10922 = vmatprep.subr.mxu1 %v19014_v43 }
 0x478   : > { %10420 = vmatmul.mubr.f32.vlgmr.msra.gmra.mxu0 %v18782_v46  ;;  %10808 = vmatmul.mubr.f32.vlgmr.msra.gmra.mxu1 %v18772_v10 }
 0x479   : > { %10539 = vmatpush1.msra.mxu0 %v10305_v14  ;;  %10572 = vmatprep.mubr.f32.mxu0 %v13221_v24 }
 0x47a   : > { %10685 = vmatprep.subr.mxu0 %v19014_v43  ;;  %10924 = vmatpush1.msra.mxu1 %v19027_v28 }
 0x47b   : > { %10957 = vmatprep.mubr.f32.mxu1 %v13221_v24  ;;  %11076 = vmatprep.subr.mxu1 %v19014_v43 }
 0x47c   : > { %10574 = vmatmul.mubr.f32.vlgmr.msra.gmra.mxu0 %v18772_v10  ;;  %10961 = vmatmul.mubr.f32.vlgmr.msra.gmra.mxu1 %v18791_v30 }
 0x47d   : > { %10687 = vmatpush1.msra.mxu0 %v19027_v28  ;;  %10720 = vmatprep.mubr.f32.mxu0 %v13221_v24 }
 0x47e   : > { %10846 = vmatprep.subr.mxu0 %v19032_v25  ;;  %11078 = vmatpush1.msra.mxu1 %v19027_v28 }
 0x47f   : > { %11111 = vmatprep.mubr.f32.mxu1 %v13221_v24 }
 0x480   : > { %10726 = vmatmul.mubr.f32.vlgmr.msra.gmra.mxu0 %v18807_v9  ;;  %11113 = vmatmul.mubr.f32.vlgmr.msra.gmra.mxu1 %v18772_v10 }
 0x481   : > { %10849 = vmatpush1.msra.mxu0 %v10769_v63  ;;  %10882 = vmatprep.mubr.f32.mxu0 %v13221_v24 }
 0x482   : > { %11000 = vmatprep.subr.mxu0 %v10764_v41 }
 0x484   : > { %10885 = vmatmul.mubr.f32.vlgmr.msra.gmra.mxu0 %v18782_v46 }
 0x485   : > { %11004 = vmatpush1.msra.mxu0 %v10770_v29  ;;  %11037 = vmatprep.mubr.f32.mxu0 %v13221_v24 }
 0x488   : > { %11039 = vmatmul.mubr.f32.vlgmr.msra.gmra.mxu0 %v18772_v10 }
 0x4e4   : > { %v7554_v30 = vpop.f32.mrf.mxu1 }
 0x4e6   : > { %v7556_v26 = vpop.f32.mrf.mxu1 }
 0x4e8   : > { %v7707_v8 = vpop.f32.mrf.mxu1 }
 0x4ea   : > { %v7709_v3 = vpop.f32.mrf.mxu1 }
 0x4ec   : > { %v7472_v49 = vpop.f32.mrf.mxu0  ;;  %v7859_v6 = vpop.f32.mrf.mxu1 }
 0x4ed   : > { %v7555_v50 = vadd.f32 %v7554_v30, %v7472_v49 }
 0x4ee   : > { %v7474_v9 = vpop.f32.mrf.mxu0  ;;  %v7861_v38 = vpop.f32.mrf.mxu1 }
 0x4ef   : > { %v7557_v36 = vadd.f32 %v7556_v26, %v7474_v9 }
 0x4f0   : > { %v7631_v58 = vpop.f32.mrf.mxu0  ;;  %v8019_v0 = vpop.f32.mrf.mxu1 }
 0x4f1   : > { %v7632_v4 = vadd.f32 %v7631_v58, %v7555_v50 }
 0x4f2   : > { %v7633_v19 = vpop.f32.mrf.mxu0  ;;  %v8021_v46 = vpop.f32.mrf.mxu1 }
 0x4f3   : > { %v7634_v35 = vadd.f32 %v7633_v19, %v7557_v36  ;;  %v7708_v33 = vadd.f32 %v7707_v8, %v7632_v4 }
 0x4f4   : > { %v7785_v24 = vpop.f32.mrf.mxu0  ;;  %v8172_v23 = vpop.f32.mrf.mxu1 }
 0x4f5   : > { %v7786_v10 = vadd.f32 %v7785_v24, %v7708_v33  ;;  %v7710_v32 = vadd.f32 %v7709_v3, %v7634_v35 }
 0x4f6   : > { %v7787_v55 = vpop.f32.mrf.mxu0  ;;  %v8174_v17 = vpop.f32.mrf.mxu1 }
 0x4f7   : > { %v7860_v16 = vadd.f32 %v7859_v6, %v7786_v10  ;;  %v7788_v39 = vadd.f32 %v7787_v55, %v7710_v32 }
 0x4f8   : > { %v7937_v45 = vpop.f32.mrf.mxu0  ;;  %v8324_v40 = vpop.f32.mrf.mxu1 }
 0x4f9   : > { %v11328_v18 = vmul.f32 -1.442695, %v7860_v16  ;;  %v7862_v53 = vadd.f32 %v7861_v38, %v7788_v39  ;;  %v8020_v59 = vadd.f32 %v8019_v0, %v7937_v45 }
 0x4fa   : > { %v7939_v1 = vpop.f32.mrf.mxu0  ;;  %v8326_v11 = vpop.f32.mrf.mxu1 }
 0x4fb   : > { %13079 = vpow2.f32 %v11328_v18  ;;  %v11329_v20 = vmul.f32 -1.442695, %v7862_v53  ;;  %v8022_v52 = vadd.f32 %v8021_v46, %v7939_v1 }
 0x4fc   : > { %v8096_v21 = vpop.f32.mrf.mxu0  ;;  %v8484_v56 = vpop.f32.mrf.mxu1 }
 0x4fd   : > { %13081 = vpow2.f32 %v11329_v20  ;;  %v8097_v60 = vadd.f32 %v8096_v21, %v8020_v59 }
 0x4fe   : > { %v8098_v12 = vpop.f32.mrf.mxu0  ;;  %v8486_v61 = vpop.f32.mrf.mxu1 }
 0x4ff   : > { %v8099_v7 = vadd.f32 %v8098_v12, %v8022_v52  ;;  %v8173_v62 = vadd.f32 %v8172_v23, %v8097_v60  ;;  %v13143_v60 = vld [vmem:[%s13676_s9] sm:$0xff] }
 0x500   : > { %v8250_v34 = vpop.f32.mrf.mxu0  ;;  %v8637_v2 = vpop.f32.mrf.mxu1 }
 0x501   : > { %v8251_v31 = vadd.f32 %v8250_v34, %v8173_v62  ;;  %v8175_v5 = vadd.f32 %v8174_v17, %v8099_v7 }
 0x502   : > { %v8252_v15 = vpop.f32.mrf.mxu0  ;;  %v8639_v42 = vpop.f32.mrf.mxu1 }
 0x503   : > { %v8325_v22 = vadd.f32 %v8324_v40, %v8251_v31  ;;  %v8253_v14 = vadd.f32 %v8252_v15, %v8175_v5  ;;  %v13144_v31 = vld [vmem:[%s13676_s9 + $0x8] sm:$0xff] }
 0x504   : > { %v8402_v27 = vpop.f32.mrf.mxu0  ;;  %v8789_v43 = vpop.f32.mrf.mxu1 }
 0x505   : > { %v11330_v54 = vmul.f32 -1.442695, %v8325_v22  ;;  %v8327_v44 = vadd.f32 %v8326_v11, %v8253_v14  ;;  %v8485_v48 = vadd.f32 %v8484_v56, %v8402_v27 }
 0x506   : > { %v8404_v28 = vpop.f32.mrf.mxu0  ;;  %v8791_v57 = vpop.f32.mrf.mxu1 }
 0x507   : > { %13083 = vpow2.f32 %v11330_v54  ;;  %v11331_v25 = vmul.f32 -1.442695, %v8327_v44  ;;  %v8487_v51 = vadd.f32 %v8486_v61, %v8404_v28 }
 0x508   : > { %v13080_v63 = vpop.eup %13079  ;;  %v8561_v41 = vpop.f32.mrf.mxu0 }
 0x509   : > { %v8949_v29 = vpop.f32.mrf.mxu1  ;;  %v11167_v13 = vadd.f32 1.0, %v13080_v63  ;;  %13085 = vpow2.f32 %v11331_v25  ;;  %v8562_v37 = vadd.f32 %v8561_v41, %v8485_v48 }
 0x50a   : > { %v13082_v47 = vpop.eup %13081  ;;  %v8563_v30 = vpop.f32.mrf.mxu0 }
 0x50b   : > { %v8951_v26 = vpop.f32.mrf.mxu1  ;;  %13087 = vrcp.f32 %v11167_v13  ;;  %v11168_v8 = vadd.f32 1.0, %v13082_v47  ;;  %v8564_v3 = vadd.f32 %v8563_v30, %v8487_v51  ;;  %v8638_v49 = vadd.f32 %v8637_v2, %v8562_v37 }
 0x50c   : > { %v8715_v6 = vpop.f32.mrf.mxu0 }
 0x50d   : > { %v9102_v9 = vpop.f32.mrf.mxu1  ;;  %13089 = vrcp.f32 %v11168_v8  ;;  %v8716_v38 = vadd.f32 %v8715_v6, %v8638_v49  ;;  %v8640_v50 = vadd.f32 %v8639_v42, %v8564_v3 }
 0x50e   : > { %v8717_v58 = vpop.f32.mrf.mxu0 }
 0x50f   : > { %v9104_v0 = vpop.f32.mrf.mxu1  ;;  %v8790_v36 = vadd.f32 %v8789_v43, %v8716_v38  ;;  %v8718_v4 = vadd.f32 %v8717_v58, %v8640_v50 }
 0x510   : > { %v8867_v19 = vpop.f32.mrf.mxu0 }
 0x511   : > { %v9254_v46 = vpop.f32.mrf.mxu1  ;;  %v11332_v35 = vmul.f32 -1.442695, %v8790_v36  ;;  %v8792_v33 = vadd.f32 %v8791_v57, %v8718_v4  ;;  %v8950_v32 = vadd.f32 %v8949_v29, %v8867_v19  ;;  %v13146_v19 = vld [vmem:[%s13676_s9 + $0x18] sm:$0xff] }
 0x512   : > { %v8869_v24 = vpop.f32.mrf.mxu0 }
 0x513   : > { %v9256_v23 = vpop.f32.mrf.mxu1  ;;  %13091 = vpow2.f32 %v11332_v35  ;;  %v11333_v10 = vmul.f32 -1.442695, %v8792_v33  ;;  %v8952_v45 = vadd.f32 %v8951_v26, %v8869_v24 }
 0x514   : > { %v13084_v55 = vpop.eup %13083  ;;  %v9026_v17 = vpop.f32.mrf.mxu0 }
 0x515   : > { %v9414_v16 = vpop.f32.mrf.mxu1  ;;  %v11169_v39 = vadd.f32 1.0, %v13084_v55  ;;  %13093 = vpow2.f32 %v11333_v10  ;;  %v9027_v40 = vadd.f32 %v9026_v17, %v8950_v32 }
 0x516   : > { %v13086_v18 = vpop.eup %13085  ;;  %v9028_v53 = vpop.f32.mrf.mxu0 }
 0x517   : > { %v9416_v1 = vpop.f32.mrf.mxu1  ;;  %13095 = vrcp.f32 %v11169_v39  ;;  %v11170_v11 = vadd.f32 1.0, %v13086_v18  ;;  %v9029_v20 = vadd.f32 %v9028_v53, %v8952_v45  ;;  %v9103_v59 = vadd.f32 %v9102_v9, %v9027_v40  ;;  %v13145_v9 = vld [vmem:[%s13676_s9 + $0x10] sm:$0xff] }
 0x518   : > { %v13088_v21 = vpop.eup %13087  ;;  %v9180_v56 = vpop.f32.mrf.mxu0 }
 0x519   : > { %v9567_v52 = vpop.f32.mrf.mxu1  ;;  %v11215_v12 = vmul.f32 %v13143_v60, %v13088_v21  ;;  %13097 = vrcp.f32 %v11170_v11  ;;  %v9181_v61 = vadd.f32 %v9180_v56, %v9103_v59  ;;  %v9105_v7 = vadd.f32 %v9104_v0, %v9029_v20 }
 0x51a   : > { %v13090_v62 = vpop.eup %13089  ;;  %v9182_v34 = vpop.f32.mrf.mxu0 }
 0x51b   : > { %v9569_v2 = vpop.f32.mrf.mxu1  ;;  %11231 = vst [vmem:[%s19102_s28] sm:$0xff] %v11215_v12  ;;  %v11216_v5 = vmul.f32 %v13144_v31, %v13090_v62  ;;  %v9255_v15 = vadd.f32 %v9254_v46, %v9181_v61  ;;  %v9183_v42 = vadd.f32 %v9182_v34, %v9105_v7  ;;  %v13147_v62 = vld [vmem:[%s13676_s9 + $0x20] sm:$0xff] }
 0x51c   : > { %v9332_v22 = vpop.f32.mrf.mxu0 }
 0x51d   : > { %v9719_v14 = vpop.f32.mrf.mxu1  ;;  %11232 = vst [vmem:[%s19102_s28 + $0x8] sm:$0xff] %v11216_v5  ;;  %v11334_v27 = vmul.f32 -1.442695, %v9255_v15  ;;  %v9257_v43 = vadd.f32 %v9256_v23, %v9183_v42  ;;  %v9415_v57 = vadd.f32 %v9414_v16, %v9332_v22  ;;  %v13148_v22 = vld [vmem:[%s13676_s9 + $0x28] sm:$0xff] }
 0x51e   : > { %v9334_v54 = vpop.f32.mrf.mxu0 }
 0x51f   : > { %v9721_v44 = vpop.f32.mrf.mxu1  ;;  %13099 = vpow2.f32 %v11334_v27  ;;  %v11335_v28 = vmul.f32 -1.442695, %v9257_v43  ;;  %v9417_v29 = vadd.f32 %v9416_v1, %v9334_v54 }
 0x520   : > { %v13092_v25 = vpop.eup %13091  ;;  %v9491_v48 = vpop.f32.mrf.mxu0 }
 0x521   : > { %v9879_v63 = vpop.f32.mrf.mxu1  ;;  %v11171_v41 = vadd.f32 1.0, %v13092_v25  ;;  %13101 = vpow2.f32 %v11335_v28  ;;  %v9492_v13 = vadd.f32 %v9491_v48, %v9415_v57 }
 0x522   : > { %v13094_v51 = vpop.eup %13093  ;;  %v9493_v37 = vpop.f32.mrf.mxu0 }
 0x523   : > { %v9881_v47 = vpop.f32.mrf.mxu1  ;;  %13103 = vrcp.f32 %v11171_v41  ;;  %v11172_v30 = vadd.f32 1.0, %v13094_v51  ;;  %v9494_v26 = vadd.f32 %v9493_v37, %v9417_v29  ;;  %v9568_v8 = vadd.f32 %v9567_v52, %v9492_v13 }
 0x524   : > { %v13096_v3 = vpop.eup %13095  ;;  %v9645_v49 = vpop.f32.mrf.mxu0 }
 0x525   : > { %v10032_v6 = vpop.f32.mrf.mxu1  ;;  %v11217_v38 = vmul.f32 %v13145_v9, %v13096_v3  ;;  %13105 = vrcp.f32 %v11172_v30  ;;  %v9646_v50 = vadd.f32 %v9645_v49, %v9568_v8  ;;  %v9570_v58 = vadd.f32 %v9569_v2, %v9494_v26 }
 0x526   : > { %v13098_v0 = vpop.eup %13097  ;;  %v9647_v36 = vpop.f32.mrf.mxu0 }
 0x527   : > { %v10034_v4 = vpop.f32.mrf.mxu1  ;;  %11233 = vst [vmem:[%s19102_s28 + $0x10] sm:$0xff] %v11217_v38  ;;  %v11218_v46 = vmul.f32 %v13146_v19, %v13098_v0  ;;  %v9720_v35 = vadd.f32 %v9719_v14, %v9646_v50  ;;  %v9648_v33 = vadd.f32 %v9647_v36, %v9570_v58  ;;  %v13149_v58 = vld [vmem:[%s13676_s9 + $0x30] sm:$0xff] }
 0x528   : > { %v9797_v24 = vpop.f32.mrf.mxu0 }
 0x529   : > { %v10184_v23 = vpop.f32.mrf.mxu1  ;;  %11234 = vst [vmem:[%s19102_s28 + $0x18] sm:$0xff] %v11218_v46  ;;  %v11336_v10 = vmul.f32 -1.442695, %v9720_v35  ;;  %v9722_v32 = vadd.f32 %v9721_v44, %v9648_v33  ;;  %v9880_v39 = vadd.f32 %v9879_v63, %v9797_v24  ;;  %v13150_v35 = vld [vmem:[%s13676_s9 + $0x38] sm:$0xff] }
 0x52a   : > { %v9799_v55 = vpop.f32.mrf.mxu0 }
 0x52b   : > { %v10186_v17 = vpop.f32.mrf.mxu1  ;;  %13107 = vpow2.f32 %v11336_v10  ;;  %v11337_v16 = vmul.f32 -1.442695, %v9722_v32  ;;  %v9882_v1 = vadd.f32 %v9881_v47, %v9799_v55 }
 0x52c   : > { %v13100_v45 = vpop.eup %13099  ;;  %v9956_v40 = vpop.f32.mrf.mxu0 }
 0x52d   : > { %v10344_v18 = vpop.f32.mrf.mxu1  ;;  %v11173_v53 = vadd.f32 1.0, %v13100_v45  ;;  %13109 = vpow2.f32 %v11337_v16  ;;  %v9957_v11 = vadd.f32 %v9956_v40, %v9880_v39 }
 0x52e   : > { %v13102_v20 = vpop.eup %13101  ;;  %v9958_v59 = vpop.f32.mrf.mxu0 }
 0x52f   : > { %v10346_v21 = vpop.f32.mrf.mxu1  ;;  %13111 = vrcp.f32 %v11173_v53  ;;  %v11174_v56 = vadd.f32 1.0, %v13102_v20  ;;  %v9959_v52 = vadd.f32 %v9958_v59, %v9882_v1  ;;  %v10033_v60 = vadd.f32 %v10032_v6, %v9957_v11 }
 0x530   : > { %v13104_v12 = vpop.eup %13103  ;;  %v10110_v61 = vpop.f32.mrf.mxu0 }
 0x531   : > { %v10497_v7 = vpop.f32.mrf.mxu1  ;;  %v11219_v34 = vmul.f32 %v13147_v62, %v13104_v12  ;;  %13113 = vrcp.f32 %v11174_v56  ;;  %v10111_v2 = vadd.f32 %v10110_v61, %v10033_v60  ;;  %v10035_v31 = vadd.f32 %v10034_v4, %v9959_v52  ;;  %v13151_v62 = vld [vmem:[%s13676_s9 + $0x40] sm:$0xff] }
 0x532   : > { %v13106_v5 = vpop.eup %13105  ;;  %v10112_v15 = vpop.f32.mrf.mxu0 }
 0x533   : > { %v10499_v42 = vpop.f32.mrf.mxu1  ;;  %11235 = vst [vmem:[%s19102_s28 + $0x20] sm:$0xff] %v11219_v34  ;;  %v11220_v14 = vmul.f32 %v13148_v22, %v13106_v5  ;;  %v10185_v27 = vadd.f32 %v10184_v23, %v10111_v2  ;;  %v10113_v43 = vadd.f32 %v10112_v15, %v10035_v31 }
 0x534   : > { %v10262_v54 = vpop.f32.mrf.mxu0 }
 0x535   : > { %v10649_v44 = vpop.f32.mrf.mxu1  ;;  %11236 = vst [vmem:[%s19102_s28 + $0x28] sm:$0xff] %v11220_v14  ;;  %v11338_v28 = vmul.f32 -1.442695, %v10185_v27  ;;  %v10187_v57 = vadd.f32 %v10186_v17, %v10113_v43  ;;  %v10345_v41 = vadd.f32 %v10344_v18, %v10262_v54 }
 0x536   : > { %v10264_v25 = vpop.f32.mrf.mxu0 }
 0x537   : > { %v10651_v48 = vpop.f32.mrf.mxu1  ;;  %13115 = vpow2.f32 %v11338_v28  ;;  %v11339_v63 = vmul.f32 -1.442695, %v10187_v57  ;;  %v10347_v47 = vadd.f32 %v10346_v21, %v10264_v25 }
 0x538   : > { %v13108_v29 = vpop.eup %13107  ;;  %v10421_v13 = vpop.f32.mrf.mxu0 }
 0x539   : > { %v10809_v51 = vpop.f32.mrf.mxu1  ;;  %v11175_v37 = vadd.f32 1.0, %v13108_v29  ;;  %13117 = vpow2.f32 %v11339_v63  ;;  %v10422_v30 = vadd.f32 %v10421_v13, %v10345_v41  ;;  %v13153_v29 = vld [vmem:[%s13676_s9 + $0x50] sm:$0xff] }
 0x53a   : > { %v13110_v26 = vpop.eup %13109  ;;  %v10423_v8 = vpop.f32.mrf.mxu0 }
 0x53b   : > { %13119 = vrcp.f32 %v11175_v37  ;;  %v11176_v3 = vadd.f32 1.0, %v13110_v26  ;;  %v10424_v49 = vadd.f32 %v10423_v8, %v10347_v47  ;;  %v10498_v6 = vadd.f32 %v10497_v7, %v10422_v30  ;;  %v10811_v38 = vpop.f32.mrf.mxu1  ;;  %v13154_v37 = vld [vmem:[%s13676_s9 + $0x58] sm:$0xff] }
 0x53c   : > { %v13112_v9 = vpop.eup %13111  ;;  %v10575_v50 = vpop.f32.mrf.mxu0 }
 0x53d   : > { %v11221_v0 = vmul.f32 %v13149_v58, %v13112_v9  ;;  %13121 = vrcp.f32 %v11176_v3  ;;  %v10576_v36 = vadd.f32 %v10575_v50, %v10498_v6  ;;  %v10500_v4 = vadd.f32 %v10499_v42, %v10424_v49  ;;  %v10962_v10 = vpop.f32.mrf.mxu1  ;;  %v13152_v42 = vld [vmem:[%s13676_s9 + $0x48] sm:$0xff]  ;;  %v13155_v6 = vld [vmem:[%s13676_s9 + $0x60] sm:$0xff] }
 0x53e   : > { %v13114_v19 = vpop.eup %13113  ;;  %v10577_v46 = vpop.f32.mrf.mxu0  ;;  %v13156_v50 = vld [vmem:[%s13676_s9 + $0x68] sm:$0xff] }
 0x53f   : > { %11237 = vst [vmem:[%s19102_s28 + $0x30] sm:$0xff] %v11221_v0  ;;  %v11222_v33 = vmul.f32 %v13150_v35, %v13114_v19  ;;  %v10650_v24 = vadd.f32 %v10649_v44, %v10576_v36  ;;  %v10578_v23 = vadd.f32 %v10577_v46, %v10500_v4  ;;  %v10964_v18 = vpop.f32.mrf.mxu1  ;;  %v13157_v36 = vld [vmem:[%s13676_s9 + $0x70] sm:$0xff]  ;;  %v13158_v46 = vld [vmem:[%s13676_s9 + $0x78] sm:$0xff] }
 0x540   : > { %v10727_v32 = vpop.f32.mrf.mxu0 }
 0x541   : > { %11238 = vst [vmem:[%s19102_s28 + $0x38] sm:$0xff] %v11222_v33  ;;  %v11340_v55 = vmul.f32 -1.442695, %v10650_v24  ;;  %v10652_v17 = vadd.f32 %v10651_v48, %v10578_v23  ;;  %v10810_v45 = vadd.f32 %v10809_v51, %v10727_v32  ;;  %v11114_v61 = vpop.f32.mrf.mxu1 }
 0x542   : > { %v10729_v16 = vpop.f32.mrf.mxu0 }
 0x543   : > { %13123 = vpow2.f32 %v11340_v55  ;;  %v11341_v39 = vmul.f32 -1.442695, %v10652_v17  ;;  %v10812_v11 = vadd.f32 %v10811_v38, %v10729_v16  ;;  %v11116_v43 = vpop.f32.mrf.mxu1 }
 0x544   : > { %v13116_v40 = vpop.eup %13115  ;;  %v10886_v53 = vpop.f32.mrf.mxu0 }
 0x545   : > { %v11177_v1 = vadd.f32 1.0, %v13116_v40  ;;  %13125 = vpow2.f32 %v11341_v39  ;;  %v10887_v20 = vadd.f32 %v10886_v53, %v10810_v45 }
 0x546   : > { %v13118_v59 = vpop.eup %13117  ;;  %v10888_v21 = vpop.f32.mrf.mxu0 }
 0x547   : > { %13127 = vrcp.f32 %v11177_v1  ;;  %v11178_v56 = vadd.f32 1.0, %v13118_v59  ;;  %v10889_v52 = vadd.f32 %v10888_v21, %v10812_v11  ;;  %v10963_v60 = vadd.f32 %v10962_v10, %v10887_v20 }
 0x548   : > { %v13120_v12 = vpop.eup %13119  ;;  %v11040_v7 = vpop.f32.mrf.mxu0 }
 0x549   : > { %v11223_v34 = vmul.f32 %v13151_v62, %v13120_v12  ;;  %13129 = vrcp.f32 %v11178_v56  ;;  %v11041_v2 = vadd.f32 %v11040_v7, %v10963_v60  ;;  %v10965_v31 = vadd.f32 %v10964_v18, %v10889_v52 }
 0x54a   : > { %v13122_v5 = vpop.eup %13121  ;;  %v11042_v15 = vpop.f32.mrf.mxu0 }
 0x54b   : > { %11239 = vst [vmem:[%s19102_s28 + $0x40] sm:$0xff] %v11223_v34  ;;  %v11224_v22 = vmul.f32 %v13152_v42, %v13122_v5  ;;  %v11115_v14 = vadd.f32 %v11114_v61, %v11041_v2  ;;  %v11043_v27 = vadd.f32 %v11042_v15, %v10965_v31 }
 0x54d   : > { %11240 = vst [vmem:[%s19102_s28 + $0x48] sm:$0xff] %v11224_v22  ;;  %v11342_v54 = vmul.f32 -1.442695, %v11115_v14  ;;  %v11117_v44 = vadd.f32 %v11116_v43, %v11043_v27 }
 0x54f   : > { %13131 = vpow2.f32 %v11342_v54  ;;  %v11343_v28 = vmul.f32 -1.442695, %v11117_v44 }
 0x550   : > { %v13124_v57 = vpop.eup %13123 }
 0x551   : > { %v11179_v25 = vadd.f32 1.0, %v13124_v57  ;;  %13133 = vpow2.f32 %v11343_v28 }
 0x552   : > { %v13126_v48 = vpop.eup %13125 }
 0x553   : > { %13135 = vrcp.f32 %v11179_v25  ;;  %v11180_v63 = vadd.f32 1.0, %v13126_v48 }
 0x554   : > { %v13128_v41 = vpop.eup %13127 }
 0x555   : > { %v11225_v13 = vmul.f32 %v13153_v29, %v13128_v41  ;;  %13137 = vrcp.f32 %v11180_v63 }
 0x556   : > { %v13130_v51 = vpop.eup %13129 }
 0x557   : > { %11241 = vst [vmem:[%s19102_s28 + $0x50] sm:$0xff] %v11225_v13  ;;  %v11226_v47 = vmul.f32 %v13154_v37, %v13130_v51 }
 0x559   : > { %11242 = vst [vmem:[%s19102_s28 + $0x58] sm:$0xff] %v11226_v47 }
 0x55c   : > { %v13132_v30 = vpop.eup %13131 }
 0x55d   : > { %v11181_v26 = vadd.f32 1.0, %v13132_v30 }
 0x55e   : > { %v13134_v8 = vpop.eup %13133 }
 0x55f   : > { %13139 = vrcp.f32 %v11181_v26  ;;  %v11182_v3 = vadd.f32 1.0, %v13134_v8 }
 0x560   : > { %v13136_v49 = vpop.eup %13135 }
 0x561   : > { %v11227_v9 = vmul.f32 %v13155_v6, %v13136_v49  ;;  %13141 = vrcp.f32 %v11182_v3 }
 0x562   : > { %v13138_v38 = vpop.eup %13137 }
 0x563   : > { %11243 = vst [vmem:[%s19102_s28 + $0x60] sm:$0xff] %v11227_v9  ;;  %v11228_v58 = vmul.f32 %v13156_v50, %v13138_v38 }
 0x565   : > { %11244 = vst [vmem:[%s19102_s28 + $0x68] sm:$0xff] %v11228_v58 }
 0x56c   : > { %v13140_v0 = vpop.eup %13139 }
 0x56d   : > { %v11229_v4 = vmul.f32 %v13157_v36, %v13140_v0 }
 0x56e   : > { %v13142_v19 = vpop.eup %13141 }
 0x56f   : > { %11245 = vst [vmem:[%s19102_s28 + $0x70] sm:$0xff] %v11229_v4  ;;  %v11230_v35 = vmul.f32 %v13158_v46, %v13142_v19 }
 0x571   : > { %11246 = vst [vmem:[%s19102_s28 + $0x78] sm:$0xff] %v11230_v35 }
 0x572   : > { %13172 = shalt.err (!%p13169_p3)
}
 0x573   : > { %s13173_s9 = scalar_lea.hbm %s11260_s6, 2048  ;;  %s13177_s20 = scalar_lea.hbm %s19174_s3, 4096 }
 0x574   : > { %p13174_p4 = scmp.ne.s32.totalorder %s11260_s6, %s13173_s9  ;;  %p13178_p9 = scmp.lt.s32.totalorder %s11260_s6, %s19174_s3 }
 0x575   : > { %p13179_p10 = scmp.lt.s32.totalorder %s13177_s20, %s13173_s9 }
 0x576   : > { %p13175_p7 = pnand %p13174_p4, %p13281_p5 }
 0x577   : > { %p13180_p11 = por %p13179_p10, %p13178_p9 }
 0x578   : > { %p13176_p8 = pneg %p13175_p7 }
 0x57a   : > { %p13181_p12 = pnand %p13180_p11, %p13176_p8 }
 0x57c   : > { %13184 = shalt.err (!%p13181_p12)
}
 0x57d   : > { %13031 = dma.vmem_to_hbm [thread:$0]  (%p13281_p5), %s11263_s30, 2048, %s11260_s6, %s11248_s7  }
 0x57e PF: > { %p13037_p13 = scmp.ge.s32.totalorder %s13219_s15, 2  ;;  %s11274_s26 = sand.u32 1, %s13207_s12  }
 0x57f   : > { %s11275_s27 = scalar_lea.sflag [#allocation3], %s11274_s26 }
 0x580   : > { %p13034_p0 = pnand %p13037_p13, %p13285_p6 }
 0x582   : > { %p13035_p1 = pneg %p13034_p0 }
 0x584   : > { %13202 = dma.done.wait (%p13035_p1), %s11275_s27, 2048  }
 0x585   : > { %13204 = vsyncadd (%p13035_p1), %s11275_s27, 4294965248  ;;  %p13_p2 = scmp.ge.s32.totalorder %s13268_s18, 4   ;;  %s20621_s12 = smov %s13211_s13 }
 0x586   : > { %s20622_s13 = smov %s13215_s14  ;;  %s20623_s14 = smov %s13279_s21 }
 0x587   : > { %s20624_s15 = smov %s13268_s18  ;;  %15 = sbr.rel (!%p13_p2) target bundleno = 3 (0x3), region = 67 }
 0x58c   :  { %11280 = vsyncpa [#allocation3], 1 }
 0x58d   :  { %11282 = vsyncpa [#allocation3 + $0x1], 1 }

</bundles_post_ra>
